<compile_context>
chip_gen: v7x
topology: tpu7x:2x2x1
jax: 0.10.0
libtpu: 0.0.40
codegen_flags: <defaults>
</compile_context>

<pallas_src>
import numpy as np
import jax
import jax.numpy as jnp
from jax.experimental import pallas as pl
from jax.experimental.pallas import tpu as pltpu


# --------------------------- geometry planning ------------------------------

def _plan(h, w):
    """Row geometry for the fused kernel (flat row index = y * W + x)."""
    G = w
    e1 = h - 6        # conv1 (7x7) output extent        (24 -> 18)
    e2 = e1 - 2       # conv2 (3x3) output extent        (18 -> 16)
    e3 = e2 // 2      # pool1 extent                     (16 -> 8)
    e4 = e3 - 2       # conv3 (3x3) output extent        (8 -> 6)
    e5 = e4 // 2      # pool2 extent                     (6 -> 3)
    assert h == w and e5 >= 1 and e2 % 2 == 0 and e4 % 2 == 0, "unsupported size"

    def last(e, d):   # last flat row holding a valid value at dilation d
        return d * ((e - 1) * G + (e - 1))

    # Rows each stage computes so that every *valid* downstream read is
    # covered (extra rows hold finite garbage that valid positions never read).
    CM2 = last(e5, 4) + 1          # pool2 slab-max rows used by the avg mask
    CA3 = CM2 + (2 * G + 2)        # conv3 rows read by the pool2 slab taps
    CM1 = CA3 + 2 * (2 * G + 2)    # pool1 rows read by conv3 taps
    CA2 = CM1 + (G + 1)            # conv2 rows read by pool1 slab taps
    CA1 = CA2 + (2 * G + 2)        # conv1 rows read by conv2 taps
    CA1P = ((CA1 + 7) // 8) * 8    # (8,·)-tidy extent for the input block
    assert CA1P <= h * w
    return dict(G=G, e5=e5, CA1P=CA1P, CA2=CA2, CM1=CM1, CA3=CA3, CM2=CM2)


# ------------------------------ fused forward --------------------------------

def fused_forward(x_nchw, params):
    n, cin, h, w = x_nchw.shape
    nc = params["wf"].shape[1]
    assert cin == 3 and nc <= 128
    p = _plan(h, w)
    G, E5 = p["G"], p["e5"]
    CA1P, CA2, CM1, CA3, CM2 = p["CA1P"], p["CA2"], p["CM1"], p["CA3"], p["CM2"]

    # ---- host-side conv1 im2col on the flat row grid (review item 4) --------
    # xe[n, y*W + x, (dy*7+dx)*3 + c] = x[n, y+dy, x+dx, c]   (0 when OOB)
    x = jnp.transpose(x_nchw, (0, 2, 3, 1))                     # NHWC
    taps = []
    for dy in range(7):
        for dx in range(7):
            t = x[:, dy:, dx:, :]
            t = jnp.pad(t, ((0, 0), (0, dy), (0, dx), (0, 0)))
            taps.append(t)
    xe = jnp.concatenate(taps, axis=-1)                         # (N,H,W,147)
    xe = jnp.pad(xe, ((0, 0), (0, 0), (0, 0), (0, 256 - 147)))  # -> 256 lanes
    xe = xe.reshape(n, h * w, 256)[:, :CA1P, :].astype(jnp.bfloat16)

    # ---- weight prep: flatten, zero-pad channels to 128 lanes, bf16 ---------
    w1p = params["w1"].reshape(147, 32)                         # (dy*21+dx*3+c, co)
    w1p = jnp.pad(w1p, ((0, 256 - 147), (0, 96))).astype(jnp.bfloat16)  # (256,128)
    b1p = jnp.pad(params["b1"], ((0, 0), (0, 96)))              # (1,128) f32
    w2p = jnp.pad(params["w2"], ((0, 0), (0, 0), (0, 96), (0, 64)))
    w2p = w2p.reshape(9 * 128, 128).astype(jnp.bfloat16)        # (1152,128)
    b2p = jnp.pad(params["b2"], ((0, 0), (0, 64)))              # (1,128)
    w3p = jnp.pad(params["w3"], ((0, 0), (0, 0), (0, 64), (0, 0)))
    w3p = w3p.reshape(9 * 128, 128).astype(jnp.bfloat16)        # (1152,128)
    b3p = params["b3"]                                          # (1,128)

    # ---- avg-pool selection mask: 1/9 at the 9 pool2 output rows ------------
    sel_np = np.zeros((CM2, 128), np.float32)
    for py in range(E5):
        for px in range(E5):
            sel_np[4 * (py * G + px), :] = 1.0 / float(E5 * E5)
    selp = jnp.asarray(sel_np)

    def kernel(xe_ref, w1_ref, b1_ref, w2_ref, b2_ref, w3_ref, b3_ref, sel_ref,
               out_ref, patch_ref, a1e_ref, a1o_ref, a2_ref, m1_ref, a3_ref):
        # ---- conv1 (7x7) + ReLU: one matmul straight off the input block ----
        y1 = jnp.dot(xe_ref[0], w1_ref[...], preferred_element_type=jnp.float32)
        a1 = jnp.maximum(y1 + b1_ref[...], 0.0)
        # bf16 stored twice (rows r and r+1) so every conv2 tap slice below
        # starts at an even row -> whole-sublane bf16 moves only.
        a1e_ref[...] = a1.astype(jnp.bfloat16)
        a1o_ref[...] = a1[1:, :].astype(jnp.bfloat16)

        # ---- conv2 (3x3) + ReLU: 9 aligned bf16 slab copies -> K=1152 dot ---
        for dy in range(3):
            for dx in range(3):
                j = dy * 3 + dx
                if dx == 1:
                    src = a1o_ref[dy * G:dy * G + CA2, :]
                else:
                    src = a1e_ref[dy * G + dx:dy * G + dx + CA2, :]
                patch_ref[0:CA2, j * 128:(j + 1) * 128] = src
        y2 = jnp.dot(patch_ref[...], w2_ref[...],
                     preferred_element_type=jnp.float32)
        a2_ref[...] = jnp.maximum(y2 + b2_ref[...], 0.0)

        # ---- max_pool2d(2) #1: 4-way shifted slab max, f32 math, bf16 store -
        m1 = jnp.maximum(
            jnp.maximum(a2_ref[0:CM1, :], a2_ref[1:CM1 + 1, :]),
            jnp.maximum(a2_ref[G:G + CM1, :], a2_ref[G + 1:G + 1 + CM1, :]))
        m1_ref[...] = m1.astype(jnp.bfloat16)

        # ---- conv3 (3x3, dilation-2 grid) + ReLU: even-offset bf16 copies ---
        for dy in range(3):
            for dx in range(3):
                j = dy * 3 + dx
                off = 2 * (dy * G + dx)
                patch_ref[0:CA3, j * 128:(j + 1) * 128] = m1_ref[off:off + CA3, :]
        y3 = jnp.dot(patch_ref[0:CA3, :], w3_ref[...],
                     preferred_element_type=jnp.float32)
        a3_ref[...] = jnp.maximum(y3 + b3_ref[...], 0.0)

        # ---- max_pool2d(2) #2 + adaptive avg pool (1,1), vectorized ---------
        m2 = jnp.maximum(
            jnp.maximum(a3_ref[0:CM2, :], a3_ref[2:CM2 + 2, :]),
            jnp.maximum(a3_ref[2 * G:2 * G + CM2, :],
                        a3_ref[2 * G + 2:2 * G + 2 + CM2, :]))
        out_ref[0] = jnp.sum(m2 * sel_ref[...], axis=0, keepdims=True)

    def _full(arr):
        return pl.BlockSpec(arr.shape, lambda i: (0, 0))

    pooled = pl.pallas_call(
        kernel,
        out_shape=jax.ShapeDtypeStruct((n, 1, 128), jnp.float32),
        grid=(n,),
        in_specs=[
            pl.BlockSpec((1, CA1P, 256), lambda i: (i, 0, 0)),
            _full(w1p), _full(b1p), _full(w2p), _full(b2p),
            _full(w3p), _full(b3p), _full(selp),
        ],
        out_specs=pl.BlockSpec((1, 1, 128), lambda i: (i, 0, 0)),
        scratch_shapes=[
            pltpu.VMEM((CA2, 1152), jnp.bfloat16),      # shared im2col patch
            pltpu.VMEM((CA1P, 128), jnp.bfloat16),      # conv1 out (rows r)
            pltpu.VMEM((CA1P - 1, 128), jnp.bfloat16),  # conv1 out (rows r+1)
            pltpu.VMEM((CA2, 128), jnp.float32),        # conv2 out
            pltpu.VMEM((CM1, 128), jnp.bfloat16),       # pool1 out
            pltpu.VMEM((CA3, 128), jnp.float32),        # conv3 out
        ],
        compiler_params=pltpu.CompilerParams(
            dimension_semantics=("parallel",),
            vmem_limit_bytes=32 * 1024 * 1024),
    )(xe, w1p, b1p, w2p, b2p, w3p, b3p, selp)

    # ---- FC over the whole batch as one XLA matmul (review item 6) ----------
    # TODO(synk): dropout1/dropout2 are eval-mode identities (no RNG masking).
    pooled = pooled.reshape(n, 128)
    return pooled @ params["wf"] + params["bf"]


# ------------------------------ model glue -----------------------------------

def init_params(key, num_classes):
    ks = jax.random.split(key, 8)

    def uinit(k, shape, fan_in):
        s = 1.0 / np.sqrt(fan_in)
        return jax.random.uniform(k, shape, jnp.float32, -s, s)

    return {
        "w1": uinit(ks[0], (7, 7, 3, 32), 7 * 7 * 3),
        "b1": uinit(ks[1], (1, 32), 7 * 7 * 3),
        "w2": uinit(ks[2], (3, 3, 32, 64), 3 * 3 * 32),
        "b2": uinit(ks[3], (1, 64), 3 * 3 * 32),
        "w3": uinit(ks[4], (3, 3, 64, 128), 3 * 3 * 64),
        "b3": uinit(ks[5], (1, 128), 3 * 3 * 64),
        "wf": uinit(ks[6], (128, num_classes), 128),
        "bf": uinit(ks[7], (1, num_classes), 128),
    }


def reference_forward(x_nchw, params):
    """Pure-JAX (XLA, f32) reference for checking the fused Pallas kernel."""
    x = jnp.transpose(x_nchw, (0, 2, 3, 1))

    def conv(x, w, b):
        y = jax.lax.conv_general_dilated(
            x, w, (1, 1), "VALID",
            dimension_numbers=("NHWC", "HWIO", "NHWC"))
        return jax.nn.relu(y + b.reshape(1, 1, 1, -1))

    def pool(y):
        return jax.lax.reduce_window(y, -jnp.inf, jax.lax.max,
                                     (1, 2, 2, 1), (1, 2, 2, 1), "VALID")

    y = conv(x, params["w1"], params["b1"])
    y = conv(y, params["w2"], params["b2"])
    y = pool(y)
    y = conv(y, params["w3"], params["b3"])
    y = pool(y)
    y = jnp.mean(y, axis=(1, 2))
    return y @ params["wf"] + params["bf"]


if __name__ == "__main__":
    num_classes = 10
    key = jax.random.PRNGKey(0)
    k_x, k_p = jax.random.split(key)
    # NCHW input: batch=2, channels=3, spatial=24
    # (24 -> 18 -> 16 -> 8 -> 6 -> 3 -> 1 keeps every stage valid).
    x = jax.random.normal(k_x, (2, 3, 24, 24), jnp.float32)
    params = init_params(k_p, num_classes)

    fwd = jax.jit(fused_forward)
    out = jax.block_until_ready(fwd(x, params))
    assert out.shape == (2, num_classes), out.shape

    ref = jax.block_until_ready(reference_forward(x, params))
    # bf16 MXU inputs -> slightly looser tolerance than a pure-f32 pipeline.
    np.testing.assert_allclose(np.asarray(out), np.asarray(ref),
                               rtol=2e-2, atol=2e-2)
    print("KERNEL_OK")
</pallas_src>

<mosaic_0001>
module attributes {stable_mosaic.version = 11 : i64} {
  func.func @kernel(%arg0: i32, %arg1: memref<1x432x256xbf16, #tpu.memory_space<vmem>>, %arg2: memref<256x128xbf16, #tpu.memory_space<vmem>>, %arg3: memref<1x128xf32, #tpu.memory_space<vmem>>, %arg4: memref<1152x128xbf16, #tpu.memory_space<vmem>>, %arg5: memref<1x128xf32, #tpu.memory_space<vmem>>, %arg6: memref<1152x128xbf16, #tpu.memory_space<vmem>>, %arg7: memref<1x128xf32, #tpu.memory_space<vmem>>, %arg8: memref<201x128xf32, #tpu.memory_space<vmem>>, %arg9: memref<1x1x128xf32, #tpu.memory_space<vmem>>, %arg10: memref<376x1152xbf16, #tpu.memory_space<vmem>>, %arg11: memref<432x128xbf16, #tpu.memory_space<vmem>>, %arg12: memref<431x128xbf16, #tpu.memory_space<vmem>>, %arg13: memref<376x128xf32, #tpu.memory_space<vmem>>, %arg14: memref<351x128xbf16, #tpu.memory_space<vmem>>, %arg15: memref<251x128xf32, #tpu.memory_space<vmem>>) attributes {dimension_semantics = [#tpu.dimension_semantics<parallel>], iteration_bounds = array<i64: 2>, scalar_prefetch = 0 : i64, scratch_operands = 6 : i64, tpu.core_type = #tpu.core_type<tc>, window_params = [{transform_indices = @transform_0, window_bounds = array<i64: 1, 432, 256>}, {pipeline_mode = #tpu.pipeline_mode<synchronous>, transform_indices = @transform_1, window_bounds = array<i64: 256, 128>}, {pipeline_mode = #tpu.pipeline_mode<synchronous>, transform_indices = @transform_2, window_bounds = array<i64: 1, 128>}, {pipeline_mode = #tpu.pipeline_mode<synchronous>, transform_indices = @transform_3, window_bounds = array<i64: 1152, 128>}, {pipeline_mode = #tpu.pipeline_mode<synchronous>, transform_indices = @transform_4, window_bounds = array<i64: 1, 128>}, {pipeline_mode = #tpu.pipeline_mode<synchronous>, transform_indices = @transform_5, window_bounds = array<i64: 1152, 128>}, {pipeline_mode = #tpu.pipeline_mode<synchronous>, transform_indices = @transform_6, window_bounds = array<i64: 1, 128>}, {pipeline_mode = #tpu.pipeline_mode<synchronous>, transform_indices = @transform_7, window_bounds = array<i64: 201, 128>}, {transform_indices = @transform_8, window_bounds = array<i64: 1, 1, 128>}]} {
    %c0 = arith.constant 0 : index
    %c0_0 = arith.constant 0 : index
    %c0_1 = arith.constant 0 : index
    %0 = vector.load %arg1[%c0, %c0_0, %c0_1] : memref<1x432x256xbf16, #tpu.memory_space<vmem>>, vector<1x432x256xbf16>
    %1 = vector.shape_cast %0 : vector<1x432x256xbf16> to vector<432x256xbf16>
    %c0_2 = arith.constant 0 : index
    %c0_3 = arith.constant 0 : index
    %2 = vector.load %arg2[%c0_2, %c0_3] : memref<256x128xbf16, #tpu.memory_space<vmem>>, vector<256x128xbf16>
    %cst = arith.constant dense<0.000000e+00> : vector<432x128xf32>
    %3 = tpu.matmul %1, %2, %cst {dimension_numbers = #tpu.dot_dimension_numbers<[1], [0], [0], [1], [0, 0, 1, 1], [], []>} : vector<432x256xbf16>, vector<256x128xbf16>, vector<432x128xf32> -> vector<432x128xf32>
    %c0_4 = arith.constant 0 : index
    %c0_5 = arith.constant 0 : index
    %4 = vector.load %arg3[%c0_4, %c0_5] : memref<1x128xf32, #tpu.memory_space<vmem>>, vector<1x128xf32>
    %5 = vector.broadcast %4 : vector<1x128xf32> to vector<432x128xf32>
    %6 = arith.addf %3, %5 : vector<432x128xf32>
    %cst_6 = arith.constant 0.000000e+00 : f32
    %7 = vector.broadcast %cst_6 : f32 to vector<432x128xf32>
    %8 = arith.maximumf %6, %7 : vector<432x128xf32>
    %9 = arith.truncf %8 : vector<432x128xf32> to vector<432x128xbf16>
    %c0_7 = arith.constant 0 : index
    %c0_8 = arith.constant 0 : index
    %10 = vector.load %arg11[%c0_7, %c0_8] : memref<432x128xbf16, #tpu.memory_space<vmem>>, vector<432x128xbf16>
    tpu.vector_store %arg11[%c0_7, %c0_8], %9 {strides = array<i32>} : memref<432x128xbf16, #tpu.memory_space<vmem>>, vector<432x128xbf16>,
    %11 = vector.extract_strided_slice %8 {offsets = [1, 0], sizes = [431, 128], strides = [1, 1]} : vector<432x128xf32> to vector<431x128xf32>
    %12 = arith.truncf %11 : vector<431x128xf32> to vector<431x128xbf16>
    %c0_9 = arith.constant 0 : index
    %c0_10 = arith.constant 0 : index
    %13 = vector.load %arg12[%c0_9, %c0_10] : memref<431x128xbf16, #tpu.memory_space<vmem>>, vector<431x128xbf16>
    tpu.vector_store %arg12[%c0_9, %c0_10], %12 {strides = array<i32>} : memref<431x128xbf16, #tpu.memory_space<vmem>>, vector<431x128xbf16>,
    %c0_11 = arith.constant 0 : index
    %c0_12 = arith.constant 0 : index
    %14 = vector.load %arg11[%c0_11, %c0_12] : memref<432x128xbf16, #tpu.memory_space<vmem>>, vector<376x128xbf16>
    %c0_13 = arith.constant 0 : index
    %c0_14 = arith.constant 0 : index
    %15 = vector.load %arg10[%c0_13, %c0_14] : memref<376x1152xbf16, #tpu.memory_space<vmem>>, vector<376x128xbf16>
    tpu.vector_store %arg10[%c0_13, %c0_14], %14 {strides = array<i32>} : memref<376x1152xbf16, #tpu.memory_space<vmem>>, vector<376x128xbf16>,
    %c0_15 = arith.constant 0 : index
    %c0_16 = arith.constant 0 : index
    %16 = vector.load %arg12[%c0_15, %c0_16] : memref<431x128xbf16, #tpu.memory_space<vmem>>, vector<376x128xbf16>
    %c0_17 = arith.constant 0 : index
    %c128 = arith.constant 128 : index
    %17 = vector.load %arg10[%c0_17, %c128] : memref<376x1152xbf16, #tpu.memory_space<vmem>>, vector<376x128xbf16>
    tpu.vector_store %arg10[%c0_17, %c128], %16 {strides = array<i32>} : memref<376x1152xbf16, #tpu.memory_space<vmem>>, vector<376x128xbf16>,
    %c2 = arith.constant 2 : index
    %c0_18 = arith.constant 0 : index
    %18 = vector.load %arg11[%c2, %c0_18] : memref<432x128xbf16, #tpu.memory_space<vmem>>, vector<376x128xbf16>
    %c0_19 = arith.constant 0 : index
    %c256 = arith.constant 256 : index
    %19 = vector.load %arg10[%c0_19, %c256] : memref<376x1152xbf16, #tpu.memory_space<vmem>>, vector<376x128xbf16>
    tpu.vector_store %arg10[%c0_19, %c256], %18 {strides = array<i32>} : memref<376x1152xbf16, #tpu.memory_space<vmem>>, vector<376x128xbf16>,
    %c24 = arith.constant 24 : index
    %c0_20 = arith.constant 0 : index
    %20 = vector.load %arg11[%c24, %c0_20] : memref<432x128xbf16, #tpu.memory_space<vmem>>, vector<376x128xbf16>
    %c0_21 = arith.constant 0 : index
    %c384 = arith.constant 384 : index
    %21 = vector.load %arg10[%c0_21, %c384] : memref<376x1152xbf16, #tpu.memory_space<vmem>>, vector<376x128xbf16>
    tpu.vector_store %arg10[%c0_21, %c384], %20 {strides = array<i32>} : memref<376x1152xbf16, #tpu.memory_space<vmem>>, vector<376x128xbf16>,
    %c24_22 = arith.constant 24 : index
    %c0_23 = arith.constant 0 : index
    %22 = vector.load %arg12[%c24_22, %c0_23] : memref<431x128xbf16, #tpu.memory_space<vmem>>, vector<376x128xbf16>
    %c0_24 = arith.constant 0 : index
    %c512 = arith.constant 512 : index
    %23 = vector.load %arg10[%c0_24, %c512] : memref<376x1152xbf16, #tpu.memory_space<vmem>>, vector<376x128xbf16>
    tpu.vector_store %arg10[%c0_24, %c512], %22 {strides = array<i32>} : memref<376x1152xbf16, #tpu.memory_space<vmem>>, vector<376x128xbf16>,
    %c26 = arith.constant 26 : index
    %c0_25 = arith.constant 0 : index
    %24 = vector.load %arg11[%c26, %c0_25] : memref<432x128xbf16, #tpu.memory_space<vmem>>, vector<376x128xbf16>
    %c0_26 = arith.constant 0 : index
    %c640 = arith.constant 640 : index
    %25 = vector.load %arg10[%c0_26, %c640] : memref<376x1152xbf16, #tpu.memory_space<vmem>>, vector<376x128xbf16>
    tpu.vector_store %arg10[%c0_26, %c640], %24 {strides = array<i32>} : memref<376x1152xbf16, #tpu.memory_space<vmem>>, vector<376x128xbf16>,
    %c48 = arith.constant 48 : index
    %c0_27 = arith.constant 0 : index
    %26 = vector.load %arg11[%c48, %c0_27] : memref<432x128xbf16, #tpu.memory_space<vmem>>, vector<376x128xbf16>
    %c0_28 = arith.constant 0 : index
    %c768 = arith.constant 768 : index
    %27 = vector.load %arg10[%c0_28, %c768] : memref<376x1152xbf16, #tpu.memory_space<vmem>>, vector<376x128xbf16>
    tpu.vector_store %arg10[%c0_28, %c768], %26 {strides = array<i32>} : memref<376x1152xbf16, #tpu.memory_space<vmem>>, vector<376x128xbf16>,
    %c48_29 = arith.constant 48 : index
    %c0_30 = arith.constant 0 : index
    %28 = vector.load %arg12[%c48_29, %c0_30] : memref<431x128xbf16, #tpu.memory_space<vmem>>, vector<376x128xbf16>
    %c0_31 = arith.constant 0 : index
    %c896 = arith.constant 896 : index
    %29 = vector.load %arg10[%c0_31, %c896] : memref<376x1152xbf16, #tpu.memory_space<vmem>>, vector<376x128xbf16>
    tpu.vector_store %arg10[%c0_31, %c896], %28 {strides = array<i32>} : memref<376x1152xbf16, #tpu.memory_space<vmem>>, vector<376x128xbf16>,
    %c50 = arith.constant 50 : index
    %c0_32 = arith.constant 0 : index
    %30 = vector.load %arg11[%c50, %c0_32] : memref<432x128xbf16, #tpu.memory_space<vmem>>, vector<376x128xbf16>
    %c0_33 = arith.constant 0 : index
    %c1024 = arith.constant 1024 : index
    %31 = vector.load %arg10[%c0_33, %c1024] : memref<376x1152xbf16, #tpu.memory_space<vmem>>, vector<376x128xbf16>
    tpu.vector_store %arg10[%c0_33, %c1024], %30 {strides = array<i32>} : memref<376x1152xbf16, #tpu.memory_space<vmem>>, vector<376x128xbf16>,
    %c0_34 = arith.constant 0 : index
    %c0_35 = arith.constant 0 : index
    %32 = vector.load %arg10[%c0_34, %c0_35] : memref<376x1152xbf16, #tpu.memory_space<vmem>>, vector<376x1152xbf16>
    %c0_36 = arith.constant 0 : index
    %c0_37 = arith.constant 0 : index
    %33 = vector.load %arg4[%c0_36, %c0_37] : memref<1152x128xbf16, #tpu.memory_space<vmem>>, vector<1152x128xbf16>
    %cst_38 = arith.constant dense<0.000000e+00> : vector<376x128xf32>
    %34 = tpu.matmul %32, %33, %cst_38 {dimension_numbers = #tpu.dot_dimension_numbers<[1], [0], [0], [1], [0, 0, 1, 1], [], []>} : vector<376x1152xbf16>, vector<1152x128xbf16>, vector<376x128xf32> -> vector<376x128xf32>
    %c0_39 = arith.constant 0 : index
    %c0_40 = arith.constant 0 : index
    %35 = vector.load %arg5[%c0_39, %c0_40] : memref<1x128xf32, #tpu.memory_space<vmem>>, vector<1x128xf32>
    %36 = vector.broadcast %35 : vector<1x128xf32> to vector<376x128xf32>
    %37 = arith.addf %34, %36 : vector<376x128xf32>
    %cst_41 = arith.constant 0.000000e+00 : f32
    %38 = vector.broadcast %cst_41 : f32 to vector<376x128xf32>
    %39 = arith.maximumf %37, %38 : vector<376x128xf32>
    %c0_42 = arith.constant 0 : index
    %c0_43 = arith.constant 0 : index
    %40 = vector.load %arg13[%c0_42, %c0_43] : memref<376x128xf32, #tpu.memory_space<vmem>>, vector<376x128xf32>
    tpu.vector_store %arg13[%c0_42, %c0_43], %39 {strides = array<i32>} : memref<376x128xf32, #tpu.memory_space<vmem>>, vector<376x128xf32>,
    %c0_44 = arith.constant 0 : index
    %c0_45 = arith.constant 0 : index
    %41 = vector.load %arg13[%c0_44, %c0_45] : memref<376x128xf32, #tpu.memory_space<vmem>>, vector<351x128xf32>
    %c1 = arith.constant 1 : index
    %c0_46 = arith.constant 0 : index
    %42 = vector.load %arg13[%c1, %c0_46] : memref<376x128xf32, #tpu.memory_space<vmem>>, vector<351x128xf32>
    %43 = arith.maximumf %41, %42 : vector<351x128xf32>
    %c24_47 = arith.constant 24 : index
    %c0_48 = arith.constant 0 : index
    %44 = vector.load %arg13[%c24_47, %c0_48] : memref<376x128xf32, #tpu.memory_space<vmem>>, vector<351x128xf32>
    %c25 = arith.constant 25 : index
    %c0_49 = arith.constant 0 : index
    %45 = vector.load %arg13[%c25, %c0_49] : memref<376x128xf32, #tpu.memory_space<vmem>>, vector<351x128xf32>
    %46 = arith.maximumf %44, %45 : vector<351x128xf32>
    %47 = arith.maximumf %43, %46 : vector<351x128xf32>
    %48 = arith.truncf %47 : vector<351x128xf32> to vector<351x128xbf16>
    %c0_50 = arith.constant 0 : index
    %c0_51 = arith.constant 0 : index
    %49 = vector.load %arg14[%c0_50, %c0_51] : memref<351x128xbf16, #tpu.memory_space<vmem>>, vector<351x128xbf16>
    tpu.vector_store %arg14[%c0_50, %c0_51], %48 {strides = array<i32>} : memref<351x128xbf16, #tpu.memory_space<vmem>>, vector<351x128xbf16>,
    %c0_52 = arith.constant 0 : index
    %c0_53 = arith.constant 0 : index
    %50 = vector.load %arg14[%c0_52, %c0_53] : memref<351x128xbf16, #tpu.memory_space<vmem>>, vector<251x128xbf16>
    %c0_54 = arith.constant 0 : index
    %c0_55 = arith.constant 0 : index
    %51 = vector.load %arg10[%c0_54, %c0_55] : memref<376x1152xbf16, #tpu.memory_space<vmem>>, vector<251x128xbf16>
    tpu.vector_store %arg10[%c0_54, %c0_55], %50 {strides = array<i32>} : memref<376x1152xbf16, #tpu.memory_space<vmem>>, vector<251x128xbf16>,
    %c2_56 = arith.constant 2 : index
    %c0_57 = arith.constant 0 : index
    %52 = vector.load %arg14[%c2_56, %c0_57] : memref<351x128xbf16, #tpu.memory_space<vmem>>, vector<251x128xbf16>
    %c0_58 = arith.constant 0 : index
    %c128_59 = arith.constant 128 : index
    %53 = vector.load %arg10[%c0_58, %c128_59] : memref<376x1152xbf16, #tpu.memory_space<vmem>>, vector<251x128xbf16>
    tpu.vector_store %arg10[%c0_58, %c128_59], %52 {strides = array<i32>} : memref<376x1152xbf16, #tpu.memory_space<vmem>>, vector<251x128xbf16>,
    %c4 = arith.constant 4 : index
    %c0_60 = arith.constant 0 : index
    %54 = vector.load %arg14[%c4, %c0_60] : memref<351x128xbf16, #tpu.memory_space<vmem>>, vector<251x128xbf16>
    %c0_61 = arith.constant 0 : index
    %c256_62 = arith.constant 256 : index
    %55 = vector.load %arg10[%c0_61, %c256_62] : memref<376x1152xbf16, #tpu.memory_space<vmem>>, vector<251x128xbf16>
    tpu.vector_store %arg10[%c0_61, %c256_62], %54 {strides = array<i32>} : memref<376x1152xbf16, #tpu.memory_space<vmem>>, vector<251x128xbf16>,
    %c48_63 = arith.constant 48 : index
    %c0_64 = arith.constant 0 : index
    %56 = vector.load %arg14[%c48_63, %c0_64] : memref<351x128xbf16, #tpu.memory_space<vmem>>, vector<251x128xbf16>
    %c0_65 = arith.constant 0 : index
    %c384_66 = arith.constant 384 : index
    %57 = vector.load %arg10[%c0_65, %c384_66] : memref<376x1152xbf16, #tpu.memory_space<vmem>>, vector<251x128xbf16>
    tpu.vector_store %arg10[%c0_65, %c384_66], %56 {strides = array<i32>} : memref<376x1152xbf16, #tpu.memory_space<vmem>>, vector<251x128xbf16>,
    %c50_67 = arith.constant 50 : index
    %c0_68 = arith.constant 0 : index
    %58 = vector.load %arg14[%c50_67, %c0_68] : memref<351x128xbf16, #tpu.memory_space<vmem>>, vector<251x128xbf16>
    %c0_69 = arith.constant 0 : index
    %c512_70 = arith.constant 512 : index
    %59 = vector.load %arg10[%c0_69, %c512_70] : memref<376x1152xbf16, #tpu.memory_space<vmem>>, vector<251x128xbf16>
    tpu.vector_store %arg10[%c0_69, %c512_70], %58 {strides = array<i32>} : memref<376x1152xbf16, #tpu.memory_space<vmem>>, vector<251x128xbf16>,
    %c52 = arith.constant 52 : index
    %c0_71 = arith.constant 0 : index
    %60 = vector.load %arg14[%c52, %c0_71] : memref<351x128xbf16, #tpu.memory_space<vmem>>, vector<251x128xbf16>
    %c0_72 = arith.constant 0 : index
    %c640_73 = arith.constant 640 : index
    %61 = vector.load %arg10[%c0_72, %c640_73] : memref<376x1152xbf16, #tpu.memory_space<vmem>>, vector<251x128xbf16>
    tpu.vector_store %arg10[%c0_72, %c640_73], %60 {strides = array<i32>} : memref<376x1152xbf16, #tpu.memory_space<vmem>>, vector<251x128xbf16>,
    %c96 = arith.constant 96 : index
    %c0_74 = arith.constant 0 : index
    %62 = vector.load %arg14[%c96, %c0_74] : memref<351x128xbf16, #tpu.memory_space<vmem>>, vector<251x128xbf16>
    %c0_75 = arith.constant 0 : index
    %c768_76 = arith.constant 768 : index
    %63 = vector.load %arg10[%c0_75, %c768_76] : memref<376x1152xbf16, #tpu.memory_space<vmem>>, vector<251x128xbf16>
    tpu.vector_store %arg10[%c0_75, %c768_76], %62 {strides = array<i32>} : memref<376x1152xbf16, #tpu.memory_space<vmem>>, vector<251x128xbf16>,
    %c98 = arith.constant 98 : index
    %c0_77 = arith.constant 0 : index
    %64 = vector.load %arg14[%c98, %c0_77] : memref<351x128xbf16, #tpu.memory_space<vmem>>, vector<251x128xbf16>
    %c0_78 = arith.constant 0 : index
    %c896_79 = arith.constant 896 : index
    %65 = vector.load %arg10[%c0_78, %c896_79] : memref<376x1152xbf16, #tpu.memory_space<vmem>>, vector<251x128xbf16>
    tpu.vector_store %arg10[%c0_78, %c896_79], %64 {strides = array<i32>} : memref<376x1152xbf16, #tpu.memory_space<vmem>>, vector<251x128xbf16>,
    %c100 = arith.constant 100 : index
    %c0_80 = arith.constant 0 : index
    %66 = vector.load %arg14[%c100, %c0_80] : memref<351x128xbf16, #tpu.memory_space<vmem>>, vector<251x128xbf16>
    %c0_81 = arith.constant 0 : index
    %c1024_82 = arith.constant 1024 : index
    %67 = vector.load %arg10[%c0_81, %c1024_82] : memref<376x1152xbf16, #tpu.memory_space<vmem>>, vector<251x128xbf16>
    tpu.vector_store %arg10[%c0_81, %c1024_82], %66 {strides = array<i32>} : memref<376x1152xbf16, #tpu.memory_space<vmem>>, vector<251x128xbf16>,
    %c0_83 = arith.constant 0 : index
    %c0_84 = arith.constant 0 : index
    %68 = vector.load %arg10[%c0_83, %c0_84] : memref<376x1152xbf16, #tpu.memory_space<vmem>>, vector<251x1152xbf16>
    %c0_85 = arith.constant 0 : index
    %c0_86 = arith.constant 0 : index
    %69 = vector.load %arg6[%c0_85, %c0_86] : memref<1152x128xbf16, #tpu.memory_space<vmem>>, vector<1152x128xbf16>
    %cst_87 = arith.constant dense<0.000000e+00> : vector<251x128xf32>
    %70 = tpu.matmul %68, %69, %cst_87 {dimension_numbers = #tpu.dot_dimension_numbers<[1], [0], [0], [1], [0, 0, 1, 1], [], []>} : vector<251x1152xbf16>, vector<1152x128xbf16>, vector<251x128xf32> -> vector<251x128xf32>
    %c0_88 = arith.constant 0 : index
    %c0_89 = arith.constant 0 : index
    %71 = vector.load %arg7[%c0_88, %c0_89] : memref<1x128xf32, #tpu.memory_space<vmem>>, vector<1x128xf32>
    %72 = vector.broadcast %71 : vector<1x128xf32> to vector<251x128xf32>
    %73 = arith.addf %70, %72 : vector<251x128xf32>
    %cst_90 = arith.constant 0.000000e+00 : f32
    %74 = vector.broadcast %cst_90 : f32 to vector<251x128xf32>
    %75 = arith.maximumf %73, %74 : vector<251x128xf32>
    %c0_91 = arith.constant 0 : index
    %c0_92 = arith.constant 0 : index
    %76 = vector.load %arg15[%c0_91, %c0_92] : memref<251x128xf32, #tpu.memory_space<vmem>>, vector<251x128xf32>
    tpu.vector_store %arg15[%c0_91, %c0_92], %75 {strides = array<i32>} : memref<251x128xf32, #tpu.memory_space<vmem>>, vector<251x128xf32>,
    %c0_93 = arith.constant 0 : index
    %c0_94 = arith.constant 0 : index
    %77 = vector.load %arg15[%c0_93, %c0_94] : memref<251x128xf32, #tpu.memory_space<vmem>>, vector<201x128xf32>
    %c2_95 = arith.constant 2 : index
    %c0_96 = arith.constant 0 : index
    %78 = vector.load %arg15[%c2_95, %c0_96] : memref<251x128xf32, #tpu.memory_space<vmem>>, vector<201x128xf32>
    %79 = arith.maximumf %77, %78 : vector<201x128xf32>
    %c48_97 = arith.constant 48 : index
    %c0_98 = arith.constant 0 : index
    %80 = vector.load %arg15[%c48_97, %c0_98] : memref<251x128xf32, #tpu.memory_space<vmem>>, vector<201x128xf32>
    %c50_99 = arith.constant 50 : index
    %c0_100 = arith.constant 0 : index
    %81 = vector.load %arg15[%c50_99, %c0_100] : memref<251x128xf32, #tpu.memory_space<vmem>>, vector<201x128xf32>
    %82 = arith.maximumf %80, %81 : vector<201x128xf32>
    %83 = arith.maximumf %79, %82 : vector<201x128xf32>
    %c0_101 = arith.constant 0 : index
    %c0_102 = arith.constant 0 : index
    %84 = vector.load %arg8[%c0_101, %c0_102] : memref<201x128xf32, #tpu.memory_space<vmem>>, vector<201x128xf32>
    %85 = arith.mulf %83, %84 : vector<201x128xf32>
    %cst_103 = arith.constant dense<0.000000e+00> : vector<128xf32>
    %86 = vector.multi_reduction <add>, %85, %cst_103 [0] : vector<201x128xf32> to vector<128xf32>
    %87 = vector.shape_cast %86 : vector<128xf32> to vector<1x128xf32>
    %c0_104 = arith.constant 0 : index
    %c0_105 = arith.constant 0 : index
    %c0_106 = arith.constant 0 : index
    %88 = vector.load %arg9[%c0_104, %c0_105, %c0_106] : memref<1x1x128xf32, #tpu.memory_space<vmem>>, vector<1x1x128xf32>
    %89 = vector.shape_cast %88 : vector<1x1x128xf32> to vector<1x128xf32>
    %90 = vector.shape_cast %87 : vector<1x128xf32> to vector<1x1x128xf32>
    tpu.vector_store %arg9[%c0_104, %c0_105, %c0_106], %90 {strides = array<i32>} : memref<1x1x128xf32, #tpu.memory_space<vmem>>, vector<1x1x128xf32>,
    return
  }
  func.func @transform_0(%arg0: i32) -> (i32, i32, i32) {
    %c0_i32 = arith.constant 0 : i32
    %c0_i32_0 = arith.constant 0 : i32
    %c0_i32_1 = arith.constant 0 : i32
    return %arg0, %c0_i32, %c0_i32_0 : i32, i32, i32
  }
  func.func @transform_1(%arg0: i32) -> (i32, i32) {
    %c0_i32 = arith.constant 0 : i32
    %c0_i32_0 = arith.constant 0 : i32
    %c0_i32_1 = arith.constant 0 : i32
    return %c0_i32, %c0_i32_0 : i32, i32
  }
  func.func @transform_2(%arg0: i32) -> (i32, i32) {
    %c0_i32 = arith.constant 0 : i32
    %c0_i32_0 = arith.constant 0 : i32
    %c0_i32_1 = arith.constant 0 : i32
    return %c0_i32, %c0_i32_0 : i32, i32
  }
  func.func @transform_3(%arg0: i32) -> (i32, i32) {
    %c0_i32 = arith.constant 0 : i32
    %c0_i32_0 = arith.constant 0 : i32
    %c0_i32_1 = arith.constant 0 : i32
    return %c0_i32, %c0_i32_0 : i32, i32
  }
  func.func @transform_4(%arg0: i32) -> (i32, i32) {
    %c0_i32 = arith.constant 0 : i32
    %c0_i32_0 = arith.constant 0 : i32
    %c0_i32_1 = arith.constant 0 : i32
    return %c0_i32, %c0_i32_0 : i32, i32
  }
  func.func @transform_5(%arg0: i32) -> (i32, i32) {
    %c0_i32 = arith.constant 0 : i32
    %c0_i32_0 = arith.constant 0 : i32
    %c0_i32_1 = arith.constant 0 : i32
    return %c0_i32, %c0_i32_0 : i32, i32
  }
  func.func @transform_6(%arg0: i32) -> (i32, i32) {
    %c0_i32 = arith.constant 0 : i32
    %c0_i32_0 = arith.constant 0 : i32
    %c0_i32_1 = arith.constant 0 : i32
    return %c0_i32, %c0_i32_0 : i32, i32
  }
  func.func @transform_7(%arg0: i32) -> (i32, i32) {
    %c0_i32 = arith.constant 0 : i32
    %c0_i32_0 = arith.constant 0 : i32
    %c0_i32_1 = arith.constant 0 : i32
    return %c0_i32, %c0_i32_0 : i32, i32
  }
  func.func @transform_8(%arg0: i32) -> (i32, i32, i32) {
    %c0_i32 = arith.constant 0 : i32
    %c0_i32_0 = arith.constant 0 : i32
    %c0_i32_1 = arith.constant 0 : i32
    return %arg0, %c0_i32, %c0_i32_0 : i32, i32, i32
  }
}

</mosaic_0001>

<bundles_post_ra>
// kernel: fused_forward.1
= control target key start
LH: loop header
LB: loop body
LE: loop exit
PB: predicated region body
PF: predicated region fallthrough
CT: control target
= control target key end

     0   :  { %s14909_s27 = smov 0   ;;  %s18423_s0 = inlined_call_operand.vmem [shape: bf16[2,432,256], index: 0, kind: input, shape index: {}]   ;;  %s18424_s1 = inlined_call_operand.vmem [shape: bf16[256,128], index: 1, kind: input, shape index: {}]   ;;  %s18425_s2 = inlined_call_operand.vmem [shape: f32[1,128], index: 2, kind: input, shape index: {}]   ;;  %s18426_s3 = inlined_call_operand.vmem [shape: bf16[1152,128], index: 3, kind: input, shape index: {}]   ;;  %s18427_s4 = inlined_call_operand.vmem [shape: f32[1,128], index: 4, kind: input, shape index: {}]   ;;  %s18428_s5 = inlined_call_operand.vmem [shape: bf16[1152,128], index: 5, kind: input, shape index: {}]   ;;  %s18429_s6 = inlined_call_operand.vmem [shape: f32[1,128], index: 6, kind: input, shape index: {}]   ;;  %s18430_s7 = inlined_call_operand.vmem [shape: f32[201,128], index: 7, kind: input, shape index: {}]   ;;  %s18431_s8 = inlined_call_operand.vmem [shape: f32[2,1,128], index: 8, kind: output, shape index: {}]  }
   0x1 LB: > { %s11852_s28 = sadd.s32 4294967295, %s14861_s27   ;;  %p11856_p0 = scmp.ge.s32.totalorder %s14861_s27, 1  ;;  %s14861_s27 = sphi %s14909_s27, %s18_s27  }
   0x2   : > { %p262_p1 = scmp.lt.s32.totalorder %s14861_s27, 3 }
   0x4   : > { %p263_p2 = pnand %p11856_p0, %p262_p1 }
   0x6   : > { %266 = sbr.rel (%p263_p2) target bundleno = 2049 (0x801), region = 52 }
   0xd   : > { %v14000_v0 = vld [vmem:[%s18424_s1] sm:$0xff]   ;;  %v18432_v1 = vmov 0   ;;  %v14001_v2 = vld [vmem:[%s18424_s1 + $0x8] sm:$0xff]   ;;  %p294_p3 = scmp.lt.s32.totalorder %s11852_s28, 1  ;;  %v14002_v3 = vld [vmem:[%s18424_s1 + $0x10] sm:$0xff]   ;;  %vm2382_vm3 = vcmask 1042432  }
   0xe   : > { %762 = vmatprep.subr.bf16.mxu0 %v18432_v1  ;;  %5951 = vmatprep.subr.bf16.mxu1 %v18432_v1  ;;  %v14003_v4 = vld [vmem:[%s18424_s1 + $0x18] sm:$0xff]   ;;  %v14004_v5 = vld [vmem:[%s18424_s1 + $0x20] sm:$0xff]   ;;  %v14005_v7 = vld [vmem:[%s18424_s1 + $0x28] sm:$0xff]   ;;  %vm1254_vm0 = vsmask.f32 3328  ;;  %vm2383_vm4 = vcmask 1046532  }
   0xf   : > { %763 = vmatpush1.bf16.msra.mxu0 %v14000_v0  ;;  %s18598_s28 = smov (!%p294_p3, %s11852_s28), 1  ;;  %v14006_v8 = vld [vmem:[%s18424_s1 + $0x30] sm:$0xff]   ;;  %v14007_v9 = vld [vmem:[%s18424_s1 + $0x38] sm:$0xff]   ;;  %v14008_v10 = vld [vmem:[%s18424_s1 + $0x40] sm:$0xff]   ;;  %vm1255_vm1 = vsmask.f32 7440 }
  0x10   : > { %764 = vmatprep.subr.bf16.mxu0 %v18432_v1  ;;  %s13990_s15 = smul.u32 432, %s18598_s28  ;;  %v14009_v11 = vld [vmem:[%s18424_s1 + $0x48] sm:$0xff]   ;;  %v14010_v12 = vld [vmem:[%s18424_s1 + $0x50] sm:$0xff]   ;;  %v14011_v13 = vld [vmem:[%s18424_s1 + $0x58] sm:$0xff]   ;;  %vm1903_vm6 = vcmask 1043456   ;;  %vm7718_vm8 = vcmask 1041408   ;;  %s301_s22 = scalar_lea.vmem %s18431_s8, %s18598_s28 }
  0x11   : > { %v14012_v14 = vld [vmem:[%s18424_s1 + $0x60] sm:$0xff]   ;;  %v14013_v15 = vld [vmem:[%s18424_s1 + $0x68] sm:$0xff]   ;;  %v14014_v16 = vld [vmem:[%s18424_s1 + $0x70] sm:$0xff]   ;;  %vm8013_vm9 = vcmask 1045508   ;;  %vm7719_vm11 = vsmask.f32 1280 }
  0x12   : > { %s14943_s20 = scalar_lea.vmem %s18423_s0, %s13990_s15  ;;  %v14015_v17 = vld [vmem:[%s18424_s1 + $0x78] sm:$0xff]   ;;  %v14088_v34 = vld [vmem:[%s18426_s3] sm:$0xff]   ;;  %v14089_v35 = vld [vmem:[%s18426_s3 + $0x8] sm:$0xff]   ;;  %vm11795_vm13 = vcmask 1040384  }
  0x13   : > { %765 = vmatpush1.bf16.msra.mxu0 %v14001_v2  ;;  %v14018_v6 = vld [vmem:[%s14943_s20 + $0x4] ss:$8 sps:$4 sm:$0xff]   ;;  %v14016_v18 = vld [vmem:[%s14943_s20] ss:$8 sps:$4 sm:$0xff]   ;;  %v14019_v19 = vld [vmem:[%s14943_s20 + $0x14] ss:$8 sps:$4 sm:$0xff]   ;;  %5952 = vmatpush1.bf16.msra.mxu1 %v14088_v34 }
  0x14   : > { %766 = vmatprep.subr.bf16.mxu0 %v18432_v1  ;;  %794 = vmatprep.mubr.bf16.mxu0 %v14018_v6  ;;  %v14021_v20 = vld [vmem:[%s14943_s20 + $0x10] ss:$8 sps:$4 sm:$0xff]   ;;  %v14022_v21 = vld [vmem:[%s14943_s20 + $0x24] ss:$8 sps:$4 sm:$0xff]   ;;  %v14024_v22 = vld [vmem:[%s14943_s20 + $0x20] ss:$8 sps:$4 sm:$0xff]  }
  0x15   : > { %v14025_v23 = vld [vmem:[%s14943_s20 + $0x34] ss:$8 sps:$4 sm:$0xff]   ;;  %v14027_v24 = vld [vmem:[%s14943_s20 + $0x30] ss:$8 sps:$4 sm:$0xff]   ;;  %v14028_v25 = vld [vmem:[%s14943_s20 + $0x44] ss:$8 sps:$4 sm:$0xff]   ;;  %5953 = vmatprep.subr.bf16.mxu1 %v18432_v1 }
  0x16   : > { %v14030_v26 = vld [vmem:[%s14943_s20 + $0x40] ss:$8 sps:$4 sm:$0xff]   ;;  %v14031_v27 = vld [vmem:[%s14943_s20 + $0x54] ss:$8 sps:$4 sm:$0xff]   ;;  %v14033_v28 = vld [vmem:[%s14943_s20 + $0x50] ss:$8 sps:$4 sm:$0xff]  }
  0x17   : > { %767 = vmatpush1.bf16.msra.mxu0 %v14002_v3  ;;  %v14034_v29 = vld [vmem:[%s14943_s20 + $0x64] ss:$8 sps:$4 sm:$0xff]   ;;  %v14036_v30 = vld [vmem:[%s14943_s20 + $0x60] ss:$8 sps:$4 sm:$0xff]   ;;  %v14037_v31 = vld [vmem:[%s14943_s20 + $0x74] ss:$8 sps:$4 sm:$0xff]   ;;  %5954 = vmatpush1.bf16.msra.mxu1 %v14089_v35 }
  0x18   : > { %768 = vmatprep.subr.bf16.mxu0 %v18432_v1  ;;  %v14039_v32 = vld [vmem:[%s14943_s20 + $0x70] ss:$8 sps:$4 sm:$0xff]   ;;  %v14040_v33 = vld [vmem:[%s14943_s20 + $0x84] ss:$8 sps:$4 sm:$0xff]   ;;  %v14042_v36 = vld [vmem:[%s14943_s20 + $0x80] ss:$8 sps:$4 sm:$0xff]   ;;  %5955 = vmatprep.subr.bf16.mxu1 %v18432_v1 }
  0x19   : > { %v14043_v37 = vld [vmem:[%s14943_s20 + $0x94] ss:$8 sps:$4 sm:$0xff]   ;;  %v14045_v40 = vld [vmem:[%s14943_s20 + $0x90] ss:$8 sps:$4 sm:$0xff]   ;;  %v14046_v41 = vld [vmem:[%s14943_s20 + $0xa4] ss:$8 sps:$4 sm:$0xff]  }
  0x1a   : > { %v14093_v38 = vld [vmem:[%s18426_s3 + $0x10] sm:$0xff]   ;;  %v14094_v39 = vld [vmem:[%s18426_s3 + $0x18] sm:$0xff]   ;;  %v14095_v42 = vld [vmem:[%s18426_s3 + $0x20] sm:$0xff]  }
  0x1b   : > { %769 = vmatpush1.bf16.msra.mxu0 %v14003_v4  ;;  %5956 = vmatpush1.bf16.msra.mxu1 %v14093_v38  ;;  %v14096_v43 = vld [vmem:[%s18426_s3 + $0x28] sm:$0xff]   ;;  %v14049_v45 = vld [vmem:[%s14943_s20 + $0xb4] ss:$8 sps:$4 sm:$0xff]   ;;  %v14051_v47 = vld [vmem:[%s14943_s20 + $0xb0] ss:$8 sps:$4 sm:$0xff]  }
  0x1c   : > { %770 = vmatprep.subr.bf16.mxu0 %v18432_v1  ;;  %5957 = vmatprep.subr.bf16.mxu1 %v18432_v1  ;;  %v14048_v44 = vld [vmem:[%s14943_s20 + $0xa0] ss:$8 sps:$4 sm:$0xff]   ;;  %v14097_v46 = vld [vmem:[%s18426_s3 + $0x30] sm:$0xff]   ;;  %v14100_v48 = vld [vmem:[%s18426_s3 + $0x38] sm:$0xff]  }
  0x1d   : > { %v14052_v49 = vld [vmem:[%s14943_s20 + $0xc4] ss:$8 sps:$4 sm:$0xff]   ;;  %v14054_v51 = vld [vmem:[%s14943_s20 + $0xc0] ss:$8 sps:$4 sm:$0xff]   ;;  %v14055_v52 = vld [vmem:[%s14943_s20 + $0xd4] ss:$8 sps:$4 sm:$0xff]  }
  0x1e   : > { %v14101_v50 = vld [vmem:[%s18426_s3 + $0x40] sm:$0xff]   ;;  %v14104_v53 = vld [vmem:[%s18426_s3 + $0x48] sm:$0xff]   ;;  %v14105_v54 = vld [vmem:[%s18426_s3 + $0x50] sm:$0xff]  }
  0x1f   : > { %771 = vmatpush1.bf16.msra.mxu0 %v14004_v5  ;;  %5958 = vmatpush1.bf16.msra.mxu1 %v14094_v39  ;;  %v14057_v55 = vld [vmem:[%s14943_s20 + $0xd0] ss:$8 sps:$4 sm:$0xff]   ;;  %v14058_v56 = vld [vmem:[%s14943_s20 + $0xe4] ss:$8 sps:$4 sm:$0xff]   ;;  %v14060_v58 = vld [vmem:[%s14943_s20 + $0xe0] ss:$8 sps:$4 sm:$0xff]  }
  0x20   : > { %772 = vmatprep.subr.bf16.mxu0 %v18432_v1  ;;  %5959 = vmatprep.subr.bf16.mxu1 %v18432_v1  ;;  %v14106_v57 = vld [vmem:[%s18426_s3 + $0x58] sm:$0xff]   ;;  %v14107_v59 = vld [vmem:[%s18426_s3 + $0x60] sm:$0xff]   ;;  %v14110_v61 = vld [vmem:[%s18426_s3 + $0x68] sm:$0xff]  }
  0x21   : > { %v14061_v60 = vld [vmem:[%s14943_s20 + $0xf4] ss:$8 sps:$4 sm:$0xff]   ;;  %v14063_v62 = vld [vmem:[%s14943_s20 + $0xf0] ss:$8 sps:$4 sm:$0xff]   ;;  %v14064_v63 = vld [vmem:[%s14943_s20 + $0x104] ss:$8 sps:$4 sm:$0xff]  }
  0x22   : > { %v14111_v0 = vld [vmem:[%s18426_s3 + $0x70] sm:$0xff]   ;;  %v14117_v2 = vld [vmem:[%s18426_s3 + $0x200] sm:$0xff]   ;;  %v14112_v3 = vld [vmem:[%s18426_s3 + $0x78] sm:$0xff]  }
  0x23   : > { %773 = vmatpush1.bf16.msra.mxu0 %v14005_v7  ;;  %5960 = vmatpush1.bf16.msra.mxu1 %v14095_v42  ;;  %v14066_v4 = vld [vmem:[%s14943_s20 + $0x100] ss:$8 sps:$4 sm:$0xff]   ;;  %v14067_v5 = vld [vmem:[%s14943_s20 + $0x114] ss:$8 sps:$4 sm:$0xff]   ;;  %vm15143_vm2 = vmor %vm1254_vm0, %vm1255_vm1 }
  0x24   : > { %774 = vmatprep.subr.bf16.mxu0 %v18432_v1  ;;  %5961 = vmatprep.subr.bf16.mxu1 %v18432_v1  ;;  %v14118_v6 = vld [vmem:[%s18426_s3 + $0x208] sm:$0xff]   ;;  %v14122_v7 = vld [vmem:[%s18426_s3 + $0x210] sm:$0xff]   ;;  %vm15151_vm5 = vmor %vm2382_vm3, %vm2383_vm4 }
  0x25   : > { %vm16313_vm7 = vmand %vm1903_vm6, %vm1254_vm0 }
  0x26   : > { %vm16909_vm10 = vmor %vm7718_vm8, %vm8013_vm9 }
  0x27   : > { %775 = vmatpush1.bf16.msra.mxu0 %v14006_v8  ;;  %5962 = vmatpush1.bf16.msra.mxu1 %v14096_v43  ;;  %v14069_v8 = vld [vmem:[%s14943_s20 + $0x110] ss:$8 sps:$4 sm:$0xff]   ;;  %vm17349_vm12 = vmand %vm7718_vm8, %vm7719_vm11 }
  0x28   : > { %776 = vmatprep.subr.bf16.mxu0 %v18432_v1  ;;  %5963 = vmatprep.subr.bf16.mxu1 %v18432_v1 }
  0x2b   : > { %777 = vmatpush1.bf16.msra.mxu0 %v14007_v9  ;;  %5964 = vmatpush1.bf16.msra.mxu1 %v14097_v46  ;;  %v14070_v9 = vld [vmem:[%s14943_s20 + $0x124] ss:$8 sps:$4 sm:$0xff]  }
  0x2c   : > { %778 = vmatprep.subr.bf16.mxu0 %v18432_v1  ;;  %5965 = vmatprep.subr.bf16.mxu1 %v18432_v1 }
  0x2f   : > { %779 = vmatpush1.bf16.msra.mxu0 %v14008_v10  ;;  %5966 = vmatpush1.bf16.msra.mxu1 %v14100_v48  ;;  %v14124_v10 = vld [vmem:[%s18426_s3 + $0x218] sm:$0xff]  }
  0x30   : > { %780 = vmatprep.subr.bf16.mxu0 %v18432_v1  ;;  %5967 = vmatprep.subr.bf16.mxu1 %v18432_v1 }
  0x33   : > { %781 = vmatpush1.bf16.msra.mxu0 %v14009_v11  ;;  %5968 = vmatpush1.bf16.msra.mxu1 %v14101_v50  ;;  %v14131_v11 = vld [vmem:[%s18426_s3 + $0x220] sm:$0xff]  }
  0x34   : > { %782 = vmatprep.subr.bf16.mxu0 %v18432_v1  ;;  %5969 = vmatprep.subr.bf16.mxu1 %v18432_v1 }
  0x37   : > { %783 = vmatpush1.bf16.msra.mxu0 %v14010_v12  ;;  %5970 = vmatpush1.bf16.msra.mxu1 %v14104_v53  ;;  %v14072_v12 = vld [vmem:[%s14943_s20 + $0x120] ss:$8 sps:$4 sm:$0xff]  }
  0x38   : > { %784 = vmatprep.subr.bf16.mxu0 %v18432_v1  ;;  %5971 = vmatprep.subr.bf16.mxu1 %v18432_v1 }
  0x3b   : > { %785 = vmatpush1.bf16.msra.mxu0 %v14011_v13  ;;  %5972 = vmatpush1.bf16.msra.mxu1 %v14105_v54  ;;  %v14073_v13 = vld [vmem:[%s14943_s20 + $0x134] ss:$8 sps:$4 sm:$0xff]  }
  0x3c   : > { %786 = vmatprep.subr.bf16.mxu0 %v18432_v1  ;;  %5973 = vmatprep.subr.bf16.mxu1 %v18432_v1 }
  0x3f   : > { %787 = vmatpush1.bf16.msra.mxu0 %v14012_v14  ;;  %5974 = vmatpush1.bf16.msra.mxu1 %v14106_v57  ;;  %v14132_v14 = vld [vmem:[%s18426_s3 + $0x228] sm:$0xff]  }
  0x40   : > { %788 = vmatprep.subr.bf16.mxu0 %v18432_v1  ;;  %5975 = vmatprep.subr.bf16.mxu1 %v18432_v1 }
  0x43   : > { %789 = vmatpush1.bf16.msra.mxu0 %v14013_v15  ;;  %5976 = vmatpush1.bf16.msra.mxu1 %v14107_v59  ;;  %v14075_v15 = vld [vmem:[%s14943_s20 + $0x130] ss:$8 sps:$4 sm:$0xff]  }
  0x44   : > { %790 = vmatprep.subr.bf16.mxu0 %v18432_v1  ;;  %5977 = vmatprep.subr.bf16.mxu1 %v18432_v1 }
  0x47   : > { %791 = vmatpush1.bf16.msra.mxu0 %v14014_v16  ;;  %5978 = vmatpush1.bf16.msra.mxu1 %v14110_v61  ;;  %v14140_v16 = vld [vmem:[%s18426_s3 + $0x230] sm:$0xff]  }
  0x48   : > { %792 = vmatprep.subr.bf16.mxu0 %v18432_v1  ;;  %5979 = vmatprep.subr.bf16.mxu1 %v18432_v1 }
  0x4b   : > { %793 = vmatpush1.bf16.msra.mxu0 %v14015_v17  ;;  %5980 = vmatpush1.bf16.msra.mxu1 %v14111_v0  ;;  %v14076_v17 = vld [vmem:[%s14943_s20 + $0x144] ss:$8 sps:$4 sm:$0xff]  }
  0x4c   : > { %5981 = vmatprep.subr.bf16.mxu1 %v18432_v1  ;;  %13556 = vmatprep.subr.bf16.mxu0 %v14117_v2 }
  0x4e   : > { %795 = vmatmul.mubr.bf16.vlgmr.msra.gmra.mrb[0].mxu0 %v14016_v18  ;;  %v14078_v18 = vld [vmem:[%s14943_s20 + $0x140] ss:$8 sps:$4 sm:$0xff]  }
  0x4f   : > { %802 = vmatprep.mubr.bf16.mxu0 %v14019_v19  ;;  %13557 = vmatpush3.bf16.msra.mxu0 %v14117_v2  ;;  %v14079_v19 = vld [vmem:[%s14943_s20 + $0x154] ss:$8 sps:$4 sm:$0xff]  }
  0x50   : > { %5982 = vmatpush1.bf16.msra.mxu1 %v14112_v3  ;;  %13558 = vmatprep.subr.bf16.mxu0 %v14118_v6 }
  0x51   : > { %6175 = vmatprep.subr.bf16.mxu1 %v18432_v1 }
  0x53   : > { %13559 = vmatpush3.bf16.msra.mxu0 %v14118_v6 }
  0x54   : > { %13560 = vmatprep.subr.bf16.mxu0 %v14122_v7 }
  0x56   : > { %803 = vmatmul.mubr.bf16.gmra.mrb[4].mxu0 %v14021_v20  ;;  %v14142_v20 = vld [vmem:[%s18426_s3 + $0x238] sm:$0xff]  }
  0x57   : > { %810 = vmatprep.mubr.bf16.mxu0 %v14022_v21  ;;  %13561 = vmatpush3.bf16.msra.mxu0 %v14122_v7  ;;  %v14081_v21 = vld [vmem:[%s14943_s20 + $0x150] ss:$8 sps:$4 sm:$0xff]  }
  0x58   : > { %13562 = vmatprep.subr.bf16.mxu0 %v14124_v10 }
  0x5b   : > { %13563 = vmatpush3.bf16.msra.mxu0 %v14124_v10 }
  0x5c   : > { %13564 = vmatprep.subr.bf16.mxu0 %v14131_v11 }
  0x5e   : > { %811 = vmatmul.mubr.bf16.gmra.mrb[8].mxu0 %v14024_v22  ;;  %v14082_v22 = vld [vmem:[%s14943_s20 + $0x164] ss:$8 sps:$4 sm:$0xff]  }
  0x5f   : > { %818 = vmatprep.mubr.bf16.mxu0 %v14025_v23  ;;  %13565 = vmatpush3.bf16.msra.mxu0 %v14131_v11  ;;  %v14084_v23 = vld [vmem:[%s14943_s20 + $0x160] ss:$8 sps:$4 sm:$0xff]  }
  0x60   : > { %13566 = vmatprep.subr.bf16.mxu0 %v14132_v14 }
  0x63   : > { %13567 = vmatpush3.bf16.msra.mxu0 %v14132_v14 }
  0x64   : > { %13568 = vmatprep.subr.bf16.mxu0 %v14140_v16 }
  0x66   : > { %819 = vmatmul.mubr.bf16.gmra.mrb[12].mxu0 %v14027_v24  ;;  %v14085_v24 = vld [vmem:[%s14943_s20 + $0x174] ss:$8 sps:$4 sm:$0xff]  }
  0x67   : > { %826 = vmatprep.mubr.bf16.mxu0 %v14028_v25  ;;  %13569 = vmatpush3.bf16.msra.mxu0 %v14140_v16  ;;  %v14087_v25 = vld [vmem:[%s14943_s20 + $0x170] ss:$8 sps:$4 sm:$0xff]  }
  0x68   : > { %13570 = vmatprep.subr.bf16.mxu0 %v14142_v20 }
  0x6b   : > { %13571 = vmatpush3.bf16.msra.mxu0 %v14142_v20 }
  0x6e   : > { %827 = vmatmul.mubr.bf16.gmra.mrb[16].mxu0 %v14030_v26  ;;  %v14090_v26 = vld [vmem:[%s14943_s20 + $0x184] ss:$8 sps:$4 sm:$0xff]  }
  0x6f   : > { %834 = vmatprep.mubr.bf16.mxu0 %v14031_v27  ;;  %v14092_v27 = vld [vmem:[%s14943_s20 + $0x180] ss:$8 sps:$4 sm:$0xff]  }
  0x76   : > { %835 = vmatmul.mubr.bf16.gmra.mrb[20].mxu0 %v14033_v28  ;;  %v14125_v28 = vld [vmem:[%s14943_s20 + $0x194] ss:$8 sps:$4 sm:$0xff]  }
  0x77   : > { %842 = vmatprep.mubr.bf16.mxu0 %v14034_v29  ;;  %v14129_v29 = vld [vmem:[%s14943_s20 + $0x190] ss:$8 sps:$4 sm:$0xff]  }
  0x7e   : > { %843 = vmatmul.mubr.bf16.gmra.mrb[24].mxu0 %v14036_v30  ;;  %v14133_v30 = vld [vmem:[%s14943_s20 + $0x1a4] ss:$8 sps:$4 sm:$0xff]  }
  0x7f   : > { %850 = vmatprep.mubr.bf16.mxu0 %v14037_v31  ;;  %v14137_v31 = vld [vmem:[%s14943_s20 + $0x1a0] ss:$8 sps:$4 sm:$0xff]  }
  0x86   : > { %851 = vmatmul.mubr.bf16.gmra.mrb[28].mxu0 %v14039_v32  ;;  %v15135_v32 = vld [vmem:[%s18425_s2] ss:$0 sm:$0xff] }
  0x87   : > { %858 = vmatprep.mubr.bf16.mxu0 %v14040_v33 }
  0x8e   : > { %859 = vmatmul.mubr.bf16.gmra.mrb[32].mxu0 %v14042_v36 }
  0x8f   : > { %866 = vmatprep.mubr.bf16.mxu0 %v14043_v37 }
  0x96   : > { %867 = vmatmul.mubr.bf16.gmra.mrb[36].mxu0 %v14045_v40 }
  0x97   : > { %874 = vmatprep.mubr.bf16.mxu0 %v14046_v41 }
  0x9e   : > { %875 = vmatmul.mubr.bf16.gmra.mrb[40].mxu0 %v14048_v44 }
  0x9f   : > { %882 = vmatprep.mubr.bf16.mxu0 %v14049_v45 }
  0xa6   : > { %883 = vmatmul.mubr.bf16.gmra.mrb[44].mxu0 %v14051_v47 }
  0xa7   : > { %890 = vmatprep.mubr.bf16.mxu0 %v14052_v49 }
  0xae   : > { %891 = vmatmul.mubr.bf16.gmra.mrb[48].mxu0 %v14054_v51 }
  0xaf   : > { %898 = vmatprep.mubr.bf16.mxu0 %v14055_v52 }
  0xb6   : > { %899 = vmatmul.mubr.bf16.gmra.mrb[52].mxu0 %v14057_v55 }
  0xb7   : > { %906 = vmatprep.mubr.bf16.mxu0 %v14058_v56 }
  0xbe   : > { %907 = vmatmul.mubr.bf16.gmra.mrb[56].mxu0 %v14060_v58 }
  0xbf   : > { %914 = vmatprep.mubr.bf16.mxu0 %v14061_v60 }
  0xc6   : > { %915 = vmatmul.mubr.bf16.gmra.mrb[60].mxu0 %v14063_v62 }
  0xc7   : > { %922 = vmatprep.mubr.bf16.mxu0 %v14064_v63 }
  0xce   : > { %923 = vmatmul.mubr.bf16.gmra.mrb[64].mxu0 %v14066_v4 }
  0xcf   : > { %930 = vmatprep.mubr.bf16.mxu0 %v14067_v5 }
  0xd6   : > { %931 = vmatmul.mubr.bf16.gmra.mrb[68].mxu0 %v14069_v8 }
  0xd7   : > { %938 = vmatprep.mubr.bf16.mxu0 %v14070_v9 }
  0xde   : > { %939 = vmatmul.mubr.bf16.gmra.mrb[72].mxu0 %v14072_v12 }
  0xdf   : > { %946 = vmatprep.mubr.bf16.mxu0 %v14073_v13 }
  0xe6   : > { %947 = vmatmul.mubr.bf16.gmra.mrb[76].mxu0 %v14075_v15 }
  0xe7   : > { %954 = vmatprep.mubr.bf16.mxu0 %v14076_v17 }
  0xee   : > { %955 = vmatmul.mubr.bf16.gmra.mrb[80].mxu0 %v14078_v18 }
  0xef   : > { %962 = vmatprep.mubr.bf16.mxu0 %v14079_v19 }
  0xf6   : > { %963 = vmatmul.mubr.bf16.gmra.mrb[84].mxu0 %v14081_v21 }
  0xf7   : > { %970 = vmatprep.mubr.bf16.mxu0 %v14082_v22 }
  0xfe   : > { %971 = vmatmul.mubr.bf16.gmra.mrb[88].mxu0 %v14084_v23 }
  0xff   : > { %978 = vmatprep.mubr.bf16.mxu0 %v14085_v24 }
 0x106   : > { %979 = vmatmul.mubr.bf16.gmra.mrb[92].mxu0 %v14087_v25 }
 0x107   : > { %986 = vmatprep.mubr.bf16.mxu0 %v14090_v26 }
 0x10e   : > { %987 = vmatmul.mubr.bf16.gmra.mrb[96].mxu0 %v14092_v27 }
 0x10f   : > { %994 = vmatprep.mubr.bf16.mxu0 %v14125_v28 }
 0x116   : > { %995 = vmatmul.mubr.bf16.gmra.mrb[100].mxu0 %v14129_v29 }
 0x117   : > { %1002 = vmatprep.mubr.bf16.mxu0 %v14133_v30 }
 0x11e   : > { %1003 = vmatmul.mubr.bf16.gmra.mrb[104].mxu0 %v14137_v31 }
 0x121   : > { %v796_v33 = vpop.f32.mrb[0].mxu0 }
 0x122   : > { %v797_v34 = vadd.f32 %v15135_v32, %v796_v33  ;;  %v798_v35 = vpop.f32.mrb[1].mxu0 }
 0x123   : > { %v799_v36 = vpop.f32.mrb[2].mxu0 }
 0x124   : > { %v1011_v37 = vmax.f32 %v797_v34, 0.0  ;;  %v800_v38 = vadd.f32 %v15135_v32, %v799_v36  ;;  %v801_v39 = vpop.f32.mrb[3].mxu0 }
 0x126   : > { %v12829_v40 = vpack.c.bf16 %v1011_v37, %v1011_v37  ;;  %v1012_v41 = vmax.f32 %v800_v38, 0.0 }
 0x128   : > { %v1258_v42 = vshrl.u32 %v12829_v40, 16  ;;  %v1261_v43 = vshll.u32 %v12829_v40, 16  ;;  %v1065_v44 = vpack.c.bf16 %v1012_v41, %v1011_v37  ;;  %v12830_v45 = vpack.c.bf16 %v1012_v41, %v1012_v41  ;;  %2097 = vst [vmem:[#allocation2] sm:$0xf] %v12829_v40 }
 0x129   : > { %v804_v46 = vpop.f32.mrb[4].mxu0 }
 0x12a   : > { %v1260_v47 = vrot.slane %v1258_v42, 4  ;;  %v1263_v48 = vrot.slane %v1261_v43, 5  ;;  %1092 = vst [vmem:[#allocation3] sm:$0xff] %v1065_v44  ;;  %v1267_v49 = vshll.u32 %v12830_v45, 16  ;;  %v1271_v50 = vshrl.u32 %v12830_v45, 16  ;;  %v806_v51 = vpop.f32.mrb[5].mxu0 }
 0x12b   : > { %v805_v52 = vadd.f32 %v15135_v32, %v804_v46  ;;  %v807_v53 = vpop.f32.mrb[6].mxu0  ;;  %2098 = vst [vmem:[#allocation2 + $0x24] sm:$0xf] %v12830_v45 }
 0x12c   : > { %v1264_v54 = vor.u32 %v1263_v48, %v1260_v47  ;;  %v1269_v55 = vrot.slane %v1267_v49, 5  ;;  %v1273_v56 = vrot.slane %v1271_v50, 4  ;;  %v808_v57 = vadd.f32 %v15135_v32, %v807_v53  ;;  %v809_v58 = vpop.f32.mrb[7].mxu0 }
 0x12d   : > { %v1013_v60 = vmax.f32 %v805_v52, 0.0 }
 0x12e   : > { %v1265_v61 = vrot.slane %v1264_v54, 4  ;;  %v1274_v62 = vor.u32 %v1273_v56, %v1269_v55  ;;  %v1014_v63 = vmax.f32 %v808_v57, 0.0 }
 0x12f   : > { %v12831_v0 = vpack.c.bf16 %v1013_v60, %v1013_v60 }
 0x130   : > { %v1270_v2 = vsel %vm15143_vm2, %v1265_v61, %v1269_v55  ;;  %v1066_v3 = vpack.c.bf16 %v1014_v63, %v1013_v60  ;;  %v12832_v4 = vpack.c.bf16 %v1014_v63, %v1014_v63  ;;  %v1275_v5 = vrot.slane %v1274_v62, 4 }
 0x131   : > { %1850 = vst [vmem:[#allocation4] sm:$0xf] %v1270_v2  ;;  %v2238_v6 = vld [vmem:[#allocation3] sm:$0xfe]  ;;  %v1277_v7 = vshll.u32 %v12831_v0, 16  ;;  %v1281_v8 = vshrl.u32 %v12831_v0, 16 }
 0x132   : > { %v812_v9 = vpop.f32.mrb[8].mxu0  ;;  %v12030_v10 = vcombine.low %v2238_v6, %v2238_v6  ;;  %v12031_v11 = vcombine.high %v2238_v6, %v2238_v6  ;;  %1093 = vst [vmem:[#allocation3 + $0x8] sm:$0xff] %v1066_v3  ;;  %v1287_v12 = vshll.u32 %v12832_v4, 16  ;;  %v1291_v13 = vshrl.u32 %v12832_v4, 16  ;;  %2099 = vst [vmem:[#allocation2 + $0x48] sm:$0xf] %v12831_v0 }
 0x133   : > { %v814_v14 = vpop.f32.mrb[9].mxu0  ;;  %v1279_v15 = vrot.slane %v1277_v7, 5  ;;  %v1283_v16 = vrot.slane %v1281_v8, 4  ;;  %v2390_v26 = vrot.slane %v12831_v0, 5  ;;  %2100 = vst [vmem:[#allocation2 + $0x6c] sm:$0xf] %v12832_v4  ;;  %v813_v28 = vadd.f32 %v15135_v32, %v812_v9 }
 0x134   : > { %v815_v17 = vpop.f32.mrb[10].mxu0  ;;  %v12078_v18 = vrot.slane %v12030_v10, 9  ;;  %v2387_v19 = vrot.slane %v12031_v11, 5  ;;  %v1289_v20 = vrot.slane %v1287_v12, 5  ;;  %v1293_v21 = vrot.slane %v1291_v13, 4 }
 0x135   : > { %v817_v22 = vpop.f32.mrb[11].mxu0  ;;  %v1280_v24 = vsel %vm15143_vm2, %v1275_v5, %v1279_v15  ;;  %v1284_v25 = vor.u32 %v1283_v16, %v1279_v15  ;;  %v816_v29 = vadd.f32 %v15135_v32, %v815_v17  ;;  %v2392_v31 = vrot.slane %v2390_v26, 4 }
 0x136   : > { %v2389_v27 = vrot.slane %v2387_v19, 4  ;;  %1851 = vst [vmem:[#allocation4 + $0x4] sm:$0xf] %v1280_v24  ;;  %v2393_v33 = vrot.slane %v12832_v4, 5  ;;  %v2388_v34 = vsel %vm15151_vm5, %v12078_v18, %v2387_v19  ;;  %v1294_v35 = vor.u32 %v1293_v21, %v1289_v20 }
 0x137   : > { %v1285_v30 = vrot.slane %v1284_v25, 4  ;;  %v1015_v36 = vmax.f32 %v813_v28, 0.0  ;;  %v1016_v37 = vmax.f32 %v816_v29, 0.0  ;;  %2574 = vst [vmem:[#allocation2 + $0x8] sm:$0xf] %v2388_v34  ;;  %v14116_v28 = vld [vmem:[%s18426_s3 + $0x80] sm:$0xff]  }
 0x138   : > { %v2144_v38 = vld [vmem:[#allocation4] sm:$0xf]  ;;  %v2391_v39 = vsel %vm15151_vm5, %v2389_v27, %v2390_v26  ;;  %v2394_v42 = vsel %vm15151_vm5, %v2392_v31, %v2393_v33  ;;  %v2395_v46 = vrot.slane %v2393_v33, 4  ;;  %v1295_v50 = vrot.slane %v1294_v35, 4  ;;  %v14115_v34 = vld [vmem:[#allocation2] ss:$36 sps:$4 sm:$0xff]  }
 0x139   : > { %v1290_v40 = vsel %vm15143_vm2, %v1285_v30, %v1289_v20  ;;  %v14102_v41 = vld [vmem:[#allocation3 + $0xc] ss:$0 sps:$4 sm:$0xff]   ;;  %2191 = vst [vmem:[#allocation2 + $0x4] sm:$0xf] %v2144_v38  ;;  %2575 = vst [vmem:[#allocation2 + $0x2c] sm:$0xf] %v2391_v39  ;;  %v12833_v43 = vpack.c.bf16 %v1015_v36, %v1015_v36  ;;  %v15167_v44 = vpack.c.bf16 %v1016_v37, %v1016_v37 }
 0x13a   : > { %1852 = vst [vmem:[#allocation4 + $0x8] sm:$0xf] %v1290_v40  ;;  %v820_v45 = vpop.f32.mrb[12].mxu0  ;;  %2576 = vst [vmem:[#allocation2 + $0x50] sm:$0xf] %v2394_v42 }
 0x13b   : > { %2810 = vst [vmem:[#allocation2 + $0xc] sm:$0xf] %v14102_v41  ;;  %v15169_v47 = vld [vmem:[#allocation3 + $0xc] ss:$0 sps:$4 sm:$0xee]   ;;  %v821_v48 = vadd.f32 %v15135_v32, %v820_v45  ;;  %v822_v49 = vpop.f32.mrb[13].mxu0 }
 0x13c   : > { %18476 = vst [vmem:[#allocation8_spill] sm:$0xff] %v15169_v47  ;;  %v1297_v51 = vshll.u32 %v12833_v43, 16  ;;  %v1301_v52 = vshrl.u32 %v12833_v43, 16  ;;  %v1307_v53 = vshll.u32 %v15167_v44, 16  ;;  %v823_v54 = vpop.f32.mrb[14].mxu0  ;;  %v1311_v55 = vshrl.u32 %v15167_v44, 16 }
 0x13d   : > { %v1017_v56 = vmax.f32 %v821_v48, 0.0  ;;  %v825_v57 = vpop.f32.mrb[15].mxu0  ;;  %v2145_v58 = vld [vmem:[#allocation4 + $0x4] sm:$0xf]  ;;  %v824_v63 = vadd.f32 %v15135_v32, %v823_v54  ;;  %v15175_v2 = vrot.slane %v12833_v43, 5  ;;  %v2399_v3 = vrot.slane %v15167_v44, 5 }
 0x13e   : > { %v1299_v60 = vrot.slane %v1297_v51, 5  ;;  %v1303_v61 = vrot.slane %v1301_v52, 4  ;;  %v1309_v62 = vrot.slane %v1307_v53, 5  ;;  %2192 = vst [vmem:[#allocation2 + $0x28] sm:$0xf] %v2145_v58  ;;  %v1313_v0 = vrot.slane %v1311_v55, 4 }
 0x13f   : > { %18477 = vst [vmem:[#allocation9_spill] sm:$0xff] %v15175_v2  ;;  %2101 = vst [vmem:[#allocation2 + $0x90] sm:$0xf] %v12833_v43  ;;  %v15183_v7 = vpack.c.bf16 %v1017_v56, %v1017_v56  ;;  %v2398_v9 = vrot.slane %v15175_v2, 4  ;;  %v15186_v10 = vrot.slane %v2399_v3, 4  ;;  %v1018_v18 = vmax.f32 %v824_v63, 0.0 }
 0x140   : > { %2102 = vst [vmem:[#allocation2 + $0xb4] sm:$0xf] %v15167_v44  ;;  %2811 = vst [vmem:[#allocation2 + $0x30] sm:$0xf] %v12833_v43  ;;  %v1300_v5 = vsel %vm15143_vm2, %v1295_v50, %v1299_v60  ;;  %v1304_v6 = vor.u32 %v1303_v61, %v1299_v60  ;;  %v1314_v8 = vor.u32 %v1313_v0, %v1309_v62  ;;  %v14123_v45 = vld [vmem:[%s18426_s3 + $0x88] sm:$0xff]  }
 0x141   : > { %2812 = vst [vmem:[#allocation2 + $0x54] sm:$0xf] %v15167_v44  ;;  %1853 = vst [vmem:[#allocation4 + $0xc] sm:$0xf] %v1300_v5  ;;  %v828_v11 = vpop.f32.mrb[16].mxu0  ;;  %v1317_v14 = vshll.u32 %v15183_v7, 16  ;;  %v2397_v21 = vsel %vm15151_vm5, %v2395_v46, %v15175_v2  ;;  %v1068_v29 = vpack.c.bf16 %v1018_v18, %v1017_v56  ;;  %v15200_v30 = vpack.c.bf16 %v1018_v18, %v1018_v18 }
 0x142   : > { %v2146_v12 = vld [vmem:[#allocation4 + $0x8] sm:$0xf]  ;;  %v1305_v13 = vrot.slane %v1304_v6, 4  ;;  %v1321_v15 = vshrl.u32 %v15183_v7, 16  ;;  %v830_v16 = vpop.f32.mrb[17].mxu0  ;;  %v1315_v17 = vrot.slane %v1314_v8, 4  ;;  %v829_v19 = vadd.f32 %v15135_v32, %v828_v11 }
 0x143   : > { %2193 = vst [vmem:[#allocation2 + $0x4c] sm:$0xf] %v2146_v12  ;;  %v831_v20 = vpop.f32.mrb[18].mxu0  ;;  %v1319_v24 = vrot.slane %v1317_v14, 5  ;;  %2577 = vst [vmem:[#allocation2 + $0x74] sm:$0xf] %v2397_v21  ;;  %v15204_v35 = vsel %vm15151_vm5, %v2398_v9, %v2399_v3 }
 0x144   : > { %v1310_v22 = vsel %vm15143_vm2, %v1305_v13, %v1309_v62  ;;  %v1323_v25 = vrot.slane %v1321_v15, 4  ;;  %v832_v26 = vadd.f32 %v15135_v32, %v831_v20  ;;  %v833_v27 = vpop.f32.mrb[19].mxu0  ;;  %v1019_v31 = vmax.f32 %v829_v19, 0.0  ;;  %18478 = vst [vmem:[#allocation10_spill] sm:$0xff] %v15204_v35  ;;  %2578 = vst [vmem:[#allocation2 + $0x98] sm:$0xf] %v15204_v35 }
 0x145   : > { %1854 = vst [vmem:[#allocation4 + $0x10] sm:$0xf] %v1310_v22  ;;  %v14113_v33 = vld [vmem:[#allocation2 + $0x4] ss:$36 sps:$4 sm:$0xff]   ;;  %v1320_v36 = vsel %vm15143_vm2, %v1315_v17, %v1319_v24  ;;  %1095 = vst [vmem:[#allocation3 + $0x18] sm:$0xff] %v1068_v29  ;;  %v1327_v39 = vshll.u32 %v15200_v30, 16 }
 0x146   : > { %v1324_v37 = vor.u32 %v1323_v25, %v1319_v24  ;;  %v1020_v38 = vmax.f32 %v832_v26, 0.0  ;;  %1855 = vst [vmem:[#allocation4 + $0x14] sm:$0xf] %v1320_v36  ;;  %v1331_v40 = vshrl.u32 %v15200_v30, 16  ;;  %5983 = vmatprep.mubr.bf16.mxu1 %v14113_v33  ;;  %v12837_v42 = vpack.c.bf16 %v1019_v31, %v1019_v31  ;;  %2103 = vst [vmem:[#allocation2 + $0xd8] sm:$0xf] %v15183_v7 }
 0x147   : > { %5984 = vmatmul.mubr.bf16.vlgmr.msra.gmra.mrb[0].mxu1 %v14115_v34  ;;  %v1329_v46 = vrot.slane %v1327_v39, 5  ;;  %v2402_v49 = vrot.slane %v15183_v7, 5  ;;  %v18434_v50 = vrot.slane %v15200_v30, 5  ;;  %2104 = vst [vmem:[#allocation2 + $0xfc] sm:$0xf] %v15200_v30  ;;  %v14139_v8 = vld [vmem:[%s18426_s3 + $0x90] sm:$0xff]  }
 0x148   : > { %v1325_v41 = vrot.slane %v1324_v37, 4  ;;  %v15211_v43 = vpack.c.bf16 %v1020_v38, %v1020_v38  ;;  %v2147_v44 = vld [vmem:[#allocation4 + $0xc] sm:$0xf]  ;;  %v1333_v48 = vrot.slane %v1331_v40, 4  ;;  %2813 = vst [vmem:[#allocation2 + $0x78] sm:$0xf] %v15183_v7  ;;  %6176 = vmatpush1.bf16.msra.mxu1 %v14116_v28 }
 0x149   : > { %2814 = vst [vmem:[#allocation2 + $0x9c] sm:$0xf] %v15200_v30  ;;  %3522 = vst [vmem:[#allocation2 + $0x18] sm:$0xf] %v15183_v7  ;;  %v836_v51 = vpop.f32.mrb[20].mxu0  ;;  %v1337_v52 = vshll.u32 %v12837_v42, 16  ;;  %6177 = vmatprep.subr.bf16.mxu1 %v18432_v1 }
 0x14a   : > { %3523 = vst [vmem:[#allocation2 + $0x3c] sm:$0xf] %v15200_v30  ;;  %2194 = vst [vmem:[#allocation2 + $0x70] sm:$0xf] %v2147_v44  ;;  %v1341_v53 = vshrl.u32 %v12837_v42, 16  ;;  %v838_v54 = vpop.f32.mrb[21].mxu0  ;;  %v1330_v55 = vsel %vm15143_vm2, %v1325_v41, %v1329_v46  ;;  %v1334_v56 = vor.u32 %v1333_v48, %v1329_v46  ;;  %v837_v12 = vadd.f32 %v15135_v32, %v836_v51 }
 0x14b   : > { %v15229_v57 = vrot.slane %v2402_v49, 4  ;;  %v15233_v58 = vrot.slane %v18434_v50, 4  ;;  %v839_v60 = vpop.f32.mrb[22].mxu0  ;;  %1856 = vst [vmem:[#allocation4 + $0x18] sm:$0xf] %v1330_v55  ;;  %v1339_v61 = vrot.slane %v1337_v52, 5 }
 0x14c   : > { %v1343_v62 = vrot.slane %v1341_v53, 4  ;;  %v841_v63 = vpop.f32.mrb[23].mxu0  ;;  %v1335_v0 = vrot.slane %v1334_v56, 4  ;;  %v1347_v3 = vshll.u32 %v15211_v43, 16  ;;  %v1351_v5 = vshrl.u32 %v15211_v43, 16  ;;  %6178 = vmatpush1.bf16.msra.mxu1 %v14123_v45  ;;  %v14147_v19 = vld [vmem:[%s18426_s3 + $0x98] sm:$0xff]  }
 0x14d   : > { %v2148_v6 = vld [vmem:[#allocation4 + $0x10] sm:$0xf]  ;;  %v3663_v9 = vld [vmem:[#allocation3 + $0x18] sm:$0xfe]  ;;  %v840_v13 = vadd.f32 %v15135_v32, %v839_v60  ;;  %v2149_v14 = vld [vmem:[#allocation4 + $0x14] sm:$0xf]  ;;  %6179 = vmatprep.subr.bf16.mxu1 %v18432_v1 }
 0x14e   : > { %v1344_v11 = vor.u32 %v1343_v62, %v1339_v61  ;;  %2195 = vst [vmem:[#allocation2 + $0x94] sm:$0xf] %v2148_v6  ;;  %v12222_v15 = vcombine.low %v3663_v9, %v3663_v9  ;;  %v12223_v16 = vcombine.high %v3663_v9, %v3663_v9  ;;  %v1340_v17 = vsel %vm15143_vm2, %v1335_v0, %v1339_v61  ;;  %v14121_v34 = vld [vmem:[#allocation2 + $0x48] ss:$36 sps:$4 sm:$0xff]   ;;  %v14155_v48 = vld [vmem:[%s18426_s3 + $0xa0] sm:$0xff]  }
 0x14f   : > { %v1349_v18 = vrot.slane %v1347_v3, 5  ;;  %2105 = vst [vmem:[#allocation2 + $0x120] sm:$0xf] %v12837_v42  ;;  %2815 = vst [vmem:[#allocation2 + $0xc0] sm:$0xf] %v12837_v42  ;;  %v1353_v21 = vrot.slane %v1351_v5, 4  ;;  %v15286_v62 = vsel %vm15151_vm5, %v15186_v10, %v2402_v49 }
 0x150   : > { %3524 = vst [vmem:[#allocation2 + $0x60] sm:$0xf] %v12837_v42  ;;  %2196 = vst [vmem:[#allocation2 + $0xb8] sm:$0xf] %v2149_v14  ;;  %v1345_v20 = vrot.slane %v1344_v11, 4  ;;  %v15248_v22 = vrot.slane %v12837_v42, 5  ;;  %6180 = vmatpush1.bf16.msra.mxu1 %v14139_v8 }
 0x151   : > { %1857 = vst [vmem:[#allocation4 + $0x1c] sm:$0xf] %v1340_v17  ;;  %v2411_v24 = vrot.slane %v15211_v43, 5  ;;  %2106 = vst [vmem:[#allocation2 + $0x144] sm:$0xf] %v15211_v43  ;;  %v12270_v25 = vrot.slane %v12222_v15, 9  ;;  %v1354_v29 = vor.u32 %v1353_v21, %v1349_v18  ;;  %6181 = vmatprep.subr.bf16.mxu1 %v18432_v1 }
 0x152   : > { %2816 = vst [vmem:[#allocation2 + $0xe4] sm:$0xf] %v15211_v43  ;;  %3525 = vst [vmem:[#allocation2 + $0x84] sm:$0xf] %v15211_v43  ;;  %v15254_v26 = vrot.slane %v12223_v16, 5  ;;  %v1350_v28 = vsel %vm15143_vm2, %v1345_v20, %v1349_v18  ;;  %v2410_v31 = vrot.slane %v15248_v22, 4 }
 0x153   : > { %v14119_v27 = vld [vmem:[#allocation2 + $0x4c] ss:$36 sps:$4 sm:$0xff]   ;;  %v15259_v33 = vrot.slane %v2411_v24, 4  ;;  %v844_v36 = vpop.f32.mrb[24].mxu0  ;;  %1858 = vst [vmem:[#allocation4 + $0x20] sm:$0xf] %v1350_v28 }
 0x154   : > { %5991 = vmatprep.mubr.bf16.mxu1 %v14119_v27  ;;  %v846_v37 = vpop.f32.mrb[25].mxu0  ;;  %v1355_v38 = vrot.slane %v1354_v29, 4  ;;  %v1021_v39 = vmax.f32 %v837_v12, 0.0  ;;  %v1022_v40 = vmax.f32 %v840_v13, 0.0  ;;  %v845_v41 = vadd.f32 %v15135_v32, %v844_v36  ;;  %v2150_v43 = vld [vmem:[#allocation4 + $0x18] sm:$0xf]  ;;  %6182 = vmatpush1.bf16.msra.mxu1 %v14147_v19 }
 0x155   : > { %5992 = vmatmul.mubr.bf16.gmra.mrb[4].mxu1 %v14121_v34  ;;  %v847_v42 = vpop.f32.mrb[26].mxu0  ;;  %2197 = vst [vmem:[#allocation2 + $0xdc] sm:$0xf] %v2150_v43  ;;  %v3810_v46 = vsel %vm15151_vm5, %v12270_v25, %v15254_v26  ;;  %6183 = vmatprep.subr.bf16.mxu1 %v18432_v1  ;;  %v15277_v55 = vsel %vm15151_vm5, %v2410_v31, %v2411_v24  ;;  %v3811_v61 = vrot.slane %v15254_v26, 4  ;;  %18479 = vst [vmem:[#allocation11_spill] sm:$0xff] %v15286_v62  ;;  %v14161_v10 = vld [vmem:[%s18426_s3 + $0xa8] sm:$0xff]  }
 0x156   : > { %v15264_v44 = vadd.f32 %v15135_v32, %v847_v42  ;;  %v849_v45 = vpop.f32.mrb[27].mxu0  ;;  %v12839_v51 = vpack.c.bf16 %v1021_v39, %v1021_v39  ;;  %v15272_v52 = vpack.c.bf16 %v1022_v40, %v1022_v40  ;;  %v1023_v53 = vmax.f32 %v845_v41, 0.0  ;;  %3996 = vst [vmem:[#allocation2 + $0x20] sm:$0xf] %v3810_v46  ;;  %3998 = vst [vmem:[#allocation2 + $0x68] sm:$0xf] %v15277_v55 }
 0x157   : > { %v14127_v54 = vld [vmem:[#allocation2 + $0x94] ss:$36 sps:$4 sm:$0xff]   ;;  %2579 = vst [vmem:[#allocation2 + $0xbc] sm:$0xf] %v15286_v62  ;;  %2582 = vst [vmem:[#allocation2 + $0x128] sm:$0xf] %v15277_v55 }
 0x158   : > { %v1024_v56 = vmax.f32 %v15264_v44, 0.0  ;;  %v2151_v60 = vld [vmem:[#allocation4 + $0x1c] sm:$0xf]  ;;  %v1357_v63 = vshll.u32 %v12839_v51, 16  ;;  %v1361_v0 = vshrl.u32 %v12839_v51, 16  ;;  %v1367_v3 = vshll.u32 %v15272_v52, 16  ;;  %5999 = vmatprep.mubr.bf16.mxu1 %v14127_v54  ;;  %6184 = vmatpush1.bf16.msra.mxu1 %v14155_v48 }
 0x159   : > { %v1371_v5 = vshrl.u32 %v15272_v52, 16  ;;  %v14130_v6 = vld [vmem:[#allocation2 + $0x90] ss:$36 sps:$4 sm:$0xff]   ;;  %2198 = vst [vmem:[#allocation2 + $0x100] sm:$0xf] %v2151_v60  ;;  %v15292_v8 = vpack.c.bf16 %v1023_v53, %v1023_v53  ;;  %v852_v7 = vpop.f32.mrb[28].mxu0  ;;  %6185 = vmatprep.subr.bf16.mxu1 %v18432_v1 }
 0x15a   : > { %v1359_v49 = vrot.slane %v1357_v63, 5  ;;  %v1363_v9 = vrot.slane %v1361_v0, 4  ;;  %v1369_v11 = vrot.slane %v1367_v3, 5  ;;  %v854_v13 = vpop.f32.mrb[29].mxu0  ;;  %v2414_v14 = vrot.slane %v12839_v51, 5  ;;  %v14169_v24 = vld [vmem:[%s18426_s3 + $0xb0] sm:$0xff]  }
 0x15b   : > { %v1373_v12 = vrot.slane %v1371_v5, 4  ;;  %v2417_v15 = vrot.slane %v15272_v52, 5  ;;  %2107 = vst [vmem:[#allocation2 + $0x168] sm:$0xf] %v12839_v51  ;;  %2108 = vst [vmem:[#allocation2 + $0x18c] sm:$0xf] %v15272_v52  ;;  %v15322_v37 = vpack.c.bf16 %v1024_v56, %v1024_v56  ;;  %v853_v40 = vadd.f32 %v15135_v32, %v852_v7 }
 0x15c   : > { %2817 = vst [vmem:[#allocation2 + $0x108] sm:$0xf] %v12839_v51  ;;  %2818 = vst [vmem:[#allocation2 + $0x12c] sm:$0xf] %v15272_v52  ;;  %v855_v16 = vpop.f32.mrb[30].mxu0  ;;  %v1360_v17 = vsel %vm15143_vm2, %v1355_v38, %v1359_v49  ;;  %v1364_v18 = vor.u32 %v1363_v9, %v1359_v49  ;;  %v15307_v25 = vrot.slane %v2414_v14, 4  ;;  %6186 = vmatpush1.bf16.msra.mxu1 %v14161_v10 }
 0x15d   : > { %3526 = vst [vmem:[#allocation2 + $0xa8] sm:$0xf] %v12839_v51  ;;  %3527 = vst [vmem:[#allocation2 + $0xcc] sm:$0xf] %v15272_v52  ;;  %v1374_v19 = vor.u32 %v1373_v12, %v1369_v11  ;;  %6000 = vmatmul.mubr.bf16.gmra.mrb[8].mxu1 %v14130_v6  ;;  %v857_v20 = vpop.f32.mrb[31].mxu0  ;;  %v15311_v27 = vrot.slane %v2417_v15, 4  ;;  %v15316_v31 = vsel %vm15151_vm5, %v15259_v33, %v2414_v14  ;;  %6187 = vmatprep.subr.bf16.mxu1 %v18432_v1 }
 0x15e   : > { %v2152_v21 = vld [vmem:[#allocation4 + $0x20] sm:$0xf]  ;;  %1859 = vst [vmem:[#allocation4 + $0x24] sm:$0xf] %v1360_v17  ;;  %v1365_v28 = vrot.slane %v1364_v18, 4  ;;  %v1377_v34 = vshll.u32 %v15292_v8, 16  ;;  %v856_v41 = vadd.f32 %v15135_v32, %v855_v16  ;;  %v3813_v16 = vsel %vm15151_vm5, %v3811_v61, %v15248_v22 }
 0x15f   : > { %2199 = vst [vmem:[#allocation2 + $0x124] sm:$0xf] %v2152_v21  ;;  %v1375_v29 = vrot.slane %v1374_v19, 4  ;;  %3999 = vst [vmem:[#allocation2 + $0x8c] sm:$0xf] %v15316_v31  ;;  %v1381_v36 = vshrl.u32 %v15292_v8, 16  ;;  %v15374_v61 = vsel %vm15151_vm5, %v15307_v25, %v2417_v15 }
 0x160   : > { %v14135_v38 = vld [vmem:[#allocation2 + $0xdc] ss:$36 sps:$4 sm:$0xff]   ;;  %v1370_v39 = vsel %vm15143_vm2, %v1365_v28, %v1369_v11  ;;  %v1379_v42 = vrot.slane %v1377_v34, 5  ;;  %v1387_v44 = vshll.u32 %v15322_v37, 16  ;;  %v1391_v45 = vshrl.u32 %v15322_v37, 16  ;;  %6188 = vmatpush1.bf16.msra.mxu1 %v14169_v24  ;;  %v14189_v34 = vld [vmem:[%s18426_s3 + $0xc8] sm:$0xff]  }
 0x161   : > { %v14138_v33 = vld [vmem:[#allocation2 + $0xd8] ss:$36 sps:$4 sm:$0xff]   ;;  %1860 = vst [vmem:[#allocation4 + $0x28] sm:$0xf] %v1370_v39  ;;  %v1383_v43 = vrot.slane %v1381_v36, 4  ;;  %6007 = vmatprep.mubr.bf16.mxu1 %v14135_v38  ;;  %v860_v46 = vpop.f32.mrb[32].mxu0  ;;  %6189 = vmatprep.subr.bf16.mxu1 %v18432_v1 }
 0x162   : > { %2109 = vst [vmem:[#allocation2 + $0x1b0] sm:$0xf] %v15292_v8  ;;  %2819 = vst [vmem:[#allocation2 + $0x150] sm:$0xf] %v15292_v8  ;;  %v14175_v48 = vld [vmem:[%s18426_s3 + $0xb8] sm:$0xff]   ;;  %v2420_v51 = vrot.slane %v15292_v8, 5  ;;  %v1380_v56 = vsel %vm15143_vm2, %v1375_v29, %v1379_v42  ;;  %v861_v14 = vadd.f32 %v15135_v32, %v860_v46 }
 0x163   : > { %3528 = vst [vmem:[#allocation2 + $0xf0] sm:$0xf] %v15292_v8  ;;  %v2423_v53 = vrot.slane %v15322_v37, 5  ;;  %2110 = vst [vmem:[#allocation2 + $0x1d4] sm:$0xf] %v15322_v37  ;;  %v862_v54 = vpop.f32.mrb[33].mxu0  ;;  %v1384_v60 = vor.u32 %v1383_v43, %v1379_v42 }
 0x164   : > { %2820 = vst [vmem:[#allocation2 + $0x174] sm:$0xf] %v15322_v37  ;;  %3529 = vst [vmem:[#allocation2 + $0x114] sm:$0xf] %v15322_v37  ;;  %v1389_v63 = vrot.slane %v1387_v44, 5  ;;  %v1393_v0 = vrot.slane %v1391_v45, 4  ;;  %6190 = vmatpush1.bf16.msra.mxu1 %v14175_v48 }
 0x165   : > { %v863_v3 = vpop.f32.mrb[34].mxu0  ;;  %1861 = vst [vmem:[#allocation4 + $0x2c] sm:$0xf] %v1380_v56  ;;  %v15346_v5 = vrot.slane %v2420_v51, 4  ;;  %v15350_v6 = vrot.slane %v2423_v53, 4  ;;  %6008 = vmatmul.mubr.bf16.gmra.mrb[12].mxu1 %v14138_v33  ;;  %v1385_v10 = vrot.slane %v1384_v60, 4  ;;  %6191 = vmatprep.subr.bf16.mxu1 %v18432_v1 }
 0x166   : > { %v865_v7 = vpop.f32.mrb[35].mxu0  ;;  %v1394_v49 = vor.u32 %v1393_v0, %v1389_v63  ;;  %v2153_v9 = vld [vmem:[#allocation4 + $0x24] sm:$0xf]  ;;  %v14183_v11 = vld [vmem:[%s18426_s3 + $0xc0] sm:$0xff]   ;;  %v1025_v12 = vmax.f32 %v853_v40, 0.0  ;;  %v1026_v13 = vmax.f32 %v856_v41, 0.0  ;;  %v864_v19 = vadd.f32 %v15135_v32, %v863_v3 }
 0x167   : > { %2200 = vst [vmem:[#allocation2 + $0x148] sm:$0xf] %v2153_v9  ;;  %v1390_v17 = vsel %vm15143_vm2, %v1385_v10, %v1389_v63  ;;  %3997 = vst [vmem:[#allocation2 + $0x44] sm:$0xf] %v3813_v16  ;;  %v1027_v24 = vmax.f32 %v861_v14, 0.0  ;;  %v14197_v3 = vld [vmem:[%s18426_s3 + $0xd0] sm:$0xff]   ;;  %v15469_v8 = vsel %vm15151_vm5, %v15346_v5, %v2423_v53 }
 0x168   : > { %v1395_v18 = vrot.slane %v1394_v49, 4  ;;  %1862 = vst [vmem:[#allocation4 + $0x30] sm:$0xf] %v1390_v17  ;;  %v15365_v20 = vpack.c.bf16 %v1025_v12, %v1025_v12  ;;  %v15367_v21 = vpack.c.bf16 %v1026_v13, %v1026_v13  ;;  %v2154_v26 = vld [vmem:[#allocation4 + $0x28] sm:$0xf]  ;;  %v1028_v28 = vmax.f32 %v864_v19, 0.0  ;;  %6192 = vmatpush1.bf16.msra.mxu1 %v14183_v11 }
 0x169   : > { %v868_v29 = vpop.f32.mrb[36].mxu0  ;;  %2201 = vst [vmem:[#allocation2 + $0x16c] sm:$0xf] %v2154_v26  ;;  %4000 = vst [vmem:[#allocation2 + $0xb0] sm:$0xf] %v15374_v61  ;;  %6193 = vmatprep.subr.bf16.mxu1 %v18432_v1  ;;  %v15385_v52 = vpack.c.bf16 %v1027_v24, %v1027_v24  ;;  %v18538_v59 = vld [vmem:[#allocation10_spill] sm:$0xff] }
 0x16a   : > { %v1397_v36 = vshll.u32 %v15365_v20, 16  ;;  %v1401_v38 = vshrl.u32 %v15365_v20, 16  ;;  %v1407_v39 = vshll.u32 %v15367_v21, 16  ;;  %v1411_v40 = vshrl.u32 %v15367_v21, 16  ;;  %v870_v41 = vpop.f32.mrb[37].mxu0 }
 0x16b   : > { %v14146_v15 = vld [vmem:[#allocation2 + $0x68] ss:$36 sps:$4 sm:$0xff]   ;;  %v871_v25 = vpop.f32.mrb[38].mxu0  ;;  %v2426_v48 = vrot.slane %v15365_v20, 5  ;;  %v2429_v54 = vrot.slane %v15367_v21, 5  ;;  %v1417_v12 = vshll.u32 %v15385_v52, 16  ;;  %v15411_v16 = vpack.c.bf16 %v1028_v28, %v1028_v28 }
 0x16c   : > { %v2155_v33 = vld [vmem:[#allocation4 + $0x2c] sm:$0xf]  ;;  %v1399_v42 = vrot.slane %v1397_v36, 5  ;;  %v1403_v43 = vrot.slane %v1401_v38, 4  ;;  %v1409_v44 = vrot.slane %v1407_v39, 5  ;;  %v1413_v45 = vrot.slane %v1411_v40, 4  ;;  %6194 = vmatpush1.bf16.msra.mxu1 %v14189_v34 }
 0x16d   : > { %v873_v46 = vpop.f32.mrb[39].mxu0  ;;  %2202 = vst [vmem:[#allocation2 + $0x190] sm:$0xf] %v2155_v33  ;;  %2111 = vst [vmem:[#allocation2 + $0x1f8] sm:$0xf] %v15365_v20  ;;  %6195 = vmatprep.subr.bf16.mxu1 %v18432_v1  ;;  %v15403_v7 = vrot.slane %v2426_v48, 4  ;;  %v869_v24 = vadd.f32 %v15135_v32, %v868_v29  ;;  %v872_v26 = vadd.f32 %v15135_v32, %v871_v25 }
 0x16e   : > { %2112 = vst [vmem:[#allocation2 + $0x21c] sm:$0xf] %v15367_v21  ;;  %2821 = vst [vmem:[#allocation2 + $0x198] sm:$0xf] %v15365_v20  ;;  %v1400_v56 = vsel %vm15143_vm2, %v1395_v18, %v1399_v42  ;;  %v1404_v60 = vor.u32 %v1403_v43, %v1399_v42  ;;  %v1414_v63 = vor.u32 %v1413_v45, %v1409_v44  ;;  %v14141_v0 = vld [vmem:[#allocation2 + $0x20] ss:$36 sps:$4 sm:$0xff]  }
 0x16f   : > { %2822 = vst [vmem:[#allocation2 + $0x1bc] sm:$0xf] %v15367_v21  ;;  %3530 = vst [vmem:[#allocation2 + $0x138] sm:$0xf] %v15365_v20  ;;  %v15407_v10 = vrot.slane %v2429_v54, 4  ;;  %13572 = vmatprep.mubr.bf16.mxu0 %v14141_v0  ;;  %v1421_v14 = vshrl.u32 %v15385_v52, 16 }
 0x170   : > { %3531 = vst [vmem:[#allocation2 + $0x15c] sm:$0xf] %v15367_v21  ;;  %1863 = vst [vmem:[#allocation4 + $0x34] sm:$0xf] %v1400_v56  ;;  %v14143_v49 = vld [vmem:[#allocation2 + $0x124] ss:$36 sps:$4 sm:$0xff]   ;;  %13573 = vmatmul.mubr.bf16.vlgmr.msra.gmra.mrb[108].mxu0 %v14146_v15  ;;  %6196 = vmatpush1.bf16.msra.mxu1 %v14197_v3 }
 0x171   : > { %v1405_v9 = vrot.slane %v1404_v60, 4  ;;  %v1415_v11 = vrot.slane %v1414_v63, 4  ;;  %v14145_v13 = vld [vmem:[#allocation2 + $0x120] ss:$36 sps:$4 sm:$0xff]   ;;  %6015 = vmatprep.mubr.bf16.mxu1 %v14143_v49  ;;  %v876_v17 = vpop.f32.mrb[40].mxu0  ;;  %v1419_v19 = vrot.slane %v1417_v12, 5  ;;  %6197 = vmatprep.subr.bf16.mxu1 %v18432_v1 }
 0x172   : > { %6016 = vmatmul.mubr.bf16.gmra.mrb[16].mxu1 %v14145_v13  ;;  %v878_v34 = vpop.f32.mrb[41].mxu0  ;;  %v2156_v36 = vld [vmem:[#allocation4 + $0x30] sm:$0xf]  ;;  %v14203_v38 = vld [vmem:[%s18426_s3 + $0xd8] sm:$0xff]   ;;  %v1423_v28 = vrot.slane %v1421_v14, 4  ;;  %v1427_v39 = vshll.u32 %v15411_v16, 16  ;;  %v15455_v14 = vsel %vm15151_vm5, %v15311_v27, %v2420_v51 }
 0x173   : > { %v1410_v18 = vsel %vm15143_vm2, %v1405_v9, %v1409_v44  ;;  %v1431_v40 = vshrl.u32 %v15411_v16, 16  ;;  %v2432_v41 = vrot.slane %v15385_v52, 5  ;;  %2113 = vst [vmem:[#allocation2 + $0x240] sm:$0xf] %v15385_v52  ;;  %2114 = vst [vmem:[#allocation2 + $0x264] sm:$0xf] %v15411_v16  ;;  %v1420_v29 = vsel %vm15143_vm2, %v1415_v11, %v1419_v19 }
 0x174   : > { %1864 = vst [vmem:[#allocation4 + $0x38] sm:$0xf] %v1410_v18  ;;  %2823 = vst [vmem:[#allocation2 + $0x1e0] sm:$0xf] %v15385_v52  ;;  %v879_v32 = vpop.f32.mrb[42].mxu0  ;;  %v2435_v15 = vrot.slane %v15411_v16, 5  ;;  %v1424_v42 = vor.u32 %v1423_v28, %v1419_v19  ;;  %6198 = vmatpush1.bf16.msra.mxu1 %v14203_v38 }
 0x175   : > { %2824 = vst [vmem:[#allocation2 + $0x204] sm:$0xf] %v15411_v16  ;;  %3532 = vst [vmem:[#allocation2 + $0x180] sm:$0xf] %v15385_v52  ;;  %v14148_v25 = vld [vmem:[#allocation2 + $0x16c] ss:$36 sps:$4 sm:$0xff]   ;;  %6199 = vmatprep.subr.bf16.mxu1 %v18432_v1 }
 0x176   : > { %3533 = vst [vmem:[#allocation2 + $0x1a4] sm:$0xf] %v15411_v16  ;;  %2203 = vst [vmem:[#allocation2 + $0x1b4] sm:$0xf] %v2156_v36  ;;  %v881_v33 = vpop.f32.mrb[43].mxu0  ;;  %v1429_v43 = vrot.slane %v1427_v39, 5  ;;  %6023 = vmatprep.mubr.bf16.mxu1 %v14148_v25 }
 0x177   : > { %1865 = vst [vmem:[#allocation4 + $0x3c] sm:$0xf] %v1420_v29  ;;  %v1433_v44 = vrot.slane %v1431_v40, 4  ;;  %v15435_v45 = vrot.slane %v2432_v41, 4  ;;  %v15439_v46 = vrot.slane %v2435_v15, 4  ;;  %v1425_v63 = vrot.slane %v1424_v42, 4 }
 0x178   : > { %v14150_v56 = vld [vmem:[#allocation2 + $0x168] ss:$36 sps:$4 sm:$0xff]   ;;  %v1029_v3 = vmax.f32 %v869_v24, 0.0  ;;  %v14211_v49 = vld [vmem:[%s18426_s3 + $0xe0] sm:$0xff]   ;;  %v1030_v11 = vmax.f32 %v872_v26, 0.0  ;;  %v14235_v21 = vld [vmem:[%s18426_s3 + $0xf8] sm:$0xff]  }
 0x179   : > { %v2157_v60 = vld [vmem:[#allocation4 + $0x34] sm:$0xf]  ;;  %v1434_v0 = vor.u32 %v1433_v44, %v1429_v43  ;;  %v2857_v9 = vld [vmem:[#allocation4 + $0xc] sm:$0xf]  ;;  %v1430_v19 = vsel %vm15143_vm2, %v1425_v63, %v1429_v43  ;;  %4001 = vst [vmem:[#allocation2 + $0xd4] sm:$0xf] %v15455_v14  ;;  %6200 = vmatpush1.bf16.msra.mxu1 %v14211_v49 }
 0x17a   : > { %2204 = vst [vmem:[#allocation2 + $0x1d8] sm:$0xf] %v2157_v60  ;;  %v15447_v12 = vld [vmem:[%s18425_s2] ss:$0 sm:$0xff]  ;;  %2904 = vst [vmem:[#allocation2 + $0x10] sm:$0xf] %v2857_v9  ;;  %v15461_v24 = vpack.c.bf16 %v1029_v3, %v1029_v3  ;;  %v15471_v51 = vpack.c.bf16 %v1030_v11, %v1030_v11  ;;  %6024 = vmatmul.mubr.bf16.gmra.mrb[20].mxu1 %v14150_v56  ;;  %6201 = vmatprep.subr.bf16.mxu1 %v18432_v1 }
 0x17b   : > { %v877_v13 = vadd.f32 %v15447_v12, %v876_v17  ;;  %v880_v18 = vadd.f32 %v15447_v12, %v879_v32  ;;  %v884_v17 = vpop.f32.mrb[44].mxu0  ;;  %v2858_v27 = vld [vmem:[#allocation4 + $0x10] sm:$0xf]  ;;  %1866 = vst [vmem:[#allocation4 + $0x40] sm:$0xf] %v1430_v19  ;;  %v1435_v28 = vrot.slane %v1434_v0, 4 }
 0x17c   : > { %4002 = vst [vmem:[#allocation2 + $0xf8] sm:$0xf] %v15469_v8  ;;  %v886_v36 = vpop.f32.mrb[45].mxu0  ;;  %v2158_v38 = vld [vmem:[#allocation4 + $0x38] sm:$0xf]  ;;  %v1437_v37 = vshll.u32 %v15461_v24, 16  ;;  %v885_v11 = vadd.f32 %v15447_v12, %v884_v17 }
 0x17d   : > { %v1031_v26 = vmax.f32 %v877_v13, 0.0  ;;  %v1032_v34 = vmax.f32 %v880_v18, 0.0  ;;  %2905 = vst [vmem:[#allocation2 + $0x34] sm:$0xf] %v2858_v27  ;;  %v1441_v39 = vshrl.u32 %v15461_v24, 16  ;;  %v15476_v40 = vpop.f32.mrb[46].mxu0 }
 0x17e   : > { %2205 = vst [vmem:[#allocation2 + $0x1fc] sm:$0xf] %v2158_v38  ;;  %v1447_v53 = vshll.u32 %v15471_v51, 16  ;;  %v1451_v5 = vshrl.u32 %v15471_v51, 16  ;;  %v889_v32 = vpop.f32.mrb[47].mxu0  ;;  %v1439_v25 = vrot.slane %v1437_v37, 5 }
 0x17f   : > { %v2159_v29 = vld [vmem:[#allocation4 + $0x3c] sm:$0xf]  ;;  %v1443_v33 = vrot.slane %v1441_v39, 4  ;;  %v15481_v42 = vpack.c.bf16 %v1031_v26, %v1031_v26  ;;  %v2438_v56 = vrot.slane %v15461_v24, 5  ;;  %v2441_v60 = vrot.slane %v15471_v51, 5  ;;  %v14219_v63 = vld [vmem:[%s18426_s3 + $0xe8] sm:$0xff]  }
 0x180   : > { %2206 = vst [vmem:[#allocation2 + $0x220] sm:$0xf] %v2159_v29  ;;  %v1449_v43 = vrot.slane %v1447_v53, 5  ;;  %v1453_v44 = vrot.slane %v1451_v5, 4  ;;  %2115 = vst [vmem:[#allocation2 + $0x288] sm:$0xf] %v15461_v24  ;;  %v1440_v0 = vsel %vm15143_vm2, %v1435_v28, %v1439_v25  ;;  %6202 = vmatpush1.bf16.msra.mxu1 %v14219_v63  ;;  %v15508_v28 = vpack.c.bf16 %v1032_v34, %v1032_v34 }
 0x181   : > { %2116 = vst [vmem:[#allocation2 + $0x2ac] sm:$0xf] %v15471_v51  ;;  %2825 = vst [vmem:[#allocation2 + $0x228] sm:$0xf] %v15461_v24  ;;  %v1444_v3 = vor.u32 %v1443_v33, %v1439_v25  ;;  %v14152_v49 = vld [vmem:[#allocation2 + $0x1b4] ss:$36 sps:$4 sm:$0xff]   ;;  %6203 = vmatprep.subr.bf16.mxu1 %v18432_v1 }
 0x182   : > { %2826 = vst [vmem:[#allocation2 + $0x24c] sm:$0xf] %v15471_v51  ;;  %3534 = vst [vmem:[#allocation2 + $0x1c8] sm:$0xf] %v15461_v24  ;;  %v14154_v9 = vld [vmem:[#allocation2 + $0x1b0] ss:$36 sps:$4 sm:$0xff]   ;;  %v1454_v13 = vor.u32 %v1453_v44, %v1449_v43  ;;  %6031 = vmatprep.mubr.bf16.mxu1 %v14152_v49 }
 0x183   : > { %3535 = vst [vmem:[#allocation2 + $0x1ec] sm:$0xf] %v15471_v51  ;;  %1867 = vst [vmem:[#allocation4 + $0x44] sm:$0xf] %v1440_v0  ;;  %v15499_v18 = vrot.slane %v2438_v56, 4  ;;  %v1445_v19 = vrot.slane %v1444_v3, 4  ;;  %6032 = vmatmul.mubr.bf16.gmra.mrb[24].mxu1 %v14154_v9 }
 0x184   : > { %v15503_v27 = vrot.slane %v2441_v60, 4  ;;  %v14151_v26 = vld [vmem:[#allocation2 + $0xb0] ss:$36 sps:$4 sm:$0xff]   ;;  %v1455_v36 = vrot.slane %v1454_v13, 4  ;;  %v1457_v38 = vshll.u32 %v15481_v42, 16  ;;  %v1461_v17 = vshrl.u32 %v15481_v42, 16 }
 0x185   : > { %v1450_v37 = vsel %vm15143_vm2, %v1445_v19, %v1449_v43  ;;  %13576 = vmatprep.mubr.bf16.mxu0 %v14151_v26  ;;  %v1033_v39 = vmax.f32 %v885_v11, 0.0  ;;  %v892_v53 = vpop.f32.mrb[48].mxu0  ;;  %v2160_v5 = vld [vmem:[#allocation4 + $0x40] sm:$0xf]  ;;  %v1467_v25 = vshll.u32 %v15508_v28, 16  ;;  %v1471_v33 = vshrl.u32 %v15508_v28, 16 }
 0x186   : > { %1868 = vst [vmem:[#allocation4 + $0x48] sm:$0xf] %v1450_v37  ;;  %v1459_v32 = vrot.slane %v1457_v38, 5  ;;  %v1463_v29 = vrot.slane %v1461_v17, 4  ;;  %v894_v44 = vpop.f32.mrb[49].mxu0  ;;  %v2444_v34 = vrot.slane %v15481_v42, 5  ;;  %v15662_v24 = vsel %vm15151_vm5, %v15499_v18, %v2441_v60 }
 0x187   : > { %2207 = vst [vmem:[#allocation2 + $0x244] sm:$0xf] %v2160_v5  ;;  %v2447_v63 = vrot.slane %v15508_v28, 5  ;;  %2117 = vst [vmem:[#allocation2 + $0x2d0] sm:$0xf] %v15481_v42  ;;  %v1469_v49 = vrot.slane %v1467_v25, 5  ;;  %v888_v25 = vadd.f32 %v15447_v12, %v15476_v40 }
 0x188   : > { %2118 = vst [vmem:[#allocation2 + $0x2f4] sm:$0xf] %v15508_v28  ;;  %2827 = vst [vmem:[#allocation2 + $0x270] sm:$0xf] %v15481_v42  ;;  %v14157_v43 = vld [vmem:[#allocation2 + $0x1fc] ss:$36 sps:$4 sm:$0xff]   ;;  %v1460_v0 = vsel %vm15143_vm2, %v1455_v36, %v1459_v32  ;;  %v1464_v3 = vor.u32 %v1463_v29, %v1459_v32  ;;  %v15535_v32 = vpack.c.bf16 %v1033_v39, %v1033_v39 }
 0x189   : > { %2828 = vst [vmem:[#allocation2 + $0x294] sm:$0xf] %v15508_v28  ;;  %3536 = vst [vmem:[#allocation2 + $0x210] sm:$0xf] %v15481_v42  ;;  %v1473_v9 = vrot.slane %v1471_v33, 4  ;;  %v895_v13 = vpop.f32.mrb[50].mxu0  ;;  %6039 = vmatprep.mubr.bf16.mxu1 %v14157_v43  ;;  %v15542_v29 = vsel %vm15151_vm5, %v15350_v6, %v2426_v48  ;;  %v893_v33 = vadd.f32 %v15447_v12, %v892_v53 }
 0x18a   : > { %3537 = vst [vmem:[#allocation2 + $0x234] sm:$0xf] %v15508_v28  ;;  %v14159_v11 = vld [vmem:[#allocation2 + $0x1f8] ss:$36 sps:$4 sm:$0xff]   ;;  %v14227_v19 = vld [vmem:[%s18426_s3 + $0xf0] sm:$0xff]   ;;  %v15529_v26 = vrot.slane %v2444_v34, 4 }
 0x18b   : > { %1869 = vst [vmem:[#allocation4 + $0x4c] sm:$0xf] %v1460_v0  ;;  %v15533_v38 = vrot.slane %v2447_v63, 4  ;;  %v897_v36 = vpop.f32.mrb[51].mxu0  ;;  %v1465_v17 = vrot.slane %v1464_v3, 4  ;;  %v1474_v37 = vor.u32 %v1473_v9, %v1469_v49  ;;  %6204 = vmatpush1.bf16.msra.mxu1 %v14227_v19  ;;  %v1477_v6 = vshll.u32 %v15535_v32, 16 }
 0x18c   : > { %v2161_v5 = vld [vmem:[#allocation4 + $0x44] sm:$0xf]  ;;  %v900_v44 = vpop.f32.mrb[52].mxu0  ;;  %6205 = vmatprep.subr.bf16.mxu1 %v18432_v1  ;;  %4003 = vst [vmem:[#allocation2 + $0x11c] sm:$0xf] %v15542_v29  ;;  %6040 = vmatmul.mubr.bf16.gmra.mrb[28].mxu1 %v14159_v11  ;;  %v1481_v48 = vshrl.u32 %v15535_v32, 16  ;;  %v15560_v3 = vsel %vm15151_vm5, %v15403_v7, %v2429_v54  ;;  %v896_v9 = vadd.f32 %v15447_v12, %v895_v13 }
 0x18d   : > { %2208 = vst [vmem:[#allocation2 + $0x268] sm:$0xf] %v2161_v5  ;;  %v1470_v39 = vsel %vm15143_vm2, %v1465_v17, %v1469_v49  ;;  %v902_v20 = vpop.f32.mrb[53].mxu0  ;;  %v1034_v43 = vmax.f32 %v888_v25, 0.0  ;;  %v1035_v40 = vmax.f32 %v893_v33, 0.0  ;;  %v1475_v53 = vrot.slane %v1474_v37, 4 }
 0x18e   : > { %1870 = vst [vmem:[#allocation4 + $0x50] sm:$0xf] %v1470_v39  ;;  %v15553_v0 = vpop.f32.mrb[54].mxu0  ;;  %v15567_v49 = vsel %vm15151_vm5, %v15407_v10, %v2432_v41  ;;  %v2162_v19 = vld [vmem:[#allocation4 + $0x48] sm:$0xf]  ;;  %v1479_v36 = vrot.slane %v1477_v6, 5  ;;  %v901_v7 = vadd.f32 %v15447_v12, %v900_v44 }
 0x18f   : > { %v905_v11 = vpop.f32.mrb[55].mxu0  ;;  %v1483_v17 = vrot.slane %v1481_v48, 4  ;;  %v15570_v37 = vpack.c.bf16 %v1034_v43, %v1034_v43  ;;  %4004 = vst [vmem:[#allocation2 + $0x140] sm:$0xf] %v15560_v3  ;;  %4005 = vst [vmem:[#allocation2 + $0x164] sm:$0xf] %v15567_v49  ;;  %v15577_v52 = vpack.c.bf16 %v1035_v40, %v1035_v40  ;;  %6206 = vmatpush1.bf16.msra.mxu1 %v14235_v21 }
 0x190   : > { %2209 = vst [vmem:[#allocation2 + $0x28c] sm:$0xf] %v2162_v19  ;;  %v1036_v54 = vmax.f32 %v896_v9, 0.0  ;;  %v1480_v41 = vsel %vm15143_vm2, %v1475_v53, %v1479_v36  ;;  %6399 = vmatprep.subr.bf16.mxu1 %v18432_v1  ;;  %v2450_v53 = vrot.slane %v15535_v32, 5  ;;  %2119 = vst [vmem:[#allocation2 + $0x318] sm:$0xf] %v15535_v32 }
 0x191   : > { %v1484_v13 = vor.u32 %v1483_v17, %v1479_v36  ;;  %v1487_v5 = vshll.u32 %v15570_v37, 16  ;;  %v1491_v25 = vshrl.u32 %v15570_v37, 16  ;;  %1871 = vst [vmem:[#allocation4 + $0x54] sm:$0xf] %v1480_v41  ;;  %v1497_v33 = vshll.u32 %v15577_v52, 16  ;;  %v908_v17 = vpop.f32.mrb[56].mxu0 }
 0x192   : > { %v2163_v10 = vld [vmem:[#allocation4 + $0x4c] sm:$0xf]  ;;  %v1501_v39 = vshrl.u32 %v15577_v52, 16  ;;  %v15587_v43 = vpack.c.bf16 %v1036_v54, %v1036_v54  ;;  %v2453_v9 = vrot.slane %v15570_v37, 5  ;;  %2120 = vst [vmem:[#allocation2 + $0x33c] sm:$0xf] %v15570_v37 }
 0x193   : > { %2210 = vst [vmem:[#allocation2 + $0x2b0] sm:$0xf] %v2163_v10  ;;  %v1485_v44 = vrot.slane %v1484_v13, 4  ;;  %v14156_v6 = vld [vmem:[#allocation2 + $0xf8] ss:$36 sps:$4 sm:$0xff]   ;;  %v1489_v48 = vrot.slane %v1487_v5, 5 }
 0x194   : > { %v14162_v20 = vld [vmem:[#allocation2 + $0x244] ss:$36 sps:$4 sm:$0xff]   ;;  %v1493_v40 = vrot.slane %v1491_v25, 4  ;;  %2829 = vst [vmem:[#allocation2 + $0x2b8] sm:$0xf] %v15535_v32  ;;  %v1037_v19 = vmax.f32 %v901_v7, 0.0  ;;  %13577 = vmatmul.mubr.bf16.gmra.mrb[112].mxu0 %v14156_v6 }
 0x195   : > { %2830 = vst [vmem:[#allocation2 + $0x2dc] sm:$0xf] %v15570_v37  ;;  %3538 = vst [vmem:[#allocation2 + $0x258] sm:$0xf] %v15535_v32  ;;  %6047 = vmatprep.mubr.bf16.mxu1 %v14162_v20  ;;  %v14164_v11 = vld [vmem:[#allocation2 + $0x240] ss:$36 sps:$4 sm:$0xff]   ;;  %v1490_v36 = vsel %vm15143_vm2, %v1485_v44, %v1489_v48 }
 0x196   : > { %3539 = vst [vmem:[#allocation2 + $0x27c] sm:$0xf] %v15570_v37  ;;  %v2164_v21 = vld [vmem:[#allocation4 + $0x50] sm:$0xf]  ;;  %v1494_v54 = vor.u32 %v1493_v40, %v1489_v48  ;;  %1872 = vst [vmem:[#allocation4 + $0x58] sm:$0xf] %v1490_v36  ;;  %6048 = vmatmul.mubr.bf16.gmra.mrb[32].mxu1 %v14164_v11  ;;  %v15609_v36 = vpack.c.bf16 %v1037_v19, %v1037_v19  ;;  %v15616_v11 = vsel %vm15151_vm5, %v15435_v45, %v2435_v15 }
 0x197   : > { %v15601_v10 = vrot.slane %v2450_v53, 4  ;;  %2211 = vst [vmem:[#allocation2 + $0x2d4] sm:$0xf] %v2164_v21  ;;  %v15605_v41 = vrot.slane %v2453_v9, 4  ;;  %v1499_v13 = vrot.slane %v1497_v33, 5  ;;  %v1503_v7 = vrot.slane %v1501_v39, 4 }
 0x198   : > { %v1507_v5 = vshll.u32 %v15587_v43, 16  ;;  %v1495_v25 = vrot.slane %v1494_v54, 4  ;;  %v14160_v20 = vld [vmem:[#allocation2 + $0x140] ss:$36 sps:$4 sm:$0xff]   ;;  %v1511_v44 = vshrl.u32 %v15587_v43, 16  ;;  %v910_v6 = vpop.f32.mrb[57].mxu0 }
 0x199   : > { %v1504_v48 = vor.u32 %v1503_v7, %v1499_v13  ;;  %v14168_v39 = vld [vmem:[#allocation2 + $0x288] ss:$36 sps:$4 sm:$0xff]   ;;  %v911_v21 = vpop.f32.mrb[58].mxu0  ;;  %13580 = vmatprep.mubr.bf16.mxu0 %v14160_v20  ;;  %v2456_v7 = vrot.slane %v15577_v52, 5  ;;  %v18435_v19 = vrot.slane %v15587_v43, 5 }
 0x19a   : > { %v1509_v40 = vrot.slane %v1507_v5, 5  ;;  %v14166_v33 = vld [vmem:[#allocation2 + $0x28c] ss:$36 sps:$4 sm:$0xff]   ;;  %v1500_v54 = vsel %vm15143_vm2, %v1495_v25, %v1499_v13  ;;  %v1513_v1 = vrot.slane %v1511_v44, 4  ;;  %2121 = vst [vmem:[#allocation2 + $0x360] sm:$0xf] %v15577_v52  ;;  %v912_v50 = vadd.f32 %v15447_v12, %v911_v21 }
 0x19b   : > { %2122 = vst [vmem:[#allocation2 + $0x384] sm:$0xf] %v15587_v43  ;;  %2831 = vst [vmem:[#allocation2 + $0x300] sm:$0xf] %v15577_v52  ;;  %v913_v16 = vpop.f32.mrb[59].mxu0  ;;  %v1505_v45 = vrot.slane %v1504_v48, 4  ;;  %6055 = vmatprep.mubr.bf16.mxu1 %v14166_v33 }
 0x19c   : > { %2832 = vst [vmem:[#allocation2 + $0x324] sm:$0xf] %v15587_v43  ;;  %3540 = vst [vmem:[#allocation2 + $0x2a0] sm:$0xf] %v15577_v52  ;;  %v2165_v15 = vld [vmem:[#allocation4 + $0x54] sm:$0xf]  ;;  %v1514_v5 = vor.u32 %v1513_v1, %v1509_v40 }
 0x19d   : > { %3541 = vst [vmem:[#allocation2 + $0x2c4] sm:$0xf] %v15587_v43  ;;  %4006 = vst [vmem:[#allocation2 + $0x188] sm:$0xf] %v15616_v11  ;;  %v916_v13 = vpop.f32.mrb[60].mxu0  ;;  %v15631_v25 = vrot.slane %v2456_v7, 4  ;;  %v1510_v44 = vsel %vm15143_vm2, %v1505_v45, %v1509_v40  ;;  %v909_v40 = vadd.f32 %v15447_v12, %v908_v17 }
 0x19e   : > { %1873 = vst [vmem:[#allocation4 + $0x5c] sm:$0xf] %v1500_v54  ;;  %2212 = vst [vmem:[#allocation2 + $0x2f8] sm:$0xf] %v2165_v15  ;;  %v918_v20 = vpop.f32.mrb[61].mxu0  ;;  %v15637_v6 = vrot.slane %v18435_v19, 4  ;;  %v904_v54 = vadd.f32 %v15447_v12, %v15553_v0  ;;  %6056 = vmatmul.mubr.bf16.gmra.mrb[36].mxu1 %v14168_v39  ;;  %v15678_v42 = vadd.f32 %v15447_v12, %v916_v13 }
 0x19f   : > { %v1517_v16 = vshll.u32 %v15609_v36, 16  ;;  %v15640_v48 = vpop.f32.mrb[62].mxu0  ;;  %v1515_v33 = vrot.slane %v1514_v5, 4  ;;  %1874 = vst [vmem:[#allocation4 + $0x60] sm:$0xf] %v1510_v44  ;;  %v1521_v1 = vshrl.u32 %v15609_v36, 16  ;;  %v15651_v5 = vsel %vm15151_vm5, %v15439_v46, %v2438_v56 }
 0x1a0   : > { %v921_v15 = vpop.f32.mrb[63].mxu0  ;;  %v2166_v20 = vld [vmem:[#allocation4 + $0x58] sm:$0xf]  ;;  %v1038_v44 = vmax.f32 %v904_v54, 0.0  ;;  %4007 = vst [vmem:[#allocation2 + $0x1ac] sm:$0xf] %v15651_v5  ;;  %v15669_v46 = vsel %vm15151_vm5, %v15503_v27, %v2444_v34 }
 0x1a1   : > { %v1519_v4 = vrot.slane %v1517_v16, 5  ;;  %2213 = vst [vmem:[#allocation2 + $0x31c] sm:$0xf] %v2166_v20  ;;  %v1523_v45 = vrot.slane %v1521_v1, 4  ;;  %v1039_v39 = vmax.f32 %v909_v40, 0.0  ;;  %v1040_v51 = vmax.f32 %v912_v50, 0.0 }
 0x1a2   : > { %v15671_v17 = vpack.c.bf16 %v1038_v44, %v1038_v44  ;;  %4008 = vst [vmem:[#allocation2 + $0x1d0] sm:$0xf] %v15662_v24  ;;  %4009 = vst [vmem:[#allocation2 + $0x1f4] sm:$0xf] %v15669_v46  ;;  %v14173_v16 = vld [vmem:[#allocation2 + $0x2d0] ss:$36 sps:$4 sm:$0xff]  }
 0x1a3   : > { %v1520_v0 = vsel %vm15143_vm2, %v1515_v33, %v1519_v4  ;;  %v1524_v56 = vor.u32 %v1523_v45, %v1519_v4  ;;  %v15675_v60 = vpack.c.bf16 %v1039_v39, %v1039_v39  ;;  %v15680_v33 = vpop.f32.mrb[64].mxu0  ;;  %v2859_v54 = vld [vmem:[#allocation4 + $0x14] sm:$0xf]  ;;  %v18439_v44 = vrot.slane %v15609_v36, 5  ;;  %2123 = vst [vmem:[#allocation2 + $0x3a8] sm:$0xf] %v15609_v36 }
 0x1a4   : > { %1875 = vst [vmem:[#allocation4 + $0x64] sm:$0xf] %v1520_v0  ;;  %v1527_v4 = vshll.u32 %v15671_v17, 16  ;;  %v1531_v34 = vshrl.u32 %v15671_v17, 16  ;;  %v926_v1 = vpop.f32.mrb[65].mxu0  ;;  %v18438_v39 = vrot.slane %v15671_v17, 5 }
 0x1a5   : > { %v14171_v21 = vld [vmem:[#allocation2 + $0x2d4] ss:$36 sps:$4 sm:$0xff]   ;;  %v2167_v18 = vld [vmem:[#allocation4 + $0x5c] sm:$0xf]  ;;  %v1525_v27 = vrot.slane %v1524_v56, 4  ;;  %v1537_v50 = vshll.u32 %v15675_v60, 16 }
 0x1a6   : > { %6063 = vmatprep.mubr.bf16.mxu1 %v14171_v21  ;;  %2214 = vst [vmem:[#allocation2 + $0x340] sm:$0xf] %v2167_v18  ;;  %v1541_v15 = vshrl.u32 %v15675_v60, 16  ;;  %v15686_v20 = vpop.f32.mrb[66].mxu0  ;;  %v2168_v13 = vld [vmem:[#allocation4 + $0x60] sm:$0xf] }
 0x1a7   : > { %2906 = vst [vmem:[#allocation2 + $0x58] sm:$0xf] %v2859_v54  ;;  %v1529_v40 = vrot.slane %v1527_v4, 5  ;;  %v1533_v45 = vrot.slane %v1531_v34, 4  ;;  %2833 = vst [vmem:[#allocation2 + $0x348] sm:$0xf] %v15609_v36  ;;  %6064 = vmatmul.mubr.bf16.gmra.mrb[40].mxu1 %v14173_v16 }
 0x1a8   : > { %3542 = vst [vmem:[#allocation2 + $0x2e8] sm:$0xf] %v15609_v36  ;;  %v929_v0 = vpop.f32.mrb[67].mxu0  ;;  %2215 = vst [vmem:[#allocation2 + $0x364] sm:$0xf] %v2168_v13  ;;  %v15700_v4 = vrot.slane %v18439_v44, 4  ;;  %v15702_v13 = vpack.c.bf16 %v1040_v51, %v1040_v51 }
 0x1a9   : > { %2124 = vst [vmem:[#allocation2 + $0x3cc] sm:$0xf] %v15671_v17  ;;  %2834 = vst [vmem:[#allocation2 + $0x36c] sm:$0xf] %v15671_v17  ;;  %v14165_v56 = vld [vmem:[#allocation2 + $0x188] ss:$36 sps:$4 sm:$0xff]   ;;  %v1530_v21 = vsel %vm15143_vm2, %v1525_v27, %v1529_v40  ;;  %v1534_v18 = vor.u32 %v1533_v45, %v1529_v40  ;;  %v15710_v27 = vsel %vm15151_vm5, %v15529_v26, %v2447_v63 }
 0x1aa   : > { %3543 = vst [vmem:[#allocation2 + $0x30c] sm:$0xf] %v15671_v17  ;;  %1876 = vst [vmem:[#allocation4 + $0x68] sm:$0xf] %v1530_v21  ;;  %v1539_v16 = vrot.slane %v1537_v50, 5  ;;  %v1543_v34 = vrot.slane %v1541_v15, 4  ;;  %13581 = vmatmul.mubr.bf16.gmra.mrb[116].mxu0 %v14165_v56  ;;  %v15717_v50 = vsel %vm15151_vm5, %v15533_v38, %v2450_v53 }
 0x1ab   : > { %v1535_v1 = vrot.slane %v1534_v18, 4  ;;  %v14170_v54 = vld [vmem:[#allocation2 + $0x1d0] ss:$36 sps:$4 sm:$0xff]   ;;  %v1041_v19 = vmax.f32 %v15678_v42, 0.0  ;;  %v14178_v51 = vld [vmem:[#allocation2 + $0x318] ss:$36 sps:$4 sm:$0xff]  }
 0x1ac   : > { %v1544_v0 = vor.u32 %v1543_v34, %v1539_v16  ;;  %13584 = vmatprep.mubr.bf16.mxu0 %v14170_v54  ;;  %v1547_v28 = vshll.u32 %v15702_v13, 16  ;;  %v1551_v42 = vshrl.u32 %v15702_v13, 16  ;;  %v18437_v63 = vrot.slane %v15675_v60, 5  ;;  %2125 = vst [vmem:[#allocation2 + $0x3f0] sm:$0xf] %v15675_v60  ;;  %v932_v38 = vpop.f32.mrb[68].mxu0 }
 0x1ad   : > { %v14176_v15 = vld [vmem:[#allocation2 + $0x31c] ss:$36 sps:$4 sm:$0xff]   ;;  %v1540_v40 = vsel %vm15143_vm2, %v1535_v1, %v1539_v16  ;;  %2126 = vst [vmem:[#allocation2 + $0x414] sm:$0xf] %v15702_v13  ;;  %2835 = vst [vmem:[#allocation2 + $0x390] sm:$0xf] %v15675_v60 }
 0x1ae   : > { %2836 = vst [vmem:[#allocation2 + $0x3b4] sm:$0xf] %v15702_v13  ;;  %3544 = vst [vmem:[#allocation2 + $0x330] sm:$0xf] %v15675_v60  ;;  %v2169_v26 = vld [vmem:[#allocation4 + $0x64] sm:$0xf]  ;;  %6071 = vmatprep.mubr.bf16.mxu1 %v14176_v15 }
 0x1af   : > { %3545 = vst [vmem:[#allocation2 + $0x354] sm:$0xf] %v15702_v13  ;;  %4010 = vst [vmem:[#allocation2 + $0x218] sm:$0xf] %v15710_v27  ;;  %v15734_v32 = vrot.slane %v18438_v39, 4  ;;  %v1545_v53 = vrot.slane %v1544_v0, 4  ;;  %6072 = vmatmul.mubr.bf16.gmra.mrb[44].mxu1 %v14178_v51  ;;  %v920_v51 = vadd.f32 %v15447_v12, %v15640_v48 }
 0x1b0   : > { %4011 = vst [vmem:[#allocation2 + $0x23c] sm:$0xf] %v15717_v50  ;;  %1877 = vst [vmem:[#allocation4 + $0x6c] sm:$0xf] %v1540_v40  ;;  %v18436_v45 = vrot.slane %v15702_v13, 5  ;;  %v934_v56 = vpop.f32.mrb[69].mxu0  ;;  %v15749_v40 = vpack.c.bf16 %v1041_v19, %v1041_v19 }
 0x1b1   : > { %2216 = vst [vmem:[#allocation2 + $0x388] sm:$0xf] %v2169_v26  ;;  %v1549_v21 = vrot.slane %v1547_v28, 5  ;;  %v1553_v18 = vrot.slane %v1551_v42, 4  ;;  %v15737_v16 = vpop.f32.mrb[70].mxu0  ;;  %v15741_v34 = vrot.slane %v18437_v63, 4  ;;  %v925_v56 = vadd.f32 %v15447_v12, %v15680_v33 }
 0x1b2   : > { %v15745_v1 = vrot.slane %v18436_v45, 4  ;;  %v937_v54 = vpop.f32.mrb[71].mxu0  ;;  %v2170_v28 = vld [vmem:[#allocation4 + $0x68] sm:$0xf]  ;;  %v2860_v42 = vld [vmem:[#allocation4 + $0x18] sm:$0xf]  ;;  %v928_v45 = vadd.f32 %v15447_v12, %v15686_v20  ;;  %v15764_v33 = vsel %vm15151_vm5, %v15601_v10, %v2453_v9  ;;  %v15771_v20 = vsel %vm15151_vm5, %v15605_v41, %v2456_v7 }
 0x1b3   : > { %v1550_v0 = vsel %vm15143_vm2, %v1545_v53, %v1549_v21  ;;  %v1554_v15 = vor.u32 %v1553_v18, %v1549_v21  ;;  %v2861_v26 = vld [vmem:[#allocation4 + $0x1c] sm:$0xf]  ;;  %2217 = vst [vmem:[#allocation2 + $0x3ac] sm:$0xf] %v2170_v28  ;;  %2907 = vst [vmem:[#allocation2 + $0x7c] sm:$0xf] %v2860_v42 }
 0x1b4   : > { %1878 = vst [vmem:[#allocation4 + $0x70] sm:$0xf] %v1550_v0  ;;  %v2862_v54 = vld [vmem:[#allocation4 + $0x20] sm:$0xf]  ;;  %2908 = vst [vmem:[#allocation2 + $0xa0] sm:$0xf] %v2861_v26  ;;  %v933_v26 = vadd.f32 %v15447_v12, %v932_v38 }
 0x1b5   : > { %v3569_v53 = vld [vmem:[#allocation4 + $0x18] sm:$0xf]  ;;  %v1555_v19 = vrot.slane %v1554_v15, 4  ;;  %v1557_v21 = vshll.u32 %v15749_v40, 16  ;;  %v1561_v48 = vshrl.u32 %v15749_v40, 16  ;;  %v1042_v18 = vmax.f32 %v920_v51, 0.0 }
 0x1b6   : > { %2909 = vst [vmem:[#allocation2 + $0xc4] sm:$0xf] %v2862_v54  ;;  %v3570_v63 = vld [vmem:[#allocation4 + $0x1c] sm:$0xf]  ;;  %3616 = vst [vmem:[#allocation2 + $0x1c] sm:$0xf] %v3569_v53 }
 0x1b7   : > { %v14174_v0 = vld [vmem:[#allocation2 + $0x218] ss:$36 sps:$4 sm:$0xff]   ;;  %3617 = vst [vmem:[#allocation2 + $0x40] sm:$0xf] %v3570_v63  ;;  %v1559_v15 = vrot.slane %v1557_v21, 5  ;;  %v1563_v51 = vrot.slane %v1561_v48, 4  ;;  %v15773_v28 = vpack.c.bf16 %v1042_v18, %v1042_v18 }
 0x1b8   : > { %4012 = vst [vmem:[#allocation2 + $0x260] sm:$0xf] %v15764_v33  ;;  %4013 = vst [vmem:[#allocation2 + $0x284] sm:$0xf] %v15771_v20  ;;  %v14180_v37 = vld [vmem:[#allocation2 + $0x364] ss:$36 sps:$4 sm:$0xff]   ;;  %13585 = vmatmul.mubr.bf16.gmra.mrb[120].mxu0 %v14174_v0 }
 0x1b9   : > { %v15777_v42 = vpop.f32.mrb[72].mxu0  ;;  %v1043_v9 = vmax.f32 %v925_v56, 0.0  ;;  %v1044_v52 = vmax.f32 %v928_v45, 0.0  ;;  %v14182_v10 = vld [vmem:[#allocation2 + $0x360] ss:$36 sps:$4 sm:$0xff]   ;;  %v1560_v41 = vsel %vm15143_vm2, %v1555_v19, %v1559_v15  ;;  %v1564_v7 = vor.u32 %v1563_v51, %v1559_v15  ;;  %6079 = vmatprep.mubr.bf16.mxu1 %v14180_v37 }
 0x1ba   : > { %v1567_v63 = vshll.u32 %v15773_v28, 16  ;;  %v1571_v54 = vshrl.u32 %v15773_v28, 16  ;;  %v2171_v53 = vld [vmem:[#allocation4 + $0x6c] sm:$0xf]  ;;  %v942_v21 = vpop.f32.mrb[73].mxu0  ;;  %6080 = vmatmul.mubr.bf16.gmra.mrb[48].mxu1 %v14182_v10  ;;  %v15796_v37 = vmax.f32 %v933_v26, 0.0 }
 0x1bb   : > { %1879 = vst [vmem:[#allocation4 + $0x74] sm:$0xf] %v1560_v41  ;;  %v15784_v48 = vpack.c.bf16 %v1043_v9, %v1043_v9  ;;  %2218 = vst [vmem:[#allocation2 + $0x3d0] sm:$0xf] %v2171_v53  ;;  %v15786_v45 = vpop.f32.mrb[74].mxu0  ;;  %v1565_v18 = vrot.slane %v1564_v7, 4  ;;  %v15788_v15 = vpack.c.bf16 %v1044_v52, %v1044_v52  ;;  %v936_v9 = vadd.f32 %v15447_v12, %v15737_v16 }
 0x1bc   : > { %v2863_v56 = vld [vmem:[#allocation4 + $0x24] sm:$0xf]  ;;  %v2864_v38 = vld [vmem:[#allocation4 + $0x28] sm:$0xf]  ;;  %v1569_v0 = vrot.slane %v1567_v63, 5  ;;  %v1573_v19 = vrot.slane %v1571_v54, 4  ;;  %v15810_v16 = vpack.c.bf16 %v15796_v37, %v15796_v37 }
 0x1bd   : > { %v945_v51 = vpop.f32.mrb[75].mxu0  ;;  %2910 = vst [vmem:[#allocation2 + $0xe8] sm:$0xf] %v2863_v56  ;;  %2911 = vst [vmem:[#allocation2 + $0x10c] sm:$0xf] %v2864_v38  ;;  %v18441_v7 = vrot.slane %v15749_v40, 5 }
 0x1be   : > { %2127 = vst [vmem:[#allocation2 + $0x438] sm:$0xf] %v15749_v40  ;;  %2128 = vst [vmem:[#allocation2 + $0x45c] sm:$0xf] %v15773_v28  ;;  %v2172_v52 = vld [vmem:[#allocation4 + $0x70] sm:$0xf]  ;;  %v1570_v10 = vsel %vm15143_vm2, %v1565_v18, %v1569_v0  ;;  %v1574_v41 = vor.u32 %v1573_v19, %v1569_v0 }
 0x1bf   : > { %2837 = vst [vmem:[#allocation2 + $0x3d8] sm:$0xf] %v15749_v40  ;;  %2838 = vst [vmem:[#allocation2 + $0x3fc] sm:$0xf] %v15773_v28  ;;  %v18440_v63 = vrot.slane %v15773_v28, 5  ;;  %v1577_v53 = vshll.u32 %v15784_v48, 16 }
 0x1c0   : > { %3546 = vst [vmem:[#allocation2 + $0x378] sm:$0xf] %v15749_v40  ;;  %3547 = vst [vmem:[#allocation2 + $0x39c] sm:$0xf] %v15773_v28  ;;  %v1575_v54 = vrot.slane %v1574_v41, 4  ;;  %v1581_v26 = vshrl.u32 %v15784_v48, 16 }
 0x1c1   : > { %2219 = vst [vmem:[#allocation2 + $0x3f4] sm:$0xf] %v2172_v52  ;;  %1880 = vst [vmem:[#allocation4 + $0x78] sm:$0xf] %v1570_v10  ;;  %v1587_v21 = vshll.u32 %v15788_v15, 16  ;;  %v1591_v12 = vshrl.u32 %v15788_v15, 16 }
 0x1c2   : > { %v14179_v56 = vld [vmem:[#allocation2 + $0x260] ss:$36 sps:$4 sm:$0xff]   ;;  %v15812_v38 = vpop.f32.mrb[76].mxu0  ;;  %v1579_v0 = vrot.slane %v1577_v53, 5  ;;  %v1583_v19 = vrot.slane %v1581_v26, 4  ;;  %v18480_v52 = vrot.slane %v15587_v43, 5 }
 0x1c3   : > { %v2865_v18 = vld [vmem:[#allocation4 + $0x2c] sm:$0xf]  ;;  %v1589_v51 = vrot.slane %v1587_v21, 5  ;;  %v14185_v41 = vld [vmem:[#allocation2 + $0x3ac] ss:$36 sps:$4 sm:$0xff]   ;;  %v15823_v39 = vrot.slane %v18441_v7, 4  ;;  %13588 = vmatprep.mubr.bf16.mxu0 %v14179_v56 }
 0x1c4   : > { %v15819_v10 = vsel %vm15151_vm5, %v15631_v25, %v18480_v52  ;;  %2912 = vst [vmem:[#allocation2 + $0x130] sm:$0xf] %v2865_v18  ;;  %v15827_v44 = vrot.slane %v18440_v63, 4  ;;  %v1593_v53 = vrot.slane %v1591_v12, 4  ;;  %2839 = vst [vmem:[#allocation2 + $0x420] sm:$0xf] %v15784_v48  ;;  %v1580_v26 = vsel %vm15143_vm2, %v1575_v54, %v1579_v0  ;;  %6087 = vmatprep.mubr.bf16.mxu1 %v14185_v41 }
 0x1c5   : > { %2840 = vst [vmem:[#allocation2 + $0x444] sm:$0xf] %v15788_v15  ;;  %3548 = vst [vmem:[#allocation2 + $0x3c0] sm:$0xf] %v15784_v48  ;;  %v1597_v43 = vshll.u32 %v15810_v16, 16  ;;  %v1584_v21 = vor.u32 %v1583_v19, %v1579_v0  ;;  %v1601_v56 = vshrl.u32 %v15810_v16, 16 }
 0x1c6   : > { %3549 = vst [vmem:[#allocation2 + $0x3e4] sm:$0xf] %v15788_v15  ;;  %4014 = vst [vmem:[#allocation2 + $0x2a8] sm:$0xf] %v15819_v10  ;;  %v14187_v25 = vld [vmem:[#allocation2 + $0x3a8] ss:$36 sps:$4 sm:$0xff]   ;;  %v1594_v52 = vor.u32 %v1593_v53, %v1589_v51 }
 0x1c7   : > { %2129 = vst [vmem:[#allocation2 + $0x480] sm:$0xf] %v15784_v48  ;;  %2130 = vst [vmem:[#allocation2 + $0x4a4] sm:$0xf] %v15788_v15  ;;  %v2173_v12 = vld [vmem:[#allocation4 + $0x74] sm:$0xf]  ;;  %6088 = vmatmul.mubr.bf16.gmra.mrb[52].mxu1 %v14187_v25 }
 0x1c8   : > { %v950_v18 = vpop.f32.mrb[77].mxu0  ;;  %1881 = vst [vmem:[#allocation4 + $0x7c] sm:$0xf] %v1580_v26  ;;  %v1599_v62 = vrot.slane %v1597_v43, 5  ;;  %2220 = vst [vmem:[#allocation2 + $0x418] sm:$0xf] %v2173_v12 }
 0x1c9   : > { %v951_v35 = vpop.f32.mrb[78].mxu0  ;;  %v1585_v47 = vrot.slane %v1584_v21, 4  ;;  %v1603_v2 = vrot.slane %v1601_v56, 4  ;;  %v18481_v54 = vrot.slane %v15609_v36, 5  ;;  %v1046_v19 = vmax.f32 %v936_v9, 0.0 }
 0x1ca   : > { %v953_v41 = vpop.f32.mrb[79].mxu0  ;;  %v2174_v53 = vld [vmem:[#allocation4 + $0x78] sm:$0xf]  ;;  %v1595_v26 = vrot.slane %v1594_v52, 4  ;;  %v15853_v43 = vld [vmem:[%s18425_s2] ss:$0 sm:$0xff] }
 0x1cb   : > { %v15847_v0 = vsel %vm15151_vm5, %v15637_v6, %v18481_v54  ;;  %v941_v25 = vadd.f32 %v15853_v43, %v15777_v42  ;;  %2221 = vst [vmem:[#allocation2 + $0x43c] sm:$0xf] %v2174_v53  ;;  %v15857_v36 = vpop.f32.mrb[80].mxu0  ;;  %v2866_v21 = vld [vmem:[#allocation4 + $0x30] sm:$0xf]  ;;  %v1590_v6 = vsel %vm15143_vm2, %v1585_v47, %v1589_v51  ;;  %v1604_v9 = vor.u32 %v1603_v2, %v1599_v62 }
 0x1cc   : > { %4015 = vst [vmem:[#allocation2 + $0x2cc] sm:$0xf] %v15847_v0  ;;  %v1082_v56 = vpack.c.bf16 %v1046_v19, %v15796_v37  ;;  %v15862_v12 = vpack.c.bf16 %v1046_v19, %v1046_v19  ;;  %v958_v18 = vpop.f32.mrb[81].mxu0  ;;  %2913 = vst [vmem:[#allocation2 + $0x154] sm:$0xf] %v2866_v21  ;;  %v1600_v54 = vsel %vm15143_vm2, %v1595_v26, %v1599_v62  ;;  %v18482_v41 = vrot.slane %v15671_v17, 5 }
 0x1cd   : > { %v2867_v52 = vld [vmem:[#allocation4 + $0x34] sm:$0xf]  ;;  %1882 = vst [vmem:[#allocation4 + $0x80] sm:$0xf] %v1590_v6  ;;  %v1047_v42 = vmax.f32 %v941_v25, 0.0  ;;  %v18483_v47 = vrot.slane %v15675_v60, 5  ;;  %v944_v26 = vadd.f32 %v15853_v43, %v15786_v45  ;;  %v949_v25 = vadd.f32 %v15853_v43, %v15812_v38 }
 0x1ce   : > { %v15871_v53 = vsel %vm15151_vm5, %v15700_v4, %v18482_v41  ;;  %v15880_v37 = vpop.f32.mrb[82].mxu0  ;;  %2914 = vst [vmem:[#allocation2 + $0x178] sm:$0xf] %v2867_v52  ;;  %v3571_v51 = vld [vmem:[#allocation4 + $0x20] sm:$0xf]  ;;  %v1605_v19 = vrot.slane %v1604_v9, 4 }
 0x1cf   : > { %v15878_v2 = vsel %vm15151_vm5, %v15734_v32, %v18483_v47  ;;  %v3572_v62 = vld [vmem:[#allocation4 + $0x24] sm:$0xf]  ;;  %1883 = vst [vmem:[#allocation4 + $0x84] sm:$0xf] %v1600_v54  ;;  %1109 = vst [vmem:[#allocation3 + $0x88] sm:$0xff] %v1082_v56  ;;  %v1607_v17 = vshll.u32 %v15862_v12, 16  ;;  %v15886_v32 = vpack.c.bf16 %v1047_v42, %v1047_v42 }
 0x1d0   : > { %v1611_v4 = vshrl.u32 %v15862_v12, 16  ;;  %4016 = vst [vmem:[#allocation2 + $0x2f0] sm:$0xf] %v15871_v53  ;;  %4017 = vst [vmem:[#allocation2 + $0x314] sm:$0xf] %v15878_v2  ;;  %v961_v60 = vpop.f32.mrb[83].mxu0 }
 0x1d1   : > { %3618 = vst [vmem:[#allocation2 + $0x64] sm:$0xf] %v3571_v51  ;;  %3619 = vst [vmem:[#allocation2 + $0x88] sm:$0xf] %v3572_v62  ;;  %v2868_v21 = vld [vmem:[#allocation4 + $0x38] sm:$0xf]  ;;  %v952_v51 = vadd.f32 %v15853_v43, %v951_v35 }
 0x1d2   : > { %v3573_v6 = vld [vmem:[#allocation4 + $0x28] sm:$0xf]  ;;  %v3574_v9 = vld [vmem:[#allocation4 + $0x2c] sm:$0xf]  ;;  %v1609_v56 = vrot.slane %v1607_v17, 5  ;;  %v1613_v18 = vrot.slane %v1611_v4, 4 }
 0x1d3   : > { %2841 = vst [vmem:[#allocation2 + $0x468] sm:$0xf] %v15810_v16  ;;  %3550 = vst [vmem:[#allocation2 + $0x408] sm:$0xf] %v15810_v16  ;;  %v14190_v54 = vld [vmem:[#allocation2 + $0x3f4] ss:$36 sps:$4 sm:$0xff]  }
 0x1d4   : > { %2131 = vst [vmem:[#allocation2 + $0x4c8] sm:$0xf] %v15810_v16  ;;  %2915 = vst [vmem:[#allocation2 + $0x19c] sm:$0xf] %v2868_v21  ;;  %v1617_v45 = vshll.u32 %v15886_v32, 16  ;;  %v1621_v38 = vshrl.u32 %v15886_v32, 16  ;;  %v1610_v17 = vsel %vm15143_vm2, %v1605_v19, %v1609_v56  ;;  %v1614_v4 = vor.u32 %v1613_v18, %v1609_v56  ;;  %6095 = vmatprep.mubr.bf16.mxu1 %v14190_v54 }
 0x1d5   : > { %3620 = vst [vmem:[#allocation2 + $0xac] sm:$0xf] %v3573_v6  ;;  %3621 = vst [vmem:[#allocation2 + $0xd0] sm:$0xf] %v3574_v9  ;;  %v1048_v41 = vmax.f32 %v944_v26, 0.0  ;;  %v15904_v21 = vmax.f32 %v949_v25, 0.0 }
 0x1d6   : > { %3551 = vst [vmem:[#allocation2 + $0x42c] sm:$0xf] %v15862_v12  ;;  %v14192_v47 = vld [vmem:[#allocation2 + $0x3f0] ss:$36 sps:$4 sm:$0xff]   ;;  %2132 = vst [vmem:[#allocation2 + $0x4ec] sm:$0xf] %v15862_v12 }
 0x1d7   : > { %v14184_v62 = vld [vmem:[#allocation2 + $0x2a8] ss:$36 sps:$4 sm:$0xff]   ;;  %1884 = vst [vmem:[#allocation4 + $0x88] sm:$0xf] %v1610_v17  ;;  %v1619_v6 = vrot.slane %v1617_v45, 5  ;;  %v1623_v9 = vrot.slane %v1621_v38, 4  ;;  %v1083_v52 = vpack.c.bf16 %v1048_v41, %v1047_v42  ;;  %v15906_v26 = vpack.c.bf16 %v1048_v41, %v1048_v41  ;;  %6096 = vmatmul.mubr.bf16.gmra.mrb[56].mxu1 %v14192_v47 }
 0x1d8   : > { %v2175_v35 = vld [vmem:[#allocation4 + $0x7c] sm:$0xf]  ;;  %v15908_v7 = vpop.f32.mrb[84].mxu0  ;;  %13589 = vmatmul.mubr.bf16.gmra.mrb[124].mxu0 %v14184_v62  ;;  %v1615_v63 = vrot.slane %v1614_v4, 4  ;;  %v15912_v19 = vpack.c.bf16 %v15904_v21, %v15904_v21  ;;  %v2176_v56 = vld [vmem:[#allocation4 + $0x80] sm:$0xf]  ;;  %v957_v42 = vadd.f32 %v15853_v43, %v15857_v36 }
 0x1d9   : > { %2222 = vst [vmem:[#allocation2 + $0x460] sm:$0xf] %v2175_v35  ;;  %v966_v25 = vpop.f32.mrb[85].mxu0  ;;  %v1624_v18 = vor.u32 %v1623_v9, %v1619_v6  ;;  %v14188_v54 = vld [vmem:[#allocation2 + $0x2f0] ss:$36 sps:$4 sm:$0xff]   ;;  %1110 = vst [vmem:[#allocation3 + $0x90] sm:$0xff] %v1083_v52 }
 0x1da   : > { %2223 = vst [vmem:[#allocation2 + $0x484] sm:$0xf] %v2176_v56  ;;  %v1620_v45 = vsel %vm15143_vm2, %v1615_v63, %v1619_v6  ;;  %v1627_v38 = vshll.u32 %v15906_v26, 16  ;;  %v1631_v41 = vshrl.u32 %v15906_v26, 16  ;;  %v1637_v47 = vshll.u32 %v15912_v19, 16  ;;  %v15921_v17 = vpop.f32.mrb[86].mxu0  ;;  %13592 = vmatprep.mubr.bf16.mxu0 %v14188_v54 }
 0x1db   : > { %v2177_v62 = vld [vmem:[#allocation4 + $0x84] sm:$0xf]  ;;  %v1625_v4 = vrot.slane %v1624_v18, 4  ;;  %1885 = vst [vmem:[#allocation4 + $0x8c] sm:$0xf] %v1620_v45  ;;  %v1641_v63 = vshrl.u32 %v15912_v19, 16 }
 0x1dc   : > { %3552 = vst [vmem:[#allocation2 + $0x450] sm:$0xf] %v15886_v32  ;;  %3553 = vst [vmem:[#allocation2 + $0x474] sm:$0xf] %v15906_v26  ;;  %v969_v6 = vpop.f32.mrb[87].mxu0  ;;  %v1629_v9 = vrot.slane %v1627_v38, 5 }
 0x1dd   : > { %2224 = vst [vmem:[#allocation2 + $0x4a8] sm:$0xf] %v2177_v62  ;;  %2133 = vst [vmem:[#allocation2 + $0x510] sm:$0xf] %v15886_v32  ;;  %v1633_v35 = vrot.slane %v1631_v41, 4  ;;  %v1639_v56 = vrot.slane %v1637_v47, 5 }
 0x1de   : > { %2134 = vst [vmem:[#allocation2 + $0x534] sm:$0xf] %v15906_v26  ;;  %v18484_v25 = vrot.slane %v15702_v13, 5  ;;  %v1643_v54 = vrot.slane %v1641_v63, 4  ;;  %v18485_v45 = vrot.slane %v15749_v40, 5  ;;  %v1050_v38 = vmax.f32 %v952_v51, 0.0 }
 0x1df   : > { %v15945_v41 = vmax.f32 %v957_v42, 0.0  ;;  %v2869_v47 = vld [vmem:[#allocation4 + $0x3c] sm:$0xf]  ;;  %v1630_v13 = vsel %vm15143_vm2, %v1625_v4, %v1629_v9  ;;  %v1634_v6 = vor.u32 %v1633_v35, %v1629_v9  ;;  %v2870_v63 = vld [vmem:[#allocation4 + $0x40] sm:$0xf]  ;;  %v15957_v4 = vpop.f32.mrb[88].mxu0 }
 0x1e0   : > { %v15935_v18 = vsel %vm15151_vm5, %v15741_v34, %v18484_v25  ;;  %v15942_v62 = vsel %vm15151_vm5, %v15745_v1, %v18485_v45  ;;  %v2178_v34 = vld [vmem:[#allocation4 + $0x88] sm:$0xf]  ;;  %2916 = vst [vmem:[#allocation2 + $0x1c0] sm:$0xf] %v2869_v47  ;;  %1886 = vst [vmem:[#allocation4 + $0x90] sm:$0xf] %v1630_v13  ;;  %v1644_v40 = vor.u32 %v1643_v54, %v1639_v56 }
 0x1e1   : > { %18486 = vst [vmem:[#allocation12_spill] sm:$0xff] %v15942_v62  ;;  %4018 = vst [vmem:[#allocation2 + $0x338] sm:$0xf] %v15935_v18  ;;  %v1084_v1 = vpack.c.bf16 %v1050_v38, %v15904_v21  ;;  %v15951_v25 = vpack.c.bf16 %v1050_v38, %v1050_v38  ;;  %v14194_v45 = vld [vmem:[#allocation2 + $0x43c] ss:$36 sps:$4 sm:$0xff]   ;;  %v15955_v42 = vpack.c.bf16 %v15945_v41, %v15945_v41  ;;  %v1635_v9 = vrot.slane %v1634_v6, 4 }
 0x1e2   : > { %4019 = vst [vmem:[#allocation2 + $0x35c] sm:$0xf] %v15942_v62  ;;  %v14196_v51 = vld [vmem:[#allocation2 + $0x438] ss:$36 sps:$4 sm:$0xff]   ;;  %2225 = vst [vmem:[#allocation2 + $0x4cc] sm:$0xf] %v2178_v34  ;;  %v960_v47 = vadd.f32 %v15853_v43, %v15880_v37  ;;  %6103 = vmatprep.mubr.bf16.mxu1 %v14194_v45 }
 0x1e3   : > { %2917 = vst [vmem:[#allocation2 + $0x1e4] sm:$0xf] %v2870_v63  ;;  %v18487_v35 = vrot.slane %v15773_v28, 5  ;;  %v18489_v21 = vrot.slane %v15784_v48, 5  ;;  %v974_v13 = vpop.f32.mrb[89].mxu0  ;;  %v1645_v6 = vrot.slane %v1644_v40, 4  ;;  %6104 = vmatmul.mubr.bf16.gmra.mrb[60].mxu1 %v14196_v51 }
 0x1e4   : > { %v2871_v34 = vld [vmem:[#allocation4 + $0x44] sm:$0xf]  ;;  %1111 = vst [vmem:[#allocation3 + $0x98] sm:$0xff] %v1084_v1  ;;  %v1647_v28 = vshll.u32 %v15951_v25, 16  ;;  %v1651_v63 = vshrl.u32 %v15951_v25, 16  ;;  %v1657_v37 = vshll.u32 %v15955_v42, 16 }
 0x1e5   : > { %v15964_v54 = vsel %vm15151_vm5, %v15823_v39, %v18487_v35  ;;  %v15971_v38 = vsel %vm15151_vm5, %v15827_v44, %v18489_v21  ;;  %v15979_v39 = vpop.f32.mrb[90].mxu0  ;;  %2918 = vst [vmem:[#allocation2 + $0x208] sm:$0xf] %v2871_v34  ;;  %v1640_v44 = vsel %vm15143_vm2, %v1635_v9, %v1639_v56  ;;  %v1661_v40 = vshrl.u32 %v15955_v42, 16  ;;  %v14199_v1 = vld [vmem:[#allocation2 + $0x484] ss:$36 sps:$4 sm:$0xff]  }
 0x1e6   : > { %18488 = vst [vmem:[#allocation13_spill] sm:$0xff] %v15964_v54  ;;  %18490 = vst [vmem:[#allocation14_spill] sm:$0xff] %v15971_v38  ;;  %v977_v35 = vpop.f32.mrb[91].mxu0  ;;  %v1649_v21 = vrot.slane %v1647_v28, 5  ;;  %v1653_v45 = vrot.slane %v1651_v63, 4  ;;  %v1052_v36 = vmax.f32 %v960_v47, 0.0  ;;  %6111 = vmatprep.mubr.bf16.mxu1 %v14199_v1  ;;  %v965_v56 = vadd.f32 %v15853_v43, %v15908_v7 }
 0x1e7   : > { %4020 = vst [vmem:[#allocation2 + $0x380] sm:$0xf] %v15964_v54  ;;  %4021 = vst [vmem:[#allocation2 + $0x3a4] sm:$0xf] %v15971_v38  ;;  %v1659_v52 = vrot.slane %v1657_v37, 5  ;;  %v1663_v34 = vrot.slane %v1661_v40, 4 }
 0x1e8   : > { %1887 = vst [vmem:[#allocation4 + $0x94] sm:$0xf] %v1640_v44  ;;  %2135 = vst [vmem:[#allocation2 + $0x558] sm:$0xf] %v15912_v19  ;;  %v14201_v60 = vld [vmem:[#allocation2 + $0x480] ss:$36 sps:$4 sm:$0xff]   ;;  %v1650_v9 = vsel %vm15143_vm2, %v1645_v6, %v1649_v21  ;;  %v1654_v28 = vor.u32 %v1653_v45, %v1649_v21  ;;  %v1085_v63 = vpack.c.bf16 %v1052_v36, %v15945_v41 }
 0x1e9   : > { %2136 = vst [vmem:[#allocation2 + $0x57c] sm:$0xf] %v15951_v25  ;;  %v14193_v51 = vld [vmem:[#allocation2 + $0x338] ss:$36 sps:$4 sm:$0xff]   ;;  %v15993_v44 = vpack.c.bf16 %v1052_v36, %v1052_v36  ;;  %v2179_v47 = vld [vmem:[#allocation4 + $0x8c] sm:$0xf]  ;;  %v1664_v37 = vor.u32 %v1663_v34, %v1659_v52 }
 0x1ea   : > { %1888 = vst [vmem:[#allocation4 + $0x98] sm:$0xf] %v1650_v9  ;;  %v15995_v40 = vmax.f32 %v965_v56, 0.0  ;;  %v18491_v1 = vrot.slane %v15784_v48, 5  ;;  %v18492_v7 = vrot.slane %v15788_v15, 5  ;;  %13593 = vmatmul.mubr.bf16.gmra.mrb[128].mxu0 %v14193_v51  ;;  %v1655_v6 = vrot.slane %v1654_v28, 4 }
 0x1eb   : > { %2226 = vst [vmem:[#allocation2 + $0x4f0] sm:$0xf] %v2179_v47  ;;  %v2180_v38 = vld [vmem:[#allocation4 + $0x90] sm:$0xf]  ;;  %1112 = vst [vmem:[#allocation3 + $0xa0] sm:$0xff] %v1085_v63  ;;  %v1667_v41 = vshll.u32 %v15993_v44, 16  ;;  %6112 = vmatmul.mubr.bf16.gmra.mrb[64].mxu1 %v14201_v60  ;;  %v968_v60 = vadd.f32 %v15853_v43, %v15921_v17 }
 0x1ec   : > { %v3886_v35 = vrot.slane %v18491_v1, 4  ;;  %v3889_v13 = vrot.slane %v18492_v7, 4  ;;  %v1671_v36 = vshrl.u32 %v15993_v44, 16  ;;  %2227 = vst [vmem:[#allocation2 + $0x514] sm:$0xf] %v2180_v38  ;;  %v980_v21 = vpop.f32.mrb[92].mxu0  ;;  %v16005_v48 = vpack.c.bf16 %v15995_v40, %v15995_v40 }
 0x1ed   : > { %v2872_v45 = vld [vmem:[#allocation4 + $0x48] sm:$0xf]  ;;  %v1665_v34 = vrot.slane %v1664_v37, 4  ;;  %v18493_v56 = vmov %v18492_v7  ;;  %v982_v51 = vpop.f32.mrb[93].mxu0  ;;  %v1660_v38 = vsel %vm15143_vm2, %v1655_v6, %v1659_v52  ;;  %v1669_v47 = vrot.slane %v1667_v41, 5 }
 0x1ee   : > { %v16011_v9 = vsel %vm15151_vm5, %v3886_v35, %v18493_v56  ;;  %2919 = vst [vmem:[#allocation2 + $0x22c] sm:$0xf] %v2872_v45  ;;  %v14198_v63 = vld [vmem:[#allocation2 + $0x380] ss:$36 sps:$4 sm:$0xff]   ;;  %v1673_v37 = vrot.slane %v1671_v36, 4  ;;  %v16017_v1 = vpop.f32.mrb[94].mxu0  ;;  %v973_v51 = vadd.f32 %v15853_v43, %v15957_v4  ;;  %v976_v4 = vadd.f32 %v15853_v43, %v15979_v39 }
 0x1ef   : > { %18494 = vst [vmem:[#allocation15_spill] sm:$0xff] %v16011_v9  ;;  %4022 = vst [vmem:[#allocation2 + $0x3c8] sm:$0xf] %v16011_v9  ;;  %v1677_v35 = vshll.u32 %v16005_v48, 16  ;;  %v1681_v7 = vshrl.u32 %v16005_v48, 16  ;;  %v18495_v45 = vrot.slane %v15810_v16, 5  ;;  %13596 = vmatprep.mubr.bf16.mxu0 %v14198_v63  ;;  %v1670_v36 = vsel %vm15143_vm2, %v1665_v34, %v1669_v47 }
 0x1f0   : > { %2137 = vst [vmem:[#allocation2 + $0x5a0] sm:$0xf] %v15955_v42  ;;  %1889 = vst [vmem:[#allocation4 + $0x9c] sm:$0xf] %v1660_v38  ;;  %v2181_v6 = vld [vmem:[#allocation4 + $0x94] sm:$0xf]  ;;  %v1674_v56 = vor.u32 %v1673_v37, %v1669_v47 }
 0x1f1   : > { %v16027_v52 = vsel %vm15151_vm5, %v3889_v13, %v18495_v45  ;;  %v985_v41 = vpop.f32.mrb[95].mxu0  ;;  %2138 = vst [vmem:[#allocation2 + $0x5c4] sm:$0xf] %v15993_v44  ;;  %2228 = vst [vmem:[#allocation2 + $0x538] sm:$0xf] %v2181_v6  ;;  %v1679_v45 = vrot.slane %v1677_v35, 5 }
 0x1f2   : > { %18496 = vst [vmem:[#allocation16_spill] sm:$0xff] %v16027_v52  ;;  %4023 = vst [vmem:[#allocation2 + $0x3ec] sm:$0xf] %v16027_v52  ;;  %v2873_v13 = vld [vmem:[#allocation4 + $0x4c] sm:$0xf]  ;;  %v1683_v41 = vrot.slane %v1681_v7, 4 }
 0x1f3   : > { %v2874_v38 = vld [vmem:[#allocation4 + $0x50] sm:$0xf]  ;;  %1890 = vst [vmem:[#allocation4 + $0xa0] sm:$0xf] %v1670_v36  ;;  %v18497_v63 = vrot.slane %v15810_v16, 5  ;;  %v18498_v34 = vrot.slane %v15862_v12, 5 }
 0x1f4   : > { %2920 = vst [vmem:[#allocation2 + $0x250] sm:$0xf] %v2873_v13  ;;  %2921 = vst [vmem:[#allocation2 + $0x274] sm:$0xf] %v2874_v38  ;;  %v1675_v37 = vrot.slane %v1674_v56, 4  ;;  %v1054_v28 = vmax.f32 %v968_v60, 0.0  ;;  %v1684_v6 = vor.u32 %v1683_v41, %v1679_v45  ;;  %v981_v56 = vadd.f32 %v15853_v43, %v980_v21 }
 0x1f5   : > { %v3892_v15 = vrot.slane %v18497_v63, 4  ;;  %v3895_v47 = vrot.slane %v18498_v34, 4  ;;  %v14204_v17 = vld [vmem:[#allocation2 + $0x4cc] ss:$36 sps:$4 sm:$0xff]   ;;  %v1055_v52 = vmax.f32 %v973_v51, 0.0  ;;  %v18499_v35 = vmov %v18498_v34 }
 0x1f6   : > { %v14206_v9 = vld [vmem:[#allocation2 + $0x4c8] ss:$36 sps:$4 sm:$0xff]   ;;  %v18501_v7 = vrot.slane %v15886_v32, 5  ;;  %v1680_v39 = vsel %vm15143_vm2, %v1675_v37, %v1679_v45  ;;  %v1086_v51 = vpack.c.bf16 %v1054_v28, %v15995_v40  ;;  %v16059_v13 = vpack.c.bf16 %v1054_v28, %v1054_v28  ;;  %6119 = vmatprep.mubr.bf16.mxu1 %v14204_v17  ;;  %2139 = vst [vmem:[#allocation2 + $0x5e8] sm:$0xf] %v16005_v48 }
 0x1f7   : > { %v16047_v16 = vsel %vm15151_vm5, %v3892_v15, %v18499_v35  ;;  %v2182_v60 = vld [vmem:[#allocation4 + $0x98] sm:$0xf]  ;;  %v16061_v12 = vpack.c.bf16 %v1055_v52, %v1055_v52  ;;  %v16065_v15 = vpop.f32.mrb[96].mxu0  ;;  %v2875_v38 = vld [vmem:[#allocation4 + $0x54] sm:$0xf]  ;;  %v1685_v21 = vrot.slane %v1684_v6, 4  ;;  %6120 = vmatmul.mubr.bf16.gmra.mrb[68].mxu1 %v14206_v9 }
 0x1f8   : > { %18500 = vst [vmem:[#allocation17_spill] sm:$0xff] %v16047_v16  ;;  %v16053_v36 = vsel %vm15151_vm5, %v3895_v47, %v18501_v7  ;;  %4024 = vst [vmem:[#allocation2 + $0x410] sm:$0xf] %v16047_v16  ;;  %v1056_v41 = vmax.f32 %v976_v4, 0.0  ;;  %v16067_v63 = vmax.f32 %v981_v56, 0.0  ;;  %v18503_v40 = vmov %v18501_v7  ;;  %v990_v37 = vpop.f32.mrb[97].mxu0 }
 0x1f9   : > { %18502 = vst [vmem:[#allocation18_spill] sm:$0xff] %v16053_v36  ;;  %4025 = vst [vmem:[#allocation2 + $0x434] sm:$0xf] %v16053_v36  ;;  %v3898_v28 = vrot.slane %v18503_v40, 4  ;;  %v1687_v45 = vshll.u32 %v16059_v13, 16  ;;  %v1691_v34 = vshrl.u32 %v16059_v13, 16  ;;  %v989_v54 = vadd.f32 %v15853_v43, %v16065_v15 }
 0x1fa   : > { %2229 = vst [vmem:[#allocation2 + $0x55c] sm:$0xf] %v2182_v60  ;;  %1891 = vst [vmem:[#allocation4 + $0xa4] sm:$0xf] %v1680_v39  ;;  %v2183_v47 = vld [vmem:[#allocation4 + $0x9c] sm:$0xf]  ;;  %v1087_v4 = vpack.c.bf16 %v1056_v41, %v1055_v52  ;;  %v16075_v7 = vpack.c.bf16 %v1056_v41, %v1056_v41 }
 0x1fb   : > { %2922 = vst [vmem:[#allocation2 + $0x298] sm:$0xf] %v2875_v38  ;;  %1113 = vst [vmem:[#allocation3 + $0xa8] sm:$0xff] %v1086_v51  ;;  %v14202_v17 = vld [vmem:[#allocation2 + $0x3c8] ss:$36 sps:$4 sm:$0xff]   ;;  %v1697_v35 = vshll.u32 %v16061_v12, 16 }
 0x1fc   : > { %v1701_v6 = vshrl.u32 %v16061_v12, 16  ;;  %2230 = vst [vmem:[#allocation2 + $0x580] sm:$0xf] %v2183_v47  ;;  %v1689_v56 = vrot.slane %v1687_v45, 5  ;;  %v1693_v60 = vrot.slane %v1691_v34, 4  ;;  %v16079_v51 = vpop.f32.mrb[98].mxu0  ;;  %13597 = vmatmul.mubr.bf16.gmra.mrb[132].mxu0 %v14202_v17  ;;  %v16089_v17 = vpack.c.bf16 %v16067_v63, %v16067_v63 }
 0x1fd   : > { %2140 = vst [vmem:[#allocation2 + $0x60c] sm:$0xf] %v16059_v13  ;;  %v1699_v9 = vrot.slane %v1697_v35, 5  ;;  %1114 = vst [vmem:[#allocation3 + $0xb0] sm:$0xff] %v1087_v4  ;;  %v1707_v52 = vshll.u32 %v16075_v7, 16  ;;  %v1711_v41 = vshrl.u32 %v16075_v7, 16 }
 0x1fe   : > { %v1703_v38 = vrot.slane %v1701_v6, 4  ;;  %v14208_v40 = vld [vmem:[#allocation2 + $0x514] ss:$36 sps:$4 sm:$0xff]   ;;  %v1690_v45 = vsel %vm15143_vm2, %v1685_v21, %v1689_v56  ;;  %v1694_v34 = vor.u32 %v1693_v60, %v1689_v56  ;;  %v993_v39 = vpop.f32.mrb[99].mxu0  ;;  %v18504_v35 = vrot.slane %v15906_v26, 5 }
 0x1ff   : > { %v14210_v47 = vld [vmem:[#allocation2 + $0x510] ss:$36 sps:$4 sm:$0xff]   ;;  %1892 = vst [vmem:[#allocation4 + $0xa8] sm:$0xf] %v1690_v45  ;;  %6127 = vmatprep.mubr.bf16.mxu1 %v14208_v40  ;;  %v984_v21 = vadd.f32 %v15853_v43, %v16017_v1  ;;  %v1709_v60 = vrot.slane %v1707_v52, 5  ;;  %v1713_v39 = vrot.slane %v1711_v41, 4 }
 0x200   : > { %v2184_v37 = vld [vmem:[#allocation4 + $0xa0] sm:$0xf]  ;;  %v1704_v32 = vor.u32 %v1703_v38, %v1699_v9  ;;  %v16095_v6 = vsel %vm15151_vm5, %v3898_v28, %v18504_v35  ;;  %v1695_v4 = vrot.slane %v1694_v34, 4  ;;  %2141 = vst [vmem:[#allocation2 + $0x630] sm:$0xf] %v16061_v12  ;;  %v16103_v38 = vpop.f32.mrb[100].mxu0  ;;  %6128 = vmatmul.mubr.bf16.gmra.mrb[72].mxu1 %v14210_v47 }
 0x201   : > { %v14207_v36 = vld [vmem:[#allocation2 + $0x410] ss:$36 sps:$4 sm:$0xff]   ;;  %18505 = vst [vmem:[#allocation19_spill] sm:$0xff] %v16095_v6  ;;  %2231 = vst [vmem:[#allocation2 + $0x5a4] sm:$0xf] %v2184_v37  ;;  %v1717_v1 = vshll.u32 %v16089_v17, 16  ;;  %v1714_v41 = vor.u32 %v1713_v39, %v1709_v60  ;;  %v18506_v37 = vmov %v18504_v35 }
 0x202   : > { %4026 = vst [vmem:[#allocation2 + $0x458] sm:$0xf] %v16095_v6  ;;  %2142 = vst [vmem:[#allocation2 + $0x654] sm:$0xf] %v16075_v7  ;;  %v1705_v40 = vrot.slane %v1704_v32, 4  ;;  %13600 = vmatprep.mubr.bf16.mxu0 %v14207_v36  ;;  %v1721_v45 = vshrl.u32 %v16089_v17, 16  ;;  %v1700_v52 = vsel %vm15143_vm2, %v1695_v4, %v1699_v9 }
 0x203   : > { %v2185_v34 = vld [vmem:[#allocation4 + $0xa4] sm:$0xf]  ;;  %v3901_v35 = vrot.slane %v18506_v37, 4  ;;  %v1058_v56 = vmax.f32 %v984_v21, 0.0  ;;  %v14215_v6 = vld [vmem:[#allocation2 + $0x55c] ss:$36 sps:$4 sm:$0xff]  }
 0x204   : > { %2232 = vst [vmem:[#allocation2 + $0x5c8] sm:$0xf] %v2185_v34  ;;  %v998_v16 = vpop.f32.mrb[101].mxu0  ;;  %1893 = vst [vmem:[#allocation4 + $0xac] sm:$0xf] %v1700_v52  ;;  %v1710_v36 = vsel %vm15143_vm2, %v1705_v40, %v1709_v60  ;;  %v1719_v32 = vrot.slane %v1717_v1, 5  ;;  %6135 = vmatprep.mubr.bf16.mxu1 %v14215_v6 }
 0x205   : > { %v1723_v28 = vrot.slane %v1721_v45, 4  ;;  %v16116_v62 = vpop.f32.mrb[102].mxu0  ;;  %v1715_v9 = vrot.slane %v1714_v41, 4  ;;  %1894 = vst [vmem:[#allocation4 + $0xb0] sm:$0xf] %v1710_v36  ;;  %v18507_v26 = vrot.slane %v15912_v19, 5  ;;  %v1088_v16 = vpack.c.bf16 %v1058_v56, %v16067_v63 }
 0x206   : > { %v16125_v4 = vpack.c.bf16 %v1058_v56, %v1058_v56  ;;  %v1001_v47 = vpop.f32.mrb[103].mxu0  ;;  %v2876_v60 = vld [vmem:[#allocation4 + $0x58] sm:$0xf]  ;;  %v14217_v15 = vld [vmem:[#allocation2 + $0x558] ss:$36 sps:$4 sm:$0xff]   ;;  %v16128_v40 = vmax.f32 %v989_v54, 0.0 }
 0x207   : > { %v16122_v21 = vsel %vm15151_vm5, %v3901_v35, %v18507_v26  ;;  %v1724_v39 = vor.u32 %v1723_v28, %v1719_v32  ;;  %v18508_v1 = vmov %v18507_v26  ;;  %2923 = vst [vmem:[#allocation2 + $0x2bc] sm:$0xf] %v2876_v60  ;;  %v2877_v34 = vld [vmem:[#allocation4 + $0x5c] sm:$0xf]  ;;  %v1720_v52 = vsel %vm15143_vm2, %v1715_v9, %v1719_v32  ;;  %1115 = vst [vmem:[#allocation3 + $0xb8] sm:$0xff] %v1088_v16  ;;  %v16156_v60 = vpop.f32.mrb[104].mxu0 }
 0x208   : > { %4027 = vst [vmem:[#allocation2 + $0x47c] sm:$0xf] %v16122_v21  ;;  %v3904_v45 = vrot.slane %v18508_v1, 4  ;;  %v1727_v63 = vshll.u32 %v16125_v4, 16  ;;  %v1731_v6 = vshrl.u32 %v16125_v4, 16  ;;  %v18509_v56 = vrot.slane %v15951_v25, 5  ;;  %6136 = vmatmul.mubr.bf16.gmra.mrb[76].mxu1 %v14217_v15 }
 0x209   : > { %v2186_v41 = vld [vmem:[#allocation4 + $0xa8] sm:$0xf]  ;;  %2924 = vst [vmem:[#allocation2 + $0x2e0] sm:$0xf] %v2877_v34  ;;  %v1725_v37 = vrot.slane %v1724_v39, 4  ;;  %v16141_v19 = vpack.c.bf16 %v16128_v40, %v16128_v40  ;;  %v18513_v16 = vrot.slane %v15955_v42, 5 }
 0x20a   : > { %v3907_v28 = vrot.slane %v18509_v56, 4  ;;  %1895 = vst [vmem:[#allocation4 + $0xb4] sm:$0xf] %v1720_v52  ;;  %v18511_v35 = vmov %v18509_v56  ;;  %2233 = vst [vmem:[#allocation2 + $0x5ec] sm:$0xf] %v2186_v41  ;;  %v1729_v9 = vrot.slane %v1727_v63, 5 }
 0x20b   : > { %18510 = vst [vmem:[#allocation20_spill] sm:$0xff] %v16141_v19  ;;  %v16147_v36 = vsel %vm15151_vm5, %v3904_v45, %v18511_v35  ;;  %v2878_v32 = vld [vmem:[#allocation4 + $0x60] sm:$0xf]  ;;  %v1733_v26 = vrot.slane %v1731_v6, 4  ;;  %v2879_v25 = vld [vmem:[#allocation4 + $0x64] sm:$0xf]  ;;  %v992_v45 = vadd.f32 %v15853_v43, %v16079_v51  ;;  %v18515_v6 = vmov %v18513_v16 }
 0x20c   : > { %18512 = vst [vmem:[#allocation21_spill] sm:$0xff] %v16147_v36  ;;  %v16153_v47 = vsel %vm15151_vm5, %v3907_v28, %v18513_v16  ;;  %4028 = vst [vmem:[#allocation2 + $0x4a0] sm:$0xf] %v16147_v36  ;;  %v1737_v39 = vshll.u32 %v16141_v19, 16  ;;  %v1741_v1 = vshrl.u32 %v16141_v19, 16  ;;  %v1730_v52 = vsel %vm15143_vm2, %v1725_v37, %v1729_v9 }
 0x20d   : > { %18514 = vst [vmem:[#allocation22_spill] sm:$0xff] %v16153_v47  ;;  %2925 = vst [vmem:[#allocation2 + $0x304] sm:$0xf] %v2878_v32  ;;  %v14220_v34 = vld [vmem:[#allocation2 + $0x5a4] ss:$36 sps:$4 sm:$0xff]   ;;  %v1734_v63 = vor.u32 %v1733_v26, %v1729_v9  ;;  %v3910_v56 = vrot.slane %v18515_v6, 4 }
 0x20e   : > { %4029 = vst [vmem:[#allocation2 + $0x4c4] sm:$0xf] %v16153_v47  ;;  %2926 = vst [vmem:[#allocation2 + $0x328] sm:$0xf] %v2879_v25  ;;  %v18516_v28 = vrot.slane %v15993_v44, 5  ;;  %v1739_v32 = vrot.slane %v1737_v39, 5  ;;  %6143 = vmatprep.mubr.bf16.mxu1 %v14220_v34 }
 0x20f   : > { %v2187_v35 = vld [vmem:[#allocation4 + $0xac] sm:$0xf]  ;;  %1896 = vst [vmem:[#allocation4 + $0xb8] sm:$0xf] %v1730_v52  ;;  %v1743_v16 = vrot.slane %v1741_v1, 4  ;;  %v1060_v54 = vmax.f32 %v992_v45, 0.0 }
 0x210   : > { %v3913_v41 = vrot.slane %v18516_v28, 4  ;;  %2234 = vst [vmem:[#allocation2 + $0x610] sm:$0xf] %v2187_v35  ;;  %v18517_v51 = vrot.slane %v16005_v48, 5  ;;  %v2188_v47 = vld [vmem:[#allocation4 + $0xb0] sm:$0xf]  ;;  %v18518_v42 = vmov %v18516_v28 }
 0x211   : > { %v14212_v36 = vld [vmem:[#allocation2 + $0x458] ss:$36 sps:$4 sm:$0xff]   ;;  %v1735_v37 = vrot.slane %v1734_v63, 4  ;;  %v16175_v9 = vsel %vm15151_vm5, %v3910_v56, %v18518_v42  ;;  %v18520_v39 = vrot.slane %v16059_v13, 5  ;;  %2235 = vst [vmem:[#allocation2 + $0x634] sm:$0xf] %v2188_v47  ;;  %v1744_v45 = vor.u32 %v1743_v16, %v1739_v32 }
 0x212   : > { %v3916_v25 = vrot.slane %v18517_v51, 4  ;;  %v18519_v26 = vmov %v18517_v51  ;;  %v1089_v52 = vpack.c.bf16 %v1060_v54, %v16128_v40  ;;  %v12878_v34 = vpack.c.bf16 %v1060_v54, %v1060_v54  ;;  %4030 = vst [vmem:[#allocation2 + $0x4e8] sm:$0xf] %v16175_v9  ;;  %v14233_v63 = vld [vmem:[#allocation3 + $0xb8] ss:$0 sps:$4 sm:$0xff]   ;;  %13601 = vmatmul.mubr.bf16.gmra.mrb[136].mxu0 %v14212_v36  ;;  %v1006_v13 = vpop.f32.mrb[105].mxu0 }
 0x213   : > { %v16181_v15 = vsel %vm15151_vm5, %v3913_v41, %v18519_v26  ;;  %v3919_v1 = vrot.slane %v18520_v39, 4  ;;  %v18521_v44 = vmov %v18520_v39  ;;  %v1740_v6 = vsel %vm15143_vm2, %v1735_v37, %v1739_v32  ;;  %v14222_v47 = vld [vmem:[#allocation2 + $0x5a0] ss:$36 sps:$4 sm:$0xff]   ;;  %v2189_v54 = vld [vmem:[#allocation4 + $0xb4] sm:$0xf]  ;;  %v1007_v36 = vpop.f32.mrb[106].mxu0 }
 0x214   : > { %4031 = vst [vmem:[#allocation2 + $0x50c] sm:$0xf] %v16181_v15  ;;  %v16192_v48 = vsel %vm15151_vm5, %v3916_v25, %v18521_v44  ;;  %v18522_v56 = vrot.slane %v16061_v12, 5  ;;  %v1745_v28 = vrot.slane %v1744_v45, 4  ;;  %1897 = vst [vmem:[#allocation4 + $0xbc] sm:$0xf] %v1740_v6  ;;  %6144 = vmatmul.mubr.bf16.gmra.mrb[80].mxu1 %v14222_v47  ;;  %v997_v13 = vadd.f32 %v15853_v43, %v16103_v38 }
 0x215   : > { %4032 = vst [vmem:[#allocation2 + $0x530] sm:$0xf] %v16192_v48  ;;  %1116 = vst [vmem:[#allocation3 + $0xc0] sm:$0xff] %v1089_v52  ;;  %v1747_v41 = vshll.u32 %v12878_v34, 16  ;;  %v1751_v35 = vshrl.u32 %v12878_v34, 16  ;;  %v3225_v32 = vrot.slane %v16089_v17, 5  ;;  %v1008_v38 = vadd.f32 %v15853_v43, %v1007_v36 }
 0x216   : > { %v16200_v40 = vsel %vm15151_vm5, %v3919_v1, %v18522_v56  ;;  %2236 = vst [vmem:[#allocation2 + $0x658] sm:$0xf] %v2189_v54  ;;  %2143 = vst [vmem:[#allocation2 + $0x678] sm:$0xf] %v14233_v63  ;;  %v14218_v16 = vld [vmem:[#allocation2 + $0x4a0] ss:$36 sps:$4 sm:$0xff]   ;;  %v18524_v39 = vmov %v18522_v56 }
 0x217   : > { %4033 = vst [vmem:[#allocation2 + $0x554] sm:$0xf] %v16200_v40  ;;  %v18523_v51 = vrot.slane %v15200_v30, 5  ;;  %v3228_v37 = vrot.slane %v16125_v4, 5  ;;  %v1749_v42 = vrot.slane %v1747_v41, 5  ;;  %v1753_v26 = vrot.slane %v1751_v35, 4  ;;  %13604 = vmatprep.mubr.bf16.mxu0 %v14218_v16 }
 0x218   : > { %v3922_v1 = vrot.slane %v18524_v39, 4  ;;  %v1009_v45 = vpop.f32.mrb[107].mxu0  ;;  %v18466_v17 = vrot.slane %v16141_v19, 5  ;;  %v14224_v52 = vld [vmem:[#allocation2 + $0x5ec] ss:$36 sps:$4 sm:$0xff]   ;;  %v16221_v30 = vsel %vm15151_vm5, %v15233_v58, %v15248_v22  ;;  %v18525_v12 = vrot.slane %v16075_v7, 5 }
 0x219   : > { %v16210_v25 = vsel %vm15151_vm5, %v15229_v57, %v18523_v51  ;;  %v1750_v57 = vsel %vm15143_vm2, %v1745_v28, %v1749_v42  ;;  %v2190_v63 = vld [vmem:[#allocation4 + $0xb8] sm:$0xf]  ;;  %2581 = vst [vmem:[#allocation2 + $0x104] sm:$0xf] %v16221_v30  ;;  %2583 = vst [vmem:[#allocation2 + $0x14c] sm:$0xf] %v15316_v31  ;;  %6151 = vmatprep.mubr.bf16.mxu1 %v14224_v52  ;;  %v1754_v6 = vor.u32 %v1753_v26, %v1749_v42 }
 0x21a   : > { %2580 = vst [vmem:[#allocation2 + $0xe0] sm:$0xf] %v16210_v25  ;;  %v16229_v4 = vsel %vm15151_vm5, %v3922_v1, %v18525_v12  ;;  %v18526_v34 = vmov %v18525_v12  ;;  %v2880_v58 = vld [vmem:[#allocation4 + $0x68] sm:$0xf]  ;;  %1898 = vst [vmem:[#allocation4 + $0xc0] sm:$0xf] %v1750_v57  ;;  %v1000_v28 = vadd.f32 %v15853_v43, %v16116_v62  ;;  %v1005_v41 = vadd.f32 %v15853_v43, %v16156_v60 }
 0x21b   : > { %v16233_v44 = vrot.slane %v18526_v34, 4  ;;  %v14223_v22 = vld [vmem:[#allocation2 + $0x4e8] ss:$36 sps:$4 sm:$0xff]   ;;  %4034 = vst [vmem:[#allocation2 + $0x578] sm:$0xf] %v16229_v4  ;;  %v3928_v47 = vrot.slane %v3225_v32, 4 }
 0x21c   : > { %2237 = vst [vmem:[#allocation2 + $0x67c] sm:$0xf] %v2190_v63  ;;  %2927 = vst [vmem:[#allocation2 + $0x34c] sm:$0xf] %v2880_v58  ;;  %v3931_v56 = vrot.slane %v3228_v37, 4  ;;  %13605 = vmatmul.mubr.bf16.gmra.mrb[140].mxu0 %v14223_v22  ;;  %v1061_v60 = vmax.f32 %v997_v13, 0.0 }
 0x21d   : > { %v16242_v7 = vsel %vm15151_vm5, %v16233_v44, %v3225_v32  ;;  %2584 = vst [vmem:[#allocation2 + $0x170] sm:$0xf] %v15374_v61  ;;  %2585 = vst [vmem:[#allocation2 + $0x194] sm:$0xf] %v15455_v14  ;;  %v14226_v35 = vld [vmem:[#allocation2 + $0x5e8] ss:$36 sps:$4 sm:$0xff]   ;;  %v16257_v32 = vsel %vm15151_vm5, %v3928_v47, %v3228_v37 }
 0x21e   : > { %2586 = vst [vmem:[#allocation2 + $0x1b8] sm:$0xf] %v15469_v8  ;;  %2587 = vst [vmem:[#allocation2 + $0x1dc] sm:$0xf] %v15542_v29  ;;  %v14228_v54 = vld [vmem:[#allocation2 + $0x530] ss:$36 sps:$4 sm:$0xff]   ;;  %v16263_v16 = vsel %vm15151_vm5, %v3931_v56, %v18466_v17  ;;  %v16270_v1 = vpack.c.bf16 %v1061_v60, %v1061_v60  ;;  %6152 = vmatmul.mubr.bf16.gmra.mrb[84].mxu1 %v14226_v35 }
 0x21f   : > { %4035 = vst [vmem:[#allocation2 + $0x59c] sm:$0xf] %v16242_v7  ;;  %18527 = vst [vmem:[#allocation23_spill] sm:$0xff] %v16263_v16  ;;  %v2881_v51 = vld [vmem:[#allocation4 + $0x6c] sm:$0xf]  ;;  %13608 = vmatprep.mubr.bf16.mxu0 %v14228_v54  ;;  %v1062_v37 = vmax.f32 %v1000_v28, 0.0 }
 0x220   : > { %2588 = vst [vmem:[#allocation2 + $0x200] sm:$0xf] %v15560_v3  ;;  %v14229_v62 = vld [vmem:[#allocation2 + $0x634] ss:$36 sps:$4 sm:$0xff]   ;;  %4036 = vst [vmem:[#allocation2 + $0x5c0] sm:$0xf] %v16257_v32 }
 0x221   : > { %4037 = vst [vmem:[#allocation2 + $0x5e4] sm:$0xf] %v16263_v16  ;;  %v1063_v42 = vmax.f32 %v1005_v41, 0.0  ;;  %2589 = vst [vmem:[#allocation2 + $0x224] sm:$0xf] %v15567_v49  ;;  %v1064_v26 = vmax.f32 %v1008_v38, 0.0  ;;  %v1090_v45 = vpack.c.bf16 %v1062_v37, %v1061_v60  ;;  %6159 = vmatprep.mubr.bf16.mxu1 %v14229_v62  ;;  %v12880_v12 = vpack.c.bf16 %v1062_v37, %v1062_v37 }
 0x222   : > { %2928 = vst [vmem:[#allocation2 + $0x370] sm:$0xf] %v2881_v51  ;;  %v2882_v39 = vld [vmem:[#allocation4 + $0x70] sm:$0xf]  ;;  %18528 = vst [vmem:[#allocation24_spill] sm:$0xff] %v16270_v1  ;;  %v1755_v43 = vrot.slane %v1754_v6, 4 }
 0x223   : > { %2590 = vst [vmem:[#allocation2 + $0x248] sm:$0xf] %v15616_v11  ;;  %2591 = vst [vmem:[#allocation2 + $0x26c] sm:$0xf] %v15651_v5  ;;  %v16275_v36 = vld [vmem:[#allocation2 + $0x678] sm:$0xff]  ;;  %v1091_v52 = vpack.c.bf16 %v1064_v26, %v1063_v42  ;;  %v1757_v57 = vshll.u32 %v16270_v1, 16  ;;  %v12881_v34 = vpack.c.bf16 %v1063_v42, %v1063_v42  ;;  %v12882_v63 = vpack.c.bf16 %v1064_v26, %v1064_v26 }
 0x224   : > { %2592 = vst [vmem:[#allocation2 + $0x290] sm:$0xf] %v15662_v24  ;;  %2929 = vst [vmem:[#allocation2 + $0x394] sm:$0xf] %v2882_v39  ;;  %v12480_v22 = vcombine.high %v16275_v36, %v16275_v36  ;;  %v1761_v6 = vshrl.u32 %v16270_v1, 16  ;;  %v1767_v35 = vshll.u32 %v12880_v12, 16 }
 0x225   : > { %1117 = vst [vmem:[#allocation3 + $0xc8] sm:$0xff] %v1090_v45  ;;  %2593 = vst [vmem:[#allocation2 + $0x2b4] sm:$0xf] %v15669_v46  ;;  %v16283_v47 = vld [vmem:[#allocation3 + $0xb8] sm:$0x1f]  ;;  %v1759_v54 = vrot.slane %v1757_v57, 5 }
 0x226   : > { %2594 = vst [vmem:[#allocation2 + $0x2d8] sm:$0xf] %v15710_v27  ;;  %v14232_v58 = vld [vmem:[#allocation2 + $0x578] ss:$36 sps:$4 sm:$0xff]   ;;  %1118 = vst [vmem:[#allocation3 + $0xd0] sm:$0xff] %v1091_v52  ;;  %v1763_v41 = vrot.slane %v1761_v6, 4  ;;  %v12076_v62 = vcombine.low %v16283_v47, %v16283_v47  ;;  %v12077_v16 = vcombine.high %v16283_v47, %v16283_v47 }
 0x227   : > { %v14231_v56 = vld [vmem:[#allocation2 + $0x630] ss:$36 sps:$4 sm:$0xff]   ;;  %2595 = vst [vmem:[#allocation2 + $0x2fc] sm:$0xf] %v15717_v50  ;;  %2596 = vst [vmem:[#allocation2 + $0x320] sm:$0xf] %v15764_v33  ;;  %13609 = vmatmul.mubr.bf16.gmra.mrb[144].mxu0 %v14232_v58  ;;  %v1760_v28 = vsel %vm15143_vm2, %v1755_v43, %v1759_v54 }
 0x228   : > { %v14239_v13 = vld [vmem:[#allocation2 + $0x5c0] ss:$36 sps:$4 sm:$0xff]   ;;  %2597 = vst [vmem:[#allocation2 + $0x344] sm:$0xf] %v15771_v20  ;;  %2598 = vst [vmem:[#allocation2 + $0x368] sm:$0xf] %v15819_v10  ;;  %v1764_v26 = vor.u32 %v1763_v41, %v1759_v54  ;;  %6160 = vmatmul.mubr.bf16.gmra.mrb[88].mxu1 %v14231_v56 }
 0x229   : > { %2599 = vst [vmem:[#allocation2 + $0x38c] sm:$0xf] %v15847_v0  ;;  %2600 = vst [vmem:[#allocation2 + $0x3b0] sm:$0xf] %v15871_v53  ;;  %v18529_v38 = vld [vmem:[#allocation12_spill] sm:$0xff]  ;;  %v2638_v51 = vld [vmem:[#allocation3 + $0x90] sm:$0xff]  ;;  %13612 = vmatprep.mubr.bf16.mxu0 %v14239_v13  ;;  %6167 = vmatprep.mubr.bf16.mxu1 %v12480_v22 }
 0x22a   : > { %2601 = vst [vmem:[#allocation2 + $0x3d4] sm:$0xf] %v15878_v2  ;;  %2602 = vst [vmem:[#allocation2 + $0x3f8] sm:$0xf] %v15935_v18  ;;  %v1771_v60 = vshrl.u32 %v12880_v12, 16  ;;  %v1777_v37 = vshll.u32 %v12881_v34, 16  ;;  %v12112_v6 = vcombine.low %v2638_v51, %v2638_v51  ;;  %v12113_v17 = vcombine.high %v2638_v51, %v2638_v51 }
 0x22b   : > { %2603 = vst [vmem:[#allocation2 + $0x41c] sm:$0xf] %v18529_v38  ;;  %1899 = vst [vmem:[#allocation4 + $0xc4] sm:$0xf] %v1760_v28  ;;  %v18530_v42 = vld [vmem:[#allocation13_spill] sm:$0xff]  ;;  %v1769_v39 = vrot.slane %v1767_v35, 5 }
 0x22c   : > { %2604 = vst [vmem:[#allocation2 + $0x440] sm:$0xf] %v18530_v42  ;;  %v1781_v45 = vshrl.u32 %v12881_v34, 16  ;;  %v1773_v43 = vrot.slane %v1771_v60, 4  ;;  %v18531_v52 = vld [vmem:[#allocation14_spill] sm:$0xff]  ;;  %v1765_v19 = vrot.slane %v1764_v26, 4 }
 0x22d   : > { %2605 = vst [vmem:[#allocation2 + $0x464] sm:$0xf] %v18531_v52  ;;  %v14800_v57 = vld [vmem:[#allocation3 + $0x88] sm:$0xff]  ;;  %v1779_v1 = vrot.slane %v1777_v37, 5  ;;  %v1787_v28 = vshll.u32 %v12882_v63, 16  ;;  %v2639_v12 = vld [vmem:[#allocation3 + $0x98] sm:$0xff] }
 0x22e   : > { %v12111_v58 = vcombine.high %v14800_v57, %v14800_v57  ;;  %v1783_v13 = vrot.slane %v1781_v45, 4  ;;  %v1774_v54 = vor.u32 %v1773_v43, %v1769_v39  ;;  %v1791_v41 = vshrl.u32 %v12882_v63, 16  ;;  %2843 = vst [vmem:[#allocation2 + $0x4b0] sm:$0xf] %v12112_v6  ;;  %2844 = vst [vmem:[#allocation2 + $0x4d4] sm:$0xf] %v12113_v17 }
 0x22f   : > { %v2640_v34 = vld [vmem:[#allocation3 + $0xa0] sm:$0xff]  ;;  %v16302_v56 = vrot.slane %v12076_v62, 5  ;;  %v1770_v35 = vsel %vm15143_vm2, %v1765_v19, %v1769_v39  ;;  %v1789_v51 = vrot.slane %v1787_v28, 5  ;;  %v12114_v26 = vcombine.low %v2639_v12, %v2639_v12  ;;  %v14237_v17 = vld [vmem:[#allocation2 + $0xc] ss:$36 sps:$4 sm:$0xff]   ;;  %v18536_v28 = vld [vmem:[#allocation8_spill] sm:$0xff] }
 0x230   : > { %2842 = vst [vmem:[#allocation2 + $0x48c] sm:$0xf] %v12111_v58  ;;  %v1784_v22 = vor.u32 %v1783_v13, %v1779_v1  ;;  %v1775_v60 = vrot.slane %v1774_v54, 4  ;;  %1900 = vst [vmem:[#allocation4 + $0xc8] sm:$0xf] %v1770_v35  ;;  %v1793_v37 = vrot.slane %v1791_v41, 4  ;;  %v12479_v45 = vcombine.low %v16275_v36, %v16275_v36 }
 0x231   : > { %v12115_v43 = vcombine.high %v2639_v12, %v2639_v12  ;;  %v12116_v57 = vcombine.low %v2640_v34, %v2640_v34  ;;  %2845 = vst [vmem:[#allocation2 + $0x4f8] sm:$0xf] %v12114_v26  ;;  %v12117_v19 = vcombine.high %v2640_v34, %v2640_v34  ;;  %v18532_v6 = vmov 0  ;;  %v1905_v36 = vld [vmem:[#allocation4 + $0xd4] sm:$0xf]  ;;  %v18535_v13 = vld [vmem:[#allocation9_spill] sm:$0xff] }
 0x232   : > { %v1785_v63 = vrot.slane %v1784_v22, 4  ;;  %v1780_v62 = vsel %vm15143_vm2, %v1775_v60, %v1779_v1  ;;  %v1794_v58 = vor.u32 %v1793_v37, %v1789_v51  ;;  %v18533_v6 = vsel %vm16313_vm7, 4294967295, %v18532_v6  ;;  %6168 = vmatmul.mubr.bf16.gmra.mrb[92].mxu1 %v12479_v45  ;;  %3287 = vst [vmem:[#allocation2 + $0x38] sm:$0xf] %v18538_v59  ;;  %v18539_v41 = vld [vmem:[#allocation15_spill] sm:$0xff]  ;;  %v18541_v22 = vld [vmem:[#allocation16_spill] sm:$0xff] }
 0x233   : > { %1901 = vst [vmem:[#allocation4 + $0xcc] sm:$0xf] %v1780_v62  ;;  %18534 = vst [vmem:[#allocation12_spill] sm:$0xff] %v18533_v6  ;;  %v18537_v12 = vrot.slane %v18536_v28, 9  ;;  %6207 = vmatprep.mubr.bf16.mxu1 %v14237_v17  ;;  %v18540_v34 = vld [vmem:[#allocation11_spill] sm:$0xff]  ;;  %v18543_v60 = vld [vmem:[#allocation18_spill] sm:$0xff] }
 0x234   : > { %v1790_v39 = vsel %vm15143_vm2, %v1785_v63, %v1789_v51  ;;  %2846 = vst [vmem:[#allocation2 + $0x51c] sm:$0xf] %v12115_v43  ;;  %2847 = vst [vmem:[#allocation2 + $0x540] sm:$0xf] %v12116_v57  ;;  %v1795_v54 = vrot.slane %v1794_v58, 4  ;;  %v18542_v51 = vld [vmem:[#allocation17_spill] sm:$0xff] }
 0x235   : > { %v3100_v1 = vsel %vm15151_vm5, %v18537_v12, %v18535_v13  ;;  %1902 = vst [vmem:[#allocation4 + $0xd0] sm:$0xf] %v1790_v39  ;;  %2848 = vst [vmem:[#allocation2 + $0x564] sm:$0xf] %v12117_v19  ;;  %v18544_v37 = vld [vmem:[#allocation19_spill] sm:$0xff]  ;;  %v14241_v45 = vld [vmem:[%s18426_s3 + $0x100] sm:$0xff]  }
 0x236   : > { %3286 = vst [vmem:[#allocation2 + $0x14] sm:$0xf] %v3100_v1  ;;  %2606 = vst [vmem:[#allocation2 + $0x488] sm:$0xf] %v18539_v41  ;;  %v1906_v35 = vsel %vm16313_vm7, %v1795_v54, %v1905_v36  ;;  %v14240_v26 = vld [vmem:[#allocation2 + $0x8] ss:$36 sps:$4 sm:$0xff]  }
 0x237   : > { %3288 = vst [vmem:[#allocation2 + $0x5c] sm:$0xf] %v18540_v34  ;;  %2607 = vst [vmem:[#allocation2 + $0x4ac] sm:$0xf] %v18541_v22  ;;  %v18546_v63 = vld [vmem:[#allocation22_spill] sm:$0xff]  ;;  %v2642_v57 = vld [vmem:[#allocation3 + $0xb0] sm:$0xff] }
 0x238   : > { %3289 = vst [vmem:[#allocation2 + $0x80] sm:$0xf] %v16210_v25  ;;  %1907 = vst [vmem:[#allocation4 + $0xd4] sm:$0xf] %v1906_v35  ;;  %v2641_v25 = vld [vmem:[#allocation3 + $0xa8] sm:$0xff]  ;;  %v2643_v62 = vld [vmem:[#allocation3 + $0xb8] sm:$0xff] }
 0x239   : > { %2608 = vst [vmem:[#allocation2 + $0x4d0] sm:$0xf] %v18542_v51  ;;  %3290 = vst [vmem:[#allocation2 + $0xa4] sm:$0xf] %v16221_v30  ;;  %v18545_v30 = vld [vmem:[#allocation21_spill] sm:$0xff]  ;;  %v12118_v43 = vcombine.low %v2641_v25, %v2641_v25  ;;  %v12119_v17 = vcombine.high %v2641_v25, %v2641_v25  ;;  %v12122_v39 = vcombine.low %v2643_v62, %v2643_v62  ;;  %v14294_v34 = vld [vmem:[%s18426_s3 + $0x148] sm:$0xff]  }
 0x23a   : > { %2609 = vst [vmem:[#allocation2 + $0x4f4] sm:$0xf] %v18543_v60  ;;  %2610 = vst [vmem:[#allocation2 + $0x518] sm:$0xf] %v18544_v37  ;;  %v2883_v58 = vld [vmem:[#allocation4 + $0x74] sm:$0xf]  ;;  %6208 = vmatmul.mubr.bf16.vlgmr.msra.gmra.mrb[0].mxu1 %v14240_v26  ;;  %v12123_v36 = vcombine.high %v2643_v62, %v2643_v62 }
 0x23b   : > { %3318 = vst [vmem:[#allocation2 + $0x494] sm:$0xf] %v18543_v60  ;;  %3319 = vst [vmem:[#allocation2 + $0x4b8] sm:$0xf] %v18544_v37  ;;  %v14242_v19 = vld [vmem:[#allocation2 + $0x54] ss:$36 sps:$4 sm:$0xff]   ;;  %6400 = vmatpush1.bf16.msra.mxu1 %v14241_v45 }
 0x23c   : > { %2611 = vst [vmem:[#allocation2 + $0x53c] sm:$0xf] %v16122_v21  ;;  %3291 = vst [vmem:[#allocation2 + $0xc8] sm:$0xf] %v15277_v55  ;;  %v12120_v55 = vcombine.low %v2642_v57, %v2642_v57  ;;  %6215 = vmatprep.mubr.bf16.mxu1 %v14242_v19  ;;  %v14256_v47 = vld [vmem:[#allocation2 + $0x174] ss:$36 sps:$4 sm:$0xff]  }
 0x23d   : > { %3320 = vst [vmem:[#allocation2 + $0x4dc] sm:$0xf] %v16122_v21  ;;  %2612 = vst [vmem:[#allocation2 + $0x560] sm:$0xf] %v18545_v30  ;;  %v12121_v21 = vcombine.high %v2642_v57, %v2642_v57  ;;  %v2892_v13 = vld [vmem:[#allocation4 + $0x98] sm:$0xf] }
 0x23e   : > { %2613 = vst [vmem:[#allocation2 + $0x584] sm:$0xf] %v18546_v63  ;;  %3292 = vst [vmem:[#allocation2 + $0xec] sm:$0xf] %v15316_v31  ;;  %v2525_v31 = vrot.slane %v12077_v16, 5  ;;  %v2524_v16 = vrot.slane %v16302_v56, 4 }
 0x23f   : > { %3321 = vst [vmem:[#allocation2 + $0x500] sm:$0xf] %v18545_v30  ;;  %3322 = vst [vmem:[#allocation2 + $0x524] sm:$0xf] %v18546_v63  ;;  %v2893_v28 = vld [vmem:[#allocation4 + $0x9c] sm:$0xf] }
 0x240   : > { %2614 = vst [vmem:[#allocation2 + $0x5a8] sm:$0xf] %v16175_v9  ;;  %2615 = vst [vmem:[#allocation2 + $0x5cc] sm:$0xf] %v16181_v15  ;;  %v2894_v12 = vld [vmem:[#allocation4 + $0xa0] sm:$0xf] }
 0x241   : > { %2930 = vst [vmem:[#allocation2 + $0x3b8] sm:$0xf] %v2883_v58  ;;  %3323 = vst [vmem:[#allocation2 + $0x548] sm:$0xf] %v16175_v9  ;;  %v14247_v9 = vld [vmem:[%s18426_s3 + $0x108] sm:$0xff]   ;;  %v14308_v62 = vld [vmem:[%s18426_s3 + $0x158] sm:$0xff]  }
 0x242   : > { %3324 = vst [vmem:[#allocation2 + $0x56c] sm:$0xf] %v16181_v15  ;;  %2849 = vst [vmem:[#allocation2 + $0x588] sm:$0xf] %v12118_v43  ;;  %v18547_v15 = vmov 0   ;;  %v18548_v43 = vld [vmem:[#allocation23_spill] sm:$0xff] }
 0x243   : > { %2850 = vst [vmem:[#allocation2 + $0x5ac] sm:$0xf] %v12119_v17  ;;  %2616 = vst [vmem:[#allocation2 + $0x5f0] sm:$0xf] %v16192_v48  ;;  %6401 = vmatprep.subr.bf16.mxu1 %v18547_v15  ;;  %v2895_v1 = vld [vmem:[#allocation4 + $0xa4] sm:$0xf] }
 0x244   : > { %3325 = vst [vmem:[#allocation2 + $0x590] sm:$0xf] %v16192_v48  ;;  %2851 = vst [vmem:[#allocation2 + $0x5d0] sm:$0xf] %v12120_v55  ;;  %v2523_v48 = vsel %vm15151_vm5, %v16233_v44, %v16302_v56  ;;  %6402 = vmatpush1.bf16.msra.mxu1 %v14247_v9  ;;  %v2887_v44 = vld [vmem:[#allocation4 + $0x84] sm:$0xf] }
 0x245   : > { %2852 = vst [vmem:[#allocation2 + $0x5f4] sm:$0xf] %v12121_v21  ;;  %2617 = vst [vmem:[#allocation2 + $0x614] sm:$0xf] %v16200_v40  ;;  %6403 = vmatprep.subr.bf16.mxu1 %v18547_v15  ;;  %v2891_v56 = vld [vmem:[#allocation4 + $0x94] sm:$0xf] }
 0x246   : > { %2853 = vst [vmem:[#allocation2 + $0x618] sm:$0xf] %v12122_v39  ;;  %2854 = vst [vmem:[#allocation2 + $0x63c] sm:$0xf] %v12123_v36  ;;  %v2896_v54 = vld [vmem:[#allocation4 + $0xa8] sm:$0xf] }
 0x247   : > { %3293 = vst [vmem:[#allocation2 + $0x110] sm:$0xf] %v15374_v61  ;;  %3294 = vst [vmem:[#allocation2 + $0x134] sm:$0xf] %v15455_v14  ;;  %v14252_v61 = vld [vmem:[%s18426_s3 + $0x110] sm:$0xff]   ;;  %v2526_v14 = vsel %vm15151_vm5, %v2524_v16, %v2525_v31  ;;  %v16433_v63 = vpop.f32.mrb[108].mxu0 }
 0x248   : > { %3326 = vst [vmem:[#allocation2 + $0x5b4] sm:$0xf] %v16200_v40  ;;  %2618 = vst [vmem:[#allocation2 + $0x638] sm:$0xf] %v16229_v4  ;;  %6404 = vmatpush1.bf16.msra.mxu1 %v14252_v61  ;;  %v2885_v40 = vld [vmem:[#allocation4 + $0x7c] sm:$0xf] }
 0x249   : > { %3295 = vst [vmem:[#allocation2 + $0x158] sm:$0xf] %v15469_v8  ;;  %3296 = vst [vmem:[#allocation2 + $0x17c] sm:$0xf] %v15542_v29  ;;  %v14244_v8 = vld [vmem:[#allocation2 + $0x50] ss:$36 sps:$4 sm:$0xff]   ;;  %6405 = vmatprep.subr.bf16.mxu1 %v18547_v15 }
 0x24a   : > { %3297 = vst [vmem:[#allocation2 + $0x1a0] sm:$0xf] %v15560_v3  ;;  %3327 = vst [vmem:[#allocation2 + $0x5d8] sm:$0xf] %v16229_v4  ;;  %v2644_v29 = vld [vmem:[#allocation3 + $0xc0] sm:$0xff]  ;;  %6216 = vmatmul.mubr.bf16.gmra.mrb[4].mxu1 %v14244_v8  ;;  %v16436_v17 = vpop.f32.mrb[109].mxu0 }
 0x24b   : > { %2619 = vst [vmem:[#allocation2 + $0x65c] sm:$0xf] %v2523_v48  ;;  %3298 = vst [vmem:[#allocation2 + $0x1c4] sm:$0xf] %v15567_v49  ;;  %v14245_v3 = vld [vmem:[#allocation2 + $0x9c] ss:$36 sps:$4 sm:$0xff]   ;;  %v12124_v49 = vcombine.low %v2644_v29, %v2644_v29 }
 0x24c   : > { %3299 = vst [vmem:[#allocation2 + $0x1e8] sm:$0xf] %v15616_v11  ;;  %3300 = vst [vmem:[#allocation2 + $0x20c] sm:$0xf] %v15651_v5  ;;  %v12125_v11 = vcombine.high %v2644_v29, %v2644_v29  ;;  %6223 = vmatprep.mubr.bf16.mxu1 %v14245_v3  ;;  %v14258_v5 = vld [vmem:[%s18426_s3 + $0x118] sm:$0xff]   ;;  %v16441_v58 = vpop.f32.mrb[110].mxu0 }
 0x24d   : > { %3301 = vst [vmem:[#allocation2 + $0x230] sm:$0xf] %v15662_v24  ;;  %3302 = vst [vmem:[#allocation2 + $0x254] sm:$0xf] %v15669_v46  ;;  %6406 = vmatpush1.bf16.msra.mxu1 %v14258_v5  ;;  %v14264_v24 = vld [vmem:[%s18426_s3 + $0x120] sm:$0xff]   ;;  %v16444_v19 = vpop.f32.mrb[111].mxu0 }
 0x24e   : > { %3303 = vst [vmem:[#allocation2 + $0x278] sm:$0xf] %v15710_v27  ;;  %2620 = vst [vmem:[#allocation2 + $0x680] sm:$0xf] %v2526_v14  ;;  %v14248_v46 = vld [vmem:[#allocation2 + $0x98] ss:$36 sps:$4 sm:$0xff]   ;;  %6407 = vmatprep.subr.bf16.mxu1 %v18547_v15 }
 0x24f   : > { %3304 = vst [vmem:[#allocation2 + $0x29c] sm:$0xf] %v15717_v50  ;;  %3305 = vst [vmem:[#allocation2 + $0x2c0] sm:$0xf] %v15764_v33  ;;  %v14249_v27 = vld [vmem:[#allocation2 + $0xe4] ss:$36 sps:$4 sm:$0xff]  }
 0x250   : > { %3306 = vst [vmem:[#allocation2 + $0x2e4] sm:$0xf] %v15771_v20  ;;  %3307 = vst [vmem:[#allocation2 + $0x308] sm:$0xf] %v15819_v10  ;;  %v14272_v50 = vld [vmem:[%s18426_s3 + $0x128] sm:$0xff]   ;;  %v14277_v33 = vld [vmem:[%s18426_s3 + $0x130] sm:$0xff]  }
 0x251   : > { %3308 = vst [vmem:[#allocation2 + $0x32c] sm:$0xf] %v15847_v0  ;;  %3309 = vst [vmem:[#allocation2 + $0x350] sm:$0xf] %v15871_v53  ;;  %6408 = vmatpush1.bf16.msra.mxu1 %v14264_v24  ;;  %v14251_v20 = vld [vmem:[#allocation2 + $0xe0] ss:$36 sps:$4 sm:$0xff]  }
 0x252   : > { %3310 = vst [vmem:[#allocation2 + $0x374] sm:$0xf] %v15878_v2  ;;  %3311 = vst [vmem:[#allocation2 + $0x398] sm:$0xf] %v15935_v18  ;;  %6224 = vmatmul.mubr.bf16.gmra.mrb[8].mxu1 %v14248_v46  ;;  %6409 = vmatprep.subr.bf16.mxu1 %v18547_v15  ;;  %v14253_v10 = vld [vmem:[#allocation2 + $0x12c] ss:$36 sps:$4 sm:$0xff]  }
 0x253   : > { %3312 = vst [vmem:[#allocation2 + $0x3bc] sm:$0xf] %v18529_v38  ;;  %2855 = vst [vmem:[#allocation2 + $0x660] sm:$0xf] %v12124_v49  ;;  %6231 = vmatprep.mubr.bf16.mxu1 %v14249_v27  ;;  %v14283_v0 = vld [vmem:[%s18426_s3 + $0x138] sm:$0xff]   ;;  %v14288_v53 = vld [vmem:[%s18426_s3 + $0x140] sm:$0xff]  }
 0x254   : > { %2856 = vst [vmem:[#allocation2 + $0x684] sm:$0xf] %v12125_v11  ;;  %3313 = vst [vmem:[#allocation2 + $0x3e0] sm:$0xf] %v18530_v42  ;;  %v2884_v2 = vld [vmem:[#allocation4 + $0x78] sm:$0xf] }
 0x255   : > { %3314 = vst [vmem:[#allocation2 + $0x404] sm:$0xf] %v18531_v52  ;;  %3315 = vst [vmem:[#allocation2 + $0x428] sm:$0xf] %v18539_v41  ;;  %6410 = vmatpush1.bf16.msra.mxu1 %v14272_v50  ;;  %v14255_v18 = vld [vmem:[#allocation2 + $0x128] ss:$36 sps:$4 sm:$0xff]  }
 0x256   : > { %3316 = vst [vmem:[#allocation2 + $0x44c] sm:$0xf] %v18541_v22  ;;  %3317 = vst [vmem:[#allocation2 + $0x470] sm:$0xf] %v18542_v51  ;;  %6411 = vmatprep.subr.bf16.mxu1 %v18547_v15  ;;  %v2886_v4 = vld [vmem:[#allocation4 + $0x80] sm:$0xf] }
 0x257   : > { %2931 = vst [vmem:[#allocation2 + $0x3dc] sm:$0xf] %v2884_v2  ;;  %2932 = vst [vmem:[#allocation2 + $0x400] sm:$0xf] %v2885_v40  ;;  %v2888_v38 = vld [vmem:[#allocation4 + $0x88] sm:$0xf] }
 0x258   : > { %2933 = vst [vmem:[#allocation2 + $0x424] sm:$0xf] %v2886_v4  ;;  %2934 = vst [vmem:[#allocation2 + $0x448] sm:$0xf] %v2887_v44  ;;  %v2889_v42 = vld [vmem:[#allocation4 + $0x8c] sm:$0xf] }
 0x259   : > { %6412 = vmatpush1.bf16.msra.mxu1 %v14277_v33  ;;  %v2890_v52 = vld [vmem:[#allocation4 + $0x90] sm:$0xf]  ;;  %2935 = vst [vmem:[#allocation2 + $0x46c] sm:$0xf] %v2888_v38  ;;  %2936 = vst [vmem:[#allocation2 + $0x490] sm:$0xf] %v2889_v42 }
 0x25a   : > { %6232 = vmatmul.mubr.bf16.gmra.mrb[12].mxu1 %v14251_v20  ;;  %6413 = vmatprep.subr.bf16.mxu1 %v18547_v15  ;;  %2937 = vst [vmem:[#allocation2 + $0x4b4] sm:$0xf] %v2890_v52  ;;  %2938 = vst [vmem:[#allocation2 + $0x4d8] sm:$0xf] %v2891_v56  ;;  %v2897_v59 = vld [vmem:[#allocation4 + $0xac] sm:$0xf] }
 0x25b   : > { %6239 = vmatprep.mubr.bf16.mxu1 %v14253_v10  ;;  %2939 = vst [vmem:[#allocation2 + $0x4fc] sm:$0xf] %v2892_v13  ;;  %2940 = vst [vmem:[#allocation2 + $0x520] sm:$0xf] %v2893_v28  ;;  %v3349_v41 = vld [vmem:[#allocation3 + $0x98] sm:$0xff]  ;;  %v14315_v31 = vld [vmem:[%s18426_s3 + $0x160] sm:$0xff]  }
 0x25c   : > { %2941 = vst [vmem:[#allocation2 + $0x544] sm:$0xf] %v2894_v12  ;;  %2942 = vst [vmem:[#allocation2 + $0x568] sm:$0xf] %v2895_v1  ;;  %v2898_v35 = vld [vmem:[#allocation4 + $0xb0] sm:$0xf]  ;;  %v12207_v51 = vcombine.low %v3349_v41, %v3349_v41  ;;  %v12208_v60 = vcombine.high %v3349_v41, %v3349_v41 }
 0x25d   : > { %6414 = vmatpush1.bf16.msra.mxu1 %v14283_v0  ;;  %2943 = vst [vmem:[#allocation2 + $0x58c] sm:$0xf] %v2896_v54  ;;  %3328 = vst [vmem:[#allocation2 + $0x5fc] sm:$0xf] %v16242_v7  ;;  %v3575_v22 = vld [vmem:[#allocation4 + $0x30] sm:$0xf] }
 0x25e   : > { %6415 = vmatprep.subr.bf16.mxu1 %v18547_v15  ;;  %2944 = vst [vmem:[#allocation2 + $0x5b0] sm:$0xf] %v2897_v59  ;;  %2945 = vst [vmem:[#allocation2 + $0x5d4] sm:$0xf] %v2898_v35  ;;  %v3576_v37 = vld [vmem:[#allocation4 + $0x34] sm:$0xf] }
 0x25f   : > { %3622 = vst [vmem:[#allocation2 + $0xf4] sm:$0xf] %v3575_v22  ;;  %v3577_v26 = vld [vmem:[#allocation4 + $0x38] sm:$0xf]  ;;  %v3578_v45 = vld [vmem:[#allocation4 + $0x3c] sm:$0xf] }
 0x260   : > { %3329 = vst [vmem:[#allocation2 + $0x620] sm:$0xf] %v16257_v32  ;;  %3623 = vst [vmem:[#allocation2 + $0x118] sm:$0xf] %v3576_v37  ;;  %v14299_v7 = vld [vmem:[%s18426_s3 + $0x150] sm:$0xff]   ;;  %v14801_v32 = vld [vmem:[#allocation3 + $0xc0] sm:$0xff] }
 0x261   : > { %6416 = vmatpush1.bf16.msra.mxu1 %v14288_v53  ;;  %3624 = vst [vmem:[#allocation2 + $0x13c] sm:$0xf] %v3577_v26  ;;  %3625 = vst [vmem:[#allocation2 + $0x160] sm:$0xf] %v3578_v45  ;;  %v14259_v25 = vld [vmem:[#allocation2 + $0x170] ss:$36 sps:$4 sm:$0xff]   ;;  %v12172_v57 = vcombine.high %v14801_v32, %v14801_v32 }
 0x262   : > { %6240 = vmatmul.mubr.bf16.gmra.mrb[16].mxu1 %v14255_v18  ;;  %6417 = vmatprep.subr.bf16.mxu1 %v18547_v15  ;;  %3554 = vst [vmem:[#allocation2 + $0x498] sm:$0xf] %v12207_v51  ;;  %3555 = vst [vmem:[#allocation2 + $0x4bc] sm:$0xf] %v12208_v60  ;;  %v14260_v30 = vld [vmem:[#allocation2 + $0x1bc] ss:$36 sps:$4 sm:$0xff]  }
 0x263   : > { %6247 = vmatprep.mubr.bf16.mxu1 %v14256_v47  ;;  %3330 = vst [vmem:[#allocation2 + $0x644] sm:$0xf] %v18548_v43  ;;  %v14263_v55 = vld [vmem:[#allocation2 + $0x1b8] ss:$36 sps:$4 sm:$0xff]   ;;  %v16446_v21 = vrot.slane %v12172_v57, 5  ;;  %v14325_v3 = vld [vmem:[%s18426_s3 + $0x168] sm:$0xff]  }
 0x264   : > { %v2899_v39 = vld [vmem:[#allocation4 + $0xb4] sm:$0xf]  ;;  %v2900_v36 = vld [vmem:[#allocation4 + $0xb8] sm:$0xf]  ;;  %v2901_v9 = vld [vmem:[#allocation4 + $0xbc] sm:$0xf] }
 0x265   : > { %6418 = vmatpush1.bf16.msra.mxu1 %v14294_v34  ;;  %2946 = vst [vmem:[#allocation2 + $0x5f8] sm:$0xf] %v2899_v39  ;;  %2947 = vst [vmem:[#allocation2 + $0x61c] sm:$0xf] %v2900_v36  ;;  %v18549_v48 = vld [vmem:[#allocation24_spill] sm:$0xff]  ;;  %v3937_v49 = vrot.slane %v16446_v21, 4 }
 0x266   : > { %6419 = vmatprep.subr.bf16.mxu1 %v18547_v15  ;;  %v3938_v16 = vrot.slane %v18549_v48, 5  ;;  %v14265_v61 = vld [vmem:[#allocation2 + $0x204] ss:$36 sps:$4 sm:$0xff]   ;;  %2948 = vst [vmem:[#allocation2 + $0x640] sm:$0xf] %v2901_v9  ;;  %v18550_v14 = vld [vmem:[#allocation20_spill] sm:$0xff] }
 0x267   : > { %v18551_v8 = vrot.slane %v18550_v14, 5  ;;  %v2902_v11 = vld [vmem:[#allocation4 + $0xc0] sm:$0xf]  ;;  %v3580_v46 = vld [vmem:[#allocation4 + $0x44] sm:$0xf]  ;;  %v16478_v57 = vpop.f32.mrb[112].mxu0 }
 0x268   : > { %2949 = vst [vmem:[#allocation2 + $0x664] sm:$0xf] %v2902_v11  ;;  %v3579_v24 = vld [vmem:[#allocation4 + $0x40] sm:$0xf]  ;;  %v3581_v27 = vld [vmem:[#allocation4 + $0x48] sm:$0xf]  ;;  %v3939_v50 = vsel %vm15151_vm5, %v3937_v49, %v3938_v16 }
 0x269   : > { %6420 = vmatpush1.bf16.msra.mxu1 %v14299_v7  ;;  %v3233_v29 = vrot.slane %v18551_v8, 4  ;;  %3626 = vst [vmem:[#allocation2 + $0x184] sm:$0xf] %v3579_v24  ;;  %3627 = vst [vmem:[#allocation2 + $0x1a8] sm:$0xf] %v3580_v46  ;;  %v14332_v40 = vld [vmem:[%s18426_s3 + $0x170] sm:$0xff]  }
 0x26a   : > { %6248 = vmatmul.mubr.bf16.gmra.mrb[20].mxu1 %v14259_v25  ;;  %6421 = vmatprep.subr.bf16.mxu1 %v18547_v15  ;;  %v3582_v33 = vld [vmem:[#allocation4 + $0x4c] sm:$0xf]  ;;  %3628 = vst [vmem:[#allocation2 + $0x1cc] sm:$0xf] %v3581_v27  ;;  %v3583_v20 = vld [vmem:[#allocation4 + $0x50] sm:$0xf] }
 0x26b   : > { %6255 = vmatprep.mubr.bf16.mxu1 %v14260_v30  ;;  %v3235_v5 = vsel %vm15151_vm5, %v3233_v29, %v16446_v21  ;;  %v3584_v10 = vld [vmem:[#allocation4 + $0x54] sm:$0xf]  ;;  %v14269_v0 = vld [vmem:[#allocation2 + $0x200] ss:$36 sps:$4 sm:$0xff]   ;;  %4039 = vst [vmem:[#allocation2 + $0x62c] sm:$0xf] %v3939_v50 }
 0x26c   : > { %3331 = vst [vmem:[#allocation2 + $0x668] sm:$0xf] %v3235_v5  ;;  %4038 = vst [vmem:[#allocation2 + $0x608] sm:$0xf] %v3235_v5  ;;  %v3585_v53 = vld [vmem:[#allocation4 + $0x58] sm:$0xf] }
 0x26d   : > { %6422 = vmatpush1.bf16.msra.mxu1 %v14308_v62  ;;  %3629 = vst [vmem:[#allocation2 + $0x1f0] sm:$0xf] %v3582_v33  ;;  %3630 = vst [vmem:[#allocation2 + $0x214] sm:$0xf] %v3583_v20  ;;  %v3586_v2 = vld [vmem:[#allocation4 + $0x5c] sm:$0xf] }
 0x26e   : > { %6423 = vmatprep.subr.bf16.mxu1 %v18547_v15  ;;  %3631 = vst [vmem:[#allocation2 + $0x238] sm:$0xf] %v3584_v10  ;;  %v3587_v18 = vld [vmem:[#allocation4 + $0x60] sm:$0xf]  ;;  %3632 = vst [vmem:[#allocation2 + $0x25c] sm:$0xf] %v3585_v53 }
 0x26f   : > { %3633 = vst [vmem:[#allocation2 + $0x280] sm:$0xf] %v3586_v2  ;;  %3634 = vst [vmem:[#allocation2 + $0x2a4] sm:$0xf] %v3587_v18  ;;  %v14270_v4 = vld [vmem:[#allocation2 + $0x24c] ss:$36 sps:$4 sm:$0xff]  }
 0x270   : > { %v3588_v44 = vld [vmem:[#allocation4 + $0x64] sm:$0xf]  ;;  %v3589_v47 = vld [vmem:[#allocation4 + $0x68] sm:$0xf]  ;;  %v3590_v38 = vld [vmem:[#allocation4 + $0x6c] sm:$0xf] }
 0x271   : > { %6424 = vmatpush1.bf16.msra.mxu1 %v14315_v31  ;;  %3635 = vst [vmem:[#allocation2 + $0x2c8] sm:$0xf] %v3588_v44  ;;  %v3591_v42 = vld [vmem:[#allocation4 + $0x70] sm:$0xf]  ;;  %3636 = vst [vmem:[#allocation2 + $0x2ec] sm:$0xf] %v3589_v47 }
 0x272   : > { %6256 = vmatmul.mubr.bf16.gmra.mrb[24].mxu1 %v14263_v55  ;;  %6425 = vmatprep.subr.bf16.mxu1 %v18547_v15  ;;  %3637 = vst [vmem:[#allocation2 + $0x310] sm:$0xf] %v3590_v38  ;;  %v3592_v52 = vld [vmem:[#allocation4 + $0x74] sm:$0xf]  ;;  %3638 = vst [vmem:[#allocation2 + $0x334] sm:$0xf] %v3591_v42 }
 0x273   : > { %6263 = vmatprep.mubr.bf16.mxu1 %v14265_v61  ;;  %v3593_v56 = vld [vmem:[#allocation4 + $0x78] sm:$0xf]  ;;  %v3594_v13 = vld [vmem:[#allocation4 + $0x7c] sm:$0xf]  ;;  %v14341_v28 = vld [vmem:[%s18426_s3 + $0x178] sm:$0xff]   ;;  %v16480_v39 = vpop.f32.mrb[113].mxu0 }
 0x274   : > { %3639 = vst [vmem:[#allocation2 + $0x358] sm:$0xf] %v3592_v52  ;;  %3640 = vst [vmem:[#allocation2 + $0x37c] sm:$0xf] %v3593_v56  ;;  %v14337_v12 = vld [vmem:[#allocation2 + $0x608] ss:$36 sps:$4 sm:$0xff]  }
 0x275   : > { %6426 = vmatpush1.bf16.msra.mxu1 %v14325_v3  ;;  %3641 = vst [vmem:[#allocation2 + $0x3a0] sm:$0xf] %v3594_v13  ;;  %13613 = vmatmul.mubr.bf16.gmra.mrb[148].mxu0 %v14337_v12  ;;  %v14273_v1 = vld [vmem:[#allocation2 + $0x248] ss:$36 sps:$4 sm:$0xff]   ;;  %v14274_v54 = vld [vmem:[#allocation2 + $0x294] ss:$36 sps:$4 sm:$0xff]  }
 0x276   : > { %6427 = vmatprep.subr.bf16.mxu1 %v18547_v15  ;;  %v14276_v59 = vld [vmem:[#allocation2 + $0x290] ss:$36 sps:$4 sm:$0xff]   ;;  %v14278_v41 = vld [vmem:[#allocation2 + $0x2dc] ss:$36 sps:$4 sm:$0xff]   ;;  %v3596_v35 = vld [vmem:[#allocation4 + $0x84] sm:$0xf] }
 0x277   : > { %v3595_v34 = vld [vmem:[#allocation4 + $0x80] sm:$0xf]  ;;  %v3597_v22 = vld [vmem:[#allocation4 + $0x88] sm:$0xf]  ;;  %3643 = vst [vmem:[#allocation2 + $0x3e8] sm:$0xf] %v3596_v35 }
 0x278   : > { %3642 = vst [vmem:[#allocation2 + $0x3c4] sm:$0xf] %v3595_v34  ;;  %v3598_v51 = vld [vmem:[#allocation4 + $0x8c] sm:$0xf]  ;;  %3644 = vst [vmem:[#allocation2 + $0x40c] sm:$0xf] %v3597_v22 }
 0x279   : > { %6428 = vmatpush1.bf16.msra.mxu1 %v14332_v40  ;;  %v3599_v60 = vld [vmem:[#allocation4 + $0x90] sm:$0xf]  ;;  %v3600_v37 = vld [vmem:[#allocation4 + $0x94] sm:$0xf]  ;;  %3645 = vst [vmem:[#allocation2 + $0x430] sm:$0xf] %v3598_v51 }
 0x27a   : > { %6264 = vmatmul.mubr.bf16.gmra.mrb[28].mxu1 %v14269_v0  ;;  %6429 = vmatprep.subr.bf16.mxu1 %v18547_v15  ;;  %3646 = vst [vmem:[#allocation2 + $0x454] sm:$0xf] %v3599_v60  ;;  %3647 = vst [vmem:[#allocation2 + $0x478] sm:$0xf] %v3600_v37  ;;  %v3601_v26 = vld [vmem:[#allocation4 + $0x98] sm:$0xf] }
 0x27b   : > { %6271 = vmatprep.mubr.bf16.mxu1 %v14270_v4  ;;  %v3602_v45 = vld [vmem:[#allocation4 + $0x9c] sm:$0xf]  ;;  %v3350_v7 = vld [vmem:[#allocation3 + $0xa0] sm:$0xff]  ;;  %3648 = vst [vmem:[#allocation2 + $0x49c] sm:$0xf] %v3601_v26  ;;  %v3351_v62 = vld [vmem:[#allocation3 + $0xa8] sm:$0xff] }
 0x27c   : > { %3649 = vst [vmem:[#allocation2 + $0x4c0] sm:$0xf] %v3602_v45  ;;  %v12209_v25 = vcombine.low %v3350_v7, %v3350_v7  ;;  %v12210_v30 = vcombine.high %v3350_v7, %v3350_v7  ;;  %v3603_v43 = vld [vmem:[#allocation4 + $0xa0] sm:$0xf]  ;;  %v3604_v32 = vld [vmem:[#allocation4 + $0xa4] sm:$0xf]  ;;  %v12211_v36 = vcombine.low %v3351_v62, %v3351_v62  ;;  %v12212_v9 = vcombine.high %v3351_v62, %v3351_v62 }
 0x27d   : > { %6430 = vmatpush1.bf16.msra.mxu1 %v14341_v28  ;;  %3650 = vst [vmem:[#allocation2 + $0x4e4] sm:$0xf] %v3603_v43  ;;  %3651 = vst [vmem:[#allocation2 + $0x508] sm:$0xf] %v3604_v32  ;;  %v3605_v55 = vld [vmem:[#allocation4 + $0xa8] sm:$0xf] }
 0x27e   : > { %6623 = vmatprep.subr.bf16.mxu1 %v18547_v15  ;;  %v3606_v31 = vld [vmem:[#allocation4 + $0xac] sm:$0xf]  ;;  %3556 = vst [vmem:[#allocation2 + $0x4e0] sm:$0xf] %v12209_v25  ;;  %3557 = vst [vmem:[#allocation2 + $0x504] sm:$0xf] %v12210_v30 }
 0x27f   : > { %3652 = vst [vmem:[#allocation2 + $0x52c] sm:$0xf] %v3605_v55  ;;  %3653 = vst [vmem:[#allocation2 + $0x550] sm:$0xf] %v3606_v31  ;;  %v3352_v61 = vld [vmem:[#allocation3 + $0xb0] sm:$0xff]  ;;  %v16482_v29 = vpop.f32.mrb[114].mxu0 }
 0x280   : > { %v3607_v14 = vld [vmem:[#allocation4 + $0xb0] sm:$0xf]  ;;  %v3608_v8 = vld [vmem:[#allocation4 + $0xb4] sm:$0xf]  ;;  %v12213_v3 = vcombine.low %v3352_v61, %v3352_v61  ;;  %v12214_v11 = vcombine.high %v3352_v61, %v3352_v61  ;;  %v3353_v5 = vld [vmem:[#allocation3 + $0xb8] sm:$0xff]  ;;  %v16484_v46 = vpop.f32.mrb[115].mxu0 }
 0x281   : > { %3654 = vst [vmem:[#allocation2 + $0x574] sm:$0xf] %v3607_v14  ;;  %3655 = vst [vmem:[#allocation2 + $0x598] sm:$0xf] %v3608_v8  ;;  %v3609_v24 = vld [vmem:[#allocation4 + $0xb8] sm:$0xf]  ;;  %v12215_v27 = vcombine.low %v3353_v5, %v3353_v5  ;;  %v12216_v50 = vcombine.high %v3353_v5, %v3353_v5 }
 0x282   : > { %6272 = vmatmul.mubr.bf16.gmra.mrb[32].mxu1 %v14273_v1  ;;  %3558 = vst [vmem:[#allocation2 + $0x528] sm:$0xf] %v12211_v36  ;;  %3559 = vst [vmem:[#allocation2 + $0x54c] sm:$0xf] %v12212_v9  ;;  %v3610_v33 = vld [vmem:[#allocation4 + $0xbc] sm:$0xf] }
 0x283   : > { %6279 = vmatprep.mubr.bf16.mxu1 %v14274_v54  ;;  %3656 = vst [vmem:[#allocation2 + $0x5bc] sm:$0xf] %v3609_v24  ;;  %v14280_v20 = vld [vmem:[#allocation2 + $0x2d8] ss:$36 sps:$4 sm:$0xff]   ;;  %3560 = vst [vmem:[#allocation2 + $0x570] sm:$0xf] %v12213_v3 }
 0x284   : > { %3561 = vst [vmem:[#allocation2 + $0x594] sm:$0xf] %v12214_v11  ;;  %3657 = vst [vmem:[#allocation2 + $0x5e0] sm:$0xf] %v3610_v33  ;;  %v14281_v10 = vld [vmem:[#allocation2 + $0x324] ss:$36 sps:$4 sm:$0xff]  }
 0x285   : > { %3562 = vst [vmem:[#allocation2 + $0x5b8] sm:$0xf] %v12215_v27  ;;  %3563 = vst [vmem:[#allocation2 + $0x5dc] sm:$0xf] %v12216_v50  ;;  %v14284_v0 = vld [vmem:[#allocation2 + $0x320] ss:$36 sps:$4 sm:$0xff]  }
 0x286   : > { %v14285_v53 = vld [vmem:[#allocation2 + $0x36c] ss:$36 sps:$4 sm:$0xff]   ;;  %v16486_v18 = vpop.f32.mrb[116].mxu0  ;;  %v14289_v40 = vld [vmem:[#allocation2 + $0x3b4] ss:$36 sps:$4 sm:$0xff]   ;;  %v4274_v5 = vld [vmem:[#allocation2 + $0x680] sm:$0xff] }
 0x287   : > { %v14287_v2 = vld [vmem:[#allocation2 + $0x368] ss:$36 sps:$4 sm:$0xff]   ;;  %v16488_v4 = vpop.f32.mrb[117].mxu0  ;;  %v14291_v38 = vld [vmem:[#allocation2 + $0x3b0] ss:$36 sps:$4 sm:$0xff]   ;;  %v12482_v33 = vcombine.high %v4274_v5, %v4274_v5  ;;  %v3354_v21 = vld [vmem:[#allocation3 + $0xc0] sm:$0xff] }
 0x288   : > { %v16490_v44 = vpop.f32.mrb[118].mxu0  ;;  %v14292_v42 = vld [vmem:[#allocation2 + $0x3fc] ss:$36 sps:$4 sm:$0xff]   ;;  %v14296_v1 = vld [vmem:[#allocation2 + $0x444] ss:$36 sps:$4 sm:$0xff]  }
 0x289   : > { %v16492_v47 = vpop.f32.mrb[119].mxu0  ;;  %v14295_v12 = vld [vmem:[#allocation2 + $0x3f8] ss:$36 sps:$4 sm:$0xff]   ;;  %v14298_v54 = vld [vmem:[#allocation2 + $0x440] ss:$36 sps:$4 sm:$0xff]  }
 0x28a   : > { %6280 = vmatmul.mubr.bf16.gmra.mrb[36].mxu1 %v14276_v59  ;;  %v14301_v59 = vld [vmem:[#allocation2 + $0x48c] ss:$36 sps:$4 sm:$0xff]   ;;  %v14306_v34 = vld [vmem:[#allocation2 + $0x4d4] ss:$36 sps:$4 sm:$0xff]   ;;  %v14312_v26 = vld [vmem:[#allocation2 + $0x51c] ss:$36 sps:$4 sm:$0xff]  }
 0x28b   : > { %6287 = vmatprep.mubr.bf16.mxu1 %v14278_v41  ;;  %v16494_v52 = vpop.f32.mrb[120].mxu0  ;;  %v14303_v41 = vld [vmem:[#allocation2 + $0x488] ss:$36 sps:$4 sm:$0xff]   ;;  %v14309_v37 = vld [vmem:[#allocation2 + $0x4d0] ss:$36 sps:$4 sm:$0xff]  }
 0x28c   : > { %v16496_v56 = vpop.f32.mrb[121].mxu0  ;;  %v14314_v45 = vld [vmem:[#allocation2 + $0x518] ss:$36 sps:$4 sm:$0xff]   ;;  %v14318_v7 = vld [vmem:[#allocation2 + $0x564] ss:$36 sps:$4 sm:$0xff]  }
 0x28d   : > { %v16498_v13 = vpop.f32.mrb[122].mxu0  ;;  %v14320_v62 = vld [vmem:[#allocation2 + $0x560] ss:$36 sps:$4 sm:$0xff]   ;;  %v14323_v55 = vld [vmem:[#allocation2 + $0x5ac] ss:$36 sps:$4 sm:$0xff]  }
 0x28e   : > { %v16500_v28 = vpop.f32.mrb[123].mxu0  ;;  %v14326_v9 = vld [vmem:[#allocation2 + $0x5a8] ss:$36 sps:$4 sm:$0xff]   ;;  %v14329_v14 = vld [vmem:[#allocation2 + $0x5f4] ss:$36 sps:$4 sm:$0xff]  }
 0x28f   : > { %v14331_v3 = vld [vmem:[#allocation2 + $0x5f0] ss:$36 sps:$4 sm:$0xff]   ;;  %v14335_v11 = vld [vmem:[#allocation2 + $0x63c] ss:$36 sps:$4 sm:$0xff]  }
 0x290   : > { %v14338_v27 = vld [vmem:[#allocation2 + $0x638] ss:$36 sps:$4 sm:$0xff]  }
 0x291   : > { %v14372_v48 = vld [vmem:[#allocation2 + $0x254] ss:$36 sps:$4 sm:$0xff]  }
 0x292   : > { %6288 = vmatmul.mubr.bf16.gmra.mrb[40].mxu1 %v14280_v20 }
 0x293   : > { %6295 = vmatprep.mubr.bf16.mxu1 %v14281_v10 }
 0x29a   : > { %6296 = vmatmul.mubr.bf16.gmra.mrb[44].mxu1 %v14284_v0 }
 0x29b   : > { %6303 = vmatprep.mubr.bf16.mxu1 %v14285_v53  ;;  %v12481_v53 = vcombine.low %v4274_v5, %v4274_v5 }
 0x2a2   : > { %6304 = vmatmul.mubr.bf16.gmra.mrb[48].mxu1 %v14287_v2 }
 0x2a3   : > { %6311 = vmatprep.mubr.bf16.mxu1 %v14289_v40  ;;  %v14343_v40 = vld [vmem:[#allocation2 + $0x14] ss:$36 sps:$4 sm:$0xff]  }
 0x2aa   : > { %6312 = vmatmul.mubr.bf16.gmra.mrb[52].mxu1 %v14291_v38 }
 0x2ab   : > { %6319 = vmatprep.mubr.bf16.mxu1 %v14292_v42  ;;  %v16502_v35 = vpop.f32.mrb[124].mxu0 }
 0x2ac   : > { %v16504_v22 = vpop.f32.mrb[125].mxu0 }
 0x2ad   : > { %v16506_v51 = vpop.f32.mrb[126].mxu0 }
 0x2ae   : > { %v16508_v60 = vpop.f32.mrb[127].mxu0 }
 0x2b2   : > { %6320 = vmatmul.mubr.bf16.gmra.mrb[56].mxu1 %v14295_v12  ;;  %v14346_v12 = vld [vmem:[%s18426_s3 + $0x180] sm:$0xff]  }
 0x2b3   : > { %6327 = vmatprep.mubr.bf16.mxu1 %v14296_v1  ;;  %v14345_v1 = vld [vmem:[#allocation2 + $0x10] ss:$36 sps:$4 sm:$0xff]  }
 0x2ba   : > { %6328 = vmatmul.mubr.bf16.gmra.mrb[60].mxu1 %v14298_v54  ;;  %v14347_v54 = vld [vmem:[#allocation2 + $0x5c] ss:$36 sps:$4 sm:$0xff]  }
 0x2bb   : > { %6335 = vmatprep.mubr.bf16.mxu1 %v14301_v59 }
 0x2bd   : > { %v16510_v25 = vpop.f32.mrb[128].mxu0 }
 0x2be   : > { %v16512_v30 = vpop.f32.mrb[129].mxu0 }
 0x2bf   : > { %v16514_v43 = vpop.f32.mrb[130].mxu0 }
 0x2c0   : > { %v16516_v32 = vpop.f32.mrb[131].mxu0 }
 0x2c2   : > { %6336 = vmatmul.mubr.bf16.gmra.mrb[64].mxu1 %v14303_v41 }
 0x2c3   : > { %6343 = vmatprep.mubr.bf16.mxu1 %v14306_v34 }
 0x2ca   : > { %6344 = vmatmul.mubr.bf16.gmra.mrb[68].mxu1 %v14309_v37  ;;  %v14352_v37 = vld [vmem:[%s18426_s3 + $0x188] sm:$0xff]  }
 0x2cb   : > { %6351 = vmatprep.mubr.bf16.mxu1 %v14312_v26 }
 0x2cf   : > { %v16518_v31 = vpop.f32.mrb[132].mxu0 }
 0x2d0   : > { %v16520_v36 = vpop.f32.mrb[133].mxu0 }
 0x2d1   : > { %v16522_v61 = vpop.f32.mrb[134].mxu0 }
 0x2d2   : > { %6352 = vmatmul.mubr.bf16.gmra.mrb[72].mxu1 %v14314_v45  ;;  %v16524_v8 = vpop.f32.mrb[135].mxu0  ;;  %v14357_v45 = vld [vmem:[%s18426_s3 + $0x190] sm:$0xff]  }
 0x2d3   : > { %6359 = vmatprep.mubr.bf16.mxu1 %v14318_v7  ;;  %v14349_v7 = vld [vmem:[#allocation2 + $0x58] ss:$36 sps:$4 sm:$0xff]  }
 0x2da   : > { %6360 = vmatmul.mubr.bf16.gmra.mrb[76].mxu1 %v14320_v62  ;;  %v14350_v62 = vld [vmem:[#allocation2 + $0xa4] ss:$36 sps:$4 sm:$0xff]  }
 0x2db   : > { %6367 = vmatprep.mubr.bf16.mxu1 %v14323_v55  ;;  %v14363_v55 = vld [vmem:[%s18426_s3 + $0x198] sm:$0xff]  }
 0x2e2   : > { %6368 = vmatmul.mubr.bf16.gmra.mrb[80].mxu1 %v14326_v9 }
 0x2e3   : > { %6375 = vmatprep.mubr.bf16.mxu1 %v14329_v14 }
 0x2e5   : > { %v16526_v24 = vpop.f32.mrb[136].mxu0 }
 0x2e6   : > { %v16528_v50 = vpop.f32.mrb[137].mxu0 }
 0x2e7   : > { %v16530_v20 = vpop.f32.mrb[138].mxu0 }
 0x2e8   : > { %v16532_v10 = vpop.f32.mrb[139].mxu0 }
 0x2ea   : > { %6376 = vmatmul.mubr.bf16.gmra.mrb[84].mxu1 %v14331_v3 }
 0x2eb   : > { %6383 = vmatprep.mubr.bf16.mxu1 %v14335_v11  ;;  %v14368_v11 = vld [vmem:[%s18426_s3 + $0x1a0] sm:$0xff]  }
 0x2ef   : > { %v16534_v0 = vpop.f32.mrb[140].mxu0 }
 0x2f0   : > { %v16536_v2 = vpop.f32.mrb[141].mxu0 }
 0x2f1   : > { %v16538_v38 = vpop.f32.mrb[142].mxu0 }
 0x2f2   : > { %6384 = vmatmul.mubr.bf16.gmra.mrb[88].mxu1 %v14338_v27  ;;  %v16540_v42 = vpop.f32.mrb[143].mxu0  ;;  %v14353_v27 = vld [vmem:[#allocation2 + $0xa0] ss:$36 sps:$4 sm:$0xff]  }
 0x2f3   : > { %6391 = vmatprep.mubr.bf16.mxu1 %v12482_v33  ;;  %v14354_v33 = vld [vmem:[#allocation2 + $0xec] ss:$36 sps:$4 sm:$0xff]  }
 0x2fa   : > { %6392 = vmatmul.mubr.bf16.gmra.mrb[96].mxu1 %v12481_v53  ;;  %v16545_v59 = vpop.f32.mrb[144].mxu0  ;;  %v14374_v53 = vld [vmem:[%s18426_s3 + $0x1a8] sm:$0xff]  }
 0x2fb   : > { %6431 = vmatprep.mubr.bf16.mxu1 %v14343_v40  ;;  %v16547_v41 = vpop.f32.mrb[145].mxu0  ;;  %v14379_v40 = vld [vmem:[%s18426_s3 + $0x1b0] sm:$0xff]  }
 0x2fc   : > { %v16549_v34 = vpop.f32.mrb[146].mxu0 }
 0x2fd   : > { %v16554_v26 = vpop.f32.mrb[147].mxu0 }
 0x302   : > { %6432 = vmatmul.mubr.bf16.vlgmr.msra.gmra.mrb[0].mxu1 %v14345_v1  ;;  %v14358_v1 = vld [vmem:[#allocation2 + $0x134] ss:$36 sps:$4 sm:$0xff]  }
 0x303   : > { %6624 = vmatpush1.bf16.msra.mxu1 %v14346_v12  ;;  %6439 = vmatprep.mubr.bf16.mxu1 %v14347_v54  ;;  %v14356_v12 = vld [vmem:[#allocation2 + $0xe8] ss:$36 sps:$4 sm:$0xff]   ;;  %v14262_v54 = vld [vmem:[#allocation3 + $0xc8] ss:$0 sps:$4 sm:$0x11]  }
 0x304   : > { %6625 = vmatprep.subr.bf16.mxu1 %v18547_v15 }
 0x305   : > { %v16565_v9 = vpop.f32.mrb[92].mxu1 }
 0x306   : > { %v6171_v14 = vpop.f32.mrb[93].mxu1 }
 0x307   : > { %6626 = vmatpush1.bf16.msra.mxu1 %v14352_v37  ;;  %v6172_v3 = vpop.f32.mrb[94].mxu1  ;;  %v14385_v37 = vld [vmem:[%s18426_s3 + $0x1b8] sm:$0xff]  }
 0x308   : > { %6627 = vmatprep.subr.bf16.mxu1 %v18547_v15  ;;  %v6173_v5 = vpop.f32.mrb[95].mxu1  ;;  %v2903_v14 = vld [vmem:[#allocation4 + $0xc4] sm:$0xf] }
 0x309   : > { %2950 = vst [vmem:[#allocation2 + $0x688] sm:$0xf] %v2903_v14  ;;  %v14401_v5 = vld [vmem:[%s18426_s3 + $0x1d0] sm:$0xff]   ;;  %v14367_v14 = vld [vmem:[#allocation2 + $0x1c0] ss:$36 sps:$4 sm:$0xff]  }
 0x30a   : > { %6440 = vmatmul.mubr.bf16.gmra.mrb[4].mxu1 %v14349_v7  ;;  %v14390_v7 = vld [vmem:[%s18426_s3 + $0x1c0] sm:$0xff]  }
 0x30b   : > { %6447 = vmatprep.mubr.bf16.mxu1 %v14350_v62  ;;  %6628 = vmatpush1.bf16.msra.mxu1 %v14357_v45  ;;  %v3237_v45 = vrot.slane %v14262_v54, 5  ;;  %v14360_v62 = vld [vmem:[#allocation2 + $0x130] ss:$36 sps:$4 sm:$0xff]  }
 0x30c   : > { %6629 = vmatprep.subr.bf16.mxu1 %v18547_v15 }
 0x30d   : > { %v3238_v3 = vsel %vm15151_vm5, %v3937_v49, %v3237_v45  ;;  %v14365_v49 = vld [vmem:[#allocation2 + $0x1c4] ss:$36 sps:$4 sm:$0xff]   ;;  %v3612_v45 = vld [vmem:[#allocation4 + $0xc4] sm:$0xf] }
 0x30e   : > { %3332 = vst [vmem:[#allocation2 + $0x68c] sm:$0xf] %v3238_v3  ;;  %3659 = vst [vmem:[#allocation2 + $0x628] sm:$0xf] %v3612_v45  ;;  %v14378_v45 = vld [vmem:[#allocation2 + $0x298] ss:$36 sps:$4 sm:$0xff]  }
 0x30f   : > { %6630 = vmatpush1.bf16.msra.mxu1 %v14363_v55  ;;  %v14361_v55 = vld [vmem:[#allocation2 + $0x17c] ss:$36 sps:$4 sm:$0xff]  }
 0x310   : > { %6631 = vmatprep.subr.bf16.mxu1 %v18547_v15 }
 0x312   : > { %6448 = vmatmul.mubr.bf16.gmra.mrb[8].mxu1 %v14353_v27  ;;  %v14364_v27 = vld [vmem:[#allocation2 + $0x178] ss:$36 sps:$4 sm:$0xff]  }
 0x313   : > { %6455 = vmatprep.mubr.bf16.mxu1 %v14354_v33  ;;  %6632 = vmatpush1.bf16.msra.mxu1 %v14368_v11  ;;  %v14396_v11 = vld [vmem:[%s18426_s3 + $0x1c8] sm:$0xff]   ;;  %v12217_v33 = vcombine.low %v3354_v21, %v3354_v21 }
 0x314   : > { %6633 = vmatprep.subr.bf16.mxu1 %v18547_v15 }
 0x315   : > { %3564 = vst [vmem:[#allocation2 + $0x600] sm:$0xf] %v12217_v33 }
 0x317   : > { %6634 = vmatpush1.bf16.msra.mxu1 %v14374_v53  ;;  %v12218_v53 = vcombine.high %v3354_v21, %v3354_v21 }
 0x318   : > { %6635 = vmatprep.subr.bf16.mxu1 %v18547_v15 }
 0x319   : > { %3565 = vst [vmem:[#allocation2 + $0x624] sm:$0xf] %v12218_v53  ;;  %v14423_v53 = vld [vmem:[%s18426_s3 + $0x1f0] sm:$0xff]  }
 0x31a   : > { %6456 = vmatmul.mubr.bf16.gmra.mrb[12].mxu1 %v14356_v12  ;;  %v3611_v12 = vld [vmem:[#allocation4 + $0xc0] sm:$0xf] }
 0x31b   : > { %6463 = vmatprep.mubr.bf16.mxu1 %v14358_v1  ;;  %6636 = vmatpush1.bf16.msra.mxu1 %v14379_v40  ;;  %v16599_v40 = vld [vmem:[#allocation3 + $0xd0] sm:$0x1f]  ;;  %v14802_v1 = vld [vmem:[#allocation3 + $0xc8] sm:$0xff]  ;;  %3658 = vst [vmem:[#allocation2 + $0x604] sm:$0xf] %v3611_v12 }
 0x31c   : > { %6637 = vmatprep.subr.bf16.mxu1 %v18547_v15  ;;  %v12267_v54 = vcombine.high %v14802_v1, %v14802_v1  ;;  %v14371_v12 = vld [vmem:[#allocation2 + $0x208] ss:$36 sps:$4 sm:$0xff]  }
 0x31f   : > { %6638 = vmatpush1.bf16.msra.mxu1 %v14385_v37  ;;  %v14407_v37 = vld [vmem:[%s18426_s3 + $0x1d8] sm:$0xff]  }
 0x320   : > { %6639 = vmatprep.subr.bf16.mxu1 %v18547_v15 }
 0x322   : > { %6464 = vmatmul.mubr.bf16.gmra.mrb[16].mxu1 %v14360_v62  ;;  %v3941_v62 = vrot.slane %v12267_v54, 5  ;;  %v14375_v54 = vld [vmem:[#allocation2 + $0x250] ss:$36 sps:$4 sm:$0xff]  }
 0x323   : > { %6471 = vmatprep.mubr.bf16.mxu1 %v14361_v55  ;;  %6640 = vmatpush1.bf16.msra.mxu1 %v14390_v7  ;;  %v12268_v7 = vcombine.low %v16599_v40, %v16599_v40  ;;  %v14412_v55 = vld [vmem:[%s18426_s3 + $0x1e0] sm:$0xff]  }
 0x324   : > { %6641 = vmatprep.subr.bf16.mxu1 %v18547_v15  ;;  %v3943_v21 = vrot.slane %v3941_v62, 4 }
 0x325   : > { %v16611_v3 = vrot.slane %v12268_v7, 5  ;;  %v14380_v7 = vld [vmem:[#allocation2 + $0x2e4] ss:$36 sps:$4 sm:$0xff]  }
 0x327   : > { %6642 = vmatpush1.bf16.msra.mxu1 %v14396_v11  ;;  %v14369_v11 = vld [vmem:[#allocation2 + $0x20c] ss:$36 sps:$4 sm:$0xff]   ;;  %v3945_v33 = vsel %vm15151_vm5, %v3943_v21, %v16611_v3  ;;  %v14387_v21 = vld [vmem:[#allocation2 + $0x374] ss:$36 sps:$4 sm:$0xff]  }
 0x328   : > { %6643 = vmatprep.subr.bf16.mxu1 %v18547_v15  ;;  %4041 = vst [vmem:[#allocation2 + $0x674] sm:$0xf] %v3945_v33  ;;  %v14391_v33 = vld [vmem:[#allocation2 + $0x3bc] ss:$36 sps:$4 sm:$0xff]  }
 0x32a   : > { %6472 = vmatmul.mubr.bf16.gmra.mrb[20].mxu1 %v14364_v27  ;;  %v3940_v27 = vrot.slane %v3938_v16, 4  ;;  %v14428_v16 = vld [vmem:[%s18426_s3 + $0x1f8] sm:$0xff]  }
 0x32b   : > { %6479 = vmatprep.mubr.bf16.mxu1 %v14365_v49  ;;  %6644 = vmatpush1.bf16.msra.mxu1 %v14401_v5  ;;  %v14418_v5 = vld [vmem:[%s18426_s3 + $0x1e8] sm:$0xff]  }
 0x32c   : > { %6645 = vmatprep.subr.bf16.mxu1 %v18547_v15  ;;  %v3942_v49 = vsel %vm15151_vm5, %v3940_v27, %v3941_v62  ;;  %v14382_v62 = vld [vmem:[#allocation2 + $0x2e0] ss:$36 sps:$4 sm:$0xff]   ;;  %v14386_v27 = vld [vmem:[#allocation2 + $0x328] ss:$36 sps:$4 sm:$0xff]  }
 0x32d   : > { %4040 = vst [vmem:[#allocation2 + $0x650] sm:$0xf] %v3942_v49  ;;  %v14389_v49 = vld [vmem:[#allocation2 + $0x370] ss:$36 sps:$4 sm:$0xff]  }
 0x32f   : > { %6646 = vmatpush1.bf16.msra.mxu1 %v14407_v37  ;;  %v14376_v37 = vld [vmem:[#allocation2 + $0x29c] ss:$36 sps:$4 sm:$0xff]  }
 0x330   : > { %6647 = vmatprep.subr.bf16.mxu1 %v18547_v15 }
 0x332   : > { %6480 = vmatmul.mubr.bf16.gmra.mrb[24].mxu1 %v14367_v14 }
 0x333   : > { %6487 = vmatprep.mubr.bf16.mxu1 %v14369_v11  ;;  %6648 = vmatpush1.bf16.msra.mxu1 %v14412_v55  ;;  %v14383_v55 = vld [vmem:[#allocation2 + $0x32c] ss:$36 sps:$4 sm:$0xff]  }
 0x334   : > { %6649 = vmatprep.subr.bf16.mxu1 %v18547_v15  ;;  %v14429_v1 = vld [vmem:[#allocation2 + $0x650] ss:$36 sps:$4 sm:$0xff]  }
 0x335   : > { %13616 = vmatprep.mubr.bf16.mxu0 %v14429_v1  ;;  %v14400_v1 = vld [vmem:[#allocation2 + $0x448] ss:$36 sps:$4 sm:$0xff]  }
 0x337   : > { %6650 = vmatpush1.bf16.msra.mxu1 %v14418_v5 }
 0x338   : > { %6651 = vmatprep.subr.bf16.mxu1 %v18547_v15 }
 0x33a   : > { %6488 = vmatmul.mubr.bf16.gmra.mrb[28].mxu1 %v14371_v12  ;;  %v14394_v12 = vld [vmem:[#allocation2 + $0x404] ss:$36 sps:$4 sm:$0xff]  }
 0x33b   : > { %6495 = vmatprep.mubr.bf16.mxu1 %v14372_v48  ;;  %6652 = vmatpush1.bf16.msra.mxu1 %v14423_v53  ;;  %v14393_v53 = vld [vmem:[#allocation2 + $0x3b8] ss:$36 sps:$4 sm:$0xff]   ;;  %v14397_v48 = vld [vmem:[#allocation2 + $0x400] ss:$36 sps:$4 sm:$0xff]  }
 0x33c   : > { %6653 = vmatprep.subr.bf16.mxu1 %v18547_v15 }
 0x33f   : > { %6654 = vmatpush1.bf16.msra.mxu1 %v14428_v16  ;;  %v14398_v16 = vld [vmem:[#allocation2 + $0x44c] ss:$36 sps:$4 sm:$0xff]  }
 0x342   : > { %6496 = vmatmul.mubr.bf16.gmra.mrb[32].mxu1 %v14375_v54  ;;  %v14402_v54 = vld [vmem:[#allocation2 + $0x494] ss:$36 sps:$4 sm:$0xff]  }
 0x343   : > { %6503 = vmatprep.mubr.bf16.mxu1 %v14376_v37  ;;  %v14404_v37 = vld [vmem:[#allocation2 + $0x490] ss:$36 sps:$4 sm:$0xff]  }
 0x348   : > { %v16632_v14 = vpop.f32.mrb[148].mxu0 }
 0x349   : > { %v16634_v11 = vpop.f32.mrb[149].mxu0 }
 0x34a   : > { %6504 = vmatmul.mubr.bf16.gmra.mrb[36].mxu1 %v14378_v45  ;;  %v16636_v15 = vpop.f32.mrb[150].mxu0  ;;  %v14405_v45 = vld [vmem:[#allocation2 + $0x4dc] ss:$36 sps:$4 sm:$0xff]  }
 0x34b   : > { %6511 = vmatprep.mubr.bf16.mxu1 %v14380_v7  ;;  %v16638_v5 = vpop.f32.mrb[151].mxu0  ;;  %v14408_v7 = vld [vmem:[#allocation2 + $0x4d8] ss:$36 sps:$4 sm:$0xff]  }
 0x352   : > { %6512 = vmatmul.mubr.bf16.gmra.mrb[40].mxu1 %v14382_v62  ;;  %v14409_v62 = vld [vmem:[#allocation2 + $0x524] ss:$36 sps:$4 sm:$0xff]  }
 0x353   : > { %6519 = vmatprep.mubr.bf16.mxu1 %v14383_v55  ;;  %v14411_v55 = vld [vmem:[#allocation2 + $0x520] ss:$36 sps:$4 sm:$0xff]  }
 0x35a   : > { %6520 = vmatmul.mubr.bf16.gmra.mrb[44].mxu1 %v14386_v27  ;;  %v14413_v27 = vld [vmem:[#allocation2 + $0x56c] ss:$36 sps:$4 sm:$0xff]  }
 0x35b   : > { %6527 = vmatprep.mubr.bf16.mxu1 %v14387_v21  ;;  %v14415_v21 = vld [vmem:[#allocation2 + $0x568] ss:$36 sps:$4 sm:$0xff]  }
 0x362   : > { %6528 = vmatmul.mubr.bf16.gmra.mrb[48].mxu1 %v14389_v49  ;;  %v14416_v49 = vld [vmem:[#allocation2 + $0x5b4] ss:$36 sps:$4 sm:$0xff]  }
 0x363   : > { %6535 = vmatprep.mubr.bf16.mxu1 %v14391_v33  ;;  %v14419_v33 = vld [vmem:[#allocation2 + $0x5b0] ss:$36 sps:$4 sm:$0xff]  }
 0x36a   : > { %6536 = vmatmul.mubr.bf16.gmra.mrb[52].mxu1 %v14393_v53  ;;  %v14420_v53 = vld [vmem:[#allocation2 + $0x5fc] ss:$36 sps:$4 sm:$0xff]  }
 0x36b   : > { %6543 = vmatprep.mubr.bf16.mxu1 %v14394_v12  ;;  %v14422_v12 = vld [vmem:[#allocation2 + $0x5f8] ss:$36 sps:$4 sm:$0xff]  }
 0x372   : > { %6544 = vmatmul.mubr.bf16.gmra.mrb[56].mxu1 %v14397_v48  ;;  %v14424_v48 = vld [vmem:[#allocation2 + $0x644] ss:$36 sps:$4 sm:$0xff]  }
 0x373   : > { %6551 = vmatprep.mubr.bf16.mxu1 %v14398_v16  ;;  %v4275_v16 = vld [vmem:[#allocation2 + $0x688] sm:$0xff] }
 0x37a   : > { %6552 = vmatmul.mubr.bf16.gmra.mrb[60].mxu1 %v14400_v1  ;;  %v14426_v1 = vld [vmem:[#allocation2 + $0x640] ss:$36 sps:$4 sm:$0xff]  }
 0x37b   : > { %6559 = vmatprep.mubr.bf16.mxu1 %v14402_v54  ;;  %v12484_v54 = vcombine.high %v4275_v16, %v4275_v16 }
 0x382   : > { %6560 = vmatmul.mubr.bf16.gmra.mrb[64].mxu1 %v14404_v37  ;;  %v12483_v37 = vcombine.low %v4275_v16, %v4275_v16 }
 0x383   : > { %6567 = vmatprep.mubr.bf16.mxu1 %v14405_v45  ;;  %v14431_v45 = vld [vmem:[#allocation2 + $0x1c] ss:$36 sps:$4 sm:$0xff]  }
 0x38a   : > { %6568 = vmatmul.mubr.bf16.gmra.mrb[68].mxu1 %v14408_v7  ;;  %v14433_v7 = vld [vmem:[#allocation2 + $0x18] ss:$36 sps:$4 sm:$0xff]  }
 0x38b   : > { %6575 = vmatprep.mubr.bf16.mxu1 %v14409_v62  ;;  %v14434_v62 = vld [vmem:[#allocation2 + $0x64] ss:$36 sps:$4 sm:$0xff]  }
 0x392   : > { %6576 = vmatmul.mubr.bf16.gmra.mrb[72].mxu1 %v14411_v55  ;;  %v14436_v55 = vld [vmem:[#allocation2 + $0x60] ss:$36 sps:$4 sm:$0xff]  }
 0x393   : > { %6583 = vmatprep.mubr.bf16.mxu1 %v14413_v27  ;;  %v16643_v27 = vld [vmem:[%s18427_s4] ss:$0 sm:$0xff] }
 0x39a   : > { %6584 = vmatmul.mubr.bf16.gmra.mrb[76].mxu1 %v14415_v21  ;;  %v14437_v21 = vld [vmem:[#allocation2 + $0xac] ss:$36 sps:$4 sm:$0xff]  }
 0x39b   : > { %6591 = vmatprep.mubr.bf16.mxu1 %v14416_v49  ;;  %v6170_v49 = vadd.f32 %v16643_v27, %v16565_v9  ;;  %v14449_v9 = vld [vmem:[#allocation2 + $0x1cc] ss:$36 sps:$4 sm:$0xff]  }
 0x3a2   : > { %6592 = vmatmul.mubr.bf16.gmra.mrb[80].mxu1 %v14419_v33 }
 0x3a3   : > { %6599 = vmatprep.mubr.bf16.mxu1 %v14420_v53 }
 0x3aa   : > { %6600 = vmatmul.mubr.bf16.gmra.mrb[84].mxu1 %v14422_v12 }
 0x3ab   : > { %6607 = vmatprep.mubr.bf16.mxu1 %v14424_v48 }
 0x3b2   : > { %6608 = vmatmul.mubr.bf16.gmra.mrb[88].mxu1 %v14426_v1  ;;  %v14439_v1 = vld [vmem:[#allocation2 + $0xa8] ss:$36 sps:$4 sm:$0xff]  }
 0x3b3   : > { %6615 = vmatprep.mubr.bf16.mxu1 %v12484_v54  ;;  %v14440_v54 = vld [vmem:[#allocation2 + $0xf4] ss:$36 sps:$4 sm:$0xff]  }
 0x3ba   : > { %6616 = vmatmul.mubr.bf16.gmra.mrb[100].mxu1 %v12483_v37  ;;  %v14442_v37 = vld [vmem:[#allocation2 + $0xf0] ss:$36 sps:$4 sm:$0xff]  }
 0x3bb   : > { %6655 = vmatprep.mubr.bf16.mxu1 %v14431_v45  ;;  %v14443_v45 = vld [vmem:[#allocation2 + $0x13c] ss:$36 sps:$4 sm:$0xff]  }
 0x3c2   : > { %6656 = vmatmul.mubr.bf16.vlgmr.msra.gmra.mrb[0].mxu1 %v14433_v7  ;;  %v14445_v7 = vld [vmem:[#allocation2 + $0x138] ss:$36 sps:$4 sm:$0xff]  }
 0x3c3   : > { %6663 = vmatprep.mubr.bf16.mxu1 %v14434_v62  ;;  %v14446_v62 = vld [vmem:[#allocation2 + $0x184] ss:$36 sps:$4 sm:$0xff]  }
 0x3ca   : > { %6664 = vmatmul.mubr.bf16.gmra.mrb[4].mxu1 %v14436_v55  ;;  %v14448_v55 = vld [vmem:[#allocation2 + $0x180] ss:$36 sps:$4 sm:$0xff]  }
 0x3cb   : > { %6671 = vmatprep.mubr.bf16.mxu1 %v14437_v21  ;;  %v3355_v21 = vld [vmem:[#allocation3 + $0xc8] sm:$0xff] }
 0x3cd   : > { %v6393_v33 = vpop.f32.mrb[96].mxu1 }
 0x3ce   : > { %v16647_v53 = vadd.f32 %v6393_v33, %v6170_v49  ;;  %v6395_v12 = vpop.f32.mrb[97].mxu1  ;;  %v3613_v49 = vld [vmem:[#allocation4 + $0xc8] sm:$0xf]  ;;  %v3614_v33 = vld [vmem:[#allocation4 + $0xcc] sm:$0xf] }
 0x3cf   : > { %v6396_v48 = vpop.f32.mrb[98].mxu1  ;;  %v12219_v12 = vcombine.low %v3355_v21, %v3355_v21  ;;  %3660 = vst [vmem:[#allocation2 + $0x64c] sm:$0xf] %v3613_v49  ;;  %3661 = vst [vmem:[#allocation2 + $0x670] sm:$0xf] %v3614_v33  ;;  %v14520_v49 = vld [vmem:[%s18428_s5 + $0x48] sm:$0xff]  }
 0x3d0   : > { %v6397_v16 = vpop.f32.mrb[99].mxu1  ;;  %v12220_v48 = vcombine.high %v3355_v21, %v3355_v21  ;;  %v14455_v21 = vld [vmem:[#allocation2 + $0x25c] ss:$36 sps:$4 sm:$0xff]  }
 0x3d1   : > { %v12269_v16 = vcombine.high %v16599_v40, %v16599_v40  ;;  %3566 = vst [vmem:[#allocation2 + $0x648] sm:$0xf] %v12219_v12  ;;  %v14454_v40 = vld [vmem:[#allocation2 + $0x210] ss:$36 sps:$4 sm:$0xff]   ;;  %v14521_v12 = vld [vmem:[%s18428_s5 + $0x8] sm:$0xff]  }
 0x3d2   : > { %6672 = vmatmul.mubr.bf16.gmra.mrb[8].mxu1 %v14439_v1  ;;  %3567 = vst [vmem:[#allocation2 + $0x66c] sm:$0xf] %v12220_v48  ;;  %v14457_v48 = vld [vmem:[#allocation2 + $0x258] ss:$36 sps:$4 sm:$0xff]  }
 0x3d3   : > { %6679 = vmatprep.mubr.bf16.mxu1 %v14440_v54  ;;  %v3947_v1 = vrot.slane %v12269_v16, 5  ;;  %v14451_v54 = vld [vmem:[#allocation2 + $0x1c8] ss:$36 sps:$4 sm:$0xff]  }
 0x3d4   : > { %v14458_v16 = vld [vmem:[#allocation2 + $0x2a4] ss:$36 sps:$4 sm:$0xff]  }
 0x3da   : > { %6680 = vmatmul.mubr.bf16.gmra.mrb[12].mxu1 %v14442_v37  ;;  %v14452_v37 = vld [vmem:[#allocation2 + $0x214] ss:$36 sps:$4 sm:$0xff]  }
 0x3db   : > { %6687 = vmatprep.mubr.bf16.mxu1 %v14443_v45  ;;  %v3946_v45 = vrot.slane %v16611_v3, 4  ;;  %v14519_v3 = vld [vmem:[%s18428_s5] sm:$0xff]  }
 0x3e2   : > { %6688 = vmatmul.mubr.bf16.gmra.mrb[16].mxu1 %v14445_v7  ;;  %v14515_v7 = vld [vmem:[#allocation3 + $0xd0] ss:$0 sps:$4 sm:$0xff]  }
 0x3e3   : > { %6695 = vmatprep.mubr.bf16.mxu1 %v14446_v62  ;;  %v3615_v62 = vld [vmem:[#allocation4 + $0xd0] sm:$0xf]  ;;  %3568 = vst [vmem:[#allocation2 + $0x690] sm:$0xf] %v14515_v7  ;;  %v14523_v7 = vld [vmem:[%s18428_s5 + $0x10] sm:$0xff]  }
 0x3e4   : > { %3662 = vst [vmem:[#allocation2 + $0x694] sm:$0xf] %v3615_v62  ;;  %v14464_v62 = vld [vmem:[#allocation2 + $0x334] ss:$36 sps:$4 sm:$0xff]  }
 0x3ea   : > { %6696 = vmatmul.mubr.bf16.gmra.mrb[20].mxu1 %v14448_v55  ;;  %v14517_v55 = vld [vmem:[%s18428_s5 + $0x40] sm:$0xff]  }
 0x3eb   : > { %6703 = vmatprep.mubr.bf16.mxu1 %v14449_v9  ;;  %v3948_v9 = vsel %vm15151_vm5, %v3946_v45, %v3947_v1  ;;  %13084 = vmatprep.subr.bf16.mxu0 %v14517_v55  ;;  %v14460_v1 = vld [vmem:[#allocation2 + $0x2a0] ss:$36 sps:$4 sm:$0xff]   ;;  %v14522_v45 = vld [vmem:[%s18428_s5 + $0x50] sm:$0xff]  }
 0x3ec   : > { %4042 = vst [vmem:[#allocation2 + $0x698] sm:$0xf] %v3948_v9  ;;  %13085 = vmatpush3.bf16.msra.mxu0 %v14519_v3  ;;  %v14466_v55 = vld [vmem:[#allocation2 + $0x330] ss:$36 sps:$4 sm:$0xff]   ;;  %v14467_v9 = vld [vmem:[#allocation2 + $0x37c] ss:$36 sps:$4 sm:$0xff]  }
 0x3ed   : > { %13086 = vmatprep.subr.bf16.mxu0 %v14520_v49  ;;  %v14472_v3 = vld [vmem:[#allocation2 + $0x3c0] ss:$36 sps:$4 sm:$0xff]   ;;  %v14473_v49 = vld [vmem:[#allocation2 + $0x40c] ss:$36 sps:$4 sm:$0xff]  }
 0x3f0   : > { %13087 = vmatpush3.bf16.msra.mxu0 %v14521_v12  ;;  %v14525_v12 = vld [vmem:[%s18428_s5 + $0x18] sm:$0xff]  }
 0x3f1   : > { %13088 = vmatprep.subr.bf16.mxu0 %v14522_v45  ;;  %v14527_v45 = vld [vmem:[%s18428_s5 + $0x20] sm:$0xff]  }
 0x3f2   : > { %6704 = vmatmul.mubr.bf16.gmra.mrb[24].mxu1 %v14451_v54  ;;  %v14461_v54 = vld [vmem:[#allocation2 + $0x2ec] ss:$36 sps:$4 sm:$0xff]  }
 0x3f3   : > { %6711 = vmatprep.mubr.bf16.mxu1 %v14452_v37  ;;  %v14514_v33 = vld [vmem:[#allocation2 + $0x698] ss:$0 sps:$4 sm:$0xff]   ;;  %v14463_v37 = vld [vmem:[#allocation2 + $0x2e8] ss:$36 sps:$4 sm:$0xff]  }
 0x3f4   : > { %13617 = vmatmul.mubr.bf16.gmra.mrb[152].mxu0 %v14514_v33  ;;  %v14524_v33 = vld [vmem:[%s18428_s5 + $0x58] sm:$0xff]  }
 0x3f5   : > { %13089 = vmatpush3.bf16.msra.mxu0 %v14523_v7  ;;  %v14483_v7 = vld [vmem:[#allocation2 + $0x498] ss:$36 sps:$4 sm:$0xff]  }
 0x3f6   : > { %13090 = vmatprep.subr.bf16.mxu0 %v14524_v33  ;;  %v14530_v33 = vld [vmem:[%s18428_s5 + $0x70] sm:$0xff]  }
 0x3f9   : > { %13091 = vmatpush3.bf16.msra.mxu0 %v14525_v12  ;;  %v14531_v12 = vld [vmem:[%s18428_s5 + $0x30] sm:$0xff]  }
 0x3fa   : > { %6712 = vmatmul.mubr.bf16.gmra.mrb[28].mxu1 %v14454_v40  ;;  %v14469_v40 = vld [vmem:[#allocation2 + $0x378] ss:$36 sps:$4 sm:$0xff]  }
 0x3fb   : > { %6719 = vmatprep.mubr.bf16.mxu1 %v14455_v21  ;;  %v14470_v21 = vld [vmem:[#allocation2 + $0x3c4] ss:$36 sps:$4 sm:$0xff]  }
 0x402   : > { %6720 = vmatmul.mubr.bf16.gmra.mrb[32].mxu1 %v14457_v48  ;;  %v14475_v48 = vld [vmem:[#allocation2 + $0x408] ss:$36 sps:$4 sm:$0xff]  }
 0x403   : > { %6727 = vmatprep.mubr.bf16.mxu1 %v14458_v16  ;;  %v14476_v16 = vld [vmem:[#allocation2 + $0x454] ss:$36 sps:$4 sm:$0xff]  }
 0x40a   : > { %6728 = vmatmul.mubr.bf16.gmra.mrb[36].mxu1 %v14460_v1  ;;  %v14478_v1 = vld [vmem:[#allocation2 + $0x450] ss:$36 sps:$4 sm:$0xff]  }
 0x40b   : > { %6735 = vmatprep.mubr.bf16.mxu1 %v14461_v54  ;;  %v14481_v54 = vld [vmem:[#allocation2 + $0x49c] ss:$36 sps:$4 sm:$0xff]  }
 0x412   : > { %6736 = vmatmul.mubr.bf16.gmra.mrb[40].mxu1 %v14463_v37  ;;  %v14526_v37 = vld [vmem:[%s18428_s5 + $0x60] sm:$0xff]  }
 0x413   : > { %6743 = vmatprep.mubr.bf16.mxu1 %v14464_v62  ;;  %13092 = vmatprep.subr.bf16.mxu0 %v14526_v37  ;;  %v14486_v62 = vld [vmem:[#allocation2 + $0x4e4] ss:$36 sps:$4 sm:$0xff]   ;;  %v14503_v37 = vld [vmem:[#allocation2 + $0x5b8] ss:$36 sps:$4 sm:$0xff]  }
 0x414   : > { %13093 = vmatpush3.bf16.msra.mxu0 %v14527_v45  ;;  %v14506_v45 = vld [vmem:[#allocation2 + $0x604] ss:$36 sps:$4 sm:$0xff]  }
 0x41a   : > { %6744 = vmatmul.mubr.bf16.gmra.mrb[44].mxu1 %v14466_v55  ;;  %v14528_v55 = vld [vmem:[%s18428_s5 + $0x68] sm:$0xff]  }
 0x41b   : > { %6751 = vmatprep.mubr.bf16.mxu1 %v14467_v9  ;;  %v14529_v9 = vld [vmem:[%s18428_s5 + $0x28] sm:$0xff]   ;;  %13094 = vmatprep.subr.bf16.mxu0 %v14528_v55  ;;  %v4276_v55 = vld [vmem:[#allocation2 + $0x690] sm:$0xff] }
 0x41c   : > { %13095 = vmatpush3.bf16.msra.mxu0 %v14529_v9  ;;  %v14537_v9 = vld [vmem:[%s18428_s5 + $0xc0] sm:$0xff]  }
 0x41d   : > { %13096 = vmatprep.subr.bf16.mxu0 %v14530_v33  ;;  %v14551_v33 = vld [vmem:[%s18428_s5 + $0x208] sm:$0xff]  }
 0x420   : > { %13097 = vmatpush3.bf16.msra.mxu0 %v14531_v12  ;;  %v14555_v12 = vld [vmem:[%s18428_s5 + $0x210] sm:$0xff]  }
 0x422   : > { %6752 = vmatmul.mubr.bf16.gmra.mrb[48].mxu1 %v14469_v40  ;;  %v14488_v40 = vld [vmem:[#allocation2 + $0x4e0] ss:$36 sps:$4 sm:$0xff]  }
 0x423   : > { %6759 = vmatprep.mubr.bf16.mxu1 %v14470_v21  ;;  %v14491_v21 = vld [vmem:[#allocation2 + $0x52c] ss:$36 sps:$4 sm:$0xff]  }
 0x42a   : > { %6760 = vmatmul.mubr.bf16.gmra.mrb[52].mxu1 %v14472_v3  ;;  %v14493_v3 = vld [vmem:[#allocation2 + $0x528] ss:$36 sps:$4 sm:$0xff]  }
 0x42b   : > { %6767 = vmatprep.mubr.bf16.mxu1 %v14473_v49  ;;  %v14496_v49 = vld [vmem:[#allocation2 + $0x574] ss:$36 sps:$4 sm:$0xff]  }
 0x432   : > { %6768 = vmatmul.mubr.bf16.gmra.mrb[56].mxu1 %v14475_v48  ;;  %v14498_v48 = vld [vmem:[#allocation2 + $0x570] ss:$36 sps:$4 sm:$0xff]  }
 0x433   : > { %6775 = vmatprep.mubr.bf16.mxu1 %v14476_v16  ;;  %v14501_v16 = vld [vmem:[#allocation2 + $0x5bc] ss:$36 sps:$4 sm:$0xff]  }
 0x43a   : > { %6776 = vmatmul.mubr.bf16.gmra.mrb[60].mxu1 %v14478_v1  ;;  %v14532_v1 = vld [vmem:[%s18428_s5 + $0x78] sm:$0xff]  }
 0x43b   : > { %6783 = vmatprep.mubr.bf16.mxu1 %v14481_v54  ;;  %v14533_v54 = vld [vmem:[%s18428_s5 + $0x38] sm:$0xff]   ;;  %13098 = vmatprep.subr.bf16.mxu0 %v14532_v1 }
 0x43c   : > { %13099 = vmatpush3.bf16.msra.mxu0 %v14533_v54  ;;  %v14558_v54 = vld [vmem:[%s18428_s5 + $0x218] sm:$0xff]  }
 0x43d   : > { %13196 = vmatprep.subr.bf16.mxu0 %v14537_v9  ;;  %v14563_v9 = vld [vmem:[%s18428_s5 + $0x228] sm:$0xff]  }
 0x442   : > { %6784 = vmatmul.mubr.bf16.gmra.mrb[64].mxu1 %v14483_v7  ;;  %v14508_v7 = vld [vmem:[#allocation2 + $0x600] ss:$36 sps:$4 sm:$0xff]  }
 0x443   : > { %6791 = vmatprep.mubr.bf16.mxu1 %v14486_v62  ;;  %v14511_v62 = vld [vmem:[#allocation2 + $0x64c] ss:$36 sps:$4 sm:$0xff]  }
 0x44a   : > { %6792 = vmatmul.mubr.bf16.gmra.mrb[68].mxu1 %v14488_v40  ;;  %v12486_v40 = vcombine.high %v4276_v55, %v4276_v55 }
 0x44b   : > { %6799 = vmatprep.mubr.bf16.mxu1 %v14491_v21  ;;  %v14513_v21 = vld [vmem:[#allocation2 + $0x648] ss:$36 sps:$4 sm:$0xff]  }
 0x452   : > { %6800 = vmatmul.mubr.bf16.gmra.mrb[72].mxu1 %v14493_v3  ;;  %v12485_v3 = vcombine.low %v4276_v55, %v4276_v55 }
 0x453   : > { %6807 = vmatprep.mubr.bf16.mxu1 %v14496_v49  ;;  %v14549_v49 = vld [vmem:[%s18428_s5 + $0x200] sm:$0xff]  }
 0x454   : > { %13620 = vmatprep.subr.bf16.mxu1 %v14549_v49 }
 0x455   : > { %13621 = vmatpush3.bf16.msra.mxu1 %v14549_v49 }
 0x456   : > { %13622 = vmatprep.subr.bf16.mxu1 %v14551_v33 }
 0x459   : > { %13623 = vmatpush3.bf16.msra.mxu1 %v14551_v33 }
 0x45a   : > { %6808 = vmatmul.mubr.bf16.gmra.mrb[76].mxu1 %v14498_v48  ;;  %13624 = vmatprep.subr.bf16.mxu1 %v14555_v12 }
 0x45b   : > { %6815 = vmatprep.mubr.bf16.mxu1 %v14501_v16 }
 0x45d   : > { %13625 = vmatpush3.bf16.msra.mxu1 %v14555_v12 }
 0x45e   : > { %13626 = vmatprep.subr.bf16.mxu1 %v14558_v54 }
 0x461   : > { %13627 = vmatpush3.bf16.msra.mxu1 %v14558_v54 }
 0x462   : > { %6816 = vmatmul.mubr.bf16.gmra.mrb[80].mxu1 %v14503_v37 }
 0x463   : > { %6823 = vmatprep.mubr.bf16.mxu1 %v14506_v45 }
 0x46a   : > { %6824 = vmatmul.mubr.bf16.gmra.mrb[84].mxu1 %v14508_v7  ;;  %v14561_v7 = vld [vmem:[%s18428_s5 + $0x220] sm:$0xff]  }
 0x46b   : > { %6831 = vmatprep.mubr.bf16.mxu1 %v14511_v62  ;;  %13628 = vmatprep.subr.bf16.mxu1 %v14561_v7 }
 0x46c   : > { %13629 = vmatpush3.bf16.msra.mxu1 %v14561_v7 }
 0x46d   : > { %13630 = vmatprep.subr.bf16.mxu1 %v14563_v9 }
 0x470   : > { %13631 = vmatpush3.bf16.msra.mxu1 %v14563_v9 }
 0x472   : > { %6832 = vmatmul.mubr.bf16.gmra.mrb[88].mxu1 %v14513_v21 }
 0x473   : > { %6839 = vmatprep.mubr.bf16.mxu1 %v12486_v40 }
 0x47a   : > { %6840 = vmatmul.mubr.bf16.gmra.mrb[104].mxu1 %v12485_v3 }
 0x48d   : > { %v6617_v48 = vpop.f32.mrb[100].mxu1 }
 0x48e   : > { %v16715_v16 = vadd.f32 %v6617_v48, %v16647_v53  ;;  %v6619_v1 = vpop.f32.mrb[101].mxu1 }
 0x48f   : > { %v6620_v37 = vpop.f32.mrb[102].mxu1  ;;  %v14567_v1 = vld [vmem:[%s18428_s5 + $0x230] sm:$0xff]  }
 0x490   : > { %18552 = vst [vmem:[#allocation13_spill] sm:$0xff] %v16715_v16  ;;  %v6621_v45 = vpop.f32.mrb[103].mxu1  ;;  %13632 = vmatprep.subr.bf16.mxu1 %v14567_v1 }
 0x491   : > { %13633 = vmatpush3.bf16.msra.mxu1 %v14567_v1 }
 0x495   : > { %v6657_v62 = vpop.f32.mrb[0].mxu1 }
 0x496   : > { %v13668_v55 = vadd.f32 %v16643_v27, %v6657_v62  ;;  %v6659_v53 = vpop.f32.mrb[1].mxu1 }
 0x497   : > { %v6660_v40 = vpop.f32.mrb[2].mxu1 }
 0x498   : > { %v6882_v21 = vadd.f32 %v13668_v55, %v16436_v17  ;;  %v13669_v3 = vadd.f32 %v16643_v27, %v6660_v40  ;;  %v6662_v49 = vpop.f32.mrb[3].mxu1  ;;  %v14571_v17 = vld [vmem:[%s18428_s5 + $0x238] sm:$0xff]  }
 0x499   : > { %13634 = vmatprep.subr.bf16.mxu1 %v14571_v17 }
 0x49a   : > { %v7071_v33 = vmax.f32 %v6882_v21, 0.0  ;;  %v6885_v12 = vadd.f32 %v13669_v3, %v16444_v19  ;;  %13635 = vmatpush3.bf16.msra.mxu1 %v14571_v17 }
 0x49c   : > { %7118 = vst [vmem:[#allocation5] sm:$0xff] %v7071_v33  ;;  %v7072_v48 = vmax.f32 %v6885_v12, 0.0 }
 0x49d   : > { %v6665_v54 = vpop.f32.mrb[4].mxu1 }
 0x49e   : > { %7119 = vst [vmem:[#allocation5 + $0x8] sm:$0xff] %v7072_v48  ;;  %v13670_v37 = vadd.f32 %v16643_v27, %v6665_v54  ;;  %v6667_v45 = vpop.f32.mrb[5].mxu1 }
 0x49f   : > { %v6668_v7 = vpop.f32.mrb[6].mxu1 }
 0x4a0   : > { %v6890_v19 = vadd.f32 %v13670_v37, %v16433_v63  ;;  %v13671_v62 = vadd.f32 %v16643_v27, %v6668_v7  ;;  %v6670_v55 = vpop.f32.mrb[7].mxu1 }
 0x4a2   : > { %v7073_v53 = vmax.f32 %v6890_v19, 0.0  ;;  %v6893_v9 = vadd.f32 %v13671_v62, %v16441_v58 }
 0x4a4   : > { %7120 = vst [vmem:[#allocation5 + $0x10] sm:$0xff] %v7073_v53  ;;  %v7074_v40 = vmax.f32 %v6893_v9, 0.0 }
 0x4a5   : > { %v6673_v21 = vpop.f32.mrb[8].mxu1 }
 0x4a6   : > { %7121 = vst [vmem:[#allocation5 + $0x18] sm:$0xff] %v7074_v40  ;;  %v13672_v3 = vadd.f32 %v16643_v27, %v6673_v21  ;;  %v6675_v49 = vpop.f32.mrb[9].mxu1 }
 0x4a7   : > { %v6676_v12 = vpop.f32.mrb[10].mxu1 }
 0x4a8   : > { %v6898_v1 = vadd.f32 %v13672_v3, %v16480_v39  ;;  %v13673_v63 = vadd.f32 %v16643_v27, %v6676_v12  ;;  %v6678_v54 = vpop.f32.mrb[11].mxu1  ;;  %v7209_v39 = vld [vmem:[#allocation5 + $0x1] sm:$0xff] }
 0x4aa   : > { %v7075_v37 = vmax.f32 %v6898_v1, 0.0  ;;  %v6901_v45 = vadd.f32 %v13673_v63, %v16484_v46  ;;  %v7253_v46 = vmax.f32 %v7071_v33, %v7209_v39 }
 0x4ab   : > { %v7210_v12 = vld [vmem:[#allocation5 + $0x9] sm:$0xff] }
 0x4ac   : > { %7122 = vst [vmem:[#allocation5 + $0x20] sm:$0xff] %v7075_v37  ;;  %v7076_v7 = vmax.f32 %v6901_v45, 0.0 }
 0x4ad   : > { %v6681_v58 = vpop.f32.mrb[12].mxu1  ;;  %v7211_v33 = vld [vmem:[#allocation5 + $0x11] sm:$0xff] }
 0x4ae   : > { %7123 = vst [vmem:[#allocation5 + $0x28] sm:$0xff] %v7076_v7  ;;  %v13674_v17 = vadd.f32 %v16643_v27, %v6681_v58  ;;  %v6683_v19 = vpop.f32.mrb[13].mxu1  ;;  %v7254_v58 = vmax.f32 %v7072_v48, %v7210_v12  ;;  %v7255_v48 = vmax.f32 %v7073_v53, %v7211_v33 }
 0x4af   : > { %v6684_v62 = vpop.f32.mrb[14].mxu1 }
 0x4b0   : > { %v6906_v55 = vadd.f32 %v13674_v17, %v16478_v57  ;;  %v13675_v9 = vadd.f32 %v16643_v27, %v6684_v62  ;;  %v6686_v21 = vpop.f32.mrb[15].mxu1 }
 0x4b2   : > { %v7077_v3 = vmax.f32 %v6906_v55, 0.0  ;;  %v6909_v49 = vadd.f32 %v13675_v9, %v16482_v29 }
 0x4b3   : > { %v7212_v1 = vld [vmem:[#allocation5 + $0x19] sm:$0xff] }
 0x4b4   : > { %v7256_v63 = vmax.f32 %v7074_v40, %v7212_v1  ;;  %7124 = vst [vmem:[#allocation5 + $0x30] sm:$0xff] %v7077_v3  ;;  %v7078_v54 = vmax.f32 %v6909_v49, 0.0 }
 0x4b5   : > { %v7213_v45 = vld [vmem:[#allocation5 + $0x21] sm:$0xff]  ;;  %v6689_v6 = vpop.f32.mrb[16].mxu1 }
 0x4b6   : > { %v7389_v19 = vmax.f32 %v7253_v46, %v7256_v63  ;;  %v7257_v16 = vmax.f32 %v7075_v37, %v7213_v45  ;;  %7125 = vst [vmem:[#allocation5 + $0x38] sm:$0xff] %v7078_v54  ;;  %v13676_v57 = vadd.f32 %v16643_v27, %v6689_v6  ;;  %v6691_v17 = vpop.f32.mrb[17].mxu1 }
 0x4b7   : > { %v6692_v62 = vpop.f32.mrb[18].mxu1 }
 0x4b8   : > { %v7390_v21 = vmax.f32 %v7254_v58, %v7257_v16  ;;  %v6914_v55 = vadd.f32 %v13676_v57, %v16488_v4  ;;  %v13677_v29 = vadd.f32 %v16643_v27, %v6692_v62  ;;  %v6694_v9 = vpop.f32.mrb[19].mxu1 }
 0x4ba   : > { %v12930_v40 = vpack.c.bf16 %v7390_v21, %v7389_v19  ;;  %v7079_v39 = vmax.f32 %v6914_v55, 0.0  ;;  %v6917_v49 = vadd.f32 %v13677_v29, %v16492_v47 }
 0x4bb   : > { %v7214_v1 = vld [vmem:[#allocation5 + $0x29] sm:$0xff] }
 0x4bc   : > { %12931 = vst [vmem:[#allocation6] sm:$0xff] %v12930_v40   ;;  %v7258_v37 = vmax.f32 %v7076_v7, %v7214_v1  ;;  %7126 = vst [vmem:[#allocation5 + $0x40] sm:$0xff] %v7079_v39  ;;  %v7080_v12 = vmax.f32 %v6917_v49, 0.0 }
 0x4bd   : > { %v7215_v6 = vld [vmem:[#allocation5 + $0x31] sm:$0xff]  ;;  %v6697_v46 = vpop.f32.mrb[20].mxu1 }
 0x4be   : > { %v7391_v45 = vmax.f32 %v7255_v48, %v7258_v37  ;;  %v16752_v58 = vmax.f32 %v7077_v3, %v7215_v6  ;;  %7127 = vst [vmem:[#allocation5 + $0x48] sm:$0xff] %v7080_v12  ;;  %v13678_v4 = vadd.f32 %v16643_v27, %v6697_v46  ;;  %v6699_v57 = vpop.f32.mrb[21].mxu1 }
 0x4bf   : > { %v6700_v17 = vpop.f32.mrb[22].mxu1 }
 0x4c0   : > { %v7392_v19 = vmax.f32 %v7256_v63, %v16752_v58  ;;  %v6922_v47 = vadd.f32 %v13678_v4, %v16486_v18  ;;  %v13679_v53 = vadd.f32 %v16643_v27, %v6700_v17  ;;  %v6702_v62 = vpop.f32.mrb[23].mxu1 }
 0x4c2   : > { %v12935_v7 = vpack.c.bf16 %v7392_v19, %v7391_v45  ;;  %v7081_v21 = vmax.f32 %v6922_v47, 0.0  ;;  %v16759_v55 = vadd.f32 %v13679_v53, %v16490_v44 }
 0x4c3   : > { %v7216_v29 = vld [vmem:[#allocation5 + $0x39] sm:$0xff] }
 0x4c4   : > { %v7655_v3 = vld [vmem:[#allocation6] sm:$0xf]  ;;  %v7656_v9 = vld [vmem:[#allocation6 + $0x4] sm:$0xf]  ;;  %13032 = vst [vmem:[#allocation6 + $0x8] sm:$0xff] %v12935_v7   ;;  %v7260_v33 = vmax.f32 %v7078_v54, %v7216_v29  ;;  %7128 = vst [vmem:[#allocation5 + $0x50] sm:$0xff] %v7081_v21 }
 0x4c5   : > { %v7082_v40 = vmax.f32 %v16759_v55, 0.0  ;;  %7687 = vst [vmem:[#allocation2] sm:$0xf] %v7655_v3  ;;  %7688 = vst [vmem:[#allocation2 + $0x24] sm:$0xf] %v7656_v9  ;;  %v7217_v49 = vld [vmem:[#allocation5 + $0x41] sm:$0xff] }
 0x4c6   : > { %v7724_v63 = vld [vmem:[#allocation6] sm:$0xe]  ;;  %v7725_v18 = vld [vmem:[#allocation6 + $0x4] sm:$0xf]  ;;  %v6705_v1 = vpop.f32.mrb[24].mxu1  ;;  %v7393_v46 = vmax.f32 %v7257_v16, %v7260_v33  ;;  %v16762_v45 = vmax.f32 %v7079_v39, %v7217_v49 }
 0x4c7   : > { %v12604_v48 = vrot.slane %v7724_v63, 9  ;;  %v7790_v6 = vrot.slane %v7725_v18, 5  ;;  %7129 = vst [vmem:[#allocation5 + $0x58] sm:$0xff] %v7082_v40  ;;  %v13680_v44 = vadd.f32 %v16643_v27, %v6705_v1  ;;  %v6707_v54 = vpop.f32.mrb[25].mxu1 }
 0x4c8   : > { %v6708_v4 = vpop.f32.mrb[26].mxu1  ;;  %v7394_v17 = vmax.f32 %v7258_v37, %v16762_v45 }
 0x4c9   : > { %v7791_v57 = vsel %vm15151_vm5, %v12604_v48, %v7790_v6  ;;  %v6930_v19 = vadd.f32 %v13680_v44, %v16496_v56  ;;  %v13681_v47 = vadd.f32 %v16643_v27, %v6708_v4  ;;  %v6710_v53 = vpop.f32.mrb[27].mxu1  ;;  %v7792_v3 = vrot.slane %v7790_v6, 4 }
 0x4ca   : > { %7915 = vst [vmem:[#allocation2 + $0x4] sm:$0xf] %v7791_v57  ;;  %v12940_v16 = vpack.c.bf16 %v7394_v17, %v7393_v46 }
 0x4cb   : > { %v7083_v39 = vmax.f32 %v6930_v19, 0.0  ;;  %v16773_v62 = vadd.f32 %v13681_v47, %v16500_v28  ;;  %v7218_v7 = vld [vmem:[#allocation5 + $0x49] sm:$0xff]  ;;  %v7726_v29 = vld [vmem:[#allocation6 + $0x8] sm:$0xf]  ;;  %v7658_v18 = vld [vmem:[#allocation6 + $0xc] sm:$0xf] }
 0x4cc   : > { %v7657_v9 = vld [vmem:[#allocation6 + $0x8] sm:$0xf]  ;;  %13033 = vst [vmem:[#allocation6 + $0x10] sm:$0xff] %v12940_v16   ;;  %v16775_v63 = vmax.f32 %v7080_v12, %v7218_v7  ;;  %v7793_v56 = vrot.slane %v7726_v29, 5  ;;  %v7727_v49 = vld [vmem:[#allocation6 + $0xc] sm:$0xf] }
 0x4cd   : > { %7130 = vst [vmem:[#allocation5 + $0x60] sm:$0xff] %v7083_v39  ;;  %v7084_v37 = vmax.f32 %v16773_v62, 0.0  ;;  %7689 = vst [vmem:[#allocation2 + $0x48] sm:$0xf] %v7657_v9  ;;  %v6713_v48 = vpop.f32.mrb[28].mxu1  ;;  %v7796_v57 = vrot.slane %v7727_v49, 5 }
 0x4ce   : > { %v7219_v1 = vld [vmem:[#allocation5 + $0x51] sm:$0xff]  ;;  %7690 = vst [vmem:[#allocation2 + $0x6c] sm:$0xf] %v7658_v18  ;;  %v7395_v28 = vmax.f32 %v16752_v58, %v16775_v63  ;;  %v13682_v12 = vadd.f32 %v16643_v27, %v6713_v48  ;;  %v6715_v6 = vpop.f32.mrb[29].mxu1  ;;  %v7794_v44 = vsel %vm15151_vm5, %v7792_v3, %v7793_v56  ;;  %v7795_v4 = vrot.slane %v7793_v56, 4 }
 0x4cf   : > { %v16780_v46 = vmax.f32 %v7081_v21, %v7219_v1  ;;  %7131 = vst [vmem:[#allocation5 + $0x68] sm:$0xff] %v7084_v37  ;;  %v6716_v54 = vpop.f32.mrb[30].mxu1  ;;  %7916 = vst [vmem:[#allocation2 + $0x28] sm:$0xf] %v7794_v44  ;;  %v7798_v9 = vrot.slane %v7796_v57, 4 }
 0x4d0   : > { %v16789_v19 = vadd.f32 %v13682_v12, %v16494_v52  ;;  %v13683_v58 = vadd.f32 %v16643_v27, %v6716_v54  ;;  %v6718_v21 = vpop.f32.mrb[31].mxu1  ;;  %v7797_v47 = vsel %vm15151_vm5, %v7795_v4, %v7796_v57  ;;  %v16808_v12 = vpop.f32.mrb[152].mxu0  ;;  %v14534_v54 = vld [vmem:[#allocation2] ss:$36 sps:$4 sm:$0xff]  }
 0x4d1   : > { %v7396_v17 = vmax.f32 %v7260_v33, %v16780_v46  ;;  %7917 = vst [vmem:[#allocation2 + $0x4c] sm:$0xf] %v7797_v47 }
 0x4d2   : > { %v7085_v16 = vmax.f32 %v16789_v19, 0.0  ;;  %v16796_v7 = vadd.f32 %v13683_v58, %v16498_v13  ;;  %v14566_v19 = vld [vmem:[%s18428_s5 + $0xd8] sm:$0xff]  }
 0x4d3   : > { %v12945_v53 = vpack.c.bf16 %v7396_v17, %v7395_v28  ;;  %v7728_v3 = vld [vmem:[#allocation6 + $0x10] sm:$0xf]  ;;  %v7660_v49 = vld [vmem:[#allocation6 + $0x14] sm:$0xf]  ;;  %v14538_v28 = vld [vmem:[%s18428_s5 + $0x80] sm:$0xff]  }
 0x4d4   : > { %v7220_v29 = vld [vmem:[#allocation5 + $0x59] sm:$0xff]  ;;  %v7659_v33 = vld [vmem:[#allocation6 + $0x10] sm:$0xf]  ;;  %7132 = vst [vmem:[#allocation5 + $0x70] sm:$0xff] %v7085_v16  ;;  %v7086_v56 = vmax.f32 %v16796_v7, 0.0  ;;  %v7799_v18 = vrot.slane %v7728_v3, 5 }
 0x4d5   : > { %13034 = vst [vmem:[#allocation6 + $0x18] sm:$0xff] %v12945_v53   ;;  %v16800_v52 = vmax.f32 %v7082_v40, %v7220_v29  ;;  %7691 = vst [vmem:[#allocation2 + $0x90] sm:$0xf] %v7659_v33  ;;  %v7729_v13 = vld [vmem:[#allocation6 + $0x14] sm:$0xf]  ;;  %v6721_v48 = vpop.f32.mrb[32].mxu1 }
 0x4d6   : > { %v7221_v1 = vld [vmem:[#allocation5 + $0x61] sm:$0xff]  ;;  %7692 = vst [vmem:[#allocation2 + $0xb4] sm:$0xf] %v7660_v49  ;;  %7133 = vst [vmem:[#allocation5 + $0x78] sm:$0xff] %v7086_v56  ;;  %v13684_v6 = vadd.f32 %v16643_v27, %v6721_v48  ;;  %v6723_v44 = vpop.f32.mrb[33].mxu1  ;;  %v7800_v57 = vsel %vm15151_vm5, %v7798_v9, %v7799_v18  ;;  %v7801_v58 = vrot.slane %v7799_v18, 4 }
 0x4d7   : > { %v7397_v55 = vmax.f32 %v16762_v45, %v16800_v52  ;;  %v16812_v40 = vmax.f32 %v7083_v39, %v7221_v1  ;;  %v14536_v4 = vld [vmem:[#allocation2 + $0x4] ss:$36 sps:$4 sm:$0xff]   ;;  %v6724_v17 = vpop.f32.mrb[34].mxu1  ;;  %7918 = vst [vmem:[#allocation2 + $0x70] sm:$0xf] %v7800_v57  ;;  %v7802_v21 = vrot.slane %v7729_v13, 5 }
 0x4d8   : > { %v14544_v45 = vld [vmem:[%s18428_s5 + $0xc8] sm:$0xff]   ;;  %v16822_v39 = vpop.f32.mrb[153].mxu0  ;;  %v16827_v53 = vadd.f32 %v13684_v6, %v16504_v22  ;;  %v13685_v29 = vadd.f32 %v16643_v27, %v6724_v17  ;;  %v6726_v3 = vpop.f32.mrb[35].mxu1  ;;  %10719 = vmatprep.mubr.bf16.mxu0 %v14536_v4  ;;  %v7949_v7 = vld [vmem:[#allocation6] sm:$0xc] }
 0x4d9   : > { %v7398_v47 = vmax.f32 %v16775_v63, %v16812_v40  ;;  %v13619_v9 = vpop.f32.mrb[154].mxu0  ;;  %10720 = vmatmul.mubr.bf16.vlgmr.msra.gmra.mrb[156].mxu0 %v14534_v54  ;;  %v7803_v33 = vsel %vm15151_vm5, %v7801_v58, %v7802_v21  ;;  %v14546_v22 = vld [vmem:[%s18428_s5 + $0x88] sm:$0xff]   ;;  %v14554_v63 = vld [vmem:[%s18428_s5 + $0xd0] sm:$0xff]   ;;  %v7804_v44 = vrot.slane %v7802_v21, 4 }
 0x4da   : > { %v16832_v18 = vpop.f32.mrb[155].mxu0  ;;  %v7087_v13 = vmax.f32 %v16827_v53, 0.0  ;;  %v16836_v1 = vadd.f32 %v13685_v29, %v16508_v60  ;;  %13197 = vmatpush3.bf16.msra.mxu0 %v14538_v28  ;;  %7919 = vst [vmem:[#allocation2 + $0x94] sm:$0xf] %v7803_v33  ;;  %v14557_v21 = vld [vmem:[%s18428_s5 + $0x90] sm:$0xff]   ;;  %v14588_v53 = vld [vmem:[%s18428_s5 + $0xe8] sm:$0xff]  }
 0x4db   : > { %v12950_v49 = vpack.c.bf16 %v7398_v47, %v7397_v55  ;;  %v7222_v48 = vld [vmem:[#allocation5 + $0x69] sm:$0xff]  ;;  %13198 = vmatprep.subr.bf16.mxu0 %v14544_v45  ;;  %v14541_v3 = vld [vmem:[#allocation2 + $0x48] ss:$36 sps:$4 sm:$0xff]  }
 0x4dc   : > { %v7730_v6 = vld [vmem:[#allocation6 + $0x18] sm:$0xf]  ;;  %v16846_v60 = vmax.f32 %v7084_v37, %v7222_v48  ;;  %7134 = vst [vmem:[#allocation5 + $0x80] sm:$0xff] %v7087_v13  ;;  %v7088_v28 = vmax.f32 %v16836_v1, 0.0  ;;  %v7662_v4 = vld [vmem:[#allocation6 + $0x1c] sm:$0xf] }
 0x4dd   : > { %v7661_v55 = vld [vmem:[#allocation6 + $0x18] sm:$0xf]  ;;  %13035 = vst [vmem:[#allocation6 + $0x20] sm:$0xff] %v12950_v49   ;;  %v7805_v54 = vrot.slane %v7730_v6, 5  ;;  %v7731_v57 = vld [vmem:[#allocation6 + $0x1c] sm:$0xf] }
 0x4de   : > { %7693 = vst [vmem:[#allocation2 + $0xd8] sm:$0xf] %v7661_v55  ;;  %v7223_v17 = vld [vmem:[#allocation5 + $0x71] sm:$0xff]  ;;  %v6729_v58 = vpop.f32.mrb[36].mxu1  ;;  %7694 = vst [vmem:[#allocation2 + $0xfc] sm:$0xf] %v7662_v4  ;;  %v7399_v62 = vmax.f32 %v16780_v46, %v16846_v60  ;;  %13199 = vmatpush3.bf16.msra.mxu0 %v14546_v22 }
 0x4df   : > { %v16858_v37 = vmax.f32 %v7085_v16, %v7223_v17  ;;  %7135 = vst [vmem:[#allocation5 + $0x88] sm:$0xff] %v7088_v28  ;;  %v13686_v45 = vadd.f32 %v16643_v27, %v6729_v58  ;;  %v6731_v47 = vpop.f32.mrb[37].mxu1  ;;  %v14539_v29 = vld [vmem:[#allocation2 + $0x4c] ss:$36 sps:$4 sm:$0xff]   ;;  %v7806_v9 = vsel %vm15151_vm5, %v7804_v44, %v7805_v54  ;;  %v7807_v49 = vrot.slane %v7805_v54, 4  ;;  %13200 = vmatprep.subr.bf16.mxu0 %v14554_v63 }
 0x4e0   : > { %v6732_v33 = vpop.f32.mrb[38].mxu1  ;;  %7920 = vst [vmem:[#allocation2 + $0xb8] sm:$0xf] %v7806_v9  ;;  %v7808_v46 = vrot.slane %v7731_v57, 5  ;;  %10727 = vmatprep.mubr.bf16.mxu0 %v14539_v29 }
 0x4e1   : > { %v7400_v16 = vmax.f32 %v16800_v52, %v16858_v37  ;;  %v16871_v48 = vadd.f32 %v13686_v45, %v16502_v35  ;;  %v13687_v6 = vadd.f32 %v16643_v27, %v6732_v33  ;;  %v6734_v55 = vpop.f32.mrb[39].mxu1  ;;  %10728 = vmatmul.mubr.bf16.gmra.mrb[160].mxu0 %v14541_v3  ;;  %v14570_v35 = vld [vmem:[%s18428_s5 + $0x98] sm:$0xff]   ;;  %v14578_v52 = vld [vmem:[%s18428_s5 + $0xe0] sm:$0xff]  }
 0x4e2   : > { %v7809_v22 = vsel %vm15151_vm5, %v7807_v49, %v7808_v46  ;;  %13201 = vmatpush3.bf16.msra.mxu0 %v14557_v21  ;;  %v7810_v17 = vrot.slane %v7808_v46, 4  ;;  %v14581_v33 = vld [vmem:[%s18428_s5 + $0xa0] sm:$0xff]  }
 0x4e3   : > { %v12955_v63 = vpack.c.bf16 %v7400_v16, %v7399_v62  ;;  %v7089_v44 = vmax.f32 %v16871_v48, 0.0  ;;  %v16878_v54 = vadd.f32 %v13687_v6, %v16506_v51  ;;  %7921 = vst [vmem:[#allocation2 + $0xdc] sm:$0xf] %v7809_v22  ;;  %v7224_v4 = vld [vmem:[#allocation5 + $0x79] sm:$0xff]  ;;  %13202 = vmatprep.subr.bf16.mxu0 %v14566_v19  ;;  %v14545_v6 = vld [vmem:[#allocation2 + $0x90] ss:$36 sps:$4 sm:$0xff]  }
 0x4e4   : > { %v7732_v57 = vld [vmem:[#allocation6 + $0x20] sm:$0xf]  ;;  %v16888_v51 = vmax.f32 %v7086_v56, %v7224_v4  ;;  %v7664_v45 = vld [vmem:[#allocation6 + $0x24] sm:$0xf]  ;;  %v12605_v4 = vrot.slane %v7949_v7, 10 }
 0x4e5   : > { %v7663_v58 = vld [vmem:[#allocation6 + $0x20] sm:$0xf]  ;;  %13036 = vst [vmem:[#allocation6 + $0x28] sm:$0xff] %v12955_v63   ;;  %7136 = vst [vmem:[#allocation5 + $0x90] sm:$0xff] %v7089_v44  ;;  %v7090_v21 = vmax.f32 %v16878_v54, 0.0  ;;  %v7811_v62 = vrot.slane %v7732_v57, 5 }
 0x4e6   : > { %7695 = vst [vmem:[#allocation2 + $0x120] sm:$0xf] %v7663_v58  ;;  %v7733_v47 = vld [vmem:[#allocation6 + $0x24] sm:$0xf]  ;;  %v7225_v29 = vld [vmem:[#allocation5 + $0x81] sm:$0xff]  ;;  %v6737_v3 = vpop.f32.mrb[40].mxu1  ;;  %v7401_v56 = vmax.f32 %v16812_v40, %v16888_v51  ;;  %13203 = vmatpush3.bf16.msra.mxu0 %v14570_v35 }
 0x4e7   : > { %7696 = vst [vmem:[#allocation2 + $0x144] sm:$0xf] %v7664_v45  ;;  %v7814_v9 = vrot.slane %v7733_v47, 5  ;;  %v16900_v49 = vmax.f32 %v7087_v13, %v7225_v29  ;;  %7137 = vst [vmem:[#allocation5 + $0x98] sm:$0xff] %v7090_v21  ;;  %v13688_v46 = vadd.f32 %v16643_v27, %v6737_v3  ;;  %v6739_v19 = vpop.f32.mrb[41].mxu1  ;;  %v7812_v55 = vsel %vm15151_vm5, %v7810_v17, %v7811_v62 }
 0x4e8   : > { %v14542_v16 = vld [vmem:[#allocation2 + $0x94] ss:$36 sps:$4 sm:$0xff]   ;;  %v6740_v22 = vpop.f32.mrb[42].mxu1  ;;  %7922 = vst [vmem:[#allocation2 + $0x100] sm:$0xf] %v7812_v55  ;;  %v7813_v63 = vrot.slane %v7811_v62, 4  ;;  %13204 = vmatprep.subr.bf16.mxu0 %v14578_v52 }
 0x4e9   : > { %v7950_v13 = vld [vmem:[#allocation6 + $0x4] sm:$0xf]  ;;  %v7402_v57 = vmax.f32 %v16846_v60, %v16900_v49  ;;  %v16919_v35 = vadd.f32 %v13688_v46, %v16512_v30  ;;  %v13689_v17 = vadd.f32 %v16643_v27, %v6740_v22  ;;  %v6742_v58 = vpop.f32.mrb[43].mxu1  ;;  %10735 = vmatprep.mubr.bf16.mxu0 %v14542_v16  ;;  %v7951_v62 = vld [vmem:[#allocation6 + $0x8] sm:$0xf]  ;;  %v7816_v29 = vrot.slane %v7814_v9, 4 }
 0x4ea   : > { %v8017_v45 = vrot.slane %v7950_v13, 6  ;;  %v8176_v47 = vld [vmem:[#allocation6 + $0x18] sm:$0xf]  ;;  %10736 = vmatmul.mubr.bf16.gmra.mrb[164].mxu0 %v14545_v6  ;;  %v7815_v52 = vsel %vm15151_vm5, %v7813_v63, %v7814_v9  ;;  %v8020_v3 = vrot.slane %v7951_v62, 6  ;;  %v8177_v7 = vld [vmem:[#allocation6 + $0x1c] sm:$0xf] }
 0x4eb   : > { %8208 = vst [vmem:[#allocation2 + $0xc] sm:$0xf] %v8176_v47  ;;  %v12960_v19 = vpack.c.bf16 %v7402_v57, %v7401_v56  ;;  %v7091_v60 = vmax.f32 %v16919_v35, 0.0  ;;  %v16926_v30 = vadd.f32 %v13689_v17, %v16516_v32  ;;  %7923 = vst [vmem:[#allocation2 + $0x124] sm:$0xf] %v7815_v52  ;;  %13205 = vmatpush3.bf16.msra.mxu0 %v14581_v33  ;;  %v14591_v27 = vld [vmem:[%s18428_s5 + $0xa8] sm:$0xff]  }
 0x4ec   : > { %v14598_v46 = vld [vmem:[%s18428_s5 + $0xf0] sm:$0xff]   ;;  %v8018_v9 = vsel %vm16909_vm10, %v12605_v4, %v8017_v45  ;;  %8209 = vst [vmem:[#allocation2 + $0x30] sm:$0xf] %v8177_v7  ;;  %v7734_v6 = vld [vmem:[#allocation6 + $0x28] sm:$0xf]  ;;  %13206 = vmatprep.subr.bf16.mxu0 %v14588_v53  ;;  %v8019_v32 = vrot.slane %v8017_v45, 4 }
 0x4ed   : > { %v7952_v56 = vld [vmem:[#allocation6 + $0xc] sm:$0xf]  ;;  %v7226_v16 = vld [vmem:[#allocation5 + $0x89] sm:$0xff]  ;;  %v7665_v55 = vld [vmem:[#allocation6 + $0x28] sm:$0xf]  ;;  %13037 = vst [vmem:[#allocation6 + $0x30] sm:$0xff] %v12960_v19  }
 0x4ee   : > { %8142 = vst [vmem:[#allocation2 + $0x8] sm:$0xf] %v8018_v9  ;;  %v16936_v33 = vld [vmem:[#allocation6 + $0x10] sm:$0xf]  ;;  %v16940_v22 = vmax.f32 %v7088_v28, %v7226_v16  ;;  %7138 = vst [vmem:[#allocation5 + $0xa0] sm:$0xff] %v7091_v60  ;;  %v7092_v63 = vmax.f32 %v16926_v30, 0.0  ;;  %v8021_v1 = vsel %vm16909_vm10, %v8019_v32, %v8020_v3 }
 0x4ef   : > { %v7817_v13 = vrot.slane %v7734_v6, 5  ;;  %v7666_v4 = vld [vmem:[#allocation6 + $0x2c] sm:$0xf]  ;;  %7697 = vst [vmem:[#allocation2 + $0x168] sm:$0xf] %v7665_v55  ;;  %v7227_v17 = vld [vmem:[#allocation5 + $0x91] sm:$0xff]  ;;  %13207 = vmatpush3.bf16.msra.mxu0 %v14591_v27 }
 0x4f0   : > { %v7735_v57 = vld [vmem:[#allocation6 + $0x2c] sm:$0xf]  ;;  %v6745_v53 = vpop.f32.mrb[44].mxu1  ;;  %7698 = vst [vmem:[#allocation2 + $0x18c] sm:$0xf] %v7666_v4  ;;  %v8022_v28 = vrot.slane %v8020_v3, 4  ;;  %v7403_v47 = vmax.f32 %v16858_v37, %v16940_v22  ;;  %v16954_v52 = vmax.f32 %v7089_v44, %v7227_v17  ;;  %13208 = vmatprep.subr.bf16.mxu0 %v14598_v46 }
 0x4f1   : > { %v7820_v58 = vrot.slane %v7735_v57, 5  ;;  %v14601_v62 = vld [vmem:[%s18428_s5 + $0xb0] sm:$0xff]   ;;  %v8023_v45 = vrot.slane %v7952_v56, 6  ;;  %7139 = vst [vmem:[#allocation5 + $0xa8] sm:$0xff] %v7092_v63  ;;  %v16961_v7 = vld [vmem:[%s18427_s4] ss:$0 sm:$0xff]  ;;  %v7818_v37 = vsel %vm15151_vm5, %v7816_v29, %v7817_v13 }
 0x4f2   : > { %v13690_v19 = vadd.f32 %v16961_v7, %v6745_v53  ;;  %v6747_v9 = vpop.f32.mrb[45].mxu1  ;;  %v14547_v3 = vld [vmem:[#allocation2 + $0xdc] ss:$36 sps:$4 sm:$0xff]   ;;  %8143 = vst [vmem:[#allocation2 + $0x2c] sm:$0xf] %v8021_v1  ;;  %v7819_v44 = vrot.slane %v7817_v13, 4  ;;  %v7404_v4 = vmax.f32 %v16888_v51, %v16954_v52 }
 0x4f3   : > { %v14550_v56 = vld [vmem:[#allocation2 + $0xd8] ss:$36 sps:$4 sm:$0xff]   ;;  %v6748_v48 = vpop.f32.mrb[46].mxu1  ;;  %7924 = vst [vmem:[#allocation2 + $0x148] sm:$0xf] %v7818_v37  ;;  %v8024_v6 = vsel %vm16909_vm10, %v8022_v28, %v8023_v45  ;;  %v8025_v55 = vrot.slane %v8023_v45, 4  ;;  %10743 = vmatprep.mubr.bf16.mxu0 %v14547_v3  ;;  %13209 = vmatpush3.bf16.msra.mxu0 %v14601_v62 }
 0x4f4   : > { %v14608_v16 = vld [vmem:[%s18428_s5 + $0xf8] sm:$0xff]   ;;  %v8178_v32 = vld [vmem:[#allocation6 + $0x20] sm:$0xf]  ;;  %v16974_v29 = vadd.f32 %v13690_v19, %v16510_v25  ;;  %v13691_v27 = vadd.f32 %v16961_v7, %v6748_v48  ;;  %v6750_v57 = vpop.f32.mrb[47].mxu1  ;;  %v8026_v46 = vrot.slane %v16936_v33, 6  ;;  %10744 = vmatmul.mubr.bf16.gmra.mrb[168].mxu0 %v14550_v56  ;;  %v7821_v53 = vsel %vm15151_vm5, %v7819_v44, %v7820_v58 }
 0x4f5   : > { %8144 = vst [vmem:[#allocation2 + $0x50] sm:$0xf] %v8024_v6  ;;  %v8179_v13 = vld [vmem:[#allocation6 + $0x24] sm:$0xf]  ;;  %8210 = vst [vmem:[#allocation2 + $0x54] sm:$0xf] %v8178_v32  ;;  %v12965_v45 = vpack.c.bf16 %v7404_v4, %v7403_v47  ;;  %13210 = vmatprep.subr.bf16.mxu0 %v14608_v16 }
 0x4f6   : > { %v16978_v17 = vld [vmem:[#allocation6 + $0x14] sm:$0xf]  ;;  %v7822_v1 = vrot.slane %v7820_v58, 4  ;;  %8211 = vst [vmem:[#allocation2 + $0x78] sm:$0xf] %v8179_v13  ;;  %v7093_v33 = vmax.f32 %v16974_v29, 0.0  ;;  %v16988_v19 = vadd.f32 %v13691_v27, %v16514_v43  ;;  %v8027_v9 = vsel %vm16909_vm10, %v8025_v55, %v8026_v46 }
 0x4f7   : > { %v14611_v25 = vld [vmem:[%s18428_s5 + $0xb8] sm:$0xff]   ;;  %v8029_v51 = vrot.slane %v16978_v17, 6  ;;  %v8180_v28 = vld [vmem:[#allocation6 + $0x28] sm:$0xf]  ;;  %7925 = vst [vmem:[#allocation2 + $0x16c] sm:$0xf] %v7821_v53 }
 0x4f8   : > { %v14619_v58 = vld [vmem:[%s18428_s5 + $0x140] sm:$0xff]   ;;  %v8181_v3 = vld [vmem:[#allocation6 + $0x2c] sm:$0xf]  ;;  %8212 = vst [vmem:[#allocation2 + $0x9c] sm:$0xf] %v8180_v28  ;;  %v8028_v47 = vrot.slane %v8026_v46, 4  ;;  %13211 = vmatpush3.bf16.msra.mxu0 %v14611_v25 }
 0x4f9   : > { %v7228_v56 = vld [vmem:[#allocation5 + $0x99] sm:$0xff]  ;;  %v7736_v37 = vld [vmem:[#allocation6 + $0x30] sm:$0xf]  ;;  %8145 = vst [vmem:[#allocation2 + $0x74] sm:$0xf] %v8027_v9  ;;  %13038 = vst [vmem:[#allocation6 + $0x38] sm:$0xff] %v12965_v45   ;;  %13308 = vmatprep.subr.bf16.mxu0 %v14619_v58 }
 0x4fa   : > { %v7667_v48 = vld [vmem:[#allocation6 + $0x30] sm:$0xf]  ;;  %8213 = vst [vmem:[#allocation2 + $0xc0] sm:$0xf] %v8181_v3  ;;  %v16997_v43 = vmax.f32 %v7090_v21, %v7228_v56  ;;  %7140 = vst [vmem:[#allocation5 + $0xb0] sm:$0xff] %v7093_v33  ;;  %v7094_v62 = vmax.f32 %v16988_v19, 0.0  ;;  %v8030_v54 = vsel %vm16909_vm10, %v8028_v47, %v8029_v51 }
 0x4fb   : > { %v7823_v44 = vrot.slane %v7736_v37, 5  ;;  %v7668_v6 = vld [vmem:[#allocation6 + $0x34] sm:$0xf]  ;;  %7699 = vst [vmem:[#allocation2 + $0x1b0] sm:$0xf] %v7667_v48  ;;  %v7229_v16 = vld [vmem:[#allocation5 + $0xa1] sm:$0xff] }
 0x4fc   : > { %v7737_v55 = vld [vmem:[#allocation6 + $0x34] sm:$0xf]  ;;  %v17002_v32 = vld [vmem:[#allocation6 + $0x18] sm:$0xf]  ;;  %v6753_v4 = vpop.f32.mrb[48].mxu1  ;;  %v7405_v21 = vmax.f32 %v16900_v49, %v16997_v43  ;;  %v17010_v46 = vmax.f32 %v7091_v60, %v7229_v16  ;;  %7141 = vst [vmem:[#allocation5 + $0xb8] sm:$0xff] %v7094_v62 }
 0x4fd   : > { %7700 = vst [vmem:[#allocation2 + $0x1d4] sm:$0xf] %v7668_v6  ;;  %v7826_v27 = vrot.slane %v7737_v55, 5  ;;  %v8983_v57 = vld [vmem:[#allocation6 + $0x30] sm:$0xc]  ;;  %v13692_v13 = vadd.f32 %v16961_v7, %v6753_v4  ;;  %v6755_v17 = vpop.f32.mrb[49].mxu1  ;;  %v7824_v45 = vsel %vm15151_vm5, %v7822_v1, %v7823_v44 }
 0x4fe   : > { %v14552_v53 = vld [vmem:[#allocation2 + $0x124] ss:$36 sps:$4 sm:$0xff]   ;;  %8146 = vst [vmem:[#allocation2 + $0x98] sm:$0xf] %v8030_v54  ;;  %v6756_v9 = vpop.f32.mrb[50].mxu1  ;;  %v7825_v49 = vrot.slane %v7823_v44, 4  ;;  %v7406_v60 = vmax.f32 %v16940_v22, %v17010_v46 }
 0x4ff   : > { %v14556_v28 = vld [vmem:[#allocation2 + $0x120] ss:$36 sps:$4 sm:$0xff]   ;;  %7926 = vst [vmem:[#allocation2 + $0x190] sm:$0xf] %v7824_v45  ;;  %v8984_v3 = vld [vmem:[#allocation6 + $0x34] sm:$0xf]  ;;  %v17020_v56 = vadd.f32 %v13692_v13, %v16520_v36  ;;  %v13693_v37 = vadd.f32 %v16961_v7, %v6756_v9  ;;  %10751 = vmatprep.mubr.bf16.mxu0 %v14552_v53 }
 0x500   : > { %v12609_v35 = vrot.slane %v8983_v57, 10  ;;  %v6758_v48 = vpop.f32.mrb[51].mxu1  ;;  %v9049_v47 = vrot.slane %v8984_v3, 6  ;;  %10752 = vmatmul.mubr.bf16.gmra.mrb[172].mxu0 %v14556_v28  ;;  %v7827_v1 = vsel %vm15151_vm5, %v7825_v49, %v7826_v27  ;;  %v7828_v25 = vrot.slane %v7826_v27, 4  ;;  %v7738_v4 = vld [vmem:[#allocation6 + $0x38] sm:$0xf] }
 0x501   : > { %v8031_v44 = vrot.slane %v8029_v51, 4  ;;  %v8032_v6 = vrot.slane %v17002_v32, 6  ;;  %v12970_v58 = vpack.c.bf16 %v7406_v60, %v7405_v21  ;;  %v7095_v55 = vmax.f32 %v17020_v56, 0.0  ;;  %7927 = vst [vmem:[#allocation2 + $0x1b4] sm:$0xf] %v7827_v1  ;;  %v7230_v16 = vld [vmem:[#allocation5 + $0xa9] sm:$0xff] }
 0x502   : > { %v17028_v22 = vadd.f32 %v13693_v37, %v16524_v8  ;;  %v9050_v36 = vsel %vm16909_vm10, %v12609_v35, %v9049_v47  ;;  %v8985_v57 = vld [vmem:[#allocation6 + $0x38] sm:$0xf]  ;;  %v9051_v54 = vrot.slane %v9049_v47, 4  ;;  %v17036_v32 = vmax.f32 %v7092_v63, %v7230_v16  ;;  %v17041_v17 = vld [vmem:[#allocation6 + $0x1c] sm:$0xf]  ;;  %v6761_v28 = vpop.f32.mrb[52].mxu1 }
 0x503   : > { %9174 = vst [vmem:[#allocation2 + $0x20] sm:$0xf] %v9050_v36  ;;  %v8033_v51 = vsel %vm16909_vm10, %v8031_v44, %v8032_v6  ;;  %13039 = vst [vmem:[#allocation6 + $0x40] sm:$0xff] %v12970_v58   ;;  %v7829_v27 = vrot.slane %v7738_v4, 5  ;;  %v9052_v21 = vrot.slane %v8985_v57, 6  ;;  %v7231_v53 = vld [vmem:[#allocation5 + $0xb1] sm:$0xff]  ;;  %v13694_v49 = vadd.f32 %v16961_v7, %v6761_v28 }
 0x504   : > { %7142 = vst [vmem:[#allocation5 + $0xc0] sm:$0xff] %v7095_v55  ;;  %v7096_v8 = vmax.f32 %v17028_v22, 0.0  ;;  %v7669_v13 = vld [vmem:[#allocation6 + $0x38] sm:$0xf]  ;;  %8147 = vst [vmem:[#allocation2 + $0xbc] sm:$0xf] %v8033_v51  ;;  %v7407_v30 = vmax.f32 %v16954_v52, %v17036_v32  ;;  %v17047_v63 = vmax.f32 %v7093_v33, %v7231_v53 }
 0x505   : > { %v7670_v45 = vld [vmem:[#allocation6 + $0x3c] sm:$0xf]  ;;  %7701 = vst [vmem:[#allocation2 + $0x1f8] sm:$0xf] %v7669_v13  ;;  %v6763_v3 = vpop.f32.mrb[53].mxu1  ;;  %v7830_v37 = vsel %vm15151_vm5, %v7828_v25, %v7829_v27  ;;  %v9053_v52 = vsel %vm16909_vm10, %v9051_v54, %v9052_v21  ;;  %v9054_v29 = vrot.slane %v9052_v21, 4  ;;  %v17059_v58 = vadd.f32 %v13694_v49, %v16518_v31 }
 0x506   : > { %v7739_v9 = vld [vmem:[#allocation6 + $0x3c] sm:$0xf]  ;;  %7143 = vst [vmem:[#allocation5 + $0xc8] sm:$0xff] %v7096_v8  ;;  %v14559_v35 = vld [vmem:[#allocation2 + $0x16c] ss:$36 sps:$4 sm:$0xff]   ;;  %v6764_v48 = vpop.f32.mrb[54].mxu1  ;;  %v7408_v44 = vmax.f32 %v16997_v43, %v17047_v63 }
 0x507   : > { %v14562_v60 = vld [vmem:[#allocation2 + $0x168] ss:$36 sps:$4 sm:$0xff]   ;;  %7702 = vst [vmem:[#allocation2 + $0x21c] sm:$0xf] %v7670_v45  ;;  %7928 = vst [vmem:[#allocation2 + $0x1d8] sm:$0xf] %v7830_v37  ;;  %v13695_v36 = vadd.f32 %v16961_v7, %v6764_v48  ;;  %10759 = vmatprep.mubr.bf16.mxu0 %v14559_v35 }
 0x508   : > { %v7831_v33 = vrot.slane %v7829_v27, 4  ;;  %v7832_v47 = vrot.slane %v7739_v9, 5  ;;  %v8986_v1 = vld [vmem:[#allocation6 + $0x3c] sm:$0xf]  ;;  %v6766_v16 = vpop.f32.mrb[55].mxu1  ;;  %10760 = vmatmul.mubr.bf16.gmra.mrb[176].mxu0 %v14562_v60  ;;  %v8034_v51 = vrot.slane %v8032_v6, 4  ;;  %v12975_v43 = vpack.c.bf16 %v7408_v44, %v7407_v30 }
 0x509   : > { %9175 = vst [vmem:[#allocation2 + $0x44] sm:$0xf] %v9053_v52  ;;  %v9055_v25 = vrot.slane %v8986_v1, 6  ;;  %v8182_v4 = vld [vmem:[#allocation6 + $0x30] sm:$0xf]  ;;  %v8035_v27 = vrot.slane %v17041_v17, 6  ;;  %v17067_v13 = vadd.f32 %v13695_v36, %v16522_v61 }
 0x50a   : > { %v7833_v57 = vsel %vm15151_vm5, %v7831_v33, %v7832_v47  ;;  %v7834_v54 = vrot.slane %v7832_v47, 4  ;;  %v8183_v21 = vld [vmem:[#allocation6 + $0x34] sm:$0xf]  ;;  %8214 = vst [vmem:[#allocation2 + $0xe4] sm:$0xf] %v8182_v4  ;;  %v7097_v31 = vmax.f32 %v17059_v58, 0.0 }
 0x50b   : > { %7929 = vst [vmem:[#allocation2 + $0x1fc] sm:$0xf] %v7833_v57  ;;  %v9056_v53 = vsel %vm16909_vm10, %v9054_v29, %v9055_v25  ;;  %8215 = vst [vmem:[#allocation2 + $0x108] sm:$0xf] %v8183_v21  ;;  %v7232_v28 = vld [vmem:[#allocation5 + $0xb9] sm:$0xff]  ;;  %v9057_v49 = vrot.slane %v9055_v25, 4  ;;  %v8036_v6 = vsel %vm16909_vm10, %v8034_v51, %v8035_v27 }
 0x50c   : > { %v7740_v45 = vld [vmem:[#allocation6 + $0x40] sm:$0xf]  ;;  %9176 = vst [vmem:[#allocation2 + $0x68] sm:$0xf] %v9056_v53  ;;  %13040 = vst [vmem:[#allocation6 + $0x48] sm:$0xff] %v12975_v43   ;;  %v17075_v17 = vmax.f32 %v7094_v62, %v7232_v28  ;;  %v7098_v61 = vmax.f32 %v17067_v13, 0.0 }
 0x50d   : > { %v8987_v9 = vld [vmem:[#allocation6 + $0x40] sm:$0xf]  ;;  %7144 = vst [vmem:[#allocation5 + $0xd0] sm:$0xff] %v7097_v31  ;;  %v7835_v30 = vrot.slane %v7740_v45, 5  ;;  %8148 = vst [vmem:[#allocation2 + $0xe0] sm:$0xf] %v8036_v6 }
 0x50e   : > { %v9058_v3 = vrot.slane %v8987_v9, 6  ;;  %v7671_v35 = vld [vmem:[#allocation6 + $0x40] sm:$0xf]  ;;  %v7233_v60 = vld [vmem:[#allocation5 + $0xc1] sm:$0xff]  ;;  %v6769_v37 = vpop.f32.mrb[56].mxu1  ;;  %v7409_v29 = vmax.f32 %v17010_v46, %v17075_v17  ;;  %7145 = vst [vmem:[#allocation5 + $0xd8] sm:$0xff] %v7098_v61 }
 0x50f   : > { %v7672_v48 = vld [vmem:[#allocation6 + $0x44] sm:$0xf]  ;;  %7703 = vst [vmem:[#allocation2 + $0x240] sm:$0xf] %v7671_v35  ;;  %v17084_v19 = vmax.f32 %v7095_v55, %v7233_v60  ;;  %v13696_v62 = vadd.f32 %v16961_v7, %v6769_v37  ;;  %v6771_v33 = vpop.f32.mrb[57].mxu1  ;;  %v7836_v44 = vsel %vm15151_vm5, %v7834_v54, %v7835_v30  ;;  %v7837_v56 = vrot.slane %v7835_v30, 4 }
 0x510   : > { %v7741_v52 = vld [vmem:[#allocation6 + $0x44] sm:$0xf]  ;;  %v14564_v47 = vld [vmem:[#allocation2 + $0x1b4] ss:$36 sps:$4 sm:$0xff]   ;;  %7704 = vst [vmem:[#allocation2 + $0x264] sm:$0xf] %v7672_v48  ;;  %v9059_v46 = vsel %vm16909_vm10, %v9057_v49, %v9058_v3 }
 0x511   : > { %v14569_v1 = vld [vmem:[#allocation2 + $0x1b0] ss:$36 sps:$4 sm:$0xff]   ;;  %v6772_v36 = vpop.f32.mrb[58].mxu1  ;;  %v14568_v16 = vld [vmem:[#allocation2 + $0x20] ss:$36 sps:$4 sm:$0xff]   ;;  %v7410_v55 = vmax.f32 %v17036_v32, %v17084_v19  ;;  %v17096_v25 = vadd.f32 %v13696_v62, %v16528_v50  ;;  %10767 = vmatprep.mubr.bf16.mxu0 %v14564_v47  ;;  %v7838_v54 = vrot.slane %v7741_v52, 5 }
 0x512   : > { %7930 = vst [vmem:[#allocation2 + $0x220] sm:$0xf] %v7836_v44  ;;  %v13697_v4 = vadd.f32 %v16961_v7, %v6772_v36  ;;  %v6774_v57 = vpop.f32.mrb[59].mxu1  ;;  %9177 = vst [vmem:[#allocation2 + $0x8c] sm:$0xf] %v9059_v46  ;;  %13636 = vmatprep.mubr.bf16.mxu1 %v14568_v16  ;;  %10768 = vmatmul.mubr.bf16.gmra.mrb[180].mxu0 %v14569_v1  ;;  %v9060_v21 = vrot.slane %v9058_v3, 4 }
 0x513   : > { %v8988_v51 = vld [vmem:[#allocation6 + $0x44] sm:$0xf]  ;;  %v8037_v53 = vrot.slane %v8035_v27, 4  ;;  %v12980_v28 = vpack.c.bf16 %v7410_v55, %v7409_v29  ;;  %v7099_v45 = vmax.f32 %v17096_v25, 0.0  ;;  %v7839_v50 = vsel %vm15151_vm5, %v7837_v56, %v7838_v54  ;;  %v7957_v9 = vld [vmem:[#allocation6 + $0x20] sm:$0xf] }
 0x514   : > { %v9061_v43 = vrot.slane %v8988_v51, 6  ;;  %v17101_v32 = vadd.f32 %v13697_v4, %v16532_v10  ;;  %v7234_v49 = vld [vmem:[#allocation5 + $0xc9] sm:$0xff]  ;;  %v7742_v6 = vld [vmem:[#allocation6 + $0x48] sm:$0xf]  ;;  %v7840_v30 = vrot.slane %v7838_v54, 4  ;;  %v6777_v62 = vpop.f32.mrb[60].mxu1 }
 0x515   : > { %7931 = vst [vmem:[#allocation2 + $0x244] sm:$0xf] %v7839_v50  ;;  %v8989_v35 = vld [vmem:[#allocation6 + $0x48] sm:$0xf]  ;;  %13041 = vst [vmem:[#allocation6 + $0x50] sm:$0xff] %v12980_v28   ;;  %v17109_v27 = vmax.f32 %v7096_v8, %v7234_v49  ;;  %v7841_v60 = vrot.slane %v7742_v6, 5  ;;  %v13698_v36 = vadd.f32 %v16961_v7, %v6777_v62 }
 0x516   : > { %v9062_v3 = vsel %vm16909_vm10, %v9060_v21, %v9061_v43  ;;  %7146 = vst [vmem:[#allocation5 + $0xe0] sm:$0xff] %v7099_v45  ;;  %v7100_v10 = vmax.f32 %v17101_v32, 0.0  ;;  %v9063_v37 = vrot.slane %v9061_v43, 4  ;;  %v7673_v48 = vld [vmem:[#allocation6 + $0x48] sm:$0xf]  ;;  %v7235_v29 = vld [vmem:[#allocation5 + $0xd1] sm:$0xff] }
 0x517   : > { %9178 = vst [vmem:[#allocation2 + $0xb0] sm:$0xf] %v9062_v3  ;;  %v17114_v52 = vld [vmem:[#allocation6 + $0x24] sm:$0xf]  ;;  %v9064_v33 = vrot.slane %v8989_v35, 6  ;;  %v8038_v1 = vrot.slane %v7957_v9, 6  ;;  %v7411_v8 = vmax.f32 %v17047_v63, %v17109_v27  ;;  %v17122_v44 = vmax.f32 %v7097_v31, %v7235_v29 }
 0x518   : > { %v7674_v47 = vld [vmem:[#allocation6 + $0x4c] sm:$0xf]  ;;  %7705 = vst [vmem:[#allocation2 + $0x288] sm:$0xf] %v7673_v48  ;;  %v17116_v22 = vld [vmem:[#allocation6 + $0x28] sm:$0xf]  ;;  %v7842_v55 = vsel %vm15151_vm5, %v7840_v30, %v7841_v60  ;;  %v17136_v51 = vadd.f32 %v13698_v36, %v16526_v24 }
 0x519   : > { %7147 = vst [vmem:[#allocation5 + $0xe8] sm:$0xff] %v7100_v10  ;;  %v6779_v16 = vpop.f32.mrb[61].mxu1  ;;  %v14572_v46 = vld [vmem:[#allocation2 + $0x1fc] ss:$36 sps:$4 sm:$0xff]   ;;  %7706 = vst [vmem:[#allocation2 + $0x2ac] sm:$0xf] %v7674_v47  ;;  %v9065_v63 = vsel %vm16909_vm10, %v9063_v37, %v9064_v33  ;;  %v8039_v31 = vsel %vm16909_vm10, %v8037_v53, %v8038_v1  ;;  %v7412_v54 = vmax.f32 %v17075_v17, %v17122_v44 }
 0x51a   : > { %v14575_v56 = vld [vmem:[#allocation2 + $0x1f8] ss:$36 sps:$4 sm:$0xff]   ;;  %v6780_v4 = vpop.f32.mrb[62].mxu1  ;;  %v14574_v57 = vld [vmem:[#allocation2 + $0x68] ss:$36 sps:$4 sm:$0xff]   ;;  %v7843_v58 = vrot.slane %v7841_v60, 4  ;;  %10775 = vmatprep.mubr.bf16.mxu0 %v14572_v46 }
 0x51b   : > { %7932 = vst [vmem:[#allocation2 + $0x268] sm:$0xf] %v7842_v55  ;;  %v13699_v21 = vadd.f32 %v16961_v7, %v6780_v4  ;;  %v6782_v43 = vpop.f32.mrb[63].mxu1  ;;  %9179 = vst [vmem:[#allocation2 + $0xd4] sm:$0xf] %v9065_v63  ;;  %v9066_v9 = vrot.slane %v9064_v33, 4  ;;  %13637 = vmatmul.mubr.bf16.vlgmr.msra.gmra.mrb[108].mxu1 %v14574_v57  ;;  %10776 = vmatmul.mubr.bf16.gmra.mrb[184].mxu0 %v14575_v56  ;;  %v12985_v35 = vpack.c.bf16 %v7412_v54, %v7411_v8 }
 0x51c   : > { %v7743_v28 = vld [vmem:[#allocation6 + $0x4c] sm:$0xf]  ;;  %8149 = vst [vmem:[#allocation2 + $0x104] sm:$0xf] %v8039_v31  ;;  %v8040_v53 = vrot.slane %v8038_v1, 4  ;;  %v8041_v30 = vrot.slane %v17114_v52, 6 }
 0x51d   : > { %v8990_v50 = vld [vmem:[#allocation6 + $0x4c] sm:$0xf]  ;;  %v7844_v49 = vrot.slane %v7743_v28, 5  ;;  %v8184_v17 = vld [vmem:[#allocation6 + $0x38] sm:$0xf]  ;;  %v7101_v24 = vmax.f32 %v17136_v51, 0.0  ;;  %v17142_v3 = vadd.f32 %v13699_v21, %v16530_v20 }
 0x51e   : > { %v9067_v6 = vrot.slane %v8990_v50, 6  ;;  %v8044_v60 = vrot.slane %v17116_v22, 6  ;;  %v8185_v37 = vld [vmem:[#allocation6 + $0x3c] sm:$0xf]  ;;  %8216 = vst [vmem:[#allocation2 + $0x12c] sm:$0xf] %v8184_v17  ;;  %v8042_v47 = vsel %vm16909_vm10, %v8040_v53, %v8041_v30 }
 0x51f   : > { %v7236_v48 = vld [vmem:[#allocation5 + $0xd9] sm:$0xff]  ;;  %v7744_v29 = vld [vmem:[#allocation6 + $0x50] sm:$0xf]  ;;  %v7845_v62 = vsel %vm15151_vm5, %v7843_v58, %v7844_v49  ;;  %v7846_v33 = vrot.slane %v7844_v49, 4  ;;  %8217 = vst [vmem:[#allocation2 + $0x150] sm:$0xf] %v8185_v37 }
 0x520   : > { %v9068_v52 = vsel %vm16909_vm10, %v9066_v9, %v9067_v6  ;;  %13042 = vst [vmem:[#allocation6 + $0x58] sm:$0xff] %v12985_v35   ;;  %v17153_v20 = vmax.f32 %v7098_v61, %v7236_v48  ;;  %7148 = vst [vmem:[#allocation5 + $0xf0] sm:$0xff] %v7101_v24  ;;  %v7102_v1 = vmax.f32 %v17142_v3, 0.0  ;;  %v7847_v22 = vrot.slane %v7744_v29, 5  ;;  %v8991_v8 = vld [vmem:[#allocation6 + $0x50] sm:$0xf] }
 0x521   : > { %7933 = vst [vmem:[#allocation2 + $0x28c] sm:$0xf] %v7845_v62  ;;  %v9069_v36 = vrot.slane %v9067_v6, 4  ;;  %9180 = vst [vmem:[#allocation2 + $0xf8] sm:$0xf] %v9068_v52  ;;  %v7237_v16 = vld [vmem:[#allocation5 + $0xe1] sm:$0xff] }
 0x522   : > { %8150 = vst [vmem:[#allocation2 + $0x128] sm:$0xf] %v8042_v47  ;;  %v6785_v46 = vpop.f32.mrb[64].mxu1  ;;  %v9070_v56 = vrot.slane %v8991_v8, 6  ;;  %v7675_v55 = vld [vmem:[#allocation6 + $0x50] sm:$0xf]  ;;  %v7413_v13 = vmax.f32 %v17084_v19, %v17153_v20  ;;  %v17162_v61 = vmax.f32 %v7099_v45, %v7237_v16  ;;  %v7848_v54 = vsel %vm15151_vm5, %v7846_v33, %v7847_v22 }
 0x523   : > { %v8043_v4 = vrot.slane %v8041_v30, 4  ;;  %7149 = vst [vmem:[#allocation5 + $0xf8] sm:$0xff] %v7102_v1  ;;  %v13700_v57 = vadd.f32 %v16961_v7, %v6785_v46  ;;  %v6787_v63 = vpop.f32.mrb[65].mxu1  ;;  %v14576_v58 = vld [vmem:[#allocation2 + $0x244] ss:$36 sps:$4 sm:$0xff]   ;;  %v7849_v25 = vrot.slane %v7847_v22, 4 }
 0x524   : > { %v14580_v31 = vld [vmem:[#allocation2 + $0x240] ss:$36 sps:$4 sm:$0xff]   ;;  %7707 = vst [vmem:[#allocation2 + $0x2d0] sm:$0xf] %v7675_v55  ;;  %v6788_v21 = vpop.f32.mrb[66].mxu1  ;;  %v9071_v19 = vsel %vm16909_vm10, %v9069_v36, %v9070_v56  ;;  %v7414_v28 = vmax.f32 %v17109_v27, %v17162_v61  ;;  %10783 = vmatprep.mubr.bf16.mxu0 %v14576_v58  ;;  %v9072_v30 = vrot.slane %v9070_v56, 4 }
 0x525   : > { %v14579_v43 = vld [vmem:[#allocation2 + $0xb0] ss:$36 sps:$4 sm:$0xff]   ;;  %7934 = vst [vmem:[#allocation2 + $0x2b0] sm:$0xf] %v7848_v54  ;;  %v8045_v45 = vsel %vm16909_vm10, %v8043_v4, %v8044_v60  ;;  %v17176_v50 = vadd.f32 %v13700_v57, %v16536_v2  ;;  %v13701_v9 = vadd.f32 %v16961_v7, %v6788_v21  ;;  %v6790_v49 = vpop.f32.mrb[67].mxu1  ;;  %10784 = vmatmul.mubr.bf16.gmra.mrb[188].mxu0 %v14580_v31  ;;  %v8046_v52 = vrot.slane %v8044_v60, 4 }
 0x526   : > { %9181 = vst [vmem:[#allocation2 + $0x11c] sm:$0xf] %v9071_v19  ;;  %v7676_v6 = vld [vmem:[#allocation6 + $0x54] sm:$0xf]  ;;  %8151 = vst [vmem:[#allocation2 + $0x14c] sm:$0xf] %v8045_v45  ;;  %13640 = vmatprep.mubr.bf16.mxu1 %v14579_v43  ;;  %v12990_v37 = vpack.c.bf16 %v7414_v28, %v7413_v13 }
 0x527   : > { %v7745_v53 = vld [vmem:[#allocation6 + $0x54] sm:$0xf]  ;;  %7708 = vst [vmem:[#allocation2 + $0x2f4] sm:$0xf] %v7676_v6  ;;  %v7103_v27 = vmax.f32 %v17176_v50, 0.0  ;;  %v17181_v2 = vadd.f32 %v13701_v9, %v16540_v42  ;;  %v6793_v60 = vpop.f32.mrb[68].mxu1 }
 0x528   : > { %v7850_v17 = vrot.slane %v7745_v53, 5  ;;  %v8992_v35 = vld [vmem:[#allocation6 + $0x54] sm:$0xf]  ;;  %13043 = vst [vmem:[#allocation6 + $0x60] sm:$0xff] %v12990_v37   ;;  %v7746_v8 = vld [vmem:[#allocation6 + $0x58] sm:$0xf]  ;;  %v13702_v57 = vadd.f32 %v16961_v7, %v6793_v60 }
 0x529   : > { %v9073_v48 = vrot.slane %v8992_v35, 6  ;;  %v7238_v29 = vld [vmem:[#allocation5 + $0xe9] sm:$0xff]  ;;  %7150 = vst [vmem:[#allocation5 + $0x100] sm:$0xff] %v7103_v27  ;;  %v7104_v22 = vmax.f32 %v17181_v2, 0.0  ;;  %v7960_v46 = vld [vmem:[#allocation6 + $0x2c] sm:$0xf] }
 0x52a   : > { %v7851_v62 = vsel %vm15151_vm5, %v7849_v25, %v7850_v17  ;;  %v7852_v33 = vrot.slane %v7850_v17, 4  ;;  %v17187_v47 = vmax.f32 %v7100_v10, %v7238_v29  ;;  %v8993_v42 = vld [vmem:[#allocation6 + $0x58] sm:$0xf]  ;;  %v7853_v55 = vrot.slane %v7746_v8, 5  ;;  %v6795_v63 = vpop.f32.mrb[69].mxu1 }
 0x52b   : > { %7935 = vst [vmem:[#allocation2 + $0x2d4] sm:$0xf] %v7851_v62  ;;  %v9074_v36 = vsel %vm16909_vm10, %v9072_v30, %v9073_v48  ;;  %v9075_v16 = vrot.slane %v9073_v48, 4  ;;  %v7239_v56 = vld [vmem:[#allocation5 + $0xf1] sm:$0xff]  ;;  %v9076_v4 = vrot.slane %v8993_v42, 6  ;;  %7151 = vst [vmem:[#allocation5 + $0x108] sm:$0xff] %v7104_v22  ;;  %v17210_v19 = vadd.f32 %v13702_v57, %v16534_v0 }
 0x52c   : > { %9182 = vst [vmem:[#allocation2 + $0x140] sm:$0xf] %v9074_v36  ;;  %v7677_v32 = vld [vmem:[#allocation6 + $0x58] sm:$0xf]  ;;  %v7415_v10 = vmax.f32 %v17122_v44, %v17187_v47  ;;  %v17198_v13 = vmax.f32 %v7101_v24, %v7239_v56  ;;  %v14582_v58 = vld [vmem:[#allocation2 + $0x28c] ss:$36 sps:$4 sm:$0xff]   ;;  %v7854_v43 = vsel %vm15151_vm5, %v7852_v33, %v7853_v55 }
 0x52d   : > { %v14585_v31 = vld [vmem:[#allocation2 + $0x288] ss:$36 sps:$4 sm:$0xff]   ;;  %7709 = vst [vmem:[#allocation2 + $0x318] sm:$0xf] %v7677_v32  ;;  %v6796_v54 = vpop.f32.mrb[70].mxu1  ;;  %v9077_v44 = vsel %vm16909_vm10, %v9075_v16, %v9076_v4  ;;  %v7855_v51 = vrot.slane %v7853_v55, 4  ;;  %10791 = vmatprep.mubr.bf16.mxu0 %v14582_v58 }
 0x52e   : > { %v14584_v21 = vld [vmem:[#allocation2 + $0xf8] ss:$36 sps:$4 sm:$0xff]   ;;  %v7416_v24 = vmax.f32 %v17153_v20, %v17198_v13  ;;  %v13703_v25 = vadd.f32 %v16961_v7, %v6796_v54  ;;  %v6798_v45 = vpop.f32.mrb[71].mxu1  ;;  %7936 = vst [vmem:[#allocation2 + $0x2f8] sm:$0xf] %v7854_v43  ;;  %v9078_v49 = vrot.slane %v9076_v4, 4  ;;  %10792 = vmatmul.mubr.bf16.gmra.mrb[192].mxu0 %v14585_v31 }
 0x52f   : > { %9183 = vst [vmem:[#allocation2 + $0x164] sm:$0xf] %v9077_v44  ;;  %v7678_v28 = vld [vmem:[#allocation6 + $0x5c] sm:$0xf]  ;;  %13641 = vmatmul.mubr.bf16.gmra.mrb[112].mxu1 %v14584_v21  ;;  %v8047_v30 = vrot.slane %v7960_v46, 6  ;;  %v7105_v20 = vmax.f32 %v17210_v19, 0.0 }
 0x530   : > { %v7747_v9 = vld [vmem:[#allocation6 + $0x5c] sm:$0xf]  ;;  %7710 = vst [vmem:[#allocation2 + $0x33c] sm:$0xf] %v7678_v28  ;;  %v12995_v17 = vpack.c.bf16 %v7416_v24, %v7415_v10  ;;  %v17215_v0 = vadd.f32 %v13703_v25, %v16538_v38  ;;  %v7240_v37 = vld [vmem:[#allocation5 + $0xf9] sm:$0xff]  ;;  %v6801_v56 = vpop.f32.mrb[72].mxu1 }
 0x531   : > { %v7856_v6 = vrot.slane %v7747_v9, 5  ;;  %v8994_v53 = vld [vmem:[#allocation6 + $0x5c] sm:$0xf]  ;;  %v7748_v48 = vld [vmem:[#allocation6 + $0x60] sm:$0xf]  ;;  %v8048_v33 = vsel %vm16909_vm10, %v8046_v52, %v8047_v30  ;;  %v17221_v8 = vrot.slane %v8047_v30, 4  ;;  %v17225_v42 = vmax.f32 %v7102_v1, %v7240_v37 }
 0x532   : > { %v9079_v35 = vrot.slane %v8994_v53, 6  ;;  %13044 = vst [vmem:[#allocation6 + $0x68] sm:$0xff] %v12995_v17   ;;  %7152 = vst [vmem:[#allocation5 + $0x110] sm:$0xff] %v7105_v20  ;;  %v7106_v38 = vmax.f32 %v17215_v0, 0.0  ;;  %v7859_v36 = vrot.slane %v7748_v48, 5  ;;  %v7241_v52 = vld [vmem:[#allocation5 + $0x101] sm:$0xff]  ;;  %v13704_v32 = vadd.f32 %v16961_v7, %v6801_v56 }
 0x533   : > { %v7857_v29 = vsel %vm15151_vm5, %v7855_v51, %v7856_v6  ;;  %v7858_v62 = vrot.slane %v7856_v6, 4  ;;  %v8995_v16 = vld [vmem:[#allocation6 + $0x60] sm:$0xf]  ;;  %8152 = vst [vmem:[#allocation2 + $0x170] sm:$0xf] %v8048_v33  ;;  %v7417_v1 = vmax.f32 %v17162_v61, %v17225_v42  ;;  %v17236_v4 = vmax.f32 %v7103_v27, %v7241_v52  ;;  %v6803_v10 = vpop.f32.mrb[73].mxu1 }
 0x534   : > { %7937 = vst [vmem:[#allocation2 + $0x31c] sm:$0xf] %v7857_v29  ;;  %v9080_v46 = vsel %vm16909_vm10, %v9078_v49, %v9079_v35  ;;  %v9081_v60 = vrot.slane %v9079_v35, 4  ;;  %v9082_v55 = vrot.slane %v8995_v16, 6  ;;  %v7679_v3 = vld [vmem:[#allocation6 + $0x60] sm:$0xf]  ;;  %v17248_v27 = vadd.f32 %v13704_v32, %v16547_v41 }
 0x535   : > { %9184 = vst [vmem:[#allocation2 + $0x188] sm:$0xf] %v9080_v46  ;;  %7153 = vst [vmem:[#allocation5 + $0x118] sm:$0xff] %v7106_v38  ;;  %v7860_v57 = vsel %vm15151_vm5, %v7858_v62, %v7859_v36  ;;  %v7680_v63 = vld [vmem:[#allocation6 + $0x64] sm:$0xf]  ;;  %v6804_v31 = vpop.f32.mrb[74].mxu1  ;;  %v7418_v50 = vmax.f32 %v17187_v47, %v17236_v4 }
 0x536   : > { %7711 = vst [vmem:[#allocation2 + $0x360] sm:$0xf] %v7679_v3  ;;  %v7749_v58 = vld [vmem:[#allocation6 + $0x64] sm:$0xf]  ;;  %v14586_v54 = vld [vmem:[#allocation2 + $0x2d4] ss:$36 sps:$4 sm:$0xff]   ;;  %v9083_v61 = vsel %vm16909_vm10, %v9081_v60, %v9082_v55  ;;  %v13705_v21 = vadd.f32 %v16961_v7, %v6804_v31 }
 0x537   : > { %7938 = vst [vmem:[#allocation2 + $0x340] sm:$0xf] %v7860_v57  ;;  %7712 = vst [vmem:[#allocation2 + $0x384] sm:$0xf] %v7680_v63  ;;  %v6806_v43 = vpop.f32.mrb[75].mxu1  ;;  %v7861_v24 = vrot.slane %v7859_v36, 4  ;;  %10799 = vmatprep.mubr.bf16.mxu0 %v14586_v54  ;;  %v13000_v49 = vpack.c.bf16 %v7418_v50, %v7417_v1 }
 0x538   : > { %v14589_v44 = vld [vmem:[#allocation2 + $0x140] ss:$36 sps:$4 sm:$0xff]   ;;  %v14590_v51 = vld [vmem:[#allocation2 + $0x2d0] ss:$36 sps:$4 sm:$0xff]   ;;  %9185 = vst [vmem:[#allocation2 + $0x1ac] sm:$0xf] %v9083_v61  ;;  %v17253_v47 = vadd.f32 %v13705_v21, %v16554_v26 }
 0x539   : > { %v7862_v25 = vrot.slane %v7749_v58, 5  ;;  %v8996_v45 = vld [vmem:[#allocation6 + $0x64] sm:$0xf]  ;;  %v9084_v28 = vrot.slane %v9082_v55, 4  ;;  %v7961_v9 = vld [vmem:[#allocation6 + $0x30] sm:$0xf]  ;;  %13644 = vmatprep.mubr.bf16.mxu1 %v14589_v44  ;;  %10800 = vmatmul.mubr.bf16.gmra.mrb[196].mxu0 %v14590_v51 }
 0x53a   : > { %v7107_v6 = vmax.f32 %v17248_v27, 0.0  ;;  %v9085_v41 = vrot.slane %v8996_v45, 6  ;;  %v8186_v53 = vld [vmem:[#allocation6 + $0x40] sm:$0xf]  ;;  %v8187_v30 = vld [vmem:[#allocation6 + $0x44] sm:$0xf] }
 0x53b   : > { %v7242_v17 = vld [vmem:[#allocation5 + $0x109] sm:$0xff]  ;;  %v7750_v35 = vld [vmem:[#allocation6 + $0x68] sm:$0xf]  ;;  %v7863_v37 = vsel %vm15151_vm5, %v7861_v24, %v7862_v25  ;;  %v7864_v48 = vrot.slane %v7862_v25, 4  ;;  %v8050_v29 = vrot.slane %v7961_v9, 6  ;;  %13045 = vst [vmem:[#allocation6 + $0x70] sm:$0xff] %v13000_v49  }
 0x53c   : > { %8218 = vst [vmem:[#allocation2 + $0x174] sm:$0xf] %v8186_v53  ;;  %8219 = vst [vmem:[#allocation2 + $0x198] sm:$0xf] %v8187_v30  ;;  %v17259_v62 = vmax.f32 %v7104_v22, %v7242_v17  ;;  %v7108_v26 = vmax.f32 %v17253_v47, 0.0  ;;  %v7865_v33 = vrot.slane %v7750_v35, 5  ;;  %v9086_v16 = vsel %vm16909_vm10, %v9084_v28, %v9085_v41 }
 0x53d   : > { %7154 = vst [vmem:[#allocation5 + $0x120] sm:$0xff] %v7107_v6  ;;  %7939 = vst [vmem:[#allocation2 + $0x364] sm:$0xf] %v7863_v37  ;;  %v8997_v36 = vld [vmem:[#allocation6 + $0x68] sm:$0xf]  ;;  %v7243_v46 = vld [vmem:[#allocation5 + $0x111] sm:$0xff]  ;;  %v8051_v2 = vsel %vm16909_vm10, %v17221_v8, %v8050_v29 }
 0x53e   : > { %v6809_v52 = vpop.f32.mrb[76].mxu1  ;;  %v9087_v56 = vrot.slane %v9085_v41, 4  ;;  %v9088_v60 = vrot.slane %v8997_v36, 6  ;;  %9186 = vst [vmem:[#allocation2 + $0x1d0] sm:$0xf] %v9086_v16  ;;  %v7419_v22 = vmax.f32 %v17198_v13, %v17259_v62  ;;  %v17273_v3 = vmax.f32 %v7105_v20, %v7243_v46  ;;  %7155 = vst [vmem:[#allocation5 + $0x128] sm:$0xff] %v7108_v26 }
 0x53f   : > { %v7681_v55 = vld [vmem:[#allocation6 + $0x68] sm:$0xf]  ;;  %v13706_v1 = vadd.f32 %v16961_v7, %v6809_v52  ;;  %v6811_v32 = vpop.f32.mrb[77].mxu1  ;;  %v14592_v10 = vld [vmem:[#allocation2 + $0x31c] ss:$36 sps:$4 sm:$0xff]   ;;  %v7866_v63 = vsel %vm15151_vm5, %v7864_v48, %v7865_v33  ;;  %v7867_v19 = vrot.slane %v7865_v33, 4 }
 0x540   : > { %v14595_v57 = vld [vmem:[#allocation2 + $0x318] ss:$36 sps:$4 sm:$0xff]   ;;  %7713 = vst [vmem:[#allocation2 + $0x3a8] sm:$0xf] %v7681_v55  ;;  %8153 = vst [vmem:[#allocation2 + $0x194] sm:$0xf] %v8051_v2  ;;  %v9089_v13 = vsel %vm16909_vm10, %v9087_v56, %v9088_v60  ;;  %v7420_v20 = vmax.f32 %v17225_v42, %v17273_v3  ;;  %10807 = vmatprep.mubr.bf16.mxu0 %v14592_v10 }
 0x541   : > { %v6812_v8 = vpop.f32.mrb[78].mxu1  ;;  %v14594_v58 = vld [vmem:[#allocation2 + $0x188] ss:$36 sps:$4 sm:$0xff]   ;;  %7940 = vst [vmem:[#allocation2 + $0x388] sm:$0xf] %v7866_v63  ;;  %v17285_v31 = vadd.f32 %v13706_v1, %v16545_v59  ;;  %v9090_v43 = vrot.slane %v9088_v60, 4  ;;  %10808 = vmatmul.mubr.bf16.gmra.mrb[200].mxu0 %v14595_v57 }
 0x542   : > { %v13707_v54 = vadd.f32 %v16961_v7, %v6812_v8  ;;  %v6814_v61 = vpop.f32.mrb[79].mxu1  ;;  %9187 = vst [vmem:[#allocation2 + $0x1f4] sm:$0xf] %v9089_v13  ;;  %v7682_v50 = vld [vmem:[#allocation6 + $0x6c] sm:$0xf]  ;;  %13645 = vmatmul.mubr.bf16.gmra.mrb[116].mxu1 %v14594_v58  ;;  %v8052_v25 = vrot.slane %v8050_v29, 4  ;;  %v13005_v45 = vpack.c.bf16 %v7420_v20, %v7419_v22 }
 0x543   : > { %v7751_v21 = vld [vmem:[#allocation6 + $0x6c] sm:$0xf]  ;;  %7714 = vst [vmem:[#allocation2 + $0x3cc] sm:$0xf] %v7682_v50  ;;  %v17288_v24 = vld [vmem:[#allocation6 + $0x34] sm:$0xf] }
 0x544   : > { %v7868_v44 = vrot.slane %v7751_v21, 5  ;;  %v8998_v51 = vld [vmem:[#allocation6 + $0x6c] sm:$0xf]  ;;  %v7109_v42 = vmax.f32 %v17285_v31, 0.0  ;;  %v17292_v59 = vadd.f32 %v13707_v54, %v16549_v34  ;;  %v7244_v28 = vld [vmem:[#allocation5 + $0x119] sm:$0xff]  ;;  %v8053_v53 = vrot.slane %v17288_v24, 6 }
 0x545   : > { %v9091_v7 = vrot.slane %v8998_v51, 6  ;;  %v7752_v9 = vld [vmem:[#allocation6 + $0x70] sm:$0xf]  ;;  %13046 = vst [vmem:[#allocation6 + $0x78] sm:$0xff] %v13005_v45   ;;  %v17299_v30 = vmax.f32 %v7106_v38, %v7244_v28  ;;  %v6817_v29 = vpop.f32.mrb[80].mxu1 }
 0x546   : > { %v7869_v49 = vsel %vm15151_vm5, %v7867_v19, %v7868_v44  ;;  %v7870_v41 = vrot.slane %v7868_v44, 4  ;;  %7156 = vst [vmem:[#allocation5 + $0x130] sm:$0xff] %v7109_v42  ;;  %v7110_v34 = vmax.f32 %v17292_v59, 0.0  ;;  %v7871_v17 = vrot.slane %v7752_v9, 5  ;;  %v8999_v35 = vld [vmem:[#allocation6 + $0x70] sm:$0xf] }
 0x547   : > { %7941 = vst [vmem:[#allocation2 + $0x3ac] sm:$0xf] %v7869_v49  ;;  %v9092_v37 = vsel %vm16909_vm10, %v9090_v43, %v9091_v7  ;;  %v7245_v48 = vld [vmem:[#allocation5 + $0x121] sm:$0xff]  ;;  %v9093_v33 = vrot.slane %v9091_v7, 4  ;;  %v9094_v36 = vrot.slane %v8999_v35, 6  ;;  %v8054_v0 = vsel %vm16909_vm10, %v8052_v25, %v8053_v53  ;;  %v6819_v60 = vpop.f32.mrb[81].mxu1 }
 0x548   : > { %9188 = vst [vmem:[#allocation2 + $0x218] sm:$0xf] %v9092_v37  ;;  %v7683_v16 = vld [vmem:[#allocation6 + $0x70] sm:$0xf]  ;;  %v7421_v38 = vmax.f32 %v17236_v4, %v17299_v30  ;;  %v17312_v46 = vmax.f32 %v7107_v6, %v7245_v48  ;;  %7157 = vst [vmem:[#allocation5 + $0x138] sm:$0xff] %v7110_v34  ;;  %v7872_v4 = vsel %vm15151_vm5, %v7870_v41, %v7871_v17  ;;  %v6820_v27 = vpop.f32.mrb[82].mxu1 }
 0x549   : > { %v17319_v52 = vld [vmem:[%s18427_s4] ss:$0 sm:$0xff]  ;;  %v14596_v55 = vld [vmem:[#allocation2 + $0x364] ss:$36 sps:$4 sm:$0xff]   ;;  %7715 = vst [vmem:[#allocation2 + $0x3f0] sm:$0xf] %v7683_v16  ;;  %v9095_v22 = vsel %vm16909_vm10, %v9093_v33, %v9094_v36 }
 0x54a   : > { %v13708_v56 = vadd.f32 %v17319_v52, %v6817_v29  ;;  %v14600_v2 = vld [vmem:[#allocation2 + $0x360] ss:$36 sps:$4 sm:$0xff]   ;;  %8154 = vst [vmem:[#allocation2 + $0x1b8] sm:$0xf] %v8054_v0  ;;  %v14599_v6 = vld [vmem:[#allocation2 + $0x1d0] ss:$36 sps:$4 sm:$0xff]   ;;  %v7422_v32 = vmax.f32 %v17259_v62, %v17312_v46  ;;  %v13709_v57 = vadd.f32 %v17319_v52, %v6820_v27  ;;  %10815 = vmatprep.mubr.bf16.mxu0 %v14596_v55 }
 0x54b   : > { %7942 = vst [vmem:[#allocation2 + $0x3d0] sm:$0xf] %v7872_v4  ;;  %v7873_v1 = vrot.slane %v7871_v17, 4  ;;  %v6822_v63 = vpop.f32.mrb[83].mxu1  ;;  %9189 = vst [vmem:[#allocation2 + $0x23c] sm:$0xf] %v9095_v22  ;;  %13648 = vmatprep.mubr.bf16.mxu1 %v14599_v6  ;;  %10816 = vmatmul.mubr.bf16.gmra.mrb[204].mxu0 %v14600_v2 }
 0x54c   : > { %v17329_v10 = vadd.f32 %v13708_v56, %v16634_v11  ;;  %v7684_v8 = vld [vmem:[#allocation6 + $0x74] sm:$0xf]  ;;  %v9096_v13 = vrot.slane %v9094_v36, 4  ;;  %v13010_v54 = vpack.c.bf16 %v7422_v32, %v7421_v38  ;;  %v17334_v62 = vadd.f32 %v13709_v57, %v16638_v5  ;;  %v8188_v50 = vld [vmem:[#allocation6 + $0x48] sm:$0xf]  ;;  %v6825_v41 = vpop.f32.mrb[84].mxu1 }
 0x54d   : > { %v7753_v58 = vld [vmem:[#allocation6 + $0x74] sm:$0xf]  ;;  %7716 = vst [vmem:[#allocation2 + $0x414] sm:$0xf] %v7684_v8  ;;  %v7754_v43 = vld [vmem:[#allocation6 + $0x78] sm:$0xf]  ;;  %v13710_v48 = vadd.f32 %v17319_v52, %v6825_v41 }
 0x54e   : > { %v7874_v19 = vrot.slane %v7753_v58, 5  ;;  %v9000_v20 = vld [vmem:[#allocation6 + $0x74] sm:$0xf]  ;;  %v7111_v61 = vmax.f32 %v17329_v10, 0.0  ;;  %v8055_v24 = vrot.slane %v8053_v53, 4  ;;  %13047 = vst [vmem:[#allocation6 + $0x80] sm:$0xff] %v13010_v54  }
 0x54f   : > { %v9097_v11 = vrot.slane %v9000_v20, 6  ;;  %v7246_v21 = vld [vmem:[#allocation5 + $0x129] sm:$0xff]  ;;  %8220 = vst [vmem:[#allocation2 + $0x1bc] sm:$0xf] %v8188_v50  ;;  %v7112_v5 = vmax.f32 %v17334_v62, 0.0  ;;  %v7877_v45 = vrot.slane %v7754_v43, 5  ;;  %v17369_v60 = vadd.f32 %v13710_v48, %v16632_v14 }
 0x550   : > { %v7875_v44 = vsel %vm15151_vm5, %v7873_v1, %v7874_v19  ;;  %v7876_v51 = vrot.slane %v7874_v19, 4  ;;  %v17340_v25 = vmax.f32 %v7108_v26, %v7246_v21  ;;  %7158 = vst [vmem:[#allocation5 + $0x140] sm:$0xff] %v7111_v61  ;;  %v9001_v7 = vld [vmem:[#allocation6 + $0x78] sm:$0xf]  ;;  %v6827_v29 = vpop.f32.mrb[85].mxu1 }
 0x551   : > { %7943 = vst [vmem:[#allocation2 + $0x3f4] sm:$0xf] %v7875_v44  ;;  %v9098_v28 = vsel %vm16909_vm10, %v9096_v13, %v9097_v11  ;;  %v7963_v9 = vld [vmem:[#allocation6 + $0x38] sm:$0xf]  ;;  %v9099_v53 = vrot.slane %v9097_v11, 4  ;;  %v9100_v17 = vrot.slane %v9001_v7, 6 }
 0x552   : > { %v7247_v49 = vld [vmem:[#allocation5 + $0x131] sm:$0xff]  ;;  %9190 = vst [vmem:[#allocation2 + $0x260] sm:$0xf] %v9098_v28  ;;  %v7423_v35 = vmax.f32 %v17273_v3, %v17340_v25  ;;  %7159 = vst [vmem:[#allocation5 + $0x148] sm:$0xff] %v7112_v5  ;;  %v14602_v33 = vld [vmem:[#allocation2 + $0x3ac] ss:$36 sps:$4 sm:$0xff]   ;;  %v7878_v16 = vsel %vm15151_vm5, %v7876_v51, %v7877_v45 }
 0x553   : > { %v7685_v47 = vld [vmem:[#allocation6 + $0x78] sm:$0xf]  ;;  %v17357_v37 = vmax.f32 %v7109_v42, %v7247_v49  ;;  %v14605_v36 = vld [vmem:[#allocation2 + $0x3a8] ss:$36 sps:$4 sm:$0xff]   ;;  %v6828_v38 = vpop.f32.mrb[86].mxu1  ;;  %v9101_v3 = vsel %vm16909_vm10, %v9099_v53, %v9100_v17  ;;  %v7879_v31 = vrot.slane %v7877_v45, 4  ;;  %10823 = vmatprep.mubr.bf16.mxu0 %v14602_v33 }
 0x554   : > { %7717 = vst [vmem:[#allocation2 + $0x438] sm:$0xf] %v7685_v47  ;;  %v7721_v0 = vld [vmem:[#allocation2 + $0x45c] sm:$0x3]  ;;  %7944 = vst [vmem:[#allocation2 + $0x418] sm:$0xf] %v7878_v16  ;;  %v13711_v55 = vadd.f32 %v17319_v52, %v6828_v38  ;;  %10824 = vmatmul.mubr.bf16.gmra.mrb[208].mxu0 %v14605_v36 }
 0x555   : > { %v14604_v56 = vld [vmem:[#allocation2 + $0x218] ss:$36 sps:$4 sm:$0xff]   ;;  %v7424_v42 = vmax.f32 %v17299_v30, %v17357_v37  ;;  %v6830_v2 = vpop.f32.mrb[87].mxu1  ;;  %9191 = vst [vmem:[#allocation2 + $0x284] sm:$0xf] %v9101_v3  ;;  %v9102_v6 = vrot.slane %v9100_v17, 4 }
 0x556   : > { %v7686_v4 = vld [vmem:[#allocation6 + $0x7c] sm:$0x3]  ;;  %13649 = vmatmul.mubr.bf16.gmra.mrb[120].mxu1 %v14604_v56  ;;  %v8056_v57 = vrot.slane %v7963_v9, 6  ;;  %v8189_v63 = vld [vmem:[#allocation6 + $0x4c] sm:$0xf]  ;;  %v7113_v14 = vmax.f32 %v17369_v60, 0.0  ;;  %v17376_v8 = vadd.f32 %v13711_v55, %v16636_v15 }
 0x557   : > { %v7755_v27 = vld [vmem:[#allocation6 + $0x7c] sm:$0x7]  ;;  %v7722_v22 = vsel %vm17349_vm12, %v7686_v4, %v7721_v0  ;;  %v13015_v30 = vpack.c.bf16 %v7424_v42, %v7423_v35  ;;  %8221 = vst [vmem:[#allocation2 + $0x1e0] sm:$0xf] %v8189_v63  ;;  %v7248_v19 = vld [vmem:[#allocation5 + $0x139] sm:$0xff]  ;;  %v6833_v28 = vpop.f32.mrb[88].mxu1 }
 0x558   : > { %v7880_v1 = vrot.slane %v7755_v27, 5  ;;  %v9002_v32 = vld [vmem:[#allocation6 + $0x7c] sm:$0xf]  ;;  %7723 = vst [vmem:[#allocation2 + $0x45c] sm:$0x3] %v7722_v22  ;;  %v8057_v50 = vsel %vm16909_vm10, %v8055_v24, %v8056_v57  ;;  %v8058_v21 = vrot.slane %v8056_v57, 4  ;;  %v17384_v15 = vmax.f32 %v7110_v34, %v7248_v19 }
 0x559   : > { %v7946_v58 = vld [vmem:[#allocation2 + $0x460] sm:$0x3]  ;;  %v9103_v13 = vrot.slane %v9002_v32, 6  ;;  %v9003_v11 = vld [vmem:[#allocation6 + $0x80] sm:$0xf]  ;;  %13048 = vst [vmem:[#allocation6 + $0x88] sm:$0xff] %v13015_v30   ;;  %v13712_v17 = vadd.f32 %v17319_v52, %v6833_v28 }
 0x55a   : > { %v7881_v20 = vsel %vm15151_vm5, %v7879_v31, %v7880_v1  ;;  %v7882_v54 = vrot.slane %v7880_v1, 4  ;;  %7160 = vst [vmem:[#allocation5 + $0x150] sm:$0xff] %v7113_v14  ;;  %v7114_v43 = vmax.f32 %v17376_v8, 0.0  ;;  %v9004_v45 = vld [vmem:[#allocation6 + $0x84] sm:$0xf]  ;;  %v7249_v24 = vld [vmem:[#allocation5 + $0x141] sm:$0xff]  ;;  %v7425_v41 = vmax.f32 %v17312_v46, %v17384_v15 }
 0x55b   : > { %7945 = vst [vmem:[#allocation2 + $0x43c] sm:$0xf] %v7881_v20  ;;  %v9104_v44 = vsel %vm16909_vm10, %v9102_v6, %v9103_v13  ;;  %v9105_v51 = vrot.slane %v9103_v13, 4  ;;  %8155 = vst [vmem:[#allocation2 + $0x1dc] sm:$0xf] %v8057_v50  ;;  %v9106_v34 = vrot.slane %v9003_v11, 6  ;;  %v17397_v53 = vmax.f32 %v7111_v61, %v7249_v24 }
 0x55c   : > { %v7964_v7 = vld [vmem:[#allocation6 + $0x3c] sm:$0xf]  ;;  %v7947_v59 = vsel %vm17349_vm12, %v7882_v54, %v7946_v58  ;;  %9192 = vst [vmem:[#allocation2 + $0x2a8] sm:$0xf] %v9104_v44  ;;  %v9109_v9 = vrot.slane %v9004_v45, 6  ;;  %7161 = vst [vmem:[#allocation5 + $0x158] sm:$0xff] %v7114_v43  ;;  %v17408_v61 = vadd.f32 %v13712_v17, %v16822_v39 }
 0x55d   : > { %v7965_v49 = vld [vmem:[#allocation6 + $0x40] sm:$0xf]  ;;  %v6835_v47 = vpop.f32.mrb[89].mxu1  ;;  %v14606_v35 = vld [vmem:[#allocation2 + $0x3f4] ss:$36 sps:$4 sm:$0xff]   ;;  %v9107_v36 = vsel %vm16909_vm10, %v9105_v51, %v9106_v34  ;;  %v9108_v16 = vrot.slane %v9106_v34, 4  ;;  %v7426_v46 = vmax.f32 %v17340_v25, %v17397_v53 }
 0x55e   : > { %v14610_v48 = vld [vmem:[#allocation2 + $0x3f0] ss:$36 sps:$4 sm:$0xff]   ;;  %7948 = vst [vmem:[#allocation2 + $0x460] sm:$0x3] %v7947_v59  ;;  %v6836_v29 = vpop.f32.mrb[90].mxu1  ;;  %10831 = vmatprep.mubr.bf16.mxu0 %v14606_v35  ;;  %v8059_v31 = vrot.slane %v7964_v7, 6 }
 0x55f   : > { %v14609_v33 = vld [vmem:[#allocation2 + $0x260] ss:$36 sps:$4 sm:$0xff]   ;;  %v13713_v10 = vadd.f32 %v17319_v52, %v6836_v29  ;;  %v6838_v0 = vpop.f32.mrb[91].mxu1  ;;  %9193 = vst [vmem:[#allocation2 + $0x2cc] sm:$0xf] %v9107_v36  ;;  %v9110_v3 = vsel %vm16909_vm10, %v9108_v16, %v9109_v9  ;;  %v8062_v42 = vrot.slane %v7965_v49, 6  ;;  %v13020_v25 = vpack.c.bf16 %v7426_v46, %v7425_v41  ;;  %10832 = vmatmul.mubr.bf16.gmra.mrb[212].mxu0 %v14610_v48 }
 0x560   : > { %v8190_v38 = vld [vmem:[#allocation6 + $0x50] sm:$0xf]  ;;  %v8191_v56 = vld [vmem:[#allocation6 + $0x54] sm:$0xf]  ;;  %13652 = vmatprep.mubr.bf16.mxu1 %v14609_v33  ;;  %v7966_v55 = vld [vmem:[#allocation6 + $0x44] sm:$0xf]  ;;  %v8060_v1 = vsel %vm16909_vm10, %v8058_v21, %v8059_v31 }
 0x561   : > { %8222 = vst [vmem:[#allocation2 + $0x204] sm:$0xf] %v8190_v38  ;;  %8223 = vst [vmem:[#allocation2 + $0x228] sm:$0xf] %v8191_v56  ;;  %v7115_v52 = vmax.f32 %v17408_v61, 0.0  ;;  %v17414_v39 = vadd.f32 %v13713_v10, %v16832_v18  ;;  %v8065_v2 = vrot.slane %v7966_v55, 6 }
 0x562   : > { %9194 = vst [vmem:[#allocation2 + $0x2f0] sm:$0xf] %v9110_v3  ;;  %v8192_v4 = vld [vmem:[#allocation6 + $0x58] sm:$0xf]  ;;  %v8193_v27 = vld [vmem:[#allocation6 + $0x5c] sm:$0xf] }
 0x563   : > { %v7250_v6 = vld [vmem:[#allocation5 + $0x149] sm:$0xff]  ;;  %v9005_v22 = vld [vmem:[#allocation6 + $0x88] sm:$0xf]  ;;  %v8061_v32 = vrot.slane %v8059_v31, 4  ;;  %v8064_v57 = vrot.slane %v8062_v42, 4  ;;  %13049 = vst [vmem:[#allocation6 + $0x90] sm:$0xff] %v13020_v25  }
 0x564   : > { %8224 = vst [vmem:[#allocation2 + $0x24c] sm:$0xf] %v8192_v4  ;;  %8225 = vst [vmem:[#allocation2 + $0x270] sm:$0xf] %v8193_v27  ;;  %v17420_v63 = vmax.f32 %v7112_v5, %v7250_v6  ;;  %v7116_v18 = vmax.f32 %v17414_v39, 0.0  ;;  %v9112_v30 = vrot.slane %v9005_v22, 6 }
 0x565   : > { %7162 = vst [vmem:[#allocation5 + $0x160] sm:$0xff] %v7115_v52  ;;  %v9006_v58 = vld [vmem:[#allocation6 + $0x8c] sm:$0xf]  ;;  %8156 = vst [vmem:[#allocation2 + $0x200] sm:$0xf] %v8060_v1  ;;  %v7251_v13 = vld [vmem:[#allocation5 + $0x151] sm:$0xff]  ;;  %v8063_v54 = vsel %vm16909_vm10, %v8061_v32, %v8062_v42  ;;  %v8066_v62 = vsel %vm16909_vm10, %v8064_v57, %v8065_v2 }
 0x566   : > { %v6841_v19 = vpop.f32.mrb[104].mxu1  ;;  %v9111_v20 = vrot.slane %v9109_v9, 4  ;;  %v7967_v11 = vld [vmem:[#allocation6 + $0x48] sm:$0xf]  ;;  %v7427_v5 = vmax.f32 %v17357_v37, %v17420_v63  ;;  %v17433_v50 = vmax.f32 %v7113_v14, %v7251_v13  ;;  %7163 = vst [vmem:[#allocation5 + $0x168] sm:$0xff] %v7116_v18  ;;  %v18557_v44 = vld [vmem:[#allocation13_spill] sm:$0xff] }
 0x567   : > { %v14612_v21 = vld [vmem:[#allocation2 + $0x43c] ss:$36 sps:$4 sm:$0x3f]   ;;  %v6842_v51 = vadd.f32 %v6841_v19, %v18557_v44  ;;  %8157 = vst [vmem:[#allocation2 + $0x224] sm:$0xf] %v8063_v54  ;;  %v9114_v24 = vrot.slane %v9112_v30, 4 }
 0x568   : > { %8158 = vst [vmem:[#allocation2 + $0x248] sm:$0xf] %v8066_v62  ;;  %v14614_v45 = vld [vmem:[#allocation2 + $0x2a8] ss:$36 sps:$4 sm:$0xff]   ;;  %v9113_v7 = vsel %vm16909_vm10, %v9111_v20, %v9112_v30  ;;  %v9115_v28 = vrot.slane %v9006_v58, 6  ;;  %v7428_v37 = vmax.f32 %v17384_v15, %v17433_v50  ;;  %10839 = vmatprep.mubr.bf16.mxu0 %v14612_v21  ;;  %v6843_v59 = vpop.f32.mrb[105].mxu1 }
 0x569   : > { %v7066_v60 = vadd.f32 %v16808_v12, %v6842_v51  ;;  %v14615_v14 = vld [vmem:[#allocation2 + $0x438] ss:$36 sps:$4 sm:$0x3f]   ;;  %9195 = vst [vmem:[#allocation2 + $0x314] sm:$0xf] %v9113_v7  ;;  %13653 = vmatmul.mubr.bf16.gmra.mrb[124].mxu1 %v14614_v45  ;;  %v6844_v49 = vpop.f32.mrb[106].mxu1 }
 0x56a   : > { %v14618_v34 = vld [vmem:[#allocation2 + $0xc] ss:$36 sps:$4 sm:$0xff]   ;;  %v9116_v9 = vsel %vm16909_vm10, %v9114_v24, %v9115_v28  ;;  %v13025_v41 = vpack.c.bf16 %v7428_v37, %v7427_v5  ;;  %10840 = vmatmul.mubr.bf16.gmra.mrb[216].mxu0 %v14615_v14  ;;  %v6845_v47 = vpop.f32.mrb[107].mxu1  ;;  %v8067_v35 = vrot.slane %v8065_v2, 4  ;;  %v8068_v48 = vrot.slane %v7967_v11, 6  ;;  %v14621_v3 = vld [vmem:[%s18428_s5 + $0x100] sm:$0xff]  }
 0x56b   : > { %v7117_v17 = vmax.f32 %v7066_v60, 0.0  ;;  %9196 = vst [vmem:[#allocation2 + $0x338] sm:$0xf] %v9116_v9  ;;  %v7968_v15 = vld [vmem:[#allocation6 + $0x4c] sm:$0xf]  ;;  %10880 = vmatprep.mubr.bf16.mxu0 %v14618_v34  ;;  %v9117_v46 = vrot.slane %v9115_v28, 4 }
 0x56c   : > { %v7341_v29 = vld [vmem:[#allocation5 + $0x159] sm:$0xff]  ;;  %v9007_v12 = vld [vmem:[#allocation6 + $0x90] sm:$0xf]  ;;  %v17445_v33 = vld [vmem:[#allocation6 + $0x94] sm:$0xf]  ;;  %v8071_v36 = vrot.slane %v7968_v15, 6  ;;  %v8069_v0 = vsel %vm16909_vm10, %v8067_v35, %v8068_v48 }
 0x56d   : > { %13050 = vst [vmem:[#allocation6 + $0x98] sm:$0xff] %v13025_v41   ;;  %v7385_v16 = vmax.f32 %v7114_v43, %v7341_v29  ;;  %7164 = vst [vmem:[#allocation5 + $0x170] sm:$0xff] %v7117_v17  ;;  %v9118_v10 = vrot.slane %v9007_v12, 6  ;;  %v7969_v38 = vld [vmem:[#allocation6 + $0x50] sm:$0xf]  ;;  %v9121_v31 = vrot.slane %v17445_v33, 6 }
 0x56e   : > { %v7342_v56 = vld [vmem:[#allocation5 + $0x161] sm:$0xff]  ;;  %8159 = vst [vmem:[#allocation2 + $0x26c] sm:$0xf] %v8069_v0  ;;  %v8070_v42 = vrot.slane %v8068_v48, 4  ;;  %v8194_v27 = vld [vmem:[#allocation6 + $0x60] sm:$0xf] }
 0x56f   : > { %v7429_v55 = vmax.f32 %v17397_v53, %v7385_v16  ;;  %v7386_v8 = vmax.f32 %v7115_v52, %v7342_v56  ;;  %v14616_v43 = vld [vmem:[#allocation2 + $0x8] ss:$36 sps:$4 sm:$0xff]   ;;  %v9119_v25 = vsel %vm16909_vm10, %v9117_v46, %v9118_v10  ;;  %v9120_v4 = vrot.slane %v9118_v10, 4  ;;  %v14622_v32 = vld [vmem:[#allocation2 + $0x54] ss:$36 sps:$4 sm:$0xff]  }
 0x570   : > { %v14628_v2 = vld [vmem:[%s18428_s5 + $0x148] sm:$0xff]   ;;  %v14620_v1 = vld [vmem:[#allocation2 + $0x2f0] ss:$36 sps:$4 sm:$0xff]   ;;  %9197 = vst [vmem:[#allocation2 + $0x35c] sm:$0xf] %v9119_v25  ;;  %v8072_v53 = vsel %vm16909_vm10, %v8070_v42, %v8071_v36  ;;  %v8073_v61 = vrot.slane %v8071_v36, 4 }
 0x571   : > { %v7208_v6 = vld [vmem:[#allocation5 + $0x158] sm:$0x7f]  ;;  %v8074_v52 = vrot.slane %v7969_v38, 6  ;;  %8226 = vst [vmem:[#allocation2 + $0x294] sm:$0xf] %v8194_v27  ;;  %v7430_v57 = vmax.f32 %v17420_v63, %v7386_v8  ;;  %v9122_v30 = vsel %vm16909_vm10, %v9120_v4, %v9121_v31  ;;  %13656 = vmatprep.mubr.bf16.mxu1 %v14620_v1  ;;  %v14639_v21 = vld [vmem:[%s18428_s5 + $0x150] sm:$0xff]  }
 0x572   : > { %v7252_v22 = vld [vmem:[#allocation5 + $0x159] sm:$0x7f]  ;;  %8160 = vst [vmem:[#allocation2 + $0x290] sm:$0xf] %v8072_v53  ;;  %v7970_v13 = vld [vmem:[#allocation6 + $0x54] sm:$0xf]  ;;  %10881 = vmatmul.mubr.bf16.vlgmr.msra.gmra.mrb[220].mxu0 %v14616_v43 }
 0x573   : > { %v8195_v58 = vld [vmem:[#allocation6 + $0x64] sm:$0xf]  ;;  %v7971_v19 = vld [vmem:[#allocation6 + $0x58] sm:$0xf]  ;;  %9198 = vst [vmem:[#allocation2 + $0x380] sm:$0xf] %v9122_v30  ;;  %v8075_v54 = vsel %vm16909_vm10, %v8073_v61, %v8074_v52  ;;  %v13030_v5 = vpack.c.bf16 %v7430_v57, %v7429_v55  ;;  %13309 = vmatpush3.bf16.msra.mxu0 %v14621_v3  ;;  %10888 = vmatprep.mubr.bf16.mxu0 %v14622_v32 }
 0x574   : > { %v14631_v20 = vld [vmem:[%s18428_s5 + $0x108] sm:$0xff]   ;;  %8227 = vst [vmem:[#allocation2 + $0x2b8] sm:$0xf] %v8195_v58  ;;  %v8076_v11 = vrot.slane %v8074_v52, 4  ;;  %v8077_v62 = vrot.slane %v7970_v13, 6  ;;  %v8080_v63 = vrot.slane %v7971_v19, 6  ;;  %v7296_v14 = vmax.f32 %v7208_v6, %v7252_v22  ;;  %13310 = vmatprep.subr.bf16.mxu0 %v14628_v2 }
 0x575   : > { %8161 = vst [vmem:[#allocation2 + $0x2b4] sm:$0xf] %v8075_v54  ;;  %v8196_v44 = vld [vmem:[#allocation6 + $0x68] sm:$0xf]  ;;  %v8197_v51 = vld [vmem:[#allocation6 + $0x6c] sm:$0xf] }
 0x576   : > { %v7972_v45 = vld [vmem:[#allocation6 + $0x5c] sm:$0xf]  ;;  %v7343_v24 = vld [vmem:[#allocation5 + $0x169] sm:$0xff]  ;;  %v8078_v37 = vsel %vm16909_vm10, %v8076_v11, %v8077_v62  ;;  %v8079_v60 = vrot.slane %v8077_v62, 4  ;;  %8228 = vst [vmem:[#allocation2 + $0x2dc] sm:$0xf] %v8196_v44 }
 0x577   : > { %v7300_v7 = vld [vmem:[#allocation5 + $0x170] sm:$0x7f]  ;;  %8229 = vst [vmem:[#allocation2 + $0x300] sm:$0xf] %v8197_v51  ;;  %13051 = vst [vmem:[#allocation6 + $0xa0] sm:$0xff] %v13030_v5   ;;  %v7387_v59 = vmax.f32 %v7116_v18, %v7343_v24  ;;  %v9123_v49 = vrot.slane %v9121_v31, 4  ;;  %13311 = vmatpush3.bf16.msra.mxu0 %v14631_v20 }
 0x578   : > { %v7344_v28 = vld [vmem:[#allocation5 + $0x171] sm:$0x7f]  ;;  %8162 = vst [vmem:[#allocation2 + $0x2d8] sm:$0xf] %v8078_v37  ;;  %v7652_v17 = vld [vmem:[#allocation6 + $0xac] sm:$0xf]  ;;  %v8081_v48 = vsel %vm16909_vm10, %v8079_v60, %v8080_v63  ;;  %13312 = vmatprep.subr.bf16.mxu0 %v14639_v21 }
 0x579   : > { %v7388_v34 = vmax.f32 %v7300_v7, %v7344_v28  ;;  %v9009_v9 = vld [vmem:[#allocation6 + $0x98] sm:$0xf]  ;;  %v9010_v41 = vld [vmem:[#allocation6 + $0x9c] sm:$0xf]  ;;  %v8082_v15 = vrot.slane %v8080_v63, 4  ;;  %v7431_v29 = vmax.f32 %v17433_v50, %v7387_v59  ;;  %v14641_v46 = vld [vmem:[%s18428_s5 + $0x110] sm:$0xff]  }
 0x57a   : > { %v9124_v47 = vrot.slane %v9009_v9, 6  ;;  %v9127_v35 = vrot.slane %v9010_v41, 6  ;;  %v14624_v33 = vld [vmem:[#allocation2 + $0x338] ss:$36 sps:$4 sm:$0xff]   ;;  %v14625_v36 = vld [vmem:[#allocation2 + $0x50] ss:$36 sps:$4 sm:$0xff]  }
 0x57b   : > { %v7432_v12 = vmax.f32 %v7296_v14, %v7388_v34  ;;  %8163 = vst [vmem:[#allocation2 + $0x2fc] sm:$0xf] %v8081_v48  ;;  %v7973_v39 = vld [vmem:[#allocation6 + $0x60] sm:$0xf]  ;;  %v8083_v10 = vrot.slane %v7972_v45, 6  ;;  %v12925_v38 = vpack.c.bf16 %v7431_v29, %v7431_v29  ;;  %13657 = vmatmul.mubr.bf16.gmra.mrb[128].mxu1 %v14624_v33  ;;  %v14648_v50 = vld [vmem:[%s18428_s5 + $0x158] sm:$0xff]   ;;  %10889 = vmatmul.mubr.bf16.gmra.mrb[224].mxu0 %v14625_v36 }
 0x57c   : > { %v9125_v18 = vsel %vm16909_vm10, %v9123_v49, %v9124_v47  ;;  %v9126_v16 = vrot.slane %v9124_v47, 4  ;;  %v8198_v0 = vld [vmem:[#allocation6 + $0x70] sm:$0xf]  ;;  %v8086_v3 = vrot.slane %v7973_v39, 6  ;;  %v8199_v31 = vld [vmem:[#allocation6 + $0x74] sm:$0xf]  ;;  %13313 = vmatpush3.bf16.msra.mxu0 %v14641_v46 }
 0x57d   : > { %v12926_v56 = vpack.c.bf16 %v7432_v12, %v7432_v12  ;;  %9199 = vst [vmem:[#allocation2 + $0x3a4] sm:$0xf] %v9125_v18  ;;  %8230 = vst [vmem:[#allocation2 + $0x324] sm:$0xf] %v8198_v0  ;;  %v14626_v42 = vld [vmem:[#allocation2 + $0x9c] ss:$36 sps:$4 sm:$0xff]   ;;  %v8084_v43 = vsel %vm16909_vm10, %v8082_v15, %v8083_v10  ;;  %13314 = vmatprep.subr.bf16.mxu0 %v14648_v50 }
 0x57e   : > { %v9128_v55 = vsel %vm16909_vm10, %v9126_v16, %v9127_v35  ;;  %v14650_v8 = vld [vmem:[%s18428_s5 + $0x118] sm:$0xff]   ;;  %v8085_v25 = vrot.slane %v8083_v10, 4  ;;  %8231 = vst [vmem:[#allocation2 + $0x348] sm:$0xf] %v8199_v31  ;;  %7651 = vst [vmem:[#allocation6 + $0xa8] sm:$0xf] %v12925_v38  ;;  %10896 = vmatprep.mubr.bf16.mxu0 %v14626_v42 }
 0x57f   : > { %v7653_v4 = vsel %vm16313_vm7, %v12926_v56, %v7652_v17  ;;  %v9129_v27 = vrot.slane %v9127_v35, 4  ;;  %9200 = vst [vmem:[#allocation2 + $0x3c8] sm:$0xf] %v9128_v55  ;;  %v14656_v6 = vld [vmem:[%s18428_s5 + $0x160] sm:$0xff]   ;;  %8164 = vst [vmem:[#allocation2 + $0x320] sm:$0xf] %v8084_v43 }
 0x580   : > { %v7974_v22 = vld [vmem:[#allocation6 + $0x64] sm:$0xf]  ;;  %v7975_v1 = vld [vmem:[#allocation6 + $0x68] sm:$0xf]  ;;  %7654 = vst [vmem:[#allocation6 + $0xac] sm:$0xf] %v7653_v4  ;;  %v8087_v61 = vsel %vm16909_vm10, %v8085_v25, %v8086_v3  ;;  %13315 = vmatpush3.bf16.msra.mxu0 %v14650_v8 }
 0x581   : > { %v9011_v32 = vld [vmem:[#allocation6 + $0xa0] sm:$0xf]  ;;  %v9012_v53 = vld [vmem:[#allocation6 + $0xa4] sm:$0xf]  ;;  %v8088_v52 = vrot.slane %v8086_v3, 4  ;;  %v8089_v58 = vrot.slane %v7974_v22, 6  ;;  %13316 = vmatprep.subr.bf16.mxu0 %v14656_v6 }
 0x582   : > { %v9130_v57 = vrot.slane %v9011_v32, 6  ;;  %v9133_v30 = vrot.slane %v9012_v53, 6  ;;  %8165 = vst [vmem:[#allocation2 + $0x344] sm:$0xf] %v8087_v61  ;;  %v8092_v13 = vrot.slane %v7975_v1, 6  ;;  %v14658_v20 = vld [vmem:[%s18428_s5 + $0x120] sm:$0xff]  }
 0x583   : > { %v8200_v19 = vld [vmem:[#allocation6 + $0x78] sm:$0xf]  ;;  %v14665_v63 = vld [vmem:[%s18428_s5 + $0x168] sm:$0xff]   ;;  %v8090_v5 = vsel %vm16909_vm10, %v8088_v52, %v8089_v58  ;;  %v8201_v21 = vld [vmem:[#allocation6 + $0x7c] sm:$0xf]  ;;  %v8091_v7 = vrot.slane %v8089_v58, 4 }
 0x584   : > { %8232 = vst [vmem:[#allocation2 + $0x36c] sm:$0xf] %v8200_v19  ;;  %v14630_v54 = vld [vmem:[#allocation2 + $0x98] ss:$36 sps:$4 sm:$0xff]   ;;  %v9131_v11 = vsel %vm16909_vm10, %v9129_v27, %v9130_v57  ;;  %v9132_v62 = vrot.slane %v9130_v57, 4  ;;  %v8094_v24 = vrot.slane %v8092_v13, 4  ;;  %13317 = vmatpush3.bf16.msra.mxu0 %v14658_v20 }
 0x585   : > { %v7976_v44 = vld [vmem:[#allocation6 + $0x6c] sm:$0xf]  ;;  %v14629_v51 = vld [vmem:[#allocation2 + $0x380] ss:$36 sps:$4 sm:$0xff]   ;;  %9201 = vst [vmem:[#allocation2 + $0x3ec] sm:$0xf] %v9131_v11  ;;  %v8093_v9 = vsel %vm16909_vm10, %v8091_v7, %v8092_v13  ;;  %10897 = vmatmul.mubr.bf16.gmra.mrb[228].mxu0 %v14630_v54  ;;  %13318 = vmatprep.subr.bf16.mxu0 %v14665_v63 }
 0x586   : > { %v14632_v45 = vld [vmem:[#allocation2 + $0xe4] ss:$36 sps:$4 sm:$0xff]   ;;  %8166 = vst [vmem:[#allocation2 + $0x368] sm:$0xf] %v8090_v5  ;;  %8233 = vst [vmem:[#allocation2 + $0x390] sm:$0xf] %v8201_v21  ;;  %v9134_v28 = vsel %vm16909_vm10, %v9132_v62, %v9133_v30  ;;  %13660 = vmatprep.mubr.bf16.mxu1 %v14629_v51 }
 0x587   : > { %v9135_v37 = vrot.slane %v9133_v30, 4  ;;  %v7977_v60 = vld [vmem:[#allocation6 + $0x70] sm:$0xf]  ;;  %v8095_v14 = vrot.slane %v7976_v44, 6  ;;  %v8202_v59 = vld [vmem:[#allocation6 + $0x80] sm:$0xf]  ;;  %10904 = vmatprep.mubr.bf16.mxu0 %v14632_v45 }
 0x588   : > { %v9013_v34 = vld [vmem:[#allocation6 + $0xa8] sm:$0xf]  ;;  %9202 = vst [vmem:[#allocation2 + $0x410] sm:$0xf] %v9134_v28  ;;  %v8098_v49 = vrot.slane %v7977_v60, 6  ;;  %v14673_v12 = vld [vmem:[%s18428_s5 + $0x170] sm:$0xff]  }
 0x589   : > { %8234 = vst [vmem:[#allocation2 + $0x3b4] sm:$0xf] %v8202_v59  ;;  %v9136_v41 = vrot.slane %v9013_v34, 6  ;;  %v9014_v17 = vld [vmem:[#allocation6 + $0xac] sm:$0xf]  ;;  %v8096_v47 = vsel %vm16909_vm10, %v8094_v24, %v8095_v14  ;;  %v8097_v35 = vrot.slane %v8095_v14, 4 }
 0x58a   : > { %8167 = vst [vmem:[#allocation2 + $0x38c] sm:$0xf] %v8093_v9  ;;  %v8203_v48 = vld [vmem:[#allocation6 + $0x84] sm:$0xf]  ;;  %v9139_v15 = vrot.slane %v9014_v17, 6  ;;  %v8100_v10 = vrot.slane %v8098_v49, 4 }
 0x58b   : > { %v14666_v29 = vld [vmem:[%s18428_s5 + $0x128] sm:$0xff]   ;;  %8168 = vst [vmem:[#allocation2 + $0x3b0] sm:$0xf] %v8096_v47  ;;  %8235 = vst [vmem:[#allocation2 + $0x3d8] sm:$0xf] %v8203_v48  ;;  %v9137_v33 = vsel %vm16909_vm10, %v9135_v37, %v9136_v41  ;;  %v9138_v36 = vrot.slane %v9136_v41, 4  ;;  %v8099_v18 = vsel %vm16909_vm10, %v8097_v35, %v8098_v49 }
 0x58c   : > { %v9205_v39 = vld [vmem:[#allocation2 + $0x47c] sm:$0x3]  ;;  %v7978_v16 = vld [vmem:[#allocation6 + $0x74] sm:$0xf]  ;;  %9203 = vst [vmem:[#allocation2 + $0x434] sm:$0xf] %v9137_v33  ;;  %13319 = vmatpush3.bf16.msra.mxu0 %v14666_v29 }
 0x58d   : > { %v7979_v46 = vld [vmem:[#allocation6 + $0x78] sm:$0xf]  ;;  %v9141_v0 = vrot.slane %v9139_v15, 4  ;;  %v14674_v38 = vld [vmem:[%s18428_s5 + $0x130] sm:$0xff]   ;;  %8169 = vst [vmem:[#allocation2 + $0x3d4] sm:$0xf] %v8099_v18  ;;  %v9140_v55 = vsel %vm16909_vm10, %v9138_v36, %v9139_v15  ;;  %13320 = vmatprep.subr.bf16.mxu0 %v14673_v12 }
 0x58e   : > { %v8101_v56 = vrot.slane %v7978_v16, 6  ;;  %v8104_v50 = vrot.slane %v7979_v46, 6  ;;  %v8204_v3 = vld [vmem:[#allocation6 + $0x88] sm:$0xf]  ;;  %v14635_v42 = vld [vmem:[#allocation2 + $0xe0] ss:$36 sps:$4 sm:$0xff]  }
 0x58f   : > { %v14634_v31 = vld [vmem:[#allocation2 + $0x3c8] ss:$36 sps:$4 sm:$0xff]   ;;  %8236 = vst [vmem:[#allocation2 + $0x3fc] sm:$0xf] %v8204_v3  ;;  %9204 = vst [vmem:[#allocation2 + $0x458] sm:$0xf] %v9140_v55  ;;  %v9206_v8 = vsel %vm17349_vm12, %v9141_v0, %v9205_v39  ;;  %10905 = vmatmul.mubr.bf16.gmra.mrb[232].mxu0 %v14635_v42 }
 0x590   : > { %v8102_v43 = vsel %vm16909_vm10, %v8100_v10, %v8101_v56  ;;  %v8103_v25 = vrot.slane %v8101_v56, 4  ;;  %v8205_v2 = vld [vmem:[#allocation6 + $0x8c] sm:$0xf]  ;;  %v7980_v4 = vld [vmem:[#allocation6 + $0x7c] sm:$0xf]  ;;  %v8106_v27 = vrot.slane %v8104_v50, 4  ;;  %13661 = vmatmul.mubr.bf16.gmra.mrb[132].mxu1 %v14634_v31  ;;  %13321 = vmatpush3.bf16.msra.mxu0 %v14674_v38 }
 0x591   : > { %9207 = vst [vmem:[#allocation2 + $0x47c] sm:$0x3] %v9206_v8  ;;  %8170 = vst [vmem:[#allocation2 + $0x3f8] sm:$0xf] %v8102_v43  ;;  %v14681_v6 = vld [vmem:[%s18428_s5 + $0x178] sm:$0xff]   ;;  %v8107_v22 = vrot.slane %v7980_v4, 6 }
 0x592   : > { %8237 = vst [vmem:[#allocation2 + $0x420] sm:$0xf] %v8205_v2  ;;  %v8206_v1 = vld [vmem:[#allocation6 + $0x90] sm:$0xf]  ;;  %v8239_v32 = vld [vmem:[#allocation2 + $0x468] sm:$0x3]  ;;  %v8105_v61 = vsel %vm16909_vm10, %v8103_v25, %v8104_v50  ;;  %13322 = vmatprep.subr.bf16.mxu0 %v14681_v6 }
 0x593   : > { %v14636_v53 = vld [vmem:[#allocation2 + $0x12c] ss:$36 sps:$4 sm:$0xff]   ;;  %v14682_v52 = vld [vmem:[%s18428_s5 + $0x138] sm:$0xff]   ;;  %v8173_v57 = vld [vmem:[#allocation2 + $0x464] sm:$0x3]  ;;  %v8108_v30 = vsel %vm16909_vm10, %v8106_v27, %v8107_v22  ;;  %v8109_v58 = vrot.slane %v8107_v22, 4 }
 0x594   : > { %8238 = vst [vmem:[#allocation2 + $0x444] sm:$0xf] %v8206_v1  ;;  %8171 = vst [vmem:[#allocation2 + $0x41c] sm:$0xf] %v8105_v61  ;;  %v8207_v13 = vld [vmem:[#allocation6 + $0x94] sm:$0x3]  ;;  %10912 = vmatprep.mubr.bf16.mxu0 %v14636_v53  ;;  %13323 = vmatpush3.bf16.msra.mxu0 %v14682_v52 }
 0x595   : > { %v8242_v19 = vld [vmem:[#allocation6 + $0x18] sm:$0xe]  ;;  %8172 = vst [vmem:[#allocation2 + $0x440] sm:$0xf] %v8108_v30  ;;  %v8240_v20 = vsel %vm17349_vm12, %v8207_v13, %v8239_v32  ;;  %v8243_v54 = vld [vmem:[#allocation6 + $0x1c] sm:$0xf]  ;;  %v8174_v21 = vsel %vm17349_vm12, %v8109_v58, %v8173_v57 }
 0x596   : > { %v8244_v11 = vld [vmem:[#allocation6 + $0x20] sm:$0xf]  ;;  %v12606_v62 = vrot.slane %v8242_v19, 9  ;;  %v14638_v5 = vld [vmem:[#allocation2 + $0x410] ss:$36 sps:$4 sm:$0xff]   ;;  %v8308_v44 = vrot.slane %v8243_v54, 5 }
 0x597   : > { %v14689_v63 = vld [vmem:[%s18428_s5 + $0x1c0] sm:$0xff]   ;;  %8241 = vst [vmem:[#allocation2 + $0x468] sm:$0x3] %v8240_v20  ;;  %8175 = vst [vmem:[#allocation2 + $0x464] sm:$0x3] %v8174_v21  ;;  %v8311_v51 = vrot.slane %v8244_v11, 5  ;;  %13664 = vmatprep.mubr.bf16.mxu1 %v14638_v5 }
 0x598   : > { %v14640_v45 = vld [vmem:[#allocation2 + $0x128] ss:$36 sps:$4 sm:$0xff]   ;;  %v8309_v7 = vsel %vm15151_vm5, %v12606_v62, %v8308_v44  ;;  %v8310_v24 = vrot.slane %v8308_v44, 4  ;;  %v8467_v28 = vld [vmem:[#allocation6 + $0x18] sm:$0xc]  ;;  %13420 = vmatprep.subr.bf16.mxu0 %v14689_v63 }
 0x599   : > { %v14642_v37 = vld [vmem:[#allocation2 + $0x458] ss:$36 sps:$4 sm:$0x3f]   ;;  %8433 = vst [vmem:[#allocation2 + $0x10] sm:$0xf] %v8309_v7  ;;  %v12607_v34 = vrot.slane %v8467_v28, 10  ;;  %10913 = vmatmul.mubr.bf16.gmra.mrb[236].mxu0 %v14640_v45 }
 0x59a   : > { %v8312_v60 = vsel %vm15151_vm5, %v8310_v24, %v8311_v51  ;;  %v8468_v14 = vld [vmem:[#allocation6 + $0x1c] sm:$0xf]  ;;  %v8469_v59 = vld [vmem:[#allocation6 + $0x20] sm:$0xf]  ;;  %13665 = vmatmul.mubr.bf16.gmra.mrb[136].mxu1 %v14642_v37  ;;  %v14643_v9 = vld [vmem:[#allocation2 + $0x174] ss:$36 sps:$4 sm:$0xff]  }
 0x59b   : > { %8434 = vst [vmem:[#allocation2 + $0x34] sm:$0xf] %v8312_v60  ;;  %v8533_v49 = vrot.slane %v8468_v14, 6  ;;  %v8313_v41 = vrot.slane %v8311_v51, 4  ;;  %v8536_v17 = vrot.slane %v8469_v59, 6  ;;  %10920 = vmatprep.mubr.bf16.mxu0 %v14643_v9 }
 0x59c   : > { %v8245_v47 = vld [vmem:[#allocation6 + $0x24] sm:$0xf]  ;;  %v8246_v35 = vld [vmem:[#allocation6 + $0x28] sm:$0xf]  ;;  %v14645_v10 = vld [vmem:[#allocation2 + $0x170] ss:$36 sps:$4 sm:$0xff]  }
 0x59d   : > { %v8534_v48 = vsel %vm16909_vm10, %v12607_v34, %v8533_v49  ;;  %v8535_v15 = vrot.slane %v8533_v49, 4  ;;  %v8314_v29 = vrot.slane %v8245_v47, 5  ;;  %v8317_v12 = vrot.slane %v8246_v35, 5  ;;  %v8470_v33 = vld [vmem:[#allocation6 + $0x24] sm:$0xf] }
 0x59e   : > { %8658 = vst [vmem:[#allocation2 + $0x14] sm:$0xf] %v8534_v48  ;;  %v8538_v36 = vrot.slane %v8536_v17, 4  ;;  %v8471_v46 = vld [vmem:[#allocation6 + $0x28] sm:$0xf]  ;;  %v8539_v0 = vrot.slane %v8470_v33, 6 }
 0x59f   : > { %v8537_v39 = vsel %vm16909_vm10, %v8535_v15, %v8536_v17  ;;  %v8315_v18 = vsel %vm15151_vm5, %v8313_v41, %v8314_v29  ;;  %v8316_v16 = vrot.slane %v8314_v29, 4  ;;  %v8542_v38 = vrot.slane %v8471_v46, 6  ;;  %v8247_v56 = vld [vmem:[#allocation6 + $0x2c] sm:$0xf]  ;;  %v8248_v50 = vld [vmem:[#allocation6 + $0x30] sm:$0xf] }
 0x5a0   : > { %8659 = vst [vmem:[#allocation2 + $0x38] sm:$0xf] %v8537_v39  ;;  %8435 = vst [vmem:[#allocation2 + $0x58] sm:$0xf] %v8315_v18  ;;  %v14646_v3 = vld [vmem:[#allocation2 + $0x1bc] ss:$36 sps:$4 sm:$0xff]   ;;  %v8540_v25 = vsel %vm16909_vm10, %v8538_v36, %v8539_v0 }
 0x5a1   : > { %v8318_v31 = vsel %vm15151_vm5, %v8316_v16, %v8317_v12  ;;  %v8319_v42 = vrot.slane %v8317_v12, 4  ;;  %v8320_v55 = vrot.slane %v8247_v56, 5  ;;  %v8323_v8 = vrot.slane %v8248_v50, 5  ;;  %v8472_v43 = vld [vmem:[#allocation6 + $0x2c] sm:$0xf]  ;;  %10921 = vmatmul.mubr.bf16.gmra.mrb[240].mxu0 %v14645_v10 }
 0x5a2   : > { %8436 = vst [vmem:[#allocation2 + $0x7c] sm:$0xf] %v8318_v31  ;;  %v8541_v2 = vrot.slane %v8539_v0, 4  ;;  %v8473_v4 = vld [vmem:[#allocation6 + $0x30] sm:$0xf]  ;;  %v8544_v27 = vrot.slane %v8542_v38, 4  ;;  %10928 = vmatprep.mubr.bf16.mxu0 %v14646_v3 }
 0x5a3   : > { %v8545_v6 = vrot.slane %v8472_v43, 6  ;;  %8660 = vst [vmem:[#allocation2 + $0x5c] sm:$0xf] %v8540_v25  ;;  %v8321_v22 = vsel %vm15151_vm5, %v8319_v42, %v8320_v55  ;;  %v8322_v1 = vrot.slane %v8320_v55, 4  ;;  %v8548_v32 = vrot.slane %v8473_v4, 6 }
 0x5a4   : > { %v8249_v53 = vld [vmem:[#allocation6 + $0x34] sm:$0xf]  ;;  %v8250_v61 = vld [vmem:[#allocation6 + $0x38] sm:$0xf]  ;;  %v8543_v52 = vsel %vm16909_vm10, %v8541_v2, %v8542_v38  ;;  %8437 = vst [vmem:[#allocation2 + $0xa0] sm:$0xf] %v8321_v22 }
 0x5a5   : > { %v8546_v57 = vsel %vm16909_vm10, %v8544_v27, %v8545_v6  ;;  %v8547_v30 = vrot.slane %v8545_v6, 4  ;;  %v8325_v58 = vrot.slane %v8323_v8, 4  ;;  %v8474_v13 = vld [vmem:[#allocation6 + $0x34] sm:$0xf]  ;;  %v8475_v19 = vld [vmem:[#allocation6 + $0x38] sm:$0xf]  ;;  %v8324_v20 = vsel %vm15151_vm5, %v8322_v1, %v8323_v8 }
 0x5a6   : > { %8661 = vst [vmem:[#allocation2 + $0x80] sm:$0xf] %v8543_v52  ;;  %8662 = vst [vmem:[#allocation2 + $0xa4] sm:$0xf] %v8546_v57  ;;  %v8326_v54 = vrot.slane %v8249_v53, 5  ;;  %v8329_v11 = vrot.slane %v8250_v61, 5 }
 0x5a7   : > { %v8550_v62 = vrot.slane %v8548_v32, 4  ;;  %v8251_v63 = vld [vmem:[#allocation6 + $0x3c] sm:$0xf]  ;;  %8438 = vst [vmem:[#allocation2 + $0xc4] sm:$0xf] %v8324_v20  ;;  %v8549_v5 = vsel %vm16909_vm10, %v8547_v30, %v8548_v32  ;;  %v8551_v21 = vrot.slane %v8474_v13, 6 }
 0x5a8   : > { %v8554_v44 = vrot.slane %v8475_v19, 6  ;;  %v8252_v51 = vld [vmem:[#allocation6 + $0x40] sm:$0xf]  ;;  %v8332_v45 = vrot.slane %v8251_v63, 5  ;;  %8663 = vst [vmem:[#allocation2 + $0xc8] sm:$0xf] %v8549_v5  ;;  %v8327_v7 = vsel %vm15151_vm5, %v8325_v58, %v8326_v54 }
 0x5a9   : > { %v8328_v24 = vrot.slane %v8326_v54, 4  ;;  %v14649_v28 = vld [vmem:[#allocation2 + $0x1b8] ss:$36 sps:$4 sm:$0xff]   ;;  %8439 = vst [vmem:[#allocation2 + $0xe8] sm:$0xf] %v8327_v7  ;;  %v8552_v37 = vsel %vm16909_vm10, %v8550_v62, %v8551_v21  ;;  %v8553_v60 = vrot.slane %v8551_v21, 4 }
 0x5aa   : > { %v8331_v14 = vrot.slane %v8329_v11, 4  ;;  %v8334_v59 = vrot.slane %v8332_v45, 4  ;;  %v8476_v34 = vld [vmem:[#allocation6 + $0x3c] sm:$0xf]  ;;  %8664 = vst [vmem:[#allocation2 + $0xec] sm:$0xf] %v8552_v37  ;;  %10929 = vmatmul.mubr.bf16.gmra.mrb[244].mxu0 %v14649_v28 }
 0x5ab   : > { %v8330_v9 = vsel %vm15151_vm5, %v8328_v24, %v8329_v11  ;;  %v8335_v49 = vrot.slane %v8252_v51, 5  ;;  %v8477_v41 = vld [vmem:[#allocation6 + $0x40] sm:$0xf]  ;;  %v8556_v17 = vrot.slane %v8554_v44, 4  ;;  %v8557_v47 = vrot.slane %v8476_v34, 6 }
 0x5ac   : > { %8440 = vst [vmem:[#allocation2 + $0x10c] sm:$0xf] %v8330_v9  ;;  %v8555_v35 = vsel %vm16909_vm10, %v8553_v60, %v8554_v44  ;;  %v8333_v48 = vsel %vm15151_vm5, %v8331_v14, %v8332_v45  ;;  %v8560_v15 = vrot.slane %v8477_v41, 6  ;;  %v8253_v29 = vld [vmem:[#allocation6 + $0x44] sm:$0xf] }
 0x5ad   : > { %v8254_v12 = vld [vmem:[#allocation6 + $0x48] sm:$0xf]  ;;  %v14651_v33 = vld [vmem:[#allocation2 + $0x204] ss:$36 sps:$4 sm:$0xff]   ;;  %8665 = vst [vmem:[#allocation2 + $0x110] sm:$0xf] %v8555_v35  ;;  %v8336_v36 = vsel %vm15151_vm5, %v8334_v59, %v8335_v49  ;;  %v8558_v39 = vsel %vm16909_vm10, %v8556_v17, %v8557_v47 }
 0x5ae   : > { %8441 = vst [vmem:[#allocation2 + $0x130] sm:$0xf] %v8333_v48  ;;  %v8559_v18 = vrot.slane %v8557_v47, 4  ;;  %v8337_v16 = vrot.slane %v8335_v49, 4  ;;  %v8478_v46 = vld [vmem:[#allocation6 + $0x44] sm:$0xf]  ;;  %10936 = vmatprep.mubr.bf16.mxu0 %v14651_v33 }
 0x5af   : > { %8442 = vst [vmem:[#allocation2 + $0x154] sm:$0xf] %v8336_v36  ;;  %8666 = vst [vmem:[#allocation2 + $0x134] sm:$0xf] %v8558_v39  ;;  %v8338_v10 = vrot.slane %v8253_v29, 5  ;;  %v8341_v56 = vrot.slane %v8254_v12, 5 }
 0x5b0   : > { %v8479_v0 = vld [vmem:[#allocation6 + $0x48] sm:$0xf]  ;;  %v8561_v38 = vsel %vm16909_vm10, %v8559_v18, %v8560_v15  ;;  %v8562_v50 = vrot.slane %v8560_v15, 4  ;;  %v8563_v3 = vrot.slane %v8478_v46, 6  ;;  %v8255_v31 = vld [vmem:[#allocation6 + $0x4c] sm:$0xf] }
 0x5b1   : > { %8667 = vst [vmem:[#allocation2 + $0x158] sm:$0xf] %v8561_v38  ;;  %v8339_v42 = vsel %vm15151_vm5, %v8337_v16, %v8338_v10  ;;  %v8340_v55 = vrot.slane %v8338_v10, 4  ;;  %v8566_v25 = vrot.slane %v8479_v0, 6  ;;  %v8256_v2 = vld [vmem:[#allocation6 + $0x50] sm:$0xf] }
 0x5b2   : > { %8443 = vst [vmem:[#allocation2 + $0x178] sm:$0xf] %v8339_v42  ;;  %v8564_v8 = vsel %vm16909_vm10, %v8562_v50, %v8563_v3  ;;  %v8565_v43 = vrot.slane %v8563_v3, 4  ;;  %v8343_v4 = vrot.slane %v8341_v56, 4  ;;  %v8344_v6 = vrot.slane %v8255_v31, 5 }
 0x5b3   : > { %v8342_v27 = vsel %vm15151_vm5, %v8340_v55, %v8341_v56  ;;  %8668 = vst [vmem:[#allocation2 + $0x17c] sm:$0xf] %v8564_v8  ;;  %v8347_v22 = vrot.slane %v8256_v2, 5  ;;  %v8480_v1 = vld [vmem:[#allocation6 + $0x4c] sm:$0xf]  ;;  %v8568_v61 = vrot.slane %v8566_v25, 4 }
 0x5b4   : > { %8444 = vst [vmem:[#allocation2 + $0x19c] sm:$0xf] %v8342_v27  ;;  %v8567_v32 = vsel %vm16909_vm10, %v8565_v43, %v8566_v25  ;;  %v8481_v53 = vld [vmem:[#allocation6 + $0x50] sm:$0xf]  ;;  %v8569_v52 = vrot.slane %v8480_v1, 6  ;;  %v8345_v13 = vsel %vm15151_vm5, %v8343_v4, %v8344_v6  ;;  %v8346_v19 = vrot.slane %v8344_v6, 4 }
 0x5b5   : > { %v8257_v57 = vld [vmem:[#allocation6 + $0x54] sm:$0xf]  ;;  %v14653_v30 = vld [vmem:[#allocation2 + $0x200] ss:$36 sps:$4 sm:$0xff]   ;;  %v14654_v58 = vld [vmem:[#allocation2 + $0x24c] ss:$36 sps:$4 sm:$0xff]  }
 0x5b6   : > { %8669 = vst [vmem:[#allocation2 + $0x1a0] sm:$0xf] %v8567_v32  ;;  %8445 = vst [vmem:[#allocation2 + $0x1c0] sm:$0xf] %v8345_v13  ;;  %v8570_v20 = vsel %vm16909_vm10, %v8568_v61, %v8569_v52  ;;  %v8571_v54 = vrot.slane %v8569_v52, 4  ;;  %v8572_v11 = vrot.slane %v8481_v53, 6  ;;  %10937 = vmatmul.mubr.bf16.gmra.mrb[248].mxu0 %v14653_v30  ;;  %v8348_v5 = vsel %vm15151_vm5, %v8346_v19, %v8347_v22 }
 0x5b7   : > { %v8258_v62 = vld [vmem:[#allocation6 + $0x58] sm:$0xf]  ;;  %v8349_v63 = vrot.slane %v8347_v22, 4  ;;  %8670 = vst [vmem:[#allocation2 + $0x1c4] sm:$0xf] %v8570_v20  ;;  %v8350_v21 = vrot.slane %v8257_v57, 5  ;;  %10944 = vmatprep.mubr.bf16.mxu0 %v14654_v58 }
 0x5b8   : > { %v8353_v44 = vrot.slane %v8258_v62, 5  ;;  %v8482_v51 = vld [vmem:[#allocation6 + $0x54] sm:$0xf]  ;;  %v8483_v45 = vld [vmem:[#allocation6 + $0x58] sm:$0xf]  ;;  %v8573_v7 = vsel %vm16909_vm10, %v8571_v54, %v8572_v11  ;;  %v8574_v24 = vrot.slane %v8572_v11, 4 }
 0x5b9   : > { %8446 = vst [vmem:[#allocation2 + $0x1e4] sm:$0xf] %v8348_v5  ;;  %8671 = vst [vmem:[#allocation2 + $0x1e8] sm:$0xf] %v8573_v7  ;;  %v8351_v28 = vsel %vm15151_vm5, %v8349_v63, %v8350_v21  ;;  %v8352_v37 = vrot.slane %v8350_v21, 4  ;;  %v8575_v60 = vrot.slane %v8482_v51, 6 }
 0x5ba   : > { %v8578_v14 = vrot.slane %v8483_v45, 6  ;;  %v8259_v59 = vld [vmem:[#allocation6 + $0x5c] sm:$0xf]  ;;  %8447 = vst [vmem:[#allocation2 + $0x208] sm:$0xf] %v8351_v28  ;;  %v8355_v9 = vrot.slane %v8353_v44, 4 }
 0x5bb   : > { %v8260_v34 = vld [vmem:[#allocation6 + $0x60] sm:$0xf]  ;;  %v8356_v49 = vrot.slane %v8259_v59, 5  ;;  %v8354_v41 = vsel %vm15151_vm5, %v8352_v37, %v8353_v44  ;;  %v8576_v17 = vsel %vm16909_vm10, %v8574_v24, %v8575_v60  ;;  %v8577_v47 = vrot.slane %v8575_v60, 4  ;;  %v8484_v48 = vld [vmem:[#allocation6 + $0x5c] sm:$0xf] }
 0x5bc   : > { %v8359_v35 = vrot.slane %v8260_v34, 5  ;;  %v8485_v15 = vld [vmem:[#allocation6 + $0x60] sm:$0xf]  ;;  %v14657_v29 = vld [vmem:[#allocation2 + $0x248] ss:$36 sps:$4 sm:$0xff]   ;;  %v8580_v18 = vrot.slane %v8578_v14, 4 }
 0x5bd   : > { %v14661_v12 = vld [vmem:[#allocation2 + $0x294] ss:$36 sps:$4 sm:$0xff]   ;;  %8448 = vst [vmem:[#allocation2 + $0x22c] sm:$0xf] %v8354_v41  ;;  %8672 = vst [vmem:[#allocation2 + $0x20c] sm:$0xf] %v8576_v17  ;;  %v8357_v33 = vsel %vm15151_vm5, %v8355_v9, %v8356_v49  ;;  %v8579_v39 = vsel %vm16909_vm10, %v8577_v47, %v8578_v14 }
 0x5be   : > { %v8358_v36 = vrot.slane %v8356_v49, 4  ;;  %8449 = vst [vmem:[#allocation2 + $0x250] sm:$0xf] %v8357_v33  ;;  %v8581_v16 = vrot.slane %v8484_v48, 6  ;;  %v8584_v46 = vrot.slane %v8485_v15, 6  ;;  %v8361_v56 = vrot.slane %v8359_v35, 4  ;;  %10945 = vmatmul.mubr.bf16.gmra.mrb[252].mxu0 %v14657_v29 }
 0x5bf   : > { %v8261_v10 = vld [vmem:[#allocation6 + $0x64] sm:$0xf]  ;;  %8673 = vst [vmem:[#allocation2 + $0x230] sm:$0xf] %v8579_v39  ;;  %v8262_v38 = vld [vmem:[#allocation6 + $0x68] sm:$0xf]  ;;  %10952 = vmatprep.mubr.bf16.mxu0 %v14661_v12 }
 0x5c0   : > { %v8360_v0 = vsel %vm15151_vm5, %v8358_v36, %v8359_v35  ;;  %v8362_v50 = vrot.slane %v8261_v10, 5  ;;  %v8582_v3 = vsel %vm16909_vm10, %v8580_v18, %v8581_v16  ;;  %v8583_v31 = vrot.slane %v8581_v16, 4  ;;  %v8486_v55 = vld [vmem:[#allocation6 + $0x64] sm:$0xf]  ;;  %v8487_v8 = vld [vmem:[#allocation6 + $0x68] sm:$0xf] }
 0x5c1   : > { %8450 = vst [vmem:[#allocation2 + $0x274] sm:$0xf] %v8360_v0  ;;  %v8365_v42 = vrot.slane %v8262_v38, 5  ;;  %8674 = vst [vmem:[#allocation2 + $0x254] sm:$0xf] %v8582_v3  ;;  %v8586_v4 = vrot.slane %v8584_v46, 4 }
 0x5c2   : > { %v8363_v43 = vsel %vm15151_vm5, %v8361_v56, %v8362_v50  ;;  %v8364_v25 = vrot.slane %v8362_v50, 4  ;;  %v8585_v2 = vsel %vm16909_vm10, %v8583_v31, %v8584_v46  ;;  %v8587_v27 = vrot.slane %v8486_v55, 6  ;;  %v8263_v1 = vld [vmem:[#allocation6 + $0x6c] sm:$0xf]  ;;  %v8264_v32 = vld [vmem:[#allocation6 + $0x70] sm:$0xf] }
 0x5c3   : > { %8451 = vst [vmem:[#allocation2 + $0x298] sm:$0xf] %v8363_v43  ;;  %v8590_v6 = vrot.slane %v8487_v8, 6  ;;  %8675 = vst [vmem:[#allocation2 + $0x278] sm:$0xf] %v8585_v2  ;;  %v8367_v53 = vrot.slane %v8365_v42, 4 }
 0x5c4   : > { %v8366_v22 = vsel %vm15151_vm5, %v8364_v25, %v8365_v42  ;;  %v8588_v61 = vsel %vm16909_vm10, %v8586_v4, %v8587_v27  ;;  %v8589_v52 = vrot.slane %v8587_v27, 4  ;;  %v8368_v57 = vrot.slane %v8263_v1, 5  ;;  %v8488_v58 = vld [vmem:[#allocation6 + $0x6c] sm:$0xf]  ;;  %v8489_v13 = vld [vmem:[#allocation6 + $0x70] sm:$0xf] }
 0x5c5   : > { %8452 = vst [vmem:[#allocation2 + $0x2bc] sm:$0xf] %v8366_v22  ;;  %v8371_v30 = vrot.slane %v8264_v32, 5  ;;  %8676 = vst [vmem:[#allocation2 + $0x29c] sm:$0xf] %v8588_v61  ;;  %v8592_v19 = vrot.slane %v8590_v6, 4 }
 0x5c6   : > { %v8593_v20 = vrot.slane %v8488_v58, 6  ;;  %v8265_v54 = vld [vmem:[#allocation6 + $0x74] sm:$0xf]  ;;  %v14659_v11 = vld [vmem:[#allocation2 + $0x290] ss:$36 sps:$4 sm:$0xff]   ;;  %v8591_v63 = vsel %vm16909_vm10, %v8589_v52, %v8590_v6  ;;  %v8369_v5 = vsel %vm15151_vm5, %v8367_v53, %v8368_v57  ;;  %v8370_v21 = vrot.slane %v8368_v57, 4 }
 0x5c7   : > { %v14664_v62 = vld [vmem:[#allocation2 + $0x2dc] ss:$36 sps:$4 sm:$0xff]   ;;  %8677 = vst [vmem:[#allocation2 + $0x2c0] sm:$0xf] %v8591_v63  ;;  %8453 = vst [vmem:[#allocation2 + $0x2e0] sm:$0xf] %v8369_v5  ;;  %10953 = vmatmul.mubr.bf16.gmra.mrb[0].mxu0 %v14659_v11 }
 0x5c8   : > { %v8594_v44 = vsel %vm16909_vm10, %v8592_v19, %v8593_v20  ;;  %v8595_v51 = vrot.slane %v8593_v20, 4  ;;  %v8596_v45 = vrot.slane %v8489_v13, 6  ;;  %v8266_v7 = vld [vmem:[#allocation6 + $0x78] sm:$0xf]  ;;  %v8373_v24 = vrot.slane %v8371_v30, 4  ;;  %10960 = vmatprep.mubr.bf16.mxu0 %v14664_v62  ;;  %v13100_v53 = vpop.f32.mrb[156].mxu0 }
 0x5c9   : > { %v8372_v28 = vsel %vm15151_vm5, %v8370_v21, %v8371_v30  ;;  %8678 = vst [vmem:[#allocation2 + $0x2e4] sm:$0xf] %v8594_v44  ;;  %v8374_v37 = vrot.slane %v8265_v54, 5  ;;  %v8377_v60 = vrot.slane %v8266_v7, 5  ;;  %v8490_v14 = vld [vmem:[#allocation6 + $0x74] sm:$0xf] }
 0x5ca   : > { %8454 = vst [vmem:[#allocation2 + $0x304] sm:$0xf] %v8372_v28  ;;  %v8597_v59 = vsel %vm16909_vm10, %v8595_v51, %v8596_v45  ;;  %v8491_v34 = vld [vmem:[#allocation6 + $0x78] sm:$0xf]  ;;  %v8598_v9 = vrot.slane %v8596_v45, 4  ;;  %v8599_v49 = vrot.slane %v8490_v14, 6 }
 0x5cb   : > { %v8267_v41 = vld [vmem:[#allocation6 + $0x7c] sm:$0xf]  ;;  %8679 = vst [vmem:[#allocation2 + $0x308] sm:$0xf] %v8597_v59  ;;  %v8375_v17 = vsel %vm15151_vm5, %v8373_v24, %v8374_v37  ;;  %v8376_v47 = vrot.slane %v8374_v37, 4  ;;  %v8602_v15 = vrot.slane %v8491_v34, 6 }
 0x5cc   : > { %8455 = vst [vmem:[#allocation2 + $0x328] sm:$0xf] %v8375_v17  ;;  %v8600_v35 = vsel %vm16909_vm10, %v8598_v9, %v8599_v49  ;;  %v8601_v48 = vrot.slane %v8599_v49, 4  ;;  %v8268_v29 = vld [vmem:[#allocation6 + $0x80] sm:$0xf]  ;;  %v8379_v12 = vrot.slane %v8377_v60, 4 }
 0x5cd   : > { %v8378_v33 = vsel %vm15151_vm5, %v8376_v47, %v8377_v60  ;;  %8680 = vst [vmem:[#allocation2 + $0x32c] sm:$0xf] %v8600_v35  ;;  %v8380_v36 = vrot.slane %v8267_v41, 5  ;;  %v8383_v39 = vrot.slane %v8268_v29, 5  ;;  %v8492_v18 = vld [vmem:[#allocation6 + $0x7c] sm:$0xf] }
 0x5ce   : > { %8456 = vst [vmem:[#allocation2 + $0x34c] sm:$0xf] %v8378_v33  ;;  %v8603_v16 = vsel %vm16909_vm10, %v8601_v48, %v8602_v15  ;;  %v8493_v46 = vld [vmem:[#allocation6 + $0x80] sm:$0xf]  ;;  %v8604_v10 = vrot.slane %v8602_v15, 4  ;;  %v8605_v0 = vrot.slane %v8492_v18, 6 }
 0x5cf   : > { %v8269_v38 = vld [vmem:[#allocation6 + $0x84] sm:$0xf]  ;;  %v14662_v56 = vld [vmem:[#allocation2 + $0x2d8] ss:$36 sps:$4 sm:$0xff]   ;;  %8681 = vst [vmem:[#allocation2 + $0x350] sm:$0xf] %v8603_v16  ;;  %v8381_v3 = vsel %vm15151_vm5, %v8379_v12, %v8380_v36 }
 0x5d0   : > { %v14669_v50 = vld [vmem:[#allocation2 + $0x324] ss:$36 sps:$4 sm:$0xff]   ;;  %v8382_v31 = vrot.slane %v8380_v36, 4  ;;  %8457 = vst [vmem:[#allocation2 + $0x370] sm:$0xf] %v8381_v3  ;;  %v8606_v42 = vsel %vm16909_vm10, %v8604_v10, %v8605_v0  ;;  %v8607_v55 = vrot.slane %v8605_v0, 4  ;;  %10961 = vmatmul.mubr.bf16.gmra.mrb[4].mxu0 %v14662_v56 }
 0x5d1   : > { %v8608_v8 = vrot.slane %v8493_v46, 6  ;;  %v8270_v43 = vld [vmem:[#allocation6 + $0x88] sm:$0xf]  ;;  %v8385_v25 = vrot.slane %v8383_v39, 4  ;;  %8682 = vst [vmem:[#allocation2 + $0x374] sm:$0xf] %v8606_v42  ;;  %10968 = vmatprep.mubr.bf16.mxu0 %v14669_v50 }
 0x5d2   : > { %v8384_v2 = vsel %vm15151_vm5, %v8382_v31, %v8383_v39  ;;  %v8386_v4 = vrot.slane %v8269_v38, 5  ;;  %v8389_v27 = vrot.slane %v8270_v43, 5  ;;  %v8494_v6 = vld [vmem:[#allocation6 + $0x84] sm:$0xf]  ;;  %v8495_v22 = vld [vmem:[#allocation6 + $0x88] sm:$0xf] }
 0x5d3   : > { %8458 = vst [vmem:[#allocation2 + $0x394] sm:$0xf] %v8384_v2  ;;  %v8609_v1 = vsel %vm16909_vm10, %v8607_v55, %v8608_v8  ;;  %v8610_v32 = vrot.slane %v8608_v8, 4  ;;  %v8611_v57 = vrot.slane %v8494_v6, 6  ;;  %v8614_v30 = vrot.slane %v8495_v22, 6  ;;  %v13101_v58 = vpop.f32.mrb[157].mxu0 }
 0x5d4   : > { %8683 = vst [vmem:[#allocation2 + $0x398] sm:$0xf] %v8609_v1  ;;  %v8387_v61 = vsel %vm15151_vm5, %v8385_v25, %v8386_v4  ;;  %v8388_v52 = vrot.slane %v8386_v4, 4  ;;  %v8271_v13 = vld [vmem:[#allocation6 + $0x8c] sm:$0xf]  ;;  %v17663_v20 = vadd.f32 %v13101_v58, %v13100_v53  ;;  %v13103_v54 = vpop.f32.mrb[158].mxu0 }
 0x5d5   : > { %8459 = vst [vmem:[#allocation2 + $0x3b8] sm:$0xf] %v8387_v61  ;;  %v14667_v19 = vld [vmem:[#allocation2 + $0x320] ss:$36 sps:$4 sm:$0xff]   ;;  %v8612_v62 = vsel %vm16909_vm10, %v8610_v32, %v8611_v57  ;;  %v8613_v63 = vrot.slane %v8611_v57, 4  ;;  %v13104_v44 = vpop.f32.mrb[159].mxu0 }
 0x5d6   : > { %v8390_v11 = vsel %vm15151_vm5, %v8388_v52, %v8389_v27  ;;  %v8272_v5 = vld [vmem:[#allocation6 + $0x90] sm:$0xf]  ;;  %v8496_v21 = vld [vmem:[#allocation6 + $0x8c] sm:$0xf]  ;;  %8684 = vst [vmem:[#allocation2 + $0x3bc] sm:$0xf] %v8612_v62  ;;  %v17669_v7 = vadd.f32 %v13104_v44, %v13103_v54 }
 0x5d7   : > { %v14672_v51 = vld [vmem:[#allocation2 + $0x36c] ss:$36 sps:$4 sm:$0xff]   ;;  %8460 = vst [vmem:[#allocation2 + $0x3dc] sm:$0xf] %v8390_v11  ;;  %v8497_v45 = vld [vmem:[#allocation6 + $0x90] sm:$0xf]  ;;  %v8615_v24 = vsel %vm16909_vm10, %v8613_v63, %v8614_v30 }
 0x5d8   : > { %v8391_v28 = vrot.slane %v8389_v27, 4  ;;  %v8273_v37 = vld [vmem:[#allocation6 + $0x94] sm:$0x7]  ;;  %8685 = vst [vmem:[#allocation2 + $0x3e0] sm:$0xf] %v8615_v24  ;;  %v8392_v14 = vrot.slane %v8271_v13, 5  ;;  %10969 = vmatmul.mubr.bf16.gmra.mrb[8].mxu0 %v14667_v19 }
 0x5d9   : > { %v8498_v60 = vld [vmem:[#allocation6 + $0x94] sm:$0xf]  ;;  %v8395_v59 = vrot.slane %v8272_v5, 5  ;;  %v8616_v34 = vrot.slane %v8614_v30, 4  ;;  %v8617_v9 = vrot.slane %v8496_v21, 6  ;;  %v8620_v49 = vrot.slane %v8497_v45, 6  ;;  %10976 = vmatprep.mubr.bf16.mxu0 %v14672_v51 }
 0x5da   : > { %v8398_v41 = vrot.slane %v8273_v37, 5  ;;  %v8623_v17 = vrot.slane %v8498_v60, 6  ;;  %v8692_v47 = vld [vmem:[#allocation6 + $0x30] sm:$0xf]  ;;  %v8393_v35 = vsel %vm15151_vm5, %v8391_v28, %v8392_v14  ;;  %v8394_v48 = vrot.slane %v8392_v14, 4  ;;  %v13106_v12 = vpop.f32.mrb[160].mxu0 }
 0x5db   : > { %v8618_v15 = vsel %vm16909_vm10, %v8616_v34, %v8617_v9  ;;  %v8464_v29 = vld [vmem:[#allocation2 + $0x46c] sm:$0x3]  ;;  %8724 = vst [vmem:[#allocation2 + $0x18] sm:$0xf] %v8692_v47  ;;  %8461 = vst [vmem:[#allocation2 + $0x400] sm:$0xf] %v8393_v35 }
 0x5dc   : > { %v8619_v33 = vrot.slane %v8617_v9, 4  ;;  %8686 = vst [vmem:[#allocation2 + $0x404] sm:$0xf] %v8618_v15  ;;  %v8397_v36 = vrot.slane %v8395_v59, 4  ;;  %v8400_v39 = vrot.slane %v8398_v41, 4  ;;  %v8622_v18 = vrot.slane %v8620_v49, 4 }
 0x5dd   : > { %v8689_v16 = vld [vmem:[#allocation2 + $0x470] sm:$0x3]  ;;  %v13107_v46 = vpop.f32.mrb[161].mxu0  ;;  %v8396_v10 = vsel %vm15151_vm5, %v8394_v48, %v8395_v59  ;;  %v8625_v0 = vrot.slane %v8623_v17, 4  ;;  %v8693_v38 = vld [vmem:[#allocation6 + $0x34] sm:$0xf] }
 0x5de   : > { %v8758_v56 = vld [vmem:[#allocation6 + $0x30] sm:$0xe]  ;;  %v17679_v50 = vadd.f32 %v13107_v46, %v13106_v12  ;;  %v13109_v3 = vpop.f32.mrb[162].mxu0  ;;  %8462 = vst [vmem:[#allocation2 + $0x424] sm:$0xf] %v8396_v10  ;;  %v8621_v31 = vsel %vm16909_vm10, %v8619_v33, %v8620_v49  ;;  %v8399_v42 = vsel %vm15151_vm5, %v8397_v36, %v8398_v41  ;;  %v8465_v55 = vsel %vm17349_vm12, %v8400_v39, %v8464_v29 }
 0x5df   : > { %8725 = vst [vmem:[#allocation2 + $0x3c] sm:$0xf] %v8693_v38  ;;  %v8759_v8 = vld [vmem:[#allocation6 + $0x34] sm:$0xf]  ;;  %v8760_v43 = vld [vmem:[#allocation6 + $0x38] sm:$0xf]  ;;  %v8624_v2 = vsel %vm16909_vm10, %v8622_v18, %v8623_v17  ;;  %v8690_v4 = vsel %vm17349_vm12, %v8625_v0, %v8689_v16 }
 0x5e0   : > { %v13110_v25 = vpop.f32.mrb[163].mxu0  ;;  %8687 = vst [vmem:[#allocation2 + $0x428] sm:$0xf] %v8621_v31  ;;  %8463 = vst [vmem:[#allocation2 + $0x448] sm:$0xf] %v8399_v42  ;;  %v12608_v27 = vrot.slane %v8758_v56, 9 }
 0x5e1   : > { %8466 = vst [vmem:[#allocation2 + $0x46c] sm:$0x3] %v8465_v55  ;;  %v8824_v6 = vrot.slane %v8759_v8, 5  ;;  %v8694_v22 = vld [vmem:[#allocation6 + $0x38] sm:$0xf]  ;;  %v17691_v32 = vadd.f32 %v13110_v25, %v13109_v3  ;;  %v8827_v61 = vrot.slane %v8760_v43, 5 }
 0x5e2   : > { %v14670_v1 = vld [vmem:[#allocation2 + $0x368] ss:$36 sps:$4 sm:$0xff]   ;;  %v14677_v53 = vld [vmem:[#allocation2 + $0x3b4] ss:$36 sps:$4 sm:$0xff]   ;;  %8688 = vst [vmem:[#allocation2 + $0x44c] sm:$0xf] %v8624_v2 }
 0x5e3   : > { %8691 = vst [vmem:[#allocation2 + $0x470] sm:$0x3] %v8690_v4  ;;  %8726 = vst [vmem:[#allocation2 + $0x60] sm:$0xf] %v8694_v22  ;;  %v8825_v52 = vsel %vm15151_vm5, %v12608_v27, %v8824_v6  ;;  %v8826_v57 = vrot.slane %v8824_v6, 4  ;;  %10977 = vmatmul.mubr.bf16.gmra.mrb[12].mxu0 %v14670_v1  ;;  %v8829_v13 = vrot.slane %v8827_v61, 4 }
 0x5e4   : > { %v8695_v40 = vld [vmem:[#allocation6 + $0x3c] sm:$0xf]  ;;  %8949 = vst [vmem:[#allocation2 + $0x1c] sm:$0xf] %v8825_v52  ;;  %v8762_v58 = vld [vmem:[#allocation6 + $0x40] sm:$0xf]  ;;  %10984 = vmatprep.mubr.bf16.mxu0 %v14677_v53 }
 0x5e5   : > { %v8761_v30 = vld [vmem:[#allocation6 + $0x3c] sm:$0xf]  ;;  %8727 = vst [vmem:[#allocation2 + $0x84] sm:$0xf] %v8695_v40  ;;  %v8696_v54 = vld [vmem:[#allocation6 + $0x40] sm:$0xf]  ;;  %v8828_v11 = vsel %vm15151_vm5, %v8826_v57, %v8827_v61 }
 0x5e6   : > { %v8830_v19 = vrot.slane %v8761_v30, 5  ;;  %v8833_v62 = vrot.slane %v8762_v58, 5  ;;  %8728 = vst [vmem:[#allocation2 + $0xa8] sm:$0xf] %v8696_v54  ;;  %v13112_v63 = vpop.f32.mrb[164].mxu0 }
 0x5e7   : > { %8950 = vst [vmem:[#allocation2 + $0x40] sm:$0xf] %v8828_v11  ;;  %v8697_v44 = vld [vmem:[#allocation6 + $0x44] sm:$0xf]  ;;  %v13113_v45 = vpop.f32.mrb[165].mxu0 }
 0x5e8   : > { %v8831_v5 = vsel %vm15151_vm5, %v8829_v13, %v8830_v19  ;;  %v8832_v21 = vrot.slane %v8830_v19, 4  ;;  %v8763_v51 = vld [vmem:[#allocation6 + $0x44] sm:$0xf]  ;;  %8729 = vst [vmem:[#allocation2 + $0xcc] sm:$0xf] %v8697_v44  ;;  %v8835_v28 = vrot.slane %v8833_v62, 4  ;;  %v17699_v60 = vadd.f32 %v13113_v45, %v13112_v63 }
 0x5e9   : > { %8951 = vst [vmem:[#allocation2 + $0x64] sm:$0xf] %v8831_v5  ;;  %v8764_v24 = vld [vmem:[#allocation6 + $0x48] sm:$0xf]  ;;  %v8836_v37 = vrot.slane %v8763_v51, 5  ;;  %v13115_v14 = vpop.f32.mrb[166].mxu0 }
 0x5ea   : > { %v8834_v59 = vsel %vm15151_vm5, %v8832_v21, %v8833_v62  ;;  %v13116_v34 = vpop.f32.mrb[167].mxu0  ;;  %v8839_v41 = vrot.slane %v8764_v24, 5  ;;  %v14675_v17 = vld [vmem:[#allocation2 + $0x3b0] ss:$36 sps:$4 sm:$0xff]   ;;  %v14680_v35 = vld [vmem:[#allocation2 + $0x3fc] ss:$36 sps:$4 sm:$0xff]  }
 0x5eb   : > { %8952 = vst [vmem:[#allocation2 + $0x88] sm:$0xf] %v8834_v59  ;;  %v8837_v9 = vsel %vm15151_vm5, %v8835_v28, %v8836_v37  ;;  %v8838_v49 = vrot.slane %v8836_v37, 4  ;;  %v17705_v47 = vadd.f32 %v13116_v34, %v13115_v14  ;;  %v8698_v15 = vld [vmem:[#allocation6 + $0x48] sm:$0xf]  ;;  %10985 = vmatmul.mubr.bf16.gmra.mrb[16].mxu0 %v14675_v17  ;;  %v13118_v16 = vpop.f32.mrb[168].mxu0 }
 0x5ec   : > { %8953 = vst [vmem:[#allocation2 + $0xac] sm:$0xf] %v8837_v9  ;;  %v8699_v29 = vld [vmem:[#allocation6 + $0x4c] sm:$0xf]  ;;  %v8841_v12 = vrot.slane %v8839_v41, 4  ;;  %10992 = vmatprep.mubr.bf16.mxu0 %v14680_v35  ;;  %v13119_v0 = vpop.f32.mrb[169].mxu0 }
 0x5ed   : > { %v8840_v48 = vsel %vm15151_vm5, %v8838_v49, %v8839_v41  ;;  %8730 = vst [vmem:[#allocation2 + $0xf0] sm:$0xf] %v8698_v15  ;;  %8731 = vst [vmem:[#allocation2 + $0x114] sm:$0xf] %v8699_v29  ;;  %v8765_v33 = vld [vmem:[#allocation6 + $0x4c] sm:$0xf]  ;;  %v17711_v55 = vadd.f32 %v13119_v0, %v13118_v16 }
 0x5ee   : > { %8954 = vst [vmem:[#allocation2 + $0xd0] sm:$0xf] %v8840_v48  ;;  %v8766_v36 = vld [vmem:[#allocation6 + $0x50] sm:$0xf]  ;;  %v8842_v18 = vrot.slane %v8765_v33, 5  ;;  %v13121_v8 = vpop.f32.mrb[170].mxu0 }
 0x5ef   : > { %v8700_v39 = vld [vmem:[#allocation6 + $0x50] sm:$0xf]  ;;  %v8845_v46 = vrot.slane %v8766_v36, 5  ;;  %v8701_v10 = vld [vmem:[#allocation6 + $0x54] sm:$0xf]  ;;  %v13122_v43 = vpop.f32.mrb[171].mxu0 }
 0x5f0   : > { %8732 = vst [vmem:[#allocation2 + $0x138] sm:$0xf] %v8700_v39  ;;  %v8843_v38 = vsel %vm15151_vm5, %v8841_v12, %v8842_v18  ;;  %v8844_v56 = vrot.slane %v8842_v18, 4  ;;  %8733 = vst [vmem:[#allocation2 + $0x15c] sm:$0xf] %v8701_v10  ;;  %v17715_v6 = vadd.f32 %v13122_v43, %v13121_v8  ;;  %v13124_v62 = vpop.f32.mrb[172].mxu0 }
 0x5f1   : > { %v8767_v3 = vld [vmem:[#allocation6 + $0x54] sm:$0xf]  ;;  %v8768_v31 = vld [vmem:[#allocation6 + $0x58] sm:$0xf]  ;;  %8955 = vst [vmem:[#allocation2 + $0xf4] sm:$0xf] %v8843_v38 }
 0x5f2   : > { %v14678_v42 = vld [vmem:[#allocation2 + $0x3f8] ss:$36 sps:$4 sm:$0xff]   ;;  %v8846_v25 = vsel %vm15151_vm5, %v8844_v56, %v8845_v46  ;;  %v8847_v2 = vrot.slane %v8845_v46, 4  ;;  %v8848_v4 = vrot.slane %v8767_v3, 5  ;;  %v8851_v27 = vrot.slane %v8768_v31, 5  ;;  %v13125_v51 = vpop.f32.mrb[173].mxu0 }
 0x5f3   : > { %8956 = vst [vmem:[#allocation2 + $0x118] sm:$0xf] %v8846_v25  ;;  %v8702_v22 = vld [vmem:[#allocation6 + $0x58] sm:$0xf]  ;;  %v8703_v1 = vld [vmem:[#allocation6 + $0x5c] sm:$0xf]  ;;  %10993 = vmatmul.mubr.bf16.gmra.mrb[20].mxu0 %v14678_v42  ;;  %v17723_v14 = vadd.f32 %v13125_v51, %v13124_v62 }
 0x5f4   : > { %v8769_v53 = vld [vmem:[#allocation6 + $0x5c] sm:$0xf]  ;;  %v14685_v61 = vld [vmem:[#allocation2 + $0x444] ss:$36 sps:$4 sm:$0x3f]   ;;  %v8849_v52 = vsel %vm15151_vm5, %v8847_v2, %v8848_v4  ;;  %v8850_v57 = vrot.slane %v8848_v4, 4 }
 0x5f5   : > { %8734 = vst [vmem:[#allocation2 + $0x180] sm:$0xf] %v8702_v22  ;;  %8735 = vst [vmem:[#allocation2 + $0x1a4] sm:$0xf] %v8703_v1  ;;  %v8770_v40 = vld [vmem:[#allocation6 + $0x60] sm:$0xf]  ;;  %11000 = vmatprep.mubr.bf16.mxu0 %v14685_v61 }
 0x5f6   : > { %8957 = vst [vmem:[#allocation2 + $0x13c] sm:$0xf] %v8849_v52  ;;  %v8853_v30 = vrot.slane %v8851_v27, 4  ;;  %v8854_v58 = vrot.slane %v8769_v53, 5  ;;  %v8704_v13 = vld [vmem:[#allocation6 + $0x60] sm:$0xf]  ;;  %v8852_v19 = vsel %vm15151_vm5, %v8850_v57, %v8851_v27 }
 0x5f7   : > { %v8857_v54 = vrot.slane %v8770_v40, 5  ;;  %v8705_v11 = vld [vmem:[#allocation6 + $0x64] sm:$0xf]  ;;  %8736 = vst [vmem:[#allocation2 + $0x1c8] sm:$0xf] %v8704_v13  ;;  %v13127_v59 = vpop.f32.mrb[174].mxu0 }
 0x5f8   : > { %8958 = vst [vmem:[#allocation2 + $0x160] sm:$0xf] %v8852_v19  ;;  %v8855_v63 = vsel %vm15151_vm5, %v8853_v30, %v8854_v58  ;;  %v8856_v5 = vrot.slane %v8854_v58, 4  ;;  %8737 = vst [vmem:[#allocation2 + $0x1ec] sm:$0xf] %v8705_v11  ;;  %v13128_v41 = vpop.f32.mrb[175].mxu0 }
 0x5f9   : > { %v8771_v21 = vld [vmem:[#allocation6 + $0x64] sm:$0xf]  ;;  %v8772_v44 = vld [vmem:[#allocation6 + $0x68] sm:$0xf]  ;;  %8959 = vst [vmem:[#allocation2 + $0x184] sm:$0xf] %v8855_v63  ;;  %v17729_v48 = vadd.f32 %v13128_v41, %v13127_v59 }
 0x5fa   : > { %v8859_v45 = vrot.slane %v8857_v54, 4  ;;  %v8860_v24 = vrot.slane %v8771_v21, 5  ;;  %v8863_v28 = vrot.slane %v8772_v44, 5  ;;  %v14683_v37 = vld [vmem:[#allocation2 + $0x440] ss:$36 sps:$4 sm:$0x3f]   ;;  %v8858_v34 = vsel %vm15151_vm5, %v8856_v5, %v8857_v54 }
 0x5fb   : > { %v8706_v9 = vld [vmem:[#allocation6 + $0x68] sm:$0xf]  ;;  %v8707_v49 = vld [vmem:[#allocation6 + $0x6c] sm:$0xf]  ;;  %v14688_v17 = vld [vmem:[#allocation2 + $0x14] ss:$36 sps:$4 sm:$0xff]   ;;  %11001 = vmatmul.mubr.bf16.gmra.mrb[24].mxu0 %v14683_v37 }
 0x5fc   : > { %8960 = vst [vmem:[#allocation2 + $0x1a8] sm:$0xf] %v8858_v34  ;;  %v8861_v35 = vsel %vm15151_vm5, %v8859_v45, %v8860_v24  ;;  %8738 = vst [vmem:[#allocation2 + $0x210] sm:$0xf] %v8706_v9  ;;  %v8862_v15 = vrot.slane %v8860_v24, 4  ;;  %v8865_v33 = vrot.slane %v8863_v28, 4  ;;  %11041 = vmatprep.mubr.bf16.mxu0 %v14688_v17 }
 0x5fd   : > { %8739 = vst [vmem:[#allocation2 + $0x234] sm:$0xf] %v8707_v49  ;;  %8961 = vst [vmem:[#allocation2 + $0x1cc] sm:$0xf] %v8861_v35  ;;  %v8773_v29 = vld [vmem:[#allocation6 + $0x6c] sm:$0xf] }
 0x5fe   : > { %v8774_v12 = vld [vmem:[#allocation6 + $0x70] sm:$0xf]  ;;  %v8866_v36 = vrot.slane %v8773_v29, 5  ;;  %v8864_v16 = vsel %vm15151_vm5, %v8862_v15, %v8863_v28  ;;  %v8709_v46 = vld [vmem:[#allocation6 + $0x74] sm:$0xf]  ;;  %v13130_v3 = vpop.f32.mrb[176].mxu0 }
 0x5ff   : > { %v8869_v39 = vrot.slane %v8774_v12, 5  ;;  %v8708_v18 = vld [vmem:[#allocation6 + $0x70] sm:$0xf]  ;;  %v8775_v10 = vld [vmem:[#allocation6 + $0x74] sm:$0xf]  ;;  %v13131_v43 = vpop.f32.mrb[177].mxu0 }
 0x600   : > { %8740 = vst [vmem:[#allocation2 + $0x258] sm:$0xf] %v8708_v18  ;;  %v8776_v0 = vld [vmem:[#allocation6 + $0x78] sm:$0xf]  ;;  %8962 = vst [vmem:[#allocation2 + $0x1f0] sm:$0xf] %v8864_v16  ;;  %v8867_v38 = vsel %vm15151_vm5, %v8865_v33, %v8866_v36  ;;  %v17737_v22 = vadd.f32 %v13131_v43, %v13130_v3 }
 0x601   : > { %v8868_v56 = vrot.slane %v8866_v36, 4  ;;  %8741 = vst [vmem:[#allocation2 + $0x27c] sm:$0xf] %v8709_v46  ;;  %8963 = vst [vmem:[#allocation2 + $0x214] sm:$0xf] %v8867_v38  ;;  %v8871_v31 = vrot.slane %v8869_v39, 4 }
 0x602   : > { %v8872_v42 = vrot.slane %v8775_v10, 5  ;;  %v8875_v8 = vrot.slane %v8776_v0, 5  ;;  %v8710_v2 = vld [vmem:[#allocation6 + $0x78] sm:$0xf]  ;;  %v8711_v4 = vld [vmem:[#allocation6 + $0x7c] sm:$0xf] }
 0x603   : > { %v8870_v25 = vsel %vm15151_vm5, %v8868_v56, %v8869_v39  ;;  %v14686_v27 = vld [vmem:[#allocation2 + $0x10] ss:$36 sps:$4 sm:$0xff]   ;;  %v13133_v1 = vpop.f32.mrb[178].mxu0  ;;  %v14690_v53 = vld [vmem:[%s18428_s5 + $0x180] sm:$0xff]   ;;  %8742 = vst [vmem:[#allocation2 + $0x2a0] sm:$0xf] %v8710_v2 }
 0x604   : > { %8964 = vst [vmem:[#allocation2 + $0x238] sm:$0xf] %v8870_v25  ;;  %v8873_v61 = vsel %vm15151_vm5, %v8871_v31, %v8872_v42  ;;  %8743 = vst [vmem:[#allocation2 + $0x2c4] sm:$0xf] %v8711_v4  ;;  %v13134_v52 = vpop.f32.mrb[179].mxu0  ;;  %v8874_v40 = vrot.slane %v8872_v42, 4  ;;  %11042 = vmatmul.mubr.bf16.vlgmr.msra.gmra.mrb[28].mxu0 %v14686_v27 }
 0x605   : > { %v14693_v57 = vld [vmem:[#allocation2 + $0x5c] ss:$36 sps:$4 sm:$0xff]   ;;  %8965 = vst [vmem:[#allocation2 + $0x25c] sm:$0xf] %v8873_v61  ;;  %v8877_v58 = vrot.slane %v8875_v8, 4  ;;  %v17744_v13 = vadd.f32 %v13134_v52, %v13133_v1  ;;  %v14697_v19 = vld [vmem:[%s18428_s5 + $0x1c8] sm:$0xff]   ;;  %13421 = vmatpush3.bf16.msra.mxu0 %v14690_v53 }
 0x606   : > { %v8777_v30 = vld [vmem:[#allocation6 + $0x7c] sm:$0xf]  ;;  %v8778_v54 = vld [vmem:[#allocation6 + $0x80] sm:$0xf]  ;;  %v8876_v63 = vsel %vm15151_vm5, %v8874_v40, %v8875_v8  ;;  %v8713_v21 = vld [vmem:[#allocation6 + $0x84] sm:$0xf]  ;;  %11049 = vmatprep.mubr.bf16.mxu0 %v14693_v57  ;;  %13422 = vmatprep.subr.bf16.mxu0 %v14697_v19 }
 0x607   : > { %v8878_v11 = vrot.slane %v8777_v30, 5  ;;  %v8712_v62 = vld [vmem:[#allocation6 + $0x80] sm:$0xf]  ;;  %v8881_v5 = vrot.slane %v8778_v54, 5  ;;  %v8779_v44 = vld [vmem:[#allocation6 + $0x84] sm:$0xf] }
 0x608   : > { %8744 = vst [vmem:[#allocation2 + $0x2e8] sm:$0xf] %v8712_v62  ;;  %v14698_v51 = vld [vmem:[%s18428_s5 + $0x188] sm:$0xff]   ;;  %8966 = vst [vmem:[#allocation2 + $0x280] sm:$0xf] %v8876_v63  ;;  %v14705_v28 = vld [vmem:[%s18428_s5 + $0x1d0] sm:$0xff]  }
 0x609   : > { %v8879_v45 = vsel %vm15151_vm5, %v8877_v58, %v8878_v11  ;;  %v8880_v24 = vrot.slane %v8878_v11, 4  ;;  %8745 = vst [vmem:[#allocation2 + $0x30c] sm:$0xf] %v8713_v21  ;;  %v8780_v37 = vld [vmem:[#allocation6 + $0x88] sm:$0xf]  ;;  %v8883_v59 = vrot.slane %v8881_v5, 4  ;;  %13423 = vmatpush3.bf16.msra.mxu0 %v14698_v51 }
 0x60a   : > { %8967 = vst [vmem:[#allocation2 + $0x2a4] sm:$0xf] %v8879_v45  ;;  %v8884_v34 = vrot.slane %v8779_v44, 5  ;;  %v13136_v9 = vpop.f32.mrb[180].mxu0  ;;  %v8887_v41 = vrot.slane %v8780_v37, 5  ;;  %v14706_v29 = vld [vmem:[%s18428_s5 + $0x190] sm:$0xff]   ;;  %13424 = vmatprep.subr.bf16.mxu0 %v14705_v28 }
 0x60b   : > { %v8882_v49 = vsel %vm15151_vm5, %v8880_v24, %v8881_v5  ;;  %v8714_v17 = vld [vmem:[#allocation6 + $0x88] sm:$0xf]  ;;  %v8715_v35 = vld [vmem:[#allocation6 + $0x8c] sm:$0xf]  ;;  %v13137_v15 = vpop.f32.mrb[181].mxu0  ;;  %v14713_v31 = vld [vmem:[%s18428_s5 + $0x1d8] sm:$0xff]  }
 0x60c   : > { %8968 = vst [vmem:[#allocation2 + $0x2c8] sm:$0xf] %v8882_v49  ;;  %v8885_v12 = vsel %vm15151_vm5, %v8883_v59, %v8884_v34  ;;  %8746 = vst [vmem:[#allocation2 + $0x330] sm:$0xf] %v8714_v17  ;;  %v14691_v33 = vld [vmem:[#allocation2 + $0x58] ss:$36 sps:$4 sm:$0xff]   ;;  %v17766_v36 = vadd.f32 %v13137_v15, %v13136_v9 }
 0x60d   : > { %8747 = vst [vmem:[#allocation2 + $0x354] sm:$0xf] %v8715_v35  ;;  %v13139_v39 = vpop.f32.mrb[182].mxu0  ;;  %v8886_v18 = vrot.slane %v8884_v34, 4  ;;  %8969 = vst [vmem:[#allocation2 + $0x2ec] sm:$0xf] %v8885_v12  ;;  %11050 = vmatmul.mubr.bf16.gmra.mrb[32].mxu0 %v14691_v33 }
 0x60e   : > { %v8781_v16 = vld [vmem:[#allocation6 + $0x8c] sm:$0xf]  ;;  %v8889_v46 = vrot.slane %v8887_v41, 4  ;;  %v13140_v10 = vpop.f32.mrb[183].mxu0  ;;  %v8782_v0 = vld [vmem:[#allocation6 + $0x90] sm:$0xf]  ;;  %13425 = vmatpush3.bf16.msra.mxu0 %v14706_v29 }
 0x60f   : > { %v8890_v38 = vrot.slane %v8781_v16, 5  ;;  %v8716_v56 = vld [vmem:[#allocation6 + $0x90] sm:$0xf]  ;;  %v17768_v3 = vadd.f32 %v13140_v10, %v13139_v39  ;;  %v8888_v42 = vsel %vm15151_vm5, %v8886_v18, %v8887_v41  ;;  %v8893_v8 = vrot.slane %v8782_v0, 5  ;;  %v8717_v43 = vld [vmem:[#allocation6 + $0x94] sm:$0xf]  ;;  %13426 = vmatprep.subr.bf16.mxu0 %v14713_v31 }
 0x610   : > { %8748 = vst [vmem:[#allocation2 + $0x378] sm:$0xf] %v8716_v56  ;;  %v8783_v25 = vld [vmem:[#allocation6 + $0x94] sm:$0xf]  ;;  %v14696_v2 = vld [vmem:[#allocation2 + $0xa4] ss:$36 sps:$4 sm:$0xff]  }
 0x611   : > { %8970 = vst [vmem:[#allocation2 + $0x310] sm:$0xf] %v8888_v42  ;;  %v8891_v4 = vsel %vm15151_vm5, %v8889_v46, %v8890_v38  ;;  %v8892_v27 = vrot.slane %v8890_v38, 4  ;;  %8749 = vst [vmem:[#allocation2 + $0x39c] sm:$0xf] %v8717_v43  ;;  %v8895_v53 = vrot.slane %v8893_v8, 4  ;;  %11057 = vmatprep.mubr.bf16.mxu0 %v14696_v2 }
 0x612   : > { %8971 = vst [vmem:[#allocation2 + $0x334] sm:$0xf] %v8891_v4  ;;  %v8784_v1 = vld [vmem:[#allocation6 + $0x98] sm:$0xf]  ;;  %v8896_v61 = vrot.slane %v8783_v25, 5  ;;  %v17782_v19 = vpop.f32.mrb[108].mxu1 }
 0x613   : > { %v14714_v52 = vld [vmem:[%s18428_s5 + $0x198] sm:$0xff]   ;;  %v8894_v57 = vsel %vm15151_vm5, %v8892_v27, %v8893_v8  ;;  %v8899_v40 = vrot.slane %v8784_v1, 5  ;;  %v8719_v58 = vld [vmem:[#allocation6 + $0x9c] sm:$0xf]  ;;  %v13142_v54 = vpop.f32.mrb[184].mxu0  ;;  %v17789_v5 = vpop.f32.mrb[109].mxu1 }
 0x614   : > { %v8718_v30 = vld [vmem:[#allocation6 + $0x98] sm:$0xf]  ;;  %v14721_v11 = vld [vmem:[%s18428_s5 + $0x1e0] sm:$0xff]   ;;  %8972 = vst [vmem:[#allocation2 + $0x358] sm:$0xf] %v8894_v57  ;;  %v8897_v62 = vsel %vm15151_vm5, %v8895_v53, %v8896_v61  ;;  %v8898_v63 = vrot.slane %v8896_v61, 4  ;;  %13427 = vmatpush3.bf16.msra.mxu0 %v14714_v52 }
 0x615   : > { %8750 = vst [vmem:[#allocation2 + $0x3c0] sm:$0xf] %v8718_v30  ;;  %8751 = vst [vmem:[#allocation2 + $0x3e4] sm:$0xf] %v8719_v58  ;;  %v13143_v21 = vpop.f32.mrb[185].mxu0  ;;  %v14722_v44 = vld [vmem:[%s18428_s5 + $0x1a0] sm:$0xff]   ;;  %13428 = vmatprep.subr.bf16.mxu0 %v14721_v11 }
 0x616   : > { %8973 = vst [vmem:[#allocation2 + $0x37c] sm:$0xf] %v8897_v62  ;;  %v8901_v51 = vrot.slane %v8899_v40, 4  ;;  %v14694_v45 = vld [vmem:[#allocation2 + $0xa0] ss:$36 sps:$4 sm:$0xff]   ;;  %v17794_v24 = vadd.f32 %v13143_v21, %v13142_v54  ;;  %v17796_v28 = vpop.f32.mrb[110].mxu1  ;;  %v8900_v59 = vsel %vm15151_vm5, %v8898_v63, %v8899_v40 }
 0x617   : > { %v13145_v37 = vpop.f32.mrb[186].mxu0  ;;  %v8785_v34 = vld [vmem:[#allocation6 + $0x9c] sm:$0xf]  ;;  %v8786_v9 = vld [vmem:[#allocation6 + $0xa0] sm:$0xf]  ;;  %v17800_v49 = vpop.f32.mrb[111].mxu1  ;;  %11058 = vmatmul.mubr.bf16.gmra.mrb[36].mxu0 %v14694_v45 }
 0x618   : > { %v13146_v41 = vpop.f32.mrb[187].mxu0  ;;  %8974 = vst [vmem:[#allocation2 + $0x3a0] sm:$0xf] %v8900_v59  ;;  %v8902_v17 = vrot.slane %v8785_v34, 5  ;;  %v8905_v35 = vrot.slane %v8786_v9, 5  ;;  %v14729_v33 = vld [vmem:[%s18428_s5 + $0x1e8] sm:$0xff]   ;;  %13429 = vmatpush3.bf16.msra.mxu0 %v14722_v44 }
 0x619   : > { %v8720_v15 = vld [vmem:[#allocation6 + $0xa0] sm:$0xf]  ;;  %v17802_v29 = vadd.f32 %v13146_v41, %v13145_v37  ;;  %v14701_v12 = vld [vmem:[#allocation2 + $0xec] ss:$36 sps:$4 sm:$0xff]   ;;  %v8721_v16 = vld [vmem:[#allocation6 + $0xa4] sm:$0xf]  ;;  %13430 = vmatprep.subr.bf16.mxu0 %v14729_v33 }
 0x61a   : > { %8752 = vst [vmem:[#allocation2 + $0x408] sm:$0xf] %v8720_v15  ;;  %v8903_v39 = vsel %vm15151_vm5, %v8901_v51, %v8902_v17  ;;  %v8904_v18 = vrot.slane %v8902_v17, 4  ;;  %v8787_v46 = vld [vmem:[#allocation6 + $0xa4] sm:$0xf]  ;;  %v8907_v0 = vrot.slane %v8905_v35, 4  ;;  %11065 = vmatprep.mubr.bf16.mxu0 %v14701_v12 }
 0x61b   : > { %8975 = vst [vmem:[#allocation2 + $0x3c4] sm:$0xf] %v8903_v39  ;;  %8753 = vst [vmem:[#allocation2 + $0x42c] sm:$0xf] %v8721_v16  ;;  %v8788_v10 = vld [vmem:[#allocation6 + $0xa8] sm:$0xf] }
 0x61c   : > { %v8908_v38 = vrot.slane %v8787_v46, 5  ;;  %v8722_v56 = vld [vmem:[#allocation6 + $0xa8] sm:$0xf]  ;;  %v8906_v42 = vsel %vm15151_vm5, %v8904_v18, %v8905_v35  ;;  %v8911_v8 = vrot.slane %v8788_v10, 5  ;;  %v8755_v43 = vld [vmem:[#allocation2 + $0x474] sm:$0x3] }
 0x61d   : > { %v14730_v31 = vld [vmem:[%s18428_s5 + $0x1a8] sm:$0xff]   ;;  %8754 = vst [vmem:[#allocation2 + $0x450] sm:$0xf] %v8722_v56  ;;  %v13148_v25 = vpop.f32.mrb[188].mxu0  ;;  %v14737_v2 = vld [vmem:[%s18428_s5 + $0x1f0] sm:$0xff]   ;;  %v14745_v44 = vld [vmem:[%s18428_s5 + $0x1f8] sm:$0xff]  }
 0x61e   : > { %8976 = vst [vmem:[#allocation2 + $0x3e8] sm:$0xf] %v8906_v42  ;;  %v8909_v4 = vsel %vm15151_vm5, %v8907_v0, %v8908_v38  ;;  %v8910_v27 = vrot.slane %v8908_v38, 4  ;;  %v8723_v1 = vld [vmem:[#allocation6 + $0xac] sm:$0x3]  ;;  %v13149_v53 = vpop.f32.mrb[189].mxu0  ;;  %13431 = vmatpush3.bf16.msra.mxu0 %v14730_v31 }
 0x61f   : > { %8977 = vst [vmem:[#allocation2 + $0x40c] sm:$0xf] %v8909_v4  ;;  %v8756_v61 = vsel %vm17349_vm12, %v8723_v1, %v8755_v43  ;;  %v8789_v52 = vld [vmem:[#allocation6 + $0xac] sm:$0x7]  ;;  %v8913_v57 = vrot.slane %v8911_v8, 4  ;;  %v17821_v40 = vadd.f32 %v13149_v53, %v13148_v25  ;;  %v13151_v30 = vpop.f32.mrb[190].mxu0  ;;  %13432 = vmatprep.subr.bf16.mxu0 %v14737_v2 }
 0x620   : > { %v8912_v58 = vsel %vm15151_vm5, %v8910_v27, %v8911_v8  ;;  %8757 = vst [vmem:[#allocation2 + $0x474] sm:$0x3] %v8756_v61  ;;  %v13152_v54 = vpop.f32.mrb[191].mxu0  ;;  %v14738_v11 = vld [vmem:[%s18428_s5 + $0x1b0] sm:$0xff]   ;;  %v8914_v62 = vrot.slane %v8789_v52, 5  ;;  %v14746_v34 = vld [vmem:[%s18428_s5 + $0x1b8] sm:$0xff]  }
 0x621   : > { %8978 = vst [vmem:[#allocation2 + $0x430] sm:$0xf] %v8912_v58  ;;  %v14699_v63 = vld [vmem:[#allocation2 + $0xe8] ss:$36 sps:$4 sm:$0xff]   ;;  %v17828_v21 = vadd.f32 %v13152_v54, %v13151_v30  ;;  %v14704_v51 = vld [vmem:[#allocation2 + $0x134] ss:$36 sps:$4 sm:$0xff]  }
 0x622   : > { %v8915_v45 = vsel %vm15151_vm5, %v8913_v57, %v8914_v62  ;;  %v8916_v37 = vrot.slane %v8914_v62, 4  ;;  %11066 = vmatmul.mubr.bf16.gmra.mrb[40].mxu0 %v14699_v63  ;;  %v8980_v59 = vld [vmem:[#allocation2 + $0x478] sm:$0x3]  ;;  %v17840_v41 = vpop.f32.mrb[112].mxu1  ;;  %v13154_v17 = vpop.f32.mrb[192].mxu0 }
 0x623   : > { %8979 = vst [vmem:[#allocation2 + $0x454] sm:$0xf] %v8915_v45  ;;  %11073 = vmatprep.mubr.bf16.mxu0 %v14704_v51  ;;  %13433 = vmatpush3.bf16.msra.mxu0 %v14738_v11  ;;  %v17842_v23 = vpop.f32.mrb[113].mxu1  ;;  %v13155_v35 = vpop.f32.mrb[193].mxu0  ;;  %v14702_v16 = vld [vmem:[#allocation2 + $0x130] ss:$36 sps:$4 sm:$0xff]  }
 0x624   : > { %v8981_v9 = vsel %vm17349_vm12, %v8916_v37, %v8980_v59  ;;  %13434 = vmatprep.subr.bf16.mxu0 %v14745_v44  ;;  %v17844_v15 = vadd.f32 %v13155_v35, %v13154_v17  ;;  %v17846_v12 = vpop.f32.mrb[114].mxu1  ;;  %v13157_v33 = vpop.f32.mrb[194].mxu0  ;;  %v14709_v46 = vld [vmem:[#allocation2 + $0x17c] ss:$36 sps:$4 sm:$0xff]   ;;  %v14712_v43 = vld [vmem:[#allocation2 + $0x1c4] ss:$36 sps:$4 sm:$0xff]  }
 0x625   : > { %8982 = vst [vmem:[#allocation2 + $0x478] sm:$0x3] %v8981_v9  ;;  %v17848_v39 = vpop.f32.mrb[115].mxu1  ;;  %v13158_v18 = vpop.f32.mrb[195].mxu0  ;;  %v14707_v31 = vld [vmem:[#allocation2 + $0x178] ss:$36 sps:$4 sm:$0xff]  }
 0x626   : > { %v17850_v26 = vadd.f32 %v13158_v18, %v13157_v33  ;;  %v13160_v10 = vpop.f32.mrb[196].mxu0  ;;  %v17856_v25 = vpop.f32.mrb[116].mxu1  ;;  %v14710_v57 = vld [vmem:[#allocation2 + $0x1c0] ss:$36 sps:$4 sm:$0xff]   ;;  %v14717_v54 = vld [vmem:[#allocation2 + $0x20c] ss:$36 sps:$4 sm:$0xff]  }
 0x627   : > { %13435 = vmatpush3.bf16.msra.mxu0 %v14746_v34  ;;  %v13161_v0 = vpop.f32.mrb[197].mxu0  ;;  %v17858_v4 = vpop.f32.mrb[117].mxu1  ;;  %v14715_v51 = vld [vmem:[#allocation2 + $0x208] ss:$36 sps:$4 sm:$0xff]   ;;  %v14720_v59 = vld [vmem:[#allocation2 + $0x254] ss:$36 sps:$4 sm:$0xff]  }
 0x628   : > { %v17852_v38 = vadd.f32 %v13161_v0, %v13160_v10  ;;  %v13163_v56 = vpop.f32.mrb[198].mxu0  ;;  %v17860_v1 = vpop.f32.mrb[118].mxu1  ;;  %v14718_v10 = vld [vmem:[#allocation2 + $0x250] ss:$36 sps:$4 sm:$0xff]  }
 0x629   : > { %v13164_v42 = vpop.f32.mrb[199].mxu0  ;;  %v17864_v52 = vpop.f32.mrb[119].mxu1 }
 0x62a   : > { %11074 = vmatmul.mubr.bf16.gmra.mrb[44].mxu0 %v14702_v16  ;;  %v17854_v8 = vadd.f32 %v13164_v42, %v13163_v56  ;;  %v13166_v2 = vpop.f32.mrb[200].mxu0  ;;  %v17872_v34 = vpop.f32.mrb[120].mxu1 }
 0x62b   : > { %11081 = vmatprep.mubr.bf16.mxu0 %v14709_v46  ;;  %v13167_v27 = vpop.f32.mrb[201].mxu0  ;;  %18559 = vst [vmem:[#allocation14_spill] sm:$0xff] %v17872_v34  ;;  %v17874_v17 = vpop.f32.mrb[121].mxu1 }
 0x62c   : > { %v17862_v53 = vadd.f32 %v13167_v27, %v13166_v2  ;;  %v13169_v61 = vpop.f32.mrb[202].mxu0  ;;  %v17876_v33 = vpop.f32.mrb[122].mxu1 }
 0x62d   : > { %v13170_v30 = vpop.f32.mrb[203].mxu0  ;;  %18560 = vst [vmem:[#allocation9_spill] sm:$0xff] %v17876_v33  ;;  %v17880_v46 = vpop.f32.mrb[123].mxu1 }
 0x62e   : > { %v17866_v58 = vadd.f32 %v13170_v30, %v13169_v61  ;;  %v13172_v11 = vpop.f32.mrb[204].mxu0  ;;  %18561 = vst [vmem:[#allocation8_spill] sm:$0xff] %v17880_v46  ;;  %v14723_v61 = vld [vmem:[#allocation2 + $0x298] ss:$36 sps:$4 sm:$0xff]  }
 0x62f   : > { %v13173_v62 = vpop.f32.mrb[205].mxu0  ;;  %v14788_v46 = vld [vmem:[#allocation2 + $0x37c] ss:$36 sps:$4 sm:$0xff]  }
 0x630   : > { %v17868_v63 = vadd.f32 %v13173_v62, %v13172_v11  ;;  %v13175_v44 = vpop.f32.mrb[206].mxu0 }
 0x631   : > { %v13176_v45 = vpop.f32.mrb[207].mxu0 }
 0x632   : > { %11082 = vmatmul.mubr.bf16.gmra.mrb[48].mxu0 %v14707_v31  ;;  %v17870_v37 = vadd.f32 %v13176_v45, %v13175_v44  ;;  %v13178_v9 = vpop.f32.mrb[208].mxu0  ;;  %v14725_v31 = vld [vmem:[#allocation2 + $0x29c] ss:$36 sps:$4 sm:$0xff]  }
 0x633   : > { %11089 = vmatprep.mubr.bf16.mxu0 %v14712_v43  ;;  %v13179_v35 = vpop.f32.mrb[209].mxu0 }
 0x634   : > { %v17878_v18 = vadd.f32 %v13179_v35, %v13178_v9  ;;  %v13181_v16 = vpop.f32.mrb[210].mxu0 }
 0x635   : > { %v13182_v0 = vpop.f32.mrb[211].mxu0 }
 0x636   : > { %v17882_v56 = vadd.f32 %v13182_v0, %v13181_v16  ;;  %v13184_v42 = vpop.f32.mrb[212].mxu0  ;;  %v14726_v16 = vld [vmem:[#allocation2 + $0x2e0] ss:$36 sps:$4 sm:$0xff]  }
 0x637   : > { %v13185_v43 = vpop.f32.mrb[213].mxu0 }
 0x638   : > { %v17884_v2 = vadd.f32 %v13185_v43, %v13184_v42  ;;  %v13187_v27 = vpop.f32.mrb[214].mxu0  ;;  %v17903_v42 = vld [vmem:[%s18429_s6] ss:$0 sm:$0xff] }
 0x63a   : > { %11090 = vmatmul.mubr.bf16.gmra.mrb[52].mxu0 %v14710_v57  ;;  %v13188_v57 = vpop.f32.mrb[215].mxu0 }
 0x63b   : > { %11097 = vmatprep.mubr.bf16.mxu0 %v14717_v54  ;;  %v17886_v30 = vadd.f32 %v13188_v57, %v13187_v27  ;;  %v14728_v54 = vld [vmem:[#allocation2 + $0x2e4] ss:$36 sps:$4 sm:$0xff]  }
 0x63c   : > { %v17888_v11 = vpop.f32.mrb[124].mxu1 }
 0x63d   : > { %18562 = vst [vmem:[#allocation10_spill] sm:$0xff] %v17888_v11  ;;  %v13190_v62 = vpop.f32.mrb[216].mxu0  ;;  %v17890_v44 = vpop.f32.mrb[125].mxu1 }
 0x63e   : > { %18563 = vst [vmem:[#allocation15_spill] sm:$0xff] %v17890_v44  ;;  %v17892_v45 = vpop.f32.mrb[126].mxu1 }
 0x63f   : > { %18564 = vst [vmem:[#allocation11_spill] sm:$0xff] %v17892_v45  ;;  %v17896_v35 = vpop.f32.mrb[127].mxu1 }
 0x640   : > { %18565 = vst [vmem:[#allocation16_spill] sm:$0xff] %v17896_v35 }
 0x642   : > { %11098 = vmatmul.mubr.bf16.gmra.mrb[56].mxu0 %v14715_v51  ;;  %v13191_v51 = vpop.f32.mrb[217].mxu0 }
 0x643   : > { %11105 = vmatprep.mubr.bf16.mxu0 %v14720_v59  ;;  %v17894_v59 = vadd.f32 %v13191_v51, %v13190_v62  ;;  %v13193_v9 = vpop.f32.mrb[218].mxu0  ;;  %v14731_v62 = vld [vmem:[#allocation2 + $0x328] ss:$36 sps:$4 sm:$0xff]  }
 0x64a   : > { %11106 = vmatmul.mubr.bf16.gmra.mrb[60].mxu0 %v14718_v10  ;;  %v13194_v10 = vpop.f32.mrb[219].mxu0 }
 0x64b   : > { %11113 = vmatprep.mubr.bf16.mxu0 %v14725_v31  ;;  %v17898_v0 = vadd.f32 %v13194_v10, %v13193_v9  ;;  %v14733_v31 = vld [vmem:[#allocation2 + $0x32c] ss:$36 sps:$4 sm:$0xff]   ;;  %v13212_v43 = vpop.f32.mrb[220].mxu0  ;;  %v10725_v9 = vadd.f32 %v17669_v7, %v17903_v42  ;;  %v10730_v7 = vadd.f32 %v17679_v50, %v17903_v42  ;;  %v10738_v50 = vadd.f32 %v17699_v60, %v17903_v42 }
 0x64c   : > { %v13213_v27 = vpop.f32.mrb[221].mxu0 }
 0x64d   : > { %v13214_v57 = vadd.f32 %v13213_v27, %v13212_v43 }
 0x64e   : > { %v17913_v11 = vpop.f32.mrb[128].mxu1 }
 0x64f   : > { %18566 = vst [vmem:[#allocation17_spill] sm:$0xff] %v17913_v11  ;;  %v17915_v35 = vpop.f32.mrb[129].mxu1 }
 0x650   : > { %18567 = vst [vmem:[#allocation18_spill] sm:$0xff] %v17915_v35  ;;  %v17917_v43 = vpop.f32.mrb[130].mxu1  ;;  %v14739_v35 = vld [vmem:[#allocation2 + $0x3b8] ss:$36 sps:$4 sm:$0xff]  }
 0x651   : > { %18568 = vst [vmem:[#allocation19_spill] sm:$0xff] %v17917_v43  ;;  %v17919_v44 = vpop.f32.mrb[131].mxu1 }
 0x652   : > { %11114 = vmatmul.mubr.bf16.gmra.mrb[64].mxu0 %v14723_v61  ;;  %v10722_v61 = vadd.f32 %v17663_v20, %v17903_v42  ;;  %18569 = vst [vmem:[#allocation21_spill] sm:$0xff] %v17919_v44 }
 0x653   : > { %11121 = vmatprep.mubr.bf16.mxu0 %v14728_v54  ;;  %v13215_v54 = vpop.f32.mrb[222].mxu0 }
 0x654   : > { %v13216_v51 = vpop.f32.mrb[223].mxu0  ;;  %v17909_v10 = vadd.f32 %v13214_v57, %v10722_v61 }
 0x655   : > { %v13218_v20 = vpop.f32.mrb[224].mxu0 }
 0x656   : > { %v13219_v27 = vpop.f32.mrb[225].mxu0 }
 0x657   : > { %v13220_v61 = vadd.f32 %v13219_v27, %v13218_v20  ;;  %v13221_v57 = vpop.f32.mrb[226].mxu0 }
 0x65a   : > { %11122 = vmatmul.mubr.bf16.gmra.mrb[68].mxu0 %v14726_v16  ;;  %v13217_v16 = vadd.f32 %v13216_v51, %v13215_v54  ;;  %v14734_v54 = vld [vmem:[#allocation2 + $0x370] ss:$36 sps:$4 sm:$0xff]   ;;  %v10733_v51 = vadd.f32 %v17691_v32, %v17903_v42  ;;  %v10741_v32 = vadd.f32 %v17705_v47, %v17903_v42  ;;  %v10746_v47 = vadd.f32 %v17711_v55, %v17903_v42 }
 0x65b   : > { %11129 = vmatprep.mubr.bf16.mxu0 %v14733_v31  ;;  %v14736_v31 = vld [vmem:[#allocation2 + $0x374] ss:$36 sps:$4 sm:$0xff]  }
 0x65c   : > { %v17911_v45 = vadd.f32 %v13217_v16, %v10725_v9  ;;  %v17925_v9 = vadd.f32 %v13220_v61, %v10730_v7 }
 0x662   : > { %11130 = vmatmul.mubr.bf16.gmra.mrb[72].mxu0 %v14731_v62  ;;  %v13222_v62 = vpop.f32.mrb[227].mxu0 }
 0x663   : > { %11137 = vmatprep.mubr.bf16.mxu0 %v14736_v31  ;;  %v13223_v16 = vadd.f32 %v13222_v62, %v13221_v57  ;;  %v14741_v31 = vld [vmem:[#allocation2 + $0x3bc] ss:$36 sps:$4 sm:$0xff]   ;;  %v13224_v43 = vpop.f32.mrb[228].mxu0  ;;  %v14744_v57 = vld [vmem:[#allocation2 + $0x404] ss:$36 sps:$4 sm:$0xff]   ;;  %v17937_v62 = vpop.f32.mrb[132].mxu1 }
 0x664   : > { %v13225_v44 = vpop.f32.mrb[229].mxu0  ;;  %18570 = vst [vmem:[#allocation22_spill] sm:$0xff] %v17937_v62 }
 0x665   : > { %v17927_v11 = vadd.f32 %v13223_v16, %v10733_v51  ;;  %v13226_v20 = vadd.f32 %v13225_v44, %v13224_v43  ;;  %v13227_v27 = vpop.f32.mrb[230].mxu0  ;;  %v17939_v51 = vpop.f32.mrb[133].mxu1 }
 0x666   : > { %v13228_v33 = vpop.f32.mrb[231].mxu0  ;;  %18571 = vst [vmem:[#allocation23_spill] sm:$0xff] %v17939_v51  ;;  %v17941_v44 = vpop.f32.mrb[134].mxu1 }
 0x667   : > { %v17933_v7 = vadd.f32 %v13226_v20, %v10738_v50  ;;  %v13229_v61 = vadd.f32 %v13228_v33, %v13227_v27  ;;  %v13230_v60 = vpop.f32.mrb[232].mxu0  ;;  %18572 = vst [vmem:[#allocation24_spill] sm:$0xff] %v17941_v44  ;;  %v17943_v16 = vpop.f32.mrb[135].mxu1  ;;  %v14742_v50 = vld [vmem:[#allocation2 + $0x400] ss:$36 sps:$4 sm:$0xff]   ;;  %v10749_v20 = vadd.f32 %v17715_v6, %v17903_v42 }
 0x668   : > { %v13231_v43 = vpop.f32.mrb[233].mxu0  ;;  %18573 = vst [vmem:[#allocation20_spill] sm:$0xff] %v17943_v16 }
 0x669   : > { %v13233_v33 = vpop.f32.mrb[234].mxu0 }
 0x66a   : > { %11138 = vmatmul.mubr.bf16.gmra.mrb[76].mxu0 %v14734_v54  ;;  %v17935_v54 = vadd.f32 %v13229_v61, %v10741_v32  ;;  %v14749_v61 = vld [vmem:[#allocation2 + $0x44c] ss:$36 sps:$4 sm:$0x3f]  }
 0x66b   : > { %11145 = vmatprep.mubr.bf16.mxu0 %v14741_v31  ;;  %v13232_v31 = vadd.f32 %v13231_v43, %v13230_v60  ;;  %v10754_v43 = vadd.f32 %v17723_v14, %v17903_v42  ;;  %v10762_v14 = vadd.f32 %v17737_v22, %v17903_v42  ;;  %v10770_v22 = vadd.f32 %v17766_v36, %v17903_v42 }
 0x66c   : > { %v10778_v36 = vadd.f32 %v17794_v24, %v17903_v42  ;;  %v10786_v24 = vadd.f32 %v17821_v40, %v17903_v42  ;;  %v10794_v40 = vadd.f32 %v17844_v15, %v17903_v42  ;;  %v10802_v15 = vadd.f32 %v17852_v38, %v17903_v42 }
 0x66d   : > { %v17949_v27 = vadd.f32 %v13232_v31, %v10746_v47  ;;  %v17953_v44 = vpop.f32.mrb[136].mxu1  ;;  %v10810_v38 = vadd.f32 %v17862_v53, %v17903_v42  ;;  %v10818_v53 = vadd.f32 %v17868_v63, %v17903_v42  ;;  %v10826_v63 = vadd.f32 %v17878_v18, %v17903_v42 }
 0x66e   : > { %18574 = vst [vmem:[#allocation13_spill] sm:$0xff] %v17953_v44  ;;  %v17955_v16 = vpop.f32.mrb[137].mxu1  ;;  %v10834_v18 = vadd.f32 %v17884_v2, %v17903_v42  ;;  %v10842_v2 = vadd.f32 %v17894_v59, %v17903_v42  ;;  %v14783_v59 = vld [vmem:[#allocation2 + $0x330] ss:$36 sps:$4 sm:$0xff]  }
 0x66f   : > { %18575 = vst [vmem:[#allocation12_spill] sm:$0xff] %v17955_v16  ;;  %v17957_v60 = vpop.f32.mrb[138].mxu1 }
 0x670   : > { %18576 = vst [vmem:[#allocation25_spill] sm:$0xff] %v17957_v60  ;;  %v17961_v31 = vpop.f32.mrb[139].mxu1 }
 0x671   : > { %18577 = vst [vmem:[#allocation26_spill] sm:$0xff] %v17961_v31  ;;  %v14750_v31 = vld [vmem:[#allocation2 + $0x18] ss:$36 sps:$4 sm:$0xff]  }
 0x672   : > { %11146 = vmatmul.mubr.bf16.gmra.mrb[80].mxu0 %v14739_v35  ;;  %v13234_v35 = vpop.f32.mrb[235].mxu0 }
 0x673   : > { %11153 = vmatprep.mubr.bf16.mxu0 %v14744_v57  ;;  %v13235_v32 = vadd.f32 %v13234_v35, %v13233_v33  ;;  %v13236_v62 = vpop.f32.mrb[236].mxu0  ;;  %v14747_v33 = vld [vmem:[#allocation2 + $0x448] ss:$36 sps:$4 sm:$0x3f]   ;;  %v10757_v35 = vadd.f32 %v17729_v48, %v17903_v42  ;;  %v10765_v48 = vadd.f32 %v17744_v13, %v17903_v42  ;;  %v10773_v13 = vadd.f32 %v17768_v3, %v17903_v42 }
 0x674   : > { %v13237_v55 = vpop.f32.mrb[237].mxu0  ;;  %v10781_v3 = vadd.f32 %v17802_v29, %v17903_v42  ;;  %v10789_v29 = vadd.f32 %v17828_v21, %v17903_v42  ;;  %v10797_v21 = vadd.f32 %v17850_v26, %v17903_v42  ;;  %v10805_v26 = vadd.f32 %v17854_v8, %v17903_v42 }
 0x675   : > { %v17951_v57 = vadd.f32 %v13235_v32, %v10749_v20  ;;  %v13238_v6 = vadd.f32 %v13237_v55, %v13236_v62  ;;  %v13239_v47 = vpop.f32.mrb[238].mxu0  ;;  %v10813_v8 = vadd.f32 %v17866_v58, %v17903_v42  ;;  %v10821_v58 = vadd.f32 %v17870_v37, %v17903_v42 }
 0x676   : > { %v10829_v37 = vadd.f32 %v17882_v56, %v17903_v42  ;;  %v10837_v56 = vadd.f32 %v17886_v30, %v17903_v42  ;;  %v10845_v30 = vadd.f32 %v17898_v0, %v17903_v42 }
 0x677   : > { %v17965_v20 = vadd.f32 %v13238_v6, %v10754_v43 }
 0x67a   : > { %11154 = vmatmul.mubr.bf16.gmra.mrb[84].mxu0 %v14742_v50  ;;  %v13240_v50 = vpop.f32.mrb[239].mxu0 }
 0x67b   : > { %11161 = vmatprep.mubr.bf16.mxu0 %v14749_v61  ;;  %v13241_v32 = vadd.f32 %v13240_v50, %v13239_v47  ;;  %v14752_v61 = vld [vmem:[#allocation2 + $0x1c] ss:$36 sps:$4 sm:$0xff]   ;;  %v13242_v60 = vpop.f32.mrb[240].mxu0  ;;  %v14755_v47 = vld [vmem:[#allocation2 + $0x64] ss:$36 sps:$4 sm:$0xff]  }
 0x67c   : > { %v13243_v16 = vpop.f32.mrb[241].mxu0 }
 0x67d   : > { %v17967_v44 = vadd.f32 %v13241_v32, %v10757_v35  ;;  %v13244_v62 = vadd.f32 %v13243_v16, %v13242_v60  ;;  %v13245_v55 = vpop.f32.mrb[242].mxu0  ;;  %v14753_v32 = vld [vmem:[#allocation2 + $0x60] ss:$36 sps:$4 sm:$0xff]  }
 0x67e   : > { %v13246_v51 = vpop.f32.mrb[243].mxu0 }
 0x67f   : > { %v17973_v43 = vadd.f32 %v13244_v62, %v10762_v14  ;;  %v13247_v6 = vadd.f32 %v13246_v51, %v13245_v55  ;;  %v13248_v50 = vpop.f32.mrb[244].mxu0  ;;  %v14758_v62 = vld [vmem:[#allocation2 + $0xac] ss:$36 sps:$4 sm:$0xff]  }
 0x680   : > { %v13249_v35 = vpop.f32.mrb[245].mxu0 }
 0x681   : > { %v13250_v16 = vadd.f32 %v13249_v35, %v13248_v50  ;;  %v13251_v60 = vpop.f32.mrb[246].mxu0  ;;  %v14756_v50 = vld [vmem:[#allocation2 + $0xa8] ss:$36 sps:$4 sm:$0xff]  }
 0x682   : > { %11162 = vmatmul.mubr.bf16.gmra.mrb[88].mxu0 %v14747_v33  ;;  %v17975_v33 = vadd.f32 %v13247_v6, %v10765_v48 }
 0x683   : > { %11202 = vmatprep.mubr.bf16.mxu0 %v14752_v61  ;;  %v13252_v61 = vpop.f32.mrb[247].mxu0  ;;  %v17981_v14 = vadd.f32 %v13250_v16, %v10770_v22 }
 0x684   : > { %v13253_v51 = vadd.f32 %v13252_v61, %v13251_v60  ;;  %v14761_v60 = vld [vmem:[#allocation2 + $0xf4] ss:$36 sps:$4 sm:$0xff]  }
 0x689   : > { %v13254_v55 = vpop.f32.mrb[248].mxu0 }
 0x68a   : > { %11203 = vmatmul.mubr.bf16.vlgmr.msra.gmra.mrb[92].mxu0 %v14750_v31  ;;  %v17983_v31 = vadd.f32 %v13253_v51, %v10773_v13  ;;  %v13255_v48 = vpop.f32.mrb[249].mxu0 }
 0x68b   : > { %11210 = vmatprep.mubr.bf16.mxu0 %v14755_v47  ;;  %v13256_v6 = vadd.f32 %v13255_v48, %v13254_v55  ;;  %v13257_v47 = vpop.f32.mrb[250].mxu0  ;;  %v14759_v55 = vld [vmem:[#allocation2 + $0xf0] ss:$36 sps:$4 sm:$0xff]  }
 0x68c   : > { %v13258_v35 = vpop.f32.mrb[251].mxu0 }
 0x68d   : > { %v17989_v22 = vadd.f32 %v13256_v6, %v10778_v36  ;;  %v13259_v16 = vadd.f32 %v13258_v35, %v13257_v47  ;;  %v14764_v47 = vld [vmem:[#allocation2 + $0x13c] ss:$36 sps:$4 sm:$0xff]  }
 0x691   : > { %v13260_v61 = vpop.f32.mrb[252].mxu0 }
 0x692   : > { %11211 = vmatmul.mubr.bf16.gmra.mrb[96].mxu0 %v14753_v32  ;;  %v17991_v32 = vadd.f32 %v13259_v16, %v10781_v3  ;;  %v13261_v13 = vpop.f32.mrb[253].mxu0 }
 0x693   : > { %11218 = vmatprep.mubr.bf16.mxu0 %v14758_v62  ;;  %v13262_v51 = vadd.f32 %v13261_v13, %v13260_v61  ;;  %v13263_v62 = vpop.f32.mrb[254].mxu0  ;;  %v14762_v61 = vld [vmem:[#allocation2 + $0x138] ss:$36 sps:$4 sm:$0xff]  }
 0x694   : > { %v13264_v48 = vpop.f32.mrb[255].mxu0 }
 0x695   : > { %v17997_v36 = vadd.f32 %v13262_v51, %v10786_v24  ;;  %v13265_v6 = vadd.f32 %v13264_v48, %v13263_v62  ;;  %v14767_v62 = vld [vmem:[#allocation2 + $0x184] ss:$36 sps:$4 sm:$0xff]  }
 0x69a   : > { %11219 = vmatmul.mubr.bf16.gmra.mrb[100].mxu0 %v14756_v50  ;;  %v17999_v50 = vadd.f32 %v13265_v6, %v10789_v29  ;;  %v13266_v35 = vpop.f32.mrb[0].mxu0 }
 0x69b   : > { %11226 = vmatprep.mubr.bf16.mxu0 %v14761_v60  ;;  %v13267_v3 = vpop.f32.mrb[1].mxu0 }
 0x69c   : > { %v13268_v16 = vadd.f32 %v13267_v3, %v13266_v35  ;;  %v13269_v60 = vpop.f32.mrb[2].mxu0  ;;  %v14765_v35 = vld [vmem:[#allocation2 + $0x180] ss:$36 sps:$4 sm:$0xff]  }
 0x69d   : > { %v13270_v13 = vpop.f32.mrb[3].mxu0 }
 0x69e   : > { %v18005_v24 = vadd.f32 %v13268_v16, %v10794_v40  ;;  %v13271_v51 = vadd.f32 %v13270_v13, %v13269_v60  ;;  %v14770_v60 = vld [vmem:[#allocation2 + $0x1cc] ss:$36 sps:$4 sm:$0xff]  }
 0x6a2   : > { %11227 = vmatmul.mubr.bf16.gmra.mrb[104].mxu0 %v14759_v55  ;;  %v18007_v55 = vadd.f32 %v13271_v51, %v10797_v21 }
 0x6a3   : > { %11234 = vmatprep.mubr.bf16.mxu0 %v14764_v47  ;;  %v13272_v48 = vpop.f32.mrb[4].mxu0 }
 0x6a4   : > { %v13273_v29 = vpop.f32.mrb[5].mxu0 }
 0x6a5   : > { %v13274_v6 = vadd.f32 %v13273_v29, %v13272_v48  ;;  %v13275_v47 = vpop.f32.mrb[6].mxu0  ;;  %v14768_v48 = vld [vmem:[#allocation2 + $0x1c8] ss:$36 sps:$4 sm:$0xff]  }
 0x6a6   : > { %v13276_v3 = vpop.f32.mrb[7].mxu0 }
 0x6a7   : > { %v18013_v40 = vadd.f32 %v13274_v6, %v10802_v15  ;;  %v13277_v16 = vadd.f32 %v13276_v3, %v13275_v47  ;;  %v14773_v47 = vld [vmem:[#allocation2 + $0x214] ss:$36 sps:$4 sm:$0xff]  }
 0x6aa   : > { %11235 = vmatmul.mubr.bf16.gmra.mrb[108].mxu0 %v14762_v61  ;;  %v18015_v61 = vadd.f32 %v13277_v16, %v10805_v26 }
 0x6ab   : > { %11242 = vmatprep.mubr.bf16.mxu0 %v14767_v62  ;;  %v13278_v13 = vpop.f32.mrb[8].mxu0 }
 0x6ac   : > { %v13279_v21 = vpop.f32.mrb[9].mxu0 }
 0x6ad   : > { %v13280_v51 = vadd.f32 %v13279_v21, %v13278_v13  ;;  %v13281_v62 = vpop.f32.mrb[10].mxu0  ;;  %v14771_v13 = vld [vmem:[#allocation2 + $0x210] ss:$36 sps:$4 sm:$0xff]  }
 0x6ae   : > { %v13282_v29 = vpop.f32.mrb[11].mxu0 }
 0x6af   : > { %v18021_v15 = vadd.f32 %v13280_v51, %v10810_v38  ;;  %v13283_v6 = vadd.f32 %v13282_v29, %v13281_v62  ;;  %v14776_v62 = vld [vmem:[#allocation2 + $0x25c] ss:$36 sps:$4 sm:$0xff]  }
 0x6b2   : > { %11243 = vmatmul.mubr.bf16.gmra.mrb[112].mxu0 %v14765_v35  ;;  %v18023_v35 = vadd.f32 %v13283_v6, %v10813_v8 }
 0x6b3   : > { %11250 = vmatprep.mubr.bf16.mxu0 %v14770_v60 }
 0x6b6   : > { %v13284_v3 = vpop.f32.mrb[12].mxu0 }
 0x6b7   : > { %v13285_v26 = vpop.f32.mrb[13].mxu0 }
 0x6b8   : > { %v13286_v16 = vadd.f32 %v13285_v26, %v13284_v3  ;;  %v13287_v60 = vpop.f32.mrb[14].mxu0  ;;  %v14774_v3 = vld [vmem:[#allocation2 + $0x258] ss:$36 sps:$4 sm:$0xff]  }
 0x6b9   : > { %v13288_v21 = vpop.f32.mrb[15].mxu0 }
 0x6ba   : > { %11251 = vmatmul.mubr.bf16.gmra.mrb[116].mxu0 %v14768_v48  ;;  %v18029_v38 = vadd.f32 %v13286_v16, %v10818_v53  ;;  %v13289_v51 = vadd.f32 %v13288_v21, %v13287_v60  ;;  %v14779_v60 = vld [vmem:[#allocation2 + $0x2a4] ss:$36 sps:$4 sm:$0xff]  }
 0x6bb   : > { %11258 = vmatprep.mubr.bf16.mxu0 %v14773_v47 }
 0x6bc   : > { %v18031_v48 = vadd.f32 %v13289_v51, %v10821_v58 }
 0x6be   : > { %v13290_v29 = vpop.f32.mrb[16].mxu0 }
 0x6bf   : > { %v13291_v8 = vpop.f32.mrb[17].mxu0 }
 0x6c0   : > { %v13292_v6 = vadd.f32 %v13291_v8, %v13290_v29  ;;  %v13293_v47 = vpop.f32.mrb[18].mxu0  ;;  %v14777_v29 = vld [vmem:[#allocation2 + $0x2a0] ss:$36 sps:$4 sm:$0xff]  }
 0x6c1   : > { %v13294_v26 = vpop.f32.mrb[19].mxu0 }
 0x6c2   : > { %11259 = vmatmul.mubr.bf16.gmra.mrb[120].mxu0 %v14771_v13  ;;  %v18037_v53 = vadd.f32 %v13292_v6, %v10826_v63  ;;  %v13295_v16 = vadd.f32 %v13294_v26, %v13293_v47  ;;  %v14782_v47 = vld [vmem:[#allocation2 + $0x2ec] ss:$36 sps:$4 sm:$0xff]  }
 0x6c3   : > { %11266 = vmatprep.mubr.bf16.mxu0 %v14776_v62 }
 0x6c4   : > { %v18039_v13 = vadd.f32 %v13295_v16, %v10829_v37 }
 0x6c6   : > { %v13296_v21 = vpop.f32.mrb[20].mxu0 }
 0x6c7   : > { %v13297_v58 = vpop.f32.mrb[21].mxu0 }
 0x6c8   : > { %v13298_v51 = vadd.f32 %v13297_v58, %v13296_v21  ;;  %v13299_v62 = vpop.f32.mrb[22].mxu0  ;;  %v14780_v21 = vld [vmem:[#allocation2 + $0x2e8] ss:$36 sps:$4 sm:$0xff]  }
 0x6c9   : > { %v13300_v8 = vpop.f32.mrb[23].mxu0 }
 0x6ca   : > { %11267 = vmatmul.mubr.bf16.gmra.mrb[124].mxu0 %v14774_v3  ;;  %v18045_v63 = vadd.f32 %v13298_v51, %v10834_v18  ;;  %v13301_v6 = vadd.f32 %v13300_v8, %v13299_v62  ;;  %v14785_v62 = vld [vmem:[#allocation2 + $0x334] ss:$36 sps:$4 sm:$0xff]  }
 0x6cb   : > { %11274 = vmatprep.mubr.bf16.mxu0 %v14779_v60 }
 0x6cc   : > { %v18047_v3 = vadd.f32 %v13301_v6, %v10837_v56 }
 0x6ce   : > { %v13302_v26 = vpop.f32.mrb[24].mxu0 }
 0x6cf   : > { %v13303_v37 = vpop.f32.mrb[25].mxu0 }
 0x6d0   : > { %v13304_v16 = vadd.f32 %v13303_v37, %v13302_v26  ;;  %v13305_v60 = vpop.f32.mrb[26].mxu0 }
 0x6d1   : > { %v13306_v58 = vpop.f32.mrb[27].mxu0 }
 0x6d2   : > { %11275 = vmatmul.mubr.bf16.gmra.mrb[128].mxu0 %v14777_v29  ;;  %v18053_v18 = vadd.f32 %v13304_v16, %v10842_v2  ;;  %v13307_v51 = vadd.f32 %v13306_v58, %v13305_v60 }
 0x6d3   : > { %11282 = vmatprep.mubr.bf16.mxu0 %v14782_v47 }
 0x6d4   : > { %v18055_v29 = vadd.f32 %v13307_v51, %v10845_v30 }
 0x6d7   : > { %v13324_v8 = vpop.f32.mrb[28].mxu0 }
 0x6d8   : > { %v13325_v56 = vpop.f32.mrb[29].mxu0 }
 0x6d9   : > { %v13326_v6 = vadd.f32 %v13325_v56, %v13324_v8  ;;  %v13327_v47 = vpop.f32.mrb[30].mxu0  ;;  %v14789_v56 = vld [vmem:[#allocation2 + $0x3c0] ss:$36 sps:$4 sm:$0xff]  }
 0x6da   : > { %11283 = vmatmul.mubr.bf16.gmra.mrb[132].mxu0 %v14780_v21  ;;  %v13328_v26 = vpop.f32.mrb[31].mxu0  ;;  %v14786_v21 = vld [vmem:[#allocation2 + $0x378] ss:$36 sps:$4 sm:$0xff]  }
 0x6db   : > { %11290 = vmatprep.mubr.bf16.mxu0 %v14785_v62  ;;  %v18058_v37 = vadd.f32 %v13326_v6, %v17909_v10  ;;  %v13329_v34 = vadd.f32 %v13328_v26, %v13327_v47  ;;  %v14791_v62 = vld [vmem:[#allocation2 + $0x3c4] ss:$36 sps:$4 sm:$0xff]   ;;  %v14794_v26 = vld [vmem:[#allocation2 + $0x40c] ss:$36 sps:$4 sm:$0xff]  }
 0x6dd   : > { %v18061_v0 = vadd.f32 %v13329_v34, %v17911_v45 }
 0x6e0   : > { %v13330_v42 = vpop.f32.mrb[32].mxu0 }
 0x6e1   : > { %v13331_v2 = vpop.f32.mrb[33].mxu0 }
 0x6e2   : > { %11291 = vmatmul.mubr.bf16.gmra.mrb[136].mxu0 %v14783_v59  ;;  %v13332_v16 = vadd.f32 %v13331_v2, %v13330_v42  ;;  %v13333_v60 = vpop.f32.mrb[34].mxu0 }
 0x6e3   : > { %11298 = vmatprep.mubr.bf16.mxu0 %v14788_v46  ;;  %v13334_v58 = vpop.f32.mrb[35].mxu0 }
 0x6e4   : > { %v18064_v30 = vadd.f32 %v13332_v16, %v17925_v9  ;;  %v13335_v51 = vadd.f32 %v13334_v58, %v13333_v60  ;;  %v14792_v60 = vld [vmem:[#allocation2 + $0x408] ss:$36 sps:$4 sm:$0xff]  }
 0x6e6   : > { %v18067_v10 = vadd.f32 %v13335_v51, %v17927_v11 }
 0x6ea   : > { %11299 = vmatmul.mubr.bf16.gmra.mrb[140].mxu0 %v14786_v21  ;;  %v13336_v8 = vpop.f32.mrb[36].mxu0 }
 0x6eb   : > { %11306 = vmatprep.mubr.bf16.mxu0 %v14791_v62  ;;  %v13337_v34 = vpop.f32.mrb[37].mxu0  ;;  %v14797_v62 = vld [vmem:[#allocation2 + $0x454] ss:$36 sps:$4 sm:$0x3f]  }
 0x6ec   : > { %v13338_v45 = vadd.f32 %v13337_v34, %v13336_v8  ;;  %v13339_v46 = vpop.f32.mrb[38].mxu0 }
 0x6ed   : > { %v13340_v6 = vpop.f32.mrb[39].mxu0 }
 0x6ee   : > { %v18070_v47 = vadd.f32 %v13338_v45, %v17933_v7  ;;  %v13341_v59 = vadd.f32 %v13340_v6, %v13339_v46  ;;  %v14795_v46 = vld [vmem:[#allocation2 + $0x450] ss:$36 sps:$4 sm:$0x3f]  }
 0x6f0   : > { %v18073_v9 = vadd.f32 %v13341_v59, %v17935_v54 }
 0x6f2   : > { %11307 = vmatmul.mubr.bf16.gmra.mrb[144].mxu0 %v14789_v56 }
 0x6f3   : > { %11314 = vmatprep.mubr.bf16.mxu0 %v14794_v26 }
 0x6f5   : > { %v13342_v42 = vpop.f32.mrb[40].mxu0 }
 0x6f6   : > { %v13343_v11 = vpop.f32.mrb[41].mxu0 }
 0x6f7   : > { %v13344_v2 = vadd.f32 %v13343_v11, %v13342_v42  ;;  %v13345_v16 = vpop.f32.mrb[42].mxu0 }
 0x6f8   : > { %v13346_v21 = vpop.f32.mrb[43].mxu0 }
 0x6f9   : > { %v18076_v58 = vadd.f32 %v13344_v2, %v17949_v27  ;;  %v13347_v51 = vadd.f32 %v13346_v21, %v13345_v16 }
 0x6fa   : > { %11315 = vmatmul.mubr.bf16.gmra.mrb[148].mxu0 %v14792_v60 }
 0x6fb   : > { %v18079_v7 = vadd.f32 %v13347_v51, %v17951_v57  ;;  %11322 = vmatprep.mubr.bf16.mxu0 %v14797_v62 }
 0x6fd   : > { %v13348_v8 = vpop.f32.mrb[44].mxu0 }
 0x6fe   : > { %v13349_v54 = vpop.f32.mrb[45].mxu0 }
 0x6ff   : > { %v13350_v34 = vadd.f32 %v13349_v54, %v13348_v8  ;;  %v13351_v45 = vpop.f32.mrb[46].mxu0 }
 0x700   : > { %v13352_v56 = vpop.f32.mrb[47].mxu0 }
 0x701   : > { %v18082_v6 = vadd.f32 %v13350_v34, %v17965_v20  ;;  %v13353_v59 = vadd.f32 %v13352_v56, %v13351_v45 }
 0x702   : > { %11323 = vmatmul.mubr.bf16.gmra.mrb[152].mxu0 %v14795_v46 }
 0x703   : > { %v18085_v27 = vadd.f32 %v13353_v59, %v17967_v44 }
 0x705   : > { %v13354_v26 = vpop.f32.mrb[48].mxu0 }
 0x706   : > { %v13355_v42 = vpop.f32.mrb[49].mxu0 }
 0x707   : > { %v13356_v11 = vadd.f32 %v13355_v42, %v13354_v26  ;;  %v13357_v57 = vpop.f32.mrb[50].mxu0 }
 0x708   : > { %v13358_v2 = vpop.f32.mrb[51].mxu0 }
 0x709   : > { %v18088_v16 = vadd.f32 %v13356_v11, %v17973_v43  ;;  %v13359_v60 = vadd.f32 %v13358_v2, %v13357_v57 }
 0x70b   : > { %v18091_v21 = vadd.f32 %v13359_v60, %v17975_v33 }
 0x70d   : > { %v13360_v51 = vpop.f32.mrb[52].mxu0 }
 0x70e   : > { %v13361_v20 = vpop.f32.mrb[53].mxu0 }
 0x70f   : > { %v13362_v62 = vadd.f32 %v13361_v20, %v13360_v51  ;;  %v13363_v8 = vpop.f32.mrb[54].mxu0 }
 0x710   : > { %v13364_v54 = vpop.f32.mrb[55].mxu0 }
 0x711   : > { %v18094_v44 = vadd.f32 %v13362_v62, %v17981_v14  ;;  %v13365_v34 = vadd.f32 %v13364_v54, %v13363_v8 }
 0x713   : > { %v18097_v45 = vadd.f32 %v13365_v34, %v17983_v31 }
 0x715   : > { %v13366_v46 = vpop.f32.mrb[56].mxu0 }
 0x716   : > { %v13367_v56 = vpop.f32.mrb[57].mxu0 }
 0x717   : > { %v13368_v43 = vadd.f32 %v13367_v56, %v13366_v46  ;;  %v13369_v59 = vpop.f32.mrb[58].mxu0 }
 0x718   : > { %v13370_v26 = vpop.f32.mrb[59].mxu0 }
 0x719   : > { %v18100_v33 = vadd.f32 %v13368_v43, %v17989_v22  ;;  %v13371_v42 = vadd.f32 %v13370_v26, %v13369_v59 }
 0x71b   : > { %v18103_v11 = vadd.f32 %v13371_v42, %v17991_v32 }
 0x71d   : > { %v13372_v57 = vpop.f32.mrb[60].mxu0 }
 0x71e   : > { %v13373_v2 = vpop.f32.mrb[61].mxu0 }
 0x71f   : > { %v13374_v14 = vadd.f32 %v13373_v2, %v13372_v57  ;;  %v13375_v60 = vpop.f32.mrb[62].mxu0 }
 0x720   : > { %v13376_v51 = vpop.f32.mrb[63].mxu0 }
 0x721   : > { %v18106_v31 = vadd.f32 %v13374_v14, %v17997_v36  ;;  %v13377_v20 = vadd.f32 %v13376_v51, %v13375_v60 }
 0x723   : > { %v18109_v62 = vadd.f32 %v13377_v20, %v17999_v50 }
 0x725   : > { %v13378_v8 = vpop.f32.mrb[64].mxu0 }
 0x726   : > { %v13379_v54 = vpop.f32.mrb[65].mxu0 }
 0x727   : > { %v13380_v22 = vadd.f32 %v13379_v54, %v13378_v8  ;;  %v13381_v34 = vpop.f32.mrb[66].mxu0 }
 0x728   : > { %v13382_v46 = vpop.f32.mrb[67].mxu0 }
 0x729   : > { %v18112_v32 = vadd.f32 %v13380_v22, %v18005_v24  ;;  %v13383_v56 = vadd.f32 %v13382_v46, %v13381_v34 }
 0x72b   : > { %v18115_v43 = vadd.f32 %v13383_v56, %v18007_v55 }
 0x72d   : > { %v13384_v59 = vpop.f32.mrb[68].mxu0 }
 0x72e   : > { %v13385_v26 = vpop.f32.mrb[69].mxu0 }
 0x72f   : > { %v13386_v36 = vadd.f32 %v13385_v26, %v13384_v59  ;;  %v13387_v42 = vpop.f32.mrb[70].mxu0 }
 0x730   : > { %v13388_v57 = vpop.f32.mrb[71].mxu0 }
 0x731   : > { %v18118_v50 = vadd.f32 %v13386_v36, %v18013_v40  ;;  %v13389_v2 = vadd.f32 %v13388_v57, %v13387_v42 }
 0x733   : > { %v18121_v14 = vadd.f32 %v13389_v2, %v18015_v61 }
 0x735   : > { %v13390_v60 = vpop.f32.mrb[72].mxu0 }
 0x736   : > { %v13391_v51 = vpop.f32.mrb[73].mxu0 }
 0x737   : > { %v13392_v24 = vadd.f32 %v13391_v51, %v13390_v60  ;;  %v13393_v20 = vpop.f32.mrb[74].mxu0 }
 0x738   : > { %v13394_v8 = vpop.f32.mrb[75].mxu0 }
 0x739   : > { %v18124_v55 = vadd.f32 %v13392_v24, %v18021_v15  ;;  %v13395_v54 = vadd.f32 %v13394_v8, %v13393_v20 }
 0x73b   : > { %v18127_v22 = vadd.f32 %v13395_v54, %v18023_v35 }
 0x73d   : > { %v13396_v34 = vpop.f32.mrb[76].mxu0 }
 0x73e   : > { %v13397_v46 = vpop.f32.mrb[77].mxu0 }
 0x73f   : > { %v13398_v40 = vadd.f32 %v13397_v46, %v13396_v34  ;;  %v13399_v56 = vpop.f32.mrb[78].mxu0 }
 0x740   : > { %v13400_v59 = vpop.f32.mrb[79].mxu0 }
 0x741   : > { %v18130_v61 = vadd.f32 %v13398_v40, %v18029_v38  ;;  %v13401_v26 = vadd.f32 %v13400_v59, %v13399_v56 }
 0x743   : > { %v18133_v36 = vadd.f32 %v13401_v26, %v18031_v48 }
 0x745   : > { %v13402_v42 = vpop.f32.mrb[80].mxu0 }
 0x746   : > { %v13403_v57 = vpop.f32.mrb[81].mxu0 }
 0x747   : > { %v13404_v15 = vadd.f32 %v13403_v57, %v13402_v42  ;;  %v13405_v2 = vpop.f32.mrb[82].mxu0 }
 0x748   : > { %v13406_v60 = vpop.f32.mrb[83].mxu0 }
 0x749   : > { %v18136_v35 = vadd.f32 %v13404_v15, %v18037_v53  ;;  %v13407_v51 = vadd.f32 %v13406_v60, %v13405_v2 }
 0x74b   : > { %v18139_v24 = vadd.f32 %v13407_v51, %v18039_v13 }
 0x74d   : > { %v13408_v20 = vpop.f32.mrb[84].mxu0 }
 0x74e   : > { %v13409_v8 = vpop.f32.mrb[85].mxu0 }
 0x74f   : > { %v13410_v38 = vadd.f32 %v13409_v8, %v13408_v20  ;;  %v13411_v54 = vpop.f32.mrb[86].mxu0 }
 0x750   : > { %v13412_v34 = vpop.f32.mrb[87].mxu0 }
 0x751   : > { %v18142_v48 = vadd.f32 %v13410_v38, %v18045_v63  ;;  %v13413_v46 = vadd.f32 %v13412_v34, %v13411_v54 }
 0x753   : > { %v18145_v40 = vadd.f32 %v13413_v46, %v18047_v3 }
 0x755   : > { %v13414_v56 = vpop.f32.mrb[88].mxu0 }
 0x756   : > { %v13415_v59 = vpop.f32.mrb[89].mxu0 }
 0x757   : > { %v13416_v53 = vadd.f32 %v13415_v59, %v13414_v56  ;;  %v13417_v26 = vpop.f32.mrb[90].mxu0 }
 0x758   : > { %v13418_v42 = vpop.f32.mrb[91].mxu0 }
 0x759   : > { %v18148_v13 = vadd.f32 %v13416_v53, %v18053_v18  ;;  %v13419_v57 = vadd.f32 %v13418_v42, %v13417_v26 }
 0x75b   : > { %v18151_v15 = vadd.f32 %v13419_v57, %v18055_v29 }
 0x75d   : > { %v13436_v2 = vpop.f32.mrb[92].mxu0 }
 0x75e   : > { %v13437_v60 = vpop.f32.mrb[93].mxu0 }
 0x75f   : > { %v13438_v63 = vadd.f32 %v13437_v60, %v13436_v2  ;;  %v13439_v51 = vpop.f32.mrb[94].mxu0 }
 0x760   : > { %v13440_v20 = vpop.f32.mrb[95].mxu0 }
 0x761   : > { %v11205_v3 = vadd.f32 %v13438_v63, %v18058_v37  ;;  %v13441_v8 = vadd.f32 %v13440_v20, %v13439_v51 }
 0x763   : > { %v18155_v38 = vadd.f32 %v17789_v5, %v11205_v3  ;;  %v11208_v54 = vadd.f32 %v13441_v8, %v18061_v0 }
 0x765   : > { %v11492_v18 = vmax.f32 %v18155_v38, 0.0  ;;  %v18160_v34 = vadd.f32 %v17800_v49, %v11208_v54  ;;  %v13442_v29 = vpop.f32.mrb[96].mxu0 }
 0x766   : > { %v13443_v46 = vpop.f32.mrb[97].mxu0 }
 0x767   : > { %11524 = vst [vmem:[#allocation7] sm:$0xff] %v11492_v18  ;;  %v11493_v56 = vmax.f32 %v18160_v34, 0.0  ;;  %v13444_v59 = vadd.f32 %v13443_v46, %v13442_v29  ;;  %v13445_v37 = vpop.f32.mrb[98].mxu0 }
 0x768   : > { %v13446_v53 = vpop.f32.mrb[99].mxu0 }
 0x769   : > { %11525 = vst [vmem:[#allocation7 + $0x8] sm:$0xff] %v11493_v56  ;;  %v11213_v5 = vadd.f32 %v13444_v59, %v18064_v30  ;;  %v13447_v0 = vadd.f32 %v13446_v53, %v13445_v37 }
 0x76b   : > { %v18169_v26 = vadd.f32 %v17782_v19, %v11213_v5  ;;  %v11216_v49 = vadd.f32 %v13447_v0, %v18067_v10 }
 0x76d   : > { %v11494_v42 = vmax.f32 %v18169_v26, 0.0  ;;  %v18174_v57 = vadd.f32 %v17796_v28, %v11216_v49  ;;  %v13448_v2 = vpop.f32.mrb[100].mxu0  ;;  %v11721_v26 = vld [vmem:[%s18430_s7 + $0x10] sm:$0xff] }
 0x76e   : > { %v13449_v60 = vpop.f32.mrb[101].mxu0 }
 0x76f   : > { %11526 = vst [vmem:[#allocation7 + $0x10] sm:$0xff] %v11494_v42  ;;  %v11495_v63 = vmax.f32 %v18174_v57, 0.0  ;;  %v13450_v51 = vadd.f32 %v13449_v60, %v13448_v2  ;;  %v13451_v30 = vpop.f32.mrb[102].mxu0 }
 0x770   : > { %v13452_v20 = vpop.f32.mrb[103].mxu0 }
 0x771   : > { %11527 = vst [vmem:[#allocation7 + $0x18] sm:$0xff] %v11495_v63  ;;  %v11221_v19 = vadd.f32 %v13450_v51, %v18070_v47  ;;  %v13453_v10 = vadd.f32 %v13452_v20, %v13451_v30 }
 0x773   : > { %v18183_v3 = vadd.f32 %v17842_v23, %v11221_v19  ;;  %v11224_v28 = vadd.f32 %v13453_v10, %v18073_v9 }
 0x775   : > { %v11496_v8 = vmax.f32 %v18183_v3, 0.0  ;;  %v18188_v54 = vadd.f32 %v17848_v39, %v11224_v28  ;;  %v13454_v29 = vpop.f32.mrb[104].mxu0 }
 0x776   : > { %v13455_v46 = vpop.f32.mrb[105].mxu0 }
 0x777   : > { %11528 = vst [vmem:[#allocation7 + $0x20] sm:$0xff] %v11496_v8  ;;  %v11497_v59 = vmax.f32 %v18188_v54, 0.0  ;;  %v13456_v37 = vadd.f32 %v13455_v46, %v13454_v29  ;;  %v13457_v47 = vpop.f32.mrb[106].mxu0 }
 0x778   : > { %v13458_v53 = vpop.f32.mrb[107].mxu0 }
 0x779   : > { %11529 = vst [vmem:[#allocation7 + $0x28] sm:$0xff] %v11497_v59  ;;  %v11229_v23 = vadd.f32 %v13456_v37, %v18076_v58  ;;  %v13459_v9 = vadd.f32 %v13458_v53, %v13457_v47 }
 0x77b   : > { %v11390_v5 = vadd.f32 %v17840_v41, %v11229_v23  ;;  %v11232_v39 = vadd.f32 %v13459_v9, %v18079_v7 }
 0x77d   : > { %v11498_v0 = vmax.f32 %v11390_v5, 0.0  ;;  %v11393_v49 = vadd.f32 %v17846_v12, %v11232_v39  ;;  %v13460_v2 = vpop.f32.mrb[108].mxu0  ;;  %v11582_v12 = vld [vmem:[#allocation7 + $0x2] sm:$0xff] }
 0x77e   : > { %v13461_v60 = vpop.f32.mrb[109].mxu0 }
 0x77f   : > { %11530 = vst [vmem:[#allocation7 + $0x30] sm:$0xff] %v11498_v0  ;;  %v11499_v51 = vmax.f32 %v11393_v49, 0.0  ;;  %v13462_v30 = vadd.f32 %v13461_v60, %v13460_v2  ;;  %v13463_v20 = vpop.f32.mrb[110].mxu0  ;;  %v11583_v60 = vld [vmem:[#allocation7 + $0xa] sm:$0xff] }
 0x780   : > { %v13464_v19 = vpop.f32.mrb[111].mxu0 }
 0x781   : > { %11531 = vst [vmem:[#allocation7 + $0x38] sm:$0xff] %v11499_v51  ;;  %v11237_v10 = vadd.f32 %v13462_v30, %v18082_v6  ;;  %v13465_v28 = vadd.f32 %v13464_v19, %v13463_v20  ;;  %v11608_v6 = vmax.f32 %v11492_v18, %v11582_v12  ;;  %v11584_v30 = vld [vmem:[#allocation7 + $0x12] sm:$0xff] }
 0x783   : > { %v11398_v58 = vadd.f32 %v17858_v4, %v11237_v10  ;;  %v11240_v41 = vadd.f32 %v13465_v28, %v18085_v27  ;;  %v11609_v10 = vmax.f32 %v11493_v56, %v11583_v60 }
 0x785   : > { %v11500_v29 = vmax.f32 %v11398_v58, 0.0  ;;  %v11401_v7 = vadd.f32 %v17864_v52, %v11240_v41  ;;  %v13466_v46 = vpop.f32.mrb[112].mxu0  ;;  %v11720_v41 = vld [vmem:[%s18430_s7 + $0x8] sm:$0xff] }
 0x786   : > { %v13467_v37 = vpop.f32.mrb[113].mxu0  ;;  %v11587_v3 = vld [vmem:[#allocation7 + $0x2a] sm:$0xff] }
 0x787   : > { %11532 = vst [vmem:[#allocation7 + $0x40] sm:$0xff] %v11500_v29  ;;  %v11501_v47 = vmax.f32 %v11401_v7, 0.0  ;;  %v13468_v53 = vadd.f32 %v13467_v37, %v13466_v46  ;;  %v13469_v23 = vpop.f32.mrb[114].mxu0 }
 0x788   : > { %v11588_v9 = vld [vmem:[#allocation7 + $0x32] sm:$0xff]  ;;  %v13470_v5 = vpop.f32.mrb[115].mxu0 }
 0x789   : > { %v18205_v39 = vmax.f32 %v11498_v0, %v11588_v9  ;;  %11533 = vst [vmem:[#allocation7 + $0x48] sm:$0xff] %v11501_v47  ;;  %v11245_v4 = vadd.f32 %v13468_v53, %v18088_v16  ;;  %v13471_v27 = vadd.f32 %v13470_v5, %v13469_v23  ;;  %v11719_v16 = vld [vmem:[%s18430_s7] sm:$0xff] }
 0x78b   : > { %v11693_v52 = vmax.f32 %v11608_v6, %v18205_v39  ;;  %v11406_v49 = vadd.f32 %v17856_v25, %v11245_v4  ;;  %v11248_v2 = vadd.f32 %v13471_v27, %v18091_v21  ;;  %v11586_v6 = vld [vmem:[#allocation7 + $0x22] sm:$0xff] }
 0x78d   : > { %v11502_v20 = vmax.f32 %v11406_v49, 0.0  ;;  %v18212_v19 = vadd.f32 %v17860_v1, %v11248_v2  ;;  %v13472_v38 = vpop.f32.mrb[116].mxu0  ;;  %v11610_v1 = vmax.f32 %v11494_v42, %v11584_v30  ;;  %v11745_v37 = vmul.f32 %v11719_v16, %v11693_v52  ;;  %v11585_v42 = vld [vmem:[#allocation7 + $0x1a] sm:$0xff] }
 0x78e   : > { %v11589_v18 = vld [vmem:[#allocation7 + $0x3a] sm:$0xff]  ;;  %v13473_v0 = vpop.f32.mrb[117].mxu0  ;;  %v11611_v52 = vmax.f32 %v11495_v63, %v11585_v42 }
 0x78f   : > { %v18219_v28 = vmax.f32 %v11499_v51, %v11589_v18  ;;  %11534 = vst [vmem:[#allocation7 + $0x50] sm:$0xff] %v11502_v20  ;;  %v11503_v25 = vmax.f32 %v18212_v19, 0.0  ;;  %v13474_v21 = vadd.f32 %v13473_v0, %v13472_v38  ;;  %v13475_v58 = vpop.f32.mrb[118].mxu0  ;;  %v18578_v49 = vld [vmem:[#allocation8_spill] sm:$0xff] }
 0x790   : > { %v11590_v34 = vld [vmem:[#allocation7 + $0x42] sm:$0xff]  ;;  %v13476_v56 = vpop.f32.mrb[119].mxu0 }
 0x791   : > { %v11694_v7 = vmax.f32 %v11609_v10, %v18219_v28  ;;  %v18228_v46 = vmax.f32 %v11500_v29, %v11590_v34  ;;  %11535 = vst [vmem:[#allocation7 + $0x58] sm:$0xff] %v11503_v25  ;;  %v11253_v51 = vadd.f32 %v13474_v21, %v18094_v44  ;;  %v13477_v12 = vadd.f32 %v13476_v56, %v13475_v58  ;;  %v11722_v10 = vld [vmem:[%s18430_s7 + $0x18] sm:$0xff]  ;;  %v18579_v34 = vld [vmem:[#allocation14_spill] sm:$0xff] }
 0x793   : > { %v11746_v53 = vmul.f32 %v11720_v41, %v11694_v7  ;;  %v11695_v23 = vmax.f32 %v11610_v1, %v18228_v46  ;;  %v11414_v9 = vadd.f32 %v17874_v17, %v11253_v51  ;;  %v11256_v5 = vadd.f32 %v13477_v12, %v18097_v45  ;;  %v11723_v1 = vld [vmem:[%s18430_s7 + $0x20] sm:$0xff] }
 0x794   : > { %v11612_v45 = vmax.f32 %v11496_v8, %v11586_v6 }
 0x795   : > { %v11771_v29 = vadd.f32 %v11746_v53, %v11745_v37  ;;  %v11747_v4 = vmul.f32 %v11721_v26, %v11695_v23  ;;  %v11504_v27 = vmax.f32 %v11414_v9, 0.0  ;;  %v11417_v44 = vadd.f32 %v18578_v49, %v11256_v5  ;;  %v13478_v2 = vpop.f32.mrb[120].mxu0  ;;  %v18580_v37 = vld [vmem:[#allocation9_spill] sm:$0xff] }
 0x796   : > { %v11591_v60 = vld [vmem:[#allocation7 + $0x4a] sm:$0xff]  ;;  %v13479_v30 = vpop.f32.mrb[121].mxu0 }
 0x797   : > { %v11772_v19 = vadd.f32 %v11771_v29, %v11747_v4  ;;  %v18240_v38 = vmax.f32 %v11501_v47, %v11591_v60  ;;  %11536 = vst [vmem:[#allocation7 + $0x60] sm:$0xff] %v11504_v27  ;;  %v11505_v18 = vmax.f32 %v11417_v44, 0.0  ;;  %v13480_v17 = vadd.f32 %v13479_v30, %v13478_v2  ;;  %v13481_v0 = vpop.f32.mrb[122].mxu0 }
 0x798   : > { %v11592_v16 = vld [vmem:[#allocation7 + $0x52] sm:$0xff]  ;;  %v13482_v21 = vpop.f32.mrb[123].mxu0 }
 0x799   : > { %v11696_v57 = vmax.f32 %v11611_v52, %v18240_v38  ;;  %v18248_v63 = vmax.f32 %v11502_v20, %v11592_v16  ;;  %11537 = vst [vmem:[#allocation7 + $0x68] sm:$0xff] %v11505_v18  ;;  %v11261_v47 = vadd.f32 %v13480_v17, %v18100_v33  ;;  %v13483_v58 = vadd.f32 %v13482_v21, %v13481_v0  ;;  %v18582_v16 = vld [vmem:[#allocation16_spill] sm:$0xff] }
 0x79a   : > { %v11613_v33 = vmax.f32 %v11497_v59, %v11587_v3 }
 0x79b   : > { %v11748_v8 = vmul.f32 %v11722_v10, %v11696_v57  ;;  %v11697_v41 = vmax.f32 %v11612_v45, %v18248_v63  ;;  %v11422_v56 = vadd.f32 %v18579_v34, %v11261_v47  ;;  %v11264_v7 = vadd.f32 %v13483_v58, %v18103_v11  ;;  %v11724_v11 = vld [vmem:[%s18430_s7 + $0x28] sm:$0xff] }
 0x79d   : > { %v11773_v51 = vadd.f32 %v11772_v19, %v11748_v8  ;;  %v11749_v12 = vmul.f32 %v11723_v1, %v11697_v41  ;;  %v11506_v20 = vmax.f32 %v11422_v56, 0.0  ;;  %v11425_v26 = vadd.f32 %v18580_v37, %v11264_v7  ;;  %v13484_v42 = vpop.f32.mrb[124].mxu0  ;;  %v18581_v19 = vld [vmem:[#allocation15_spill] sm:$0xff] }
 0x79e   : > { %v11593_v53 = vld [vmem:[#allocation7 + $0x5a] sm:$0xff]  ;;  %v13485_v23 = vpop.f32.mrb[125].mxu0 }
 0x79f   : > { %v11774_v9 = vadd.f32 %v11773_v51, %v11749_v12  ;;  %v18260_v5 = vmax.f32 %v11503_v25, %v11593_v53  ;;  %11538 = vst [vmem:[#allocation7 + $0x70] sm:$0xff] %v11506_v20  ;;  %v11507_v6 = vmax.f32 %v11425_v26, 0.0  ;;  %v13486_v29 = vadd.f32 %v13485_v23, %v13484_v42  ;;  %v13487_v4 = vpop.f32.mrb[126].mxu0  ;;  %v11725_v25 = vld [vmem:[%s18430_s7 + $0x30] sm:$0xff]  ;;  %v11727_v12 = vld [vmem:[%s18430_s7 + $0x40] sm:$0xff] }
 0x7a0   : > { %v11594_v49 = vld [vmem:[#allocation7 + $0x62] sm:$0xff]  ;;  %v13488_v44 = vpop.f32.mrb[127].mxu0  ;;  %v18583_v42 = vld [vmem:[#allocation10_spill] sm:$0xff] }
 0x7a1   : > { %v11698_v2 = vmax.f32 %v11613_v33, %v18260_v5  ;;  %v18266_v52 = vmax.f32 %v11504_v27, %v11594_v49  ;;  %11539 = vst [vmem:[#allocation7 + $0x78] sm:$0xff] %v11507_v6  ;;  %v11269_v54 = vadd.f32 %v13486_v29, %v18106_v31  ;;  %v13489_v59 = vadd.f32 %v13488_v44, %v13487_v4 }
 0x7a3   : > { %v11750_v60 = vmul.f32 %v11724_v11, %v11698_v2  ;;  %v11699_v30 = vmax.f32 %v18205_v39, %v18266_v52  ;;  %v11430_v17 = vadd.f32 %v18581_v19, %v11269_v54  ;;  %v11272_v0 = vadd.f32 %v13489_v59, %v18109_v62  ;;  %v11726_v39 = vld [vmem:[%s18430_s7 + $0x38] sm:$0xff] }
 0x7a5   : > { %v11775_v45 = vadd.f32 %v11774_v9, %v11750_v60  ;;  %v11751_v10 = vmul.f32 %v11725_v25, %v11699_v30  ;;  %v11508_v27 = vmax.f32 %v11430_v17, 0.0  ;;  %v11433_v21 = vadd.f32 %v18582_v16, %v11272_v0  ;;  %v13490_v57 = vpop.f32.mrb[128].mxu0  ;;  %v18584_v9 = vld [vmem:[#allocation11_spill] sm:$0xff] }
 0x7a6   : > { %v11595_v31 = vld [vmem:[#allocation7 + $0x6a] sm:$0xff]  ;;  %v13491_v47 = vpop.f32.mrb[129].mxu0  ;;  %v11729_v17 = vld [vmem:[%s18430_s7 + $0x50] sm:$0xff] }
 0x7a7   : > { %v11776_v58 = vadd.f32 %v11775_v45, %v11751_v10  ;;  %v18277_v1 = vmax.f32 %v11505_v18, %v11595_v31  ;;  %11540 = vst [vmem:[#allocation7 + $0x80] sm:$0xff] %v11508_v27  ;;  %v11509_v3 = vmax.f32 %v11433_v21, 0.0  ;;  %v13492_v8 = vadd.f32 %v13491_v47, %v13490_v57  ;;  %v13493_v41 = vpop.f32.mrb[130].mxu0  ;;  %v18585_v10 = vld [vmem:[#allocation18_spill] sm:$0xff]  ;;  %v18586_v31 = vld [vmem:[#allocation21_spill] sm:$0xff] }
 0x7a8   : > { %v11596_v62 = vld [vmem:[#allocation7 + $0x72] sm:$0xff]  ;;  %v13494_v34 = vpop.f32.mrb[131].mxu0 }
 0x7a9   : > { %v11700_v56 = vmax.f32 %v18219_v28, %v18277_v1  ;;  %v18284_v7 = vmax.f32 %v11506_v20, %v11596_v62  ;;  %11541 = vst [vmem:[#allocation7 + $0x88] sm:$0xff] %v11509_v3  ;;  %v11277_v51 = vadd.f32 %v13492_v8, %v18112_v32  ;;  %v13495_v18 = vadd.f32 %v13494_v34, %v13493_v41 }
 0x7ab   : > { %v11752_v37 = vmul.f32 %v11726_v39, %v11700_v56  ;;  %v11701_v26 = vmax.f32 %v18228_v46, %v18284_v7  ;;  %v11438_v33 = vadd.f32 %v18583_v42, %v11277_v51  ;;  %v11280_v53 = vadd.f32 %v13495_v18, %v18115_v43  ;;  %v11728_v46 = vld [vmem:[%s18430_s7 + $0x48] sm:$0xff] }
 0x7ad   : > { %v11777_v23 = vadd.f32 %v11776_v58, %v11752_v37  ;;  %v11753_v28 = vmul.f32 %v11727_v12, %v11701_v26  ;;  %v11510_v20 = vmax.f32 %v11438_v33, 0.0  ;;  %v11441_v29 = vadd.f32 %v18584_v9, %v11280_v53  ;;  %v13496_v4 = vpop.f32.mrb[132].mxu0  ;;  %v11731_v26 = vld [vmem:[%s18430_s7 + $0x60] sm:$0xff] }
 0x7ae   : > { %v11597_v32 = vld [vmem:[#allocation7 + $0x7a] sm:$0xff]  ;;  %v13497_v11 = vpop.f32.mrb[133].mxu0  ;;  %v18587_v53 = vld [vmem:[#allocation17_spill] sm:$0xff] }
 0x7af   : > { %v11778_v49 = vadd.f32 %v11777_v23, %v11753_v28  ;;  %v18295_v44 = vmax.f32 %v11507_v6, %v11597_v32  ;;  %11542 = vst [vmem:[#allocation7 + $0x90] sm:$0xff] %v11510_v20  ;;  %v11511_v2 = vmax.f32 %v11441_v29, 0.0  ;;  %v13498_v54 = vadd.f32 %v13497_v11, %v13496_v4  ;;  %v13499_v59 = vpop.f32.mrb[134].mxu0  ;;  %v18588_v29 = vld [vmem:[#allocation19_spill] sm:$0xff] }
 0x7b0   : > { %v11598_v43 = vld [vmem:[#allocation7 + $0x82] sm:$0xff]  ;;  %v13500_v25 = vpop.f32.mrb[135].mxu0 }
 0x7b1   : > { %v11702_v60 = vmax.f32 %v18240_v38, %v18295_v44  ;;  %v18302_v30 = vmax.f32 %v11508_v27, %v11598_v43  ;;  %11543 = vst [vmem:[#allocation7 + $0x98] sm:$0xff] %v11511_v2  ;;  %v11285_v19 = vadd.f32 %v13498_v54, %v18118_v50  ;;  %v13501_v6 = vadd.f32 %v13500_v25, %v13499_v59 }
 0x7b3   : > { %v11754_v0 = vmul.f32 %v11728_v46, %v11702_v60  ;;  %v11703_v45 = vmax.f32 %v18248_v63, %v18302_v30  ;;  %v11446_v16 = vadd.f32 %v18585_v10, %v11285_v19  ;;  %v11288_v21 = vadd.f32 %v13501_v6, %v18121_v14  ;;  %v11730_v63 = vld [vmem:[%s18430_s7 + $0x58] sm:$0xff]  ;;  %v18589_v10 = vld [vmem:[#allocation23_spill] sm:$0xff] }
 0x7b5   : > { %v11779_v57 = vadd.f32 %v11778_v49, %v11754_v0  ;;  %v11755_v38 = vmul.f32 %v11729_v17, %v11703_v45  ;;  %v11512_v27 = vmax.f32 %v11446_v16, 0.0  ;;  %v11449_v47 = vadd.f32 %v18586_v31, %v11288_v21  ;;  %v13502_v58 = vpop.f32.mrb[136].mxu0  ;;  %v11733_v17 = vld [vmem:[%s18430_s7 + $0x70] sm:$0xff] }
 0x7b6   : > { %v11599_v50 = vld [vmem:[#allocation7 + $0x8a] sm:$0xff]  ;;  %v13503_v8 = vpop.f32.mrb[137].mxu0 }
 0x7b7   : > { %v11780_v41 = vadd.f32 %v11779_v57, %v11755_v38  ;;  %v18313_v39 = vmax.f32 %v11509_v3, %v11599_v50  ;;  %11544 = vst [vmem:[#allocation7 + $0xa0] sm:$0xff] %v11512_v27  ;;  %v11513_v62 = vmax.f32 %v11449_v47, 0.0  ;;  %v13504_v34 = vadd.f32 %v13503_v8, %v13502_v58  ;;  %v13505_v56 = vpop.f32.mrb[138].mxu0 }
 0x7b8   : > { %v11600_v14 = vld [vmem:[#allocation7 + $0x92] sm:$0xff]  ;;  %v13506_v51 = vpop.f32.mrb[139].mxu0 }
 0x7b9   : > { %v11704_v18 = vmax.f32 %v18260_v5, %v18313_v39  ;;  %v18320_v12 = vmax.f32 %v11510_v20, %v11600_v14  ;;  %11545 = vst [vmem:[#allocation7 + $0xa8] sm:$0xff] %v11513_v62  ;;  %v11293_v37 = vadd.f32 %v13504_v34, %v18124_v55  ;;  %v13507_v3 = vadd.f32 %v13506_v51, %v13505_v56 }
 0x7bb   : > { %v11756_v42 = vmul.f32 %v11730_v63, %v11704_v18  ;;  %v11705_v33 = vmax.f32 %v18266_v52, %v18320_v12  ;;  %v11454_v23 = vadd.f32 %v18587_v53, %v11293_v37  ;;  %v11296_v28 = vadd.f32 %v13507_v3, %v18127_v22  ;;  %v11732_v52 = vld [vmem:[%s18430_s7 + $0x68] sm:$0xff]  ;;  %v11735_v37 = vld [vmem:[%s18430_s7 + $0x80] sm:$0xff] }
 0x7bd   : > { %v11781_v9 = vadd.f32 %v11780_v41, %v11756_v42  ;;  %v11757_v5 = vmul.f32 %v11731_v26, %v11705_v33  ;;  %v11514_v20 = vmax.f32 %v11454_v23, 0.0  ;;  %v11457_v4 = vadd.f32 %v18588_v29, %v11296_v28  ;;  %v13508_v32 = vpop.f32.mrb[140].mxu0  ;;  %v18591_v42 = vld [vmem:[#allocation22_spill] sm:$0xff] }
 0x7be   : > { %v11601_v55 = vld [vmem:[#allocation7 + $0x9a] sm:$0xff]  ;;  %v13509_v11 = vpop.f32.mrb[141].mxu0 }
 0x7bf   : > { %v11782_v49 = vadd.f32 %v11781_v9, %v11757_v5  ;;  %v18331_v54 = vmax.f32 %v11511_v2, %v11601_v55  ;;  %11546 = vst [vmem:[#allocation7 + $0xb0] sm:$0xff] %v11514_v20  ;;  %v11515_v59 = vmax.f32 %v11457_v4, 0.0  ;;  %v13510_v46 = vadd.f32 %v13509_v11, %v13508_v32  ;;  %v13511_v43 = vpop.f32.mrb[142].mxu0  ;;  %v18592_v9 = vld [vmem:[#allocation24_spill] sm:$0xff] }
 0x7c0   : > { %v11602_v22 = vld [vmem:[#allocation7 + $0xa2] sm:$0xff]  ;;  %v13512_v25 = vpop.f32.mrb[143].mxu0 }
 0x7c1   : > { %v11706_v60 = vmax.f32 %v18277_v1, %v18331_v54  ;;  %v18338_v19 = vmax.f32 %v11512_v27, %v11602_v22  ;;  %11547 = vst [vmem:[#allocation7 + $0xb8] sm:$0xff] %v11515_v59  ;;  %v11301_v6 = vadd.f32 %v13510_v46, %v18130_v61  ;;  %v13513_v2 = vadd.f32 %v13512_v25, %v13511_v43  ;;  %v18590_v27 = vld [vmem:[#allocation20_spill] sm:$0xff] }
 0x7c3   : > { %v11758_v0 = vmul.f32 %v11732_v52, %v11706_v60  ;;  %v11707_v45 = vmax.f32 %v18284_v7, %v18338_v19  ;;  %v11462_v16 = vadd.f32 %v18589_v10, %v11301_v6  ;;  %v11304_v21 = vadd.f32 %v13513_v2, %v18133_v36  ;;  %v11734_v7 = vld [vmem:[%s18430_s7 + $0x78] sm:$0xff] }
 0x7c4   : > { %v18593_v2 = vld [vmem:[#allocation12_spill] sm:$0xff] }
 0x7c5   : > { %v11783_v57 = vadd.f32 %v11782_v49, %v11758_v0  ;;  %v11759_v1 = vmul.f32 %v11733_v17, %v11707_v45  ;;  %v11516_v38 = vmax.f32 %v11462_v16, 0.0  ;;  %v11465_v31 = vadd.f32 %v18590_v27, %v11304_v21  ;;  %v13514_v47 = vpop.f32.mrb[144].mxu0 }
 0x7c6   : > { %v11603_v61 = vld [vmem:[#allocation7 + $0xaa] sm:$0xff]  ;;  %v13515_v58 = vpop.f32.mrb[145].mxu0 }
 0x7c7   : > { %v11784_v50 = vadd.f32 %v11783_v57, %v11759_v1  ;;  %v18349_v8 = vmax.f32 %v11513_v62, %v11603_v61  ;;  %11548 = vst [vmem:[#allocation7 + $0xc0] sm:$0xff] %v11516_v38  ;;  %v11517_v41 = vmax.f32 %v11465_v31, 0.0  ;;  %v13516_v34 = vadd.f32 %v13515_v58, %v13514_v47  ;;  %v13517_v56 = vpop.f32.mrb[146].mxu0  ;;  %v18594_v57 = vld [vmem:[#allocation26_spill] sm:$0xff] }
 0x7c8   : > { %v11604_v36 = vld [vmem:[#allocation7 + $0xb2] sm:$0xff]  ;;  %v13518_v63 = vpop.f32.mrb[147].mxu0 }
 0x7c9   : > { %v11708_v14 = vmax.f32 %v18295_v44, %v18349_v8  ;;  %v18356_v51 = vmax.f32 %v11514_v20, %v11604_v36  ;;  %11549 = vst [vmem:[#allocation7 + $0xc8] sm:$0xff] %v11517_v41  ;;  %v11309_v18 = vadd.f32 %v13516_v34, %v18136_v35  ;;  %v13519_v62 = vadd.f32 %v13518_v63, %v13517_v56 }
 0x7cb   : > { %v11760_v3 = vmul.f32 %v11734_v7, %v11708_v14  ;;  %v11709_v26 = vmax.f32 %v18302_v30, %v18356_v51  ;;  %v11470_v33 = vadd.f32 %v18591_v42, %v11309_v18  ;;  %v11312_v53 = vadd.f32 %v13519_v62, %v18139_v24  ;;  %v11736_v30 = vld [vmem:[%s18430_s7 + $0x88] sm:$0xff]  ;;  %v18595_v14 = vld [vmem:[#allocation13_spill] sm:$0xff] }
 0x7cd   : > { %v11785_v23 = vadd.f32 %v11784_v50, %v11760_v3  ;;  %v11761_v44 = vmul.f32 %v11735_v37, %v11709_v26  ;;  %v11518_v28 = vmax.f32 %v11470_v33, 0.0  ;;  %v11473_v5 = vadd.f32 %v18592_v9, %v11312_v53  ;;  %v13520_v20 = vpop.f32.mrb[148].mxu0 }
 0x7ce   : > { %v11605_v35 = vld [vmem:[#allocation7 + $0xba] sm:$0xff]  ;;  %v13521_v29 = vpop.f32.mrb[149].mxu0 }
 0x7cf   : > { %v11786_v4 = vadd.f32 %v11785_v23, %v11761_v44  ;;  %v18367_v32 = vmax.f32 %v11515_v59, %v11605_v35  ;;  %11550 = vst [vmem:[#allocation7 + $0xd0] sm:$0xff] %v11518_v28  ;;  %v11519_v55 = vmax.f32 %v11473_v5, 0.0  ;;  %v13522_v11 = vadd.f32 %v13521_v29, %v13520_v20  ;;  %v13523_v49 = vpop.f32.mrb[150].mxu0  ;;  %v11737_v59 = vld [vmem:[%s18430_s7 + $0x90] sm:$0xff]  ;;  %v11740_v44 = vld [vmem:[%s18430_s7 + $0xa8] sm:$0xff] }
 0x7d0   : > { %v11606_v24 = vld [vmem:[#allocation7 + $0xc2] sm:$0xff]  ;;  %v13524_v46 = vpop.f32.mrb[151].mxu0 }
 0x7d1   : > { %v11710_v43 = vmax.f32 %v18313_v39, %v18367_v32  ;;  %v18374_v52 = vmax.f32 %v11516_v38, %v11606_v24  ;;  %11551 = vst [vmem:[#allocation7 + $0xd8] sm:$0xff] %v11519_v55  ;;  %v11317_v22 = vadd.f32 %v13522_v11, %v18142_v48  ;;  %v13525_v25 = vadd.f32 %v13524_v46, %v13523_v49  ;;  %v11741_v5 = vld [vmem:[%s18430_s7 + $0xb0] sm:$0xff]  ;;  %v11581_v29 = vld [vmem:[#allocation7 + $0xc8] sm:$0x1] }
 0x7d3   : > { %v11762_v60 = vmul.f32 %v11736_v30, %v11710_v43  ;;  %v11711_v6 = vmax.f32 %v18320_v12, %v18374_v52  ;;  %v11478_v17 = vadd.f32 %v18593_v2, %v11317_v22  ;;  %v11320_v0 = vadd.f32 %v13525_v25, %v18145_v40  ;;  %v11738_v12 = vld [vmem:[%s18430_s7 + $0x98] sm:$0xff] }
 0x7d5   : > { %v11787_v45 = vadd.f32 %v11786_v4, %v11762_v60  ;;  %v11763_v39 = vmul.f32 %v11737_v59, %v11711_v6  ;;  %v11520_v10 = vmax.f32 %v11478_v17, 0.0  ;;  %v13526_v16 = vpop.f32.mrb[152].mxu0  ;;  %v11481_v48 = vadd.f32 %v18594_v57, %v11320_v0  ;;  %v11607_v4 = vld [vmem:[#allocation7 + $0xca] sm:$0x1]  ;;  %v11744_v6 = vld [vmem:[%s18430_s7 + $0xc8] sm:$0x1] }
 0x7d6   : > { %v11660_v21 = vld [vmem:[#allocation7 + $0xca] sm:$0xff]  ;;  %v13527_v1 = vpop.f32.mrb[153].mxu0  ;;  %v11633_v22 = vmax.f32 %v11581_v29, %v11607_v4 }
 0x7d7   : > { %v11788_v38 = vadd.f32 %v11787_v45, %v11763_v39  ;;  %v11686_v27 = vmax.f32 %v11517_v41, %v11660_v21  ;;  %11552 = vst [vmem:[#allocation7 + $0xe0] sm:$0xff] %v11520_v10  ;;  %v13528_v31 = vadd.f32 %v13527_v1, %v13526_v16  ;;  %v13529_v47 = vpop.f32.mrb[154].mxu0  ;;  %v11521_v58 = vmax.f32 %v11481_v48, 0.0  ;;  %v11739_v41 = vld [vmem:[%s18430_s7 + $0xa0] sm:$0xff] }
 0x7d8   : > { %v11661_v61 = vld [vmem:[#allocation7 + $0xd2] sm:$0xff]  ;;  %v13530_v40 = vpop.f32.mrb[155].mxu0 }
 0x7d9   : > { %v11712_v50 = vmax.f32 %v18331_v54, %v11686_v27  ;;  %v11687_v34 = vmax.f32 %v11518_v28, %v11661_v61  ;;  %v11325_v56 = vadd.f32 %v13528_v31, %v18148_v13  ;;  %v13531_v7 = vadd.f32 %v13530_v40, %v13529_v47  ;;  %11553 = vst [vmem:[#allocation7 + $0xe8] sm:$0xff] %v11521_v58  ;;  %v18596_v54 = vld [vmem:[#allocation25_spill] sm:$0xff] }
 0x7db   : > { %v11764_v36 = vmul.f32 %v11738_v12, %v11712_v50  ;;  %v11713_v63 = vmax.f32 %v18338_v19, %v11687_v34  ;;  %v11486_v18 = vadd.f32 %v18595_v14, %v11325_v56  ;;  %v11328_v62 = vadd.f32 %v13531_v7, %v18151_v15 }
 0x7dd   : > { %v11789_v37 = vadd.f32 %v11788_v38, %v11764_v36  ;;  %v11765_v3 = vmul.f32 %v11739_v41, %v11713_v63  ;;  %v11522_v26 = vmax.f32 %v11486_v18, 0.0  ;;  %v11489_v42 = vadd.f32 %v18596_v54, %v11328_v62 }
 0x7de   : > { %v11662_v33 = vld [vmem:[#allocation7 + $0xda] sm:$0xff] }
 0x7df   : > { %v11790_v13 = vadd.f32 %v11789_v37, %v11765_v3  ;;  %v11688_v53 = vmax.f32 %v11519_v55, %v11662_v33  ;;  %11554 = vst [vmem:[#allocation7 + $0xf0] sm:$0xff] %v11522_v26  ;;  %v11523_v23 = vmax.f32 %v11489_v42, 0.0 }
 0x7e0   : > { %v11663_v28 = vld [vmem:[#allocation7 + $0xe2] sm:$0xff] }
 0x7e1   : > { %v11714_v19 = vmax.f32 %v18349_v8, %v11688_v53  ;;  %11555 = vst [vmem:[#allocation7 + $0xf8] sm:$0x7] %v11523_v23  ;;  %v11689_v9 = vmax.f32 %v11520_v10, %v11663_v28  ;;  %v11742_v8 = vld [vmem:[%s18430_s7 + $0xb8] sm:$0xff] }
 0x7e3   : > { %v11766_v15 = vmul.f32 %v11740_v44, %v11714_v19  ;;  %v11715_v20 = vmax.f32 %v18356_v51, %v11689_v9  ;;  %v11743_v51 = vld [vmem:[%s18430_s7 + $0xc0] sm:$0xff] }
 0x7e5   : > { %v11791_v35 = vadd.f32 %v11790_v13, %v11766_v15  ;;  %v11767_v55 = vmul.f32 %v11741_v5, %v11715_v20 }
 0x7e6   : > { %v11664_v11 = vld [vmem:[#allocation7 + $0xea] sm:$0xff] }
 0x7e7   : > { %v11690_v49 = vmax.f32 %v11521_v58, %v11664_v11  ;;  %v11792_v30 = vadd.f32 %v11791_v35, %v11767_v55 }
 0x7e8   : > { %v11640_v24 = vld [vmem:[#allocation7 + $0xf8] sm:$0x1]  ;;  %v11666_v43 = vld [vmem:[#allocation7 + $0xfa] sm:$0x1] }
 0x7e9   : > { %v11665_v46 = vld [vmem:[#allocation7 + $0xf2] sm:$0xff]  ;;  %v11716_v59 = vmax.f32 %v18367_v32, %v11690_v49  ;;  %v11692_v60 = vmax.f32 %v11640_v24, %v11666_v43 }
 0x7ea   : > { %v11691_v25 = vmax.f32 %v11522_v26, %v11665_v46 }
 0x7eb   : > { %v11768_v2 = vmul.f32 %v11742_v8, %v11716_v59  ;;  %v11718_v0 = vmax.f32 %v11633_v22, %v11692_v60 }
 0x7ec   : > { %v11717_v17 = vmax.f32 %v18374_v52, %v11691_v25 }
 0x7ed   : > { %v11793_v45 = vadd.f32 %v11792_v30, %v11768_v2  ;;  %v11770_v10 = vmul.f32 %v11744_v6, %v11718_v0 }
 0x7ee   : > { %v11769_v39 = vmul.f32 %v11743_v51, %v11717_v17 }
 0x7ef   : > { %v11796_v16 = vsel %vm11795_vm13, %v11770_v10, 0.0 }
 0x7f0   : > { %v11794_v32 = vadd.f32 %v11793_v45, %v11769_v39 }
 0x7f2   : > { %v11797_v21 = vadd.f32 %v11796_v16, %v11794_v32 }
 0x7f4   : > { %v11798_v57 = vrot.slane %v11797_v21, 4 }
 0x7f6   : > { %v11799_v48 = vadd.f32 %v11798_v57, %v11797_v21 }
 0x7f8   : > { %v11800_v1 = vrot.slane %v11799_v48, 2 }
 0x7fa   : > { %v11801_v38 = vadd.f32 %v11800_v1, %v11799_v48 }
 0x7fc   : > { %v11802_v27 = vrot.slane %v11801_v38, 1 }
 0x7fe   : > { %v11803_v31 = vadd.f32 %v11802_v27, %v11801_v38 }
 0x800   : > { %11804 = vst [vmem:[%s301_s22] sm:$0x1] %v11803_v31 }
 0x801 PF: > { %s18_s27 = sadd.s32 1, %s14861_s27  }
 0x802   : > { %p15_p4 = scmp.ge.s32.totalorder %s18_s27, 4  }
 0x804   :  { %17 = sbr.rel (!%p15_p4) target bundleno = 1 (0x1), region = 82 }

</bundles_post_ra>
